<compile_context>
chip_gen: v6e
topology: v6e:2x2x1
jax: 0.10.0
libtpu: 0.0.40
codegen_flags: <defaults>
</compile_context>

<pallas_src>
import jax
import jax.numpy as jnp
from jax.experimental import pallas as pl
from jax.experimental.pallas import tpu as pltpu


def _elu(y):
    # exp only sees the clamped-negative half -> no inf in the untaken branch
    return jnp.where(y > 0.0, y, jnp.exp(jnp.minimum(y, 0.0)) - 1.0)


def _concat_elu(v):
    # torch: F.elu(cat([x, -x], channel)); channel == last dim (NHWC)
    return jnp.concatenate([_elu(v), _elu(-v)], axis=-1)


def make_pixelcnn_layer_down(N, H, W, F, nr_resnet, NB=2):
    """Fused PixelCNNLayer_down.forward -> apply(u, ul, u_list, ul_list, packed)."""
    assert N % NB == 0
    BT = N // NB                        # batch tiles = leading (parallel) grid axis
    M = NB * H * W                      # matmul rows per grid step
    CE = 2 * F                          # channels after concat_elu
    KU1 = 6 * CE + 2 * F                # u-stream: 2x3 taps + nin(a: F ch)
    KU2 = 6 * CE                        # u-stream conv_out
    KL1 = 4 * CE + 4 * F                # ul-stream: 2x2 taps + nin(a: 2F ch)
    KL2 = 4 * CE                        # ul-stream conv_out

    def kernel(u_in_ref, ul_in_ref, au_ref, aul_ref,
               w1u_ref, b1u_ref, w2u_ref, b2u_ref,
               w1l_ref, b1l_ref, w2l_ref, b2l_ref,
               u_out_ref, ul_out_ref,
               scr_u_ref, scr_l_ref):
        r = pl.program_id(1)

        @pl.when(r == 0)
        def _():
            # carry u/ul in the resident output blocks across the serial
            # resnet axis; zero the causal-pad scratch ONCE per batch tile
            # (the border is never overwritten, the interior always is).
            u_out_ref[...] = u_in_ref[...]
            ul_out_ref[...] = ul_in_ref[...]
            scr_u_ref[...] = jnp.zeros_like(scr_u_ref)
            scr_l_ref[...] = jnp.zeros_like(scr_l_ref)

        def shifted_conv_cols(v, scr_ref, kh, kw, pad_left):
            # "down(_right)_shifted" causal conv as im2col: store concat_elu(v)
            # into the zero-bordered scratch interior, read the kh*kw shifted
            # windows back as lane-concatenable column blocks.
            scr_ref[:, kh - 1:, pad_left:pad_left + W, :] = _concat_elu(v)
            return [scr_ref[:, dy:dy + H, dx:dx + W, :]
                    for dy in range(kh) for dx in range(kw)]

        def gated_resnet(og, a, scr_ref, w1, b1, w2, b2, kh, kw, pad_left):
            # x = conv_in(concat_elu(og)) + nin(concat_elu(a))   -- ONE matmul
            cols = shifted_conv_cols(og, scr_ref, kh, kw, pad_left)
            cols.append(_concat_elu(a))
            col1 = jnp.concatenate(cols, axis=-1).reshape(M, -1)
            x = jnp.dot(col1.astype(jnp.bfloat16), w1,
                        preferred_element_type=jnp.float32) + b1
            x = x.reshape(NB, H, W, F)
            # dropout(p=0.5) -> eval-mode identity
            # x2 = conv_out(concat_elu(x))                       -- ONE matmul
            col2 = jnp.concatenate(
                shifted_conv_cols(x, scr_ref, kh, kw, pad_left),
                axis=-1).reshape(M, -1)
            x2 = jnp.dot(col2.astype(jnp.bfloat16), w2,
                         preferred_element_type=jnp.float32) + b2
            x2 = x2.reshape(NB, H, W, 2 * F)
            # a, b = chunk(x2, 2, channel); og + a * sigmoid(b)
            return og + x2[..., :F] * jax.nn.sigmoid(x2[..., F:])

        u = u_out_ref[...]
        ul = ul_out_ref[...]

        # u-stream: down_shifted_conv2d (2x3, pad top=1,left=1,right=1)
        u_new = gated_resnet(u, au_ref[...], scr_u_ref,
                             w1u_ref[0], b1u_ref[0], w2u_ref[0], b2u_ref[0],
                             kh=2, kw=3, pad_left=1)
        # ul-stream: a = cat(u, ul_skip); down_right_shifted_conv2d (2x2)
        a_ul = jnp.concatenate([u_new, aul_ref[...]], axis=-1)
        ul_new = gated_resnet(ul, a_ul, scr_l_ref,
                              w1l_ref[0], b1l_ref[0], w2l_ref[0], b2l_ref[0],
                              kh=2, kw=2, pad_left=1)

        u_out_ref[...] = u_new.astype(u_out_ref.dtype)
        ul_out_ref[...] = ul_new.astype(ul_out_ref.dtype)

    act_spec = pl.BlockSpec((NB, H, W, F), lambda b, r: (b, 0, 0, 0))
    skip_spec = pl.BlockSpec((NB, H, W, F), lambda b, r: (r * BT + b, 0, 0, 0))

    def wspec(k, cout):
        return pl.BlockSpec((1, k, cout), lambda b, r: (r, 0, 0))

    def bspec(cout):
        return pl.BlockSpec((1, 1, cout), lambda b, r: (r, 0, 0))

    grid_spec = pltpu.PrefetchScalarGridSpec(
        num_scalar_prefetch=0,
        grid=(BT, nr_resnet),                      # serial resnet axis last
        in_specs=[
            act_spec, act_spec,                    # u, ul (only read at r==0)
            skip_spec, skip_spec,                  # stacked u_list / ul_list skips
            wspec(KU1, F), bspec(F), wspec(KU2, 2 * F), bspec(2 * F),   # u-stream
            wspec(KL1, F), bspec(F), wspec(KL2, 2 * F), bspec(2 * F),   # ul-stream
        ],
        out_specs=[act_spec, act_spec],
        scratch_shapes=[
            pltpu.VMEM((NB, H + 1, W + 2, CE), jnp.float32),   # 2x3 causal pad
            pltpu.VMEM((NB, H + 1, W + 1, CE), jnp.float32),   # 2x2 causal pad
        ],
    )

    call = pl.pallas_call(
        kernel,
        out_shape=(jax.ShapeDtypeStruct((N, H, W, F), jnp.float32),
                   jax.ShapeDtypeStruct((N, H, W, F), jnp.float32)),
        grid_spec=grid_spec,
        compiler_params=pltpu.CompilerParams(
            dimension_semantics=("parallel", "arbitrary")),
    )

    def apply(u, ul, u_list, ul_list, packed):
        assert len(packed) == 8
        # skips consumed in pop() order: iteration r uses list[-(r+1)]
        au = jnp.concatenate([u_list[-(r + 1)] for r in range(nr_resnet)], 0)
        aul = jnp.concatenate([ul_list[-(r + 1)] for r in range(nr_resnet)], 0)
        return call(u, ul, au, aul, *packed)

    return apply


def init_params(key, nr_resnet, F):
    """Deterministic synthetic params (weight_norm folded into plain weights)."""
    params_u, params_ul = [], []
    for _ in range(nr_resnet):
        key, *ks = jax.random.split(key, 7)
        params_u.append(dict(
            w_in=0.05 * jax.random.normal(ks[0], (2, 3, 2 * F, F), jnp.float32),
            b_in=0.05 * jax.random.normal(ks[1], (1, F), jnp.float32),
            w_nin=0.05 * jax.random.normal(ks[2], (2 * F, F), jnp.float32),
            b_nin=0.05 * jax.random.normal(ks[3], (1, F), jnp.float32),
            w_out=0.05 * jax.random.normal(ks[4], (2, 3, 2 * F, 2 * F), jnp.float32),
            b_out=0.05 * jax.random.normal(ks[5], (1, 2 * F), jnp.float32),
        ))
        key, *ks = jax.random.split(key, 7)
        params_ul.append(dict(
            w_in=0.05 * jax.random.normal(ks[0], (2, 2, 2 * F, F), jnp.float32),
            b_in=0.05 * jax.random.normal(ks[1], (1, F), jnp.float32),
            w_nin=0.05 * jax.random.normal(ks[2], (4 * F, F), jnp.float32),
            b_nin=0.05 * jax.random.normal(ks[3], (1, F), jnp.float32),
            w_out=0.05 * jax.random.normal(ks[4], (2, 2, 2 * F, 2 * F), jnp.float32),
            b_out=0.05 * jax.random.normal(ks[5], (1, 2 * F), jnp.float32),
        ))
    return params_u, params_ul


def pack_params(params_u, params_ul, F):
    """Stack per-iteration weights along a leading resnet axis and fold them
    into im2col matrices: rows = [tap(0,0) 2F ch, ..., tap(kh-1,kw-1), nin 2Fa].
    Matmul weights are shipped as bf16, biases stay f32."""
    def pack_stream(plist):
        w1s, b1s, w2s, b2s = [], [], [], []
        for p in plist:
            kh, kw, ci, _ = p['w_in'].shape
            w1s.append(jnp.concatenate(
                [p['w_in'].reshape(kh * kw * ci, F), p['w_nin']], axis=0))
            b1s.append((p['b_in'] + p['b_nin']).reshape(1, F))
            w2s.append(p['w_out'].reshape(kh * kw * ci, 2 * F))
            b2s.append(p['b_out'].reshape(1, 2 * F))
        return [jnp.stack(w1s).astype(jnp.bfloat16), jnp.stack(b1s),
                jnp.stack(w2s).astype(jnp.bfloat16), jnp.stack(b2s)]
    return pack_stream(params_u) + pack_stream(params_ul)


# ---------------- plain-JAX reference (numerical verification) ---------------

def _ref_shifted_conv(x, w, b, pad_left):
    kh, kw = w.shape[0], w.shape[1]
    xp = jnp.pad(x, ((0, 0), (kh - 1, 0), (pad_left, kw - 1 - pad_left), (0, 0)))
    y = jax.lax.conv_general_dilated(
        xp.astype(jnp.bfloat16), w.astype(jnp.bfloat16), (1, 1), 'VALID',
        dimension_numbers=('NHWC', 'HWIO', 'NHWC'),
        preferred_element_type=jnp.float32)
    return y + b.reshape(1, 1, 1, -1)


def _ref_gated_resnet(og, a, p, pad_left):
    x = _ref_shifted_conv(_concat_elu(og), p['w_in'], p['b_in'], pad_left)
    x = x + jnp.einsum('nhwc,cf->nhwf',
                       _concat_elu(a).astype(jnp.bfloat16),
                       p['w_nin'].astype(jnp.bfloat16),
                       preferred_element_type=jnp.float32) \
          + p['b_nin'].reshape(1, 1, 1, -1)
    x = _concat_elu(x)
    x2 = _ref_shifted_conv(x, p['w_out'], p['b_out'], pad_left)
    Fc = og.shape[-1]
    return og + x2[..., :Fc] * jax.nn.sigmoid(x2[..., Fc:])


def _ref_layer_down(u, ul, u_list, ul_list, params_u, params_ul):
    u_list, ul_list = list(u_list), list(ul_list)
    for pu, pul in zip(params_u, params_ul):
        u = _ref_gated_resnet(u, u_list.pop(), pu, pad_left=1)
        ul = _ref_gated_resnet(ul, jnp.concatenate([u, ul_list.pop()], -1),
                               pul, pad_left=1)
    return u, ul


if __name__ == "__main__":
    N, H, W, F = 4, 8, 8, 32       # NHWC; F == nr_filters
    nr_resnet = 2
    NB = 2                          # images per grid step -> M = 128

    key = jax.random.PRNGKey(0)
    k0, k1, k2, k3, kp = jax.random.split(key, 5)
    u = jax.random.normal(k0, (N, H, W, F), jnp.float32)
    ul = jax.random.normal(k1, (N, H, W, F), jnp.float32)
    u_list = [jax.random.normal(jax.random.fold_in(k2, i), (N, H, W, F), jnp.float32)
              for i in range(nr_resnet)]
    ul_list = [jax.random.normal(jax.random.fold_in(k3, i), (N, H, W, F), jnp.float32)
               for i in range(nr_resnet)]
    params_u, params_ul = init_params(kp, nr_resnet, F)

    layer = jax.jit(make_pixelcnn_layer_down(N, H, W, F, nr_resnet, NB=NB))
    packed = pack_params(params_u, params_ul, F)

    u_out, ul_out = layer(u, ul, u_list, ul_list, packed)
    u_out = jax.block_until_ready(u_out)
    ul_out = jax.block_until_ready(ul_out)

    ru, rul = _ref_layer_down(u, ul, u_list, ul_list, params_u, params_ul)
    ru = jax.block_until_ready(ru)
    rul = jax.block_until_ready(rul)

    assert jnp.allclose(u_out, ru, atol=1e-2, rtol=1e-2), \
        float(jnp.max(jnp.abs(u_out - ru)))
    assert jnp.allclose(ul_out, rul, atol=1e-2, rtol=1e-2), \
        float(jnp.max(jnp.abs(ul_out - rul)))

    print("KERNEL_OK")
</pallas_src>

<mosaic_0001>
module attributes {stable_mosaic.version = 11 : i64} {
  func.func @kernel(%arg0: i32, %arg1: i32, %arg2: memref<2x8x8x32xf32, #tpu.memory_space<vmem>>, %arg3: memref<2x8x8x32xf32, #tpu.memory_space<vmem>>, %arg4: memref<2x8x8x32xf32, #tpu.memory_space<vmem>>, %arg5: memref<2x8x8x32xf32, #tpu.memory_space<vmem>>, %arg6: memref<1x448x32xbf16, #tpu.memory_space<vmem>>, %arg7: memref<1x1x32xf32, #tpu.memory_space<vmem>>, %arg8: memref<1x384x64xbf16, #tpu.memory_space<vmem>>, %arg9: memref<1x1x64xf32, #tpu.memory_space<vmem>>, %arg10: memref<1x384x32xbf16, #tpu.memory_space<vmem>>, %arg11: memref<1x1x32xf32, #tpu.memory_space<vmem>>, %arg12: memref<1x256x64xbf16, #tpu.memory_space<vmem>>, %arg13: memref<1x1x64xf32, #tpu.memory_space<vmem>>, %arg14: memref<2x8x8x32xf32, #tpu.memory_space<vmem>>, %arg15: memref<2x8x8x32xf32, #tpu.memory_space<vmem>>, %arg16: memref<2x9x10x64xf32, #tpu.memory_space<vmem>>, %arg17: memref<2x9x9x64xf32, #tpu.memory_space<vmem>>) attributes {dimension_semantics = [#tpu.dimension_semantics<parallel>, #tpu.dimension_semantics<arbitrary>], iteration_bounds = array<i64: 2, 2>, scalar_prefetch = 0 : i64, scratch_operands = 2 : i64, tpu.core_type = #tpu.core_type<tc>, window_params = [{transform_indices = @transform_0, window_bounds = array<i64: 2, 8, 8, 32>}, {transform_indices = @transform_1, window_bounds = array<i64: 2, 8, 8, 32>}, {transform_indices = @transform_2, window_bounds = array<i64: 2, 8, 8, 32>}, {transform_indices = @transform_3, window_bounds = array<i64: 2, 8, 8, 32>}, {transform_indices = @transform_4, window_bounds = array<i64: 1, 448, 32>}, {transform_indices = @transform_5, window_bounds = array<i64: 1, 1, 32>}, {transform_indices = @transform_6, window_bounds = array<i64: 1, 384, 64>}, {transform_indices = @transform_7, window_bounds = array<i64: 1, 1, 64>}, {transform_indices = @transform_8, window_bounds = array<i64: 1, 384, 32>}, {transform_indices = @transform_9, window_bounds = array<i64: 1, 1, 32>}, {transform_indices = @transform_10, window_bounds = array<i64: 1, 256, 64>}, {transform_indices = @transform_11, window_bounds = array<i64: 1, 1, 64>}, {transform_indices = @transform_12, window_bounds = array<i64: 2, 8, 8, 32>}, {transform_indices = @transform_13, window_bounds = array<i64: 2, 8, 8, 32>}]} {
    %c0_i32 = arith.constant 0 : i32
    %0 = arith.cmpi eq, %arg1, %c0_i32 : i32
    %1 = arith.extui %0 : i1 to i32
    %c0_i32_0 = arith.constant 0 : i32
    %2 = arith.cmpi ne, %1, %c0_i32_0 : i32
    scf.if %2 {
      %c0_189 = arith.constant 0 : index
      %c0_190 = arith.constant 0 : index
      %c0_191 = arith.constant 0 : index
      %c0_192 = arith.constant 0 : index
      %210 = vector.load %arg2[%c0_189, %c0_190, %c0_191, %c0_192] : memref<2x8x8x32xf32, #tpu.memory_space<vmem>>, vector<2x8x8x32xf32>
      %c0_193 = arith.constant 0 : index
      %c0_194 = arith.constant 0 : index
      %c0_195 = arith.constant 0 : index
      %c0_196 = arith.constant 0 : index
      %211 = vector.load %arg14[%c0_193, %c0_194, %c0_195, %c0_196] : memref<2x8x8x32xf32, #tpu.memory_space<vmem>>, vector<2x8x8x32xf32>
      tpu.vector_store %arg14[%c0_193, %c0_194, %c0_195, %c0_196], %210 {strides = array<i32>} : memref<2x8x8x32xf32, #tpu.memory_space<vmem>>, vector<2x8x8x32xf32>,
      %c0_197 = arith.constant 0 : index
      %c0_198 = arith.constant 0 : index
      %c0_199 = arith.constant 0 : index
      %c0_200 = arith.constant 0 : index
      %212 = vector.load %arg3[%c0_197, %c0_198, %c0_199, %c0_200] : memref<2x8x8x32xf32, #tpu.memory_space<vmem>>, vector<2x8x8x32xf32>
      %c0_201 = arith.constant 0 : index
      %c0_202 = arith.constant 0 : index
      %c0_203 = arith.constant 0 : index
      %c0_204 = arith.constant 0 : index
      %213 = vector.load %arg15[%c0_201, %c0_202, %c0_203, %c0_204] : memref<2x8x8x32xf32, #tpu.memory_space<vmem>>, vector<2x8x8x32xf32>
      tpu.vector_store %arg15[%c0_201, %c0_202, %c0_203, %c0_204], %212 {strides = array<i32>} : memref<2x8x8x32xf32, #tpu.memory_space<vmem>>, vector<2x8x8x32xf32>,
      %cst_205 = arith.constant 0.000000e+00 : f32
      %214 = vector.broadcast %cst_205 : f32 to vector<2x9x10x64xf32>
      %c0_206 = arith.constant 0 : index
      %c0_207 = arith.constant 0 : index
      %c0_208 = arith.constant 0 : index
      %c0_209 = arith.constant 0 : index
      %215 = vector.load %arg16[%c0_206, %c0_207, %c0_208, %c0_209] : memref<2x9x10x64xf32, #tpu.memory_space<vmem>>, vector<2x9x10x64xf32>
      tpu.vector_store %arg16[%c0_206, %c0_207, %c0_208, %c0_209], %214 {strides = array<i32>} : memref<2x9x10x64xf32, #tpu.memory_space<vmem>>, vector<2x9x10x64xf32>,
      %cst_210 = arith.constant 0.000000e+00 : f32
      %216 = vector.broadcast %cst_210 : f32 to vector<2x9x9x64xf32>
      %c0_211 = arith.constant 0 : index
      %c0_212 = arith.constant 0 : index
      %c0_213 = arith.constant 0 : index
      %c0_214 = arith.constant 0 : index
      %217 = vector.load %arg17[%c0_211, %c0_212, %c0_213, %c0_214] : memref<2x9x9x64xf32, #tpu.memory_space<vmem>>, vector<2x9x9x64xf32>
      tpu.vector_store %arg17[%c0_211, %c0_212, %c0_213, %c0_214], %216 {strides = array<i32>} : memref<2x9x9x64xf32, #tpu.memory_space<vmem>>, vector<2x9x9x64xf32>,
    } else {
    }
    %c0 = arith.constant 0 : index
    %c0_1 = arith.constant 0 : index
    %c0_2 = arith.constant 0 : index
    %c0_3 = arith.constant 0 : index
    %3 = vector.load %arg14[%c0, %c0_1, %c0_2, %c0_3] : memref<2x8x8x32xf32, #tpu.memory_space<vmem>>, vector<2x8x8x32xf32>
    %c0_4 = arith.constant 0 : index
    %c0_5 = arith.constant 0 : index
    %c0_6 = arith.constant 0 : index
    %c0_7 = arith.constant 0 : index
    %4 = vector.load %arg15[%c0_4, %c0_5, %c0_6, %c0_7] : memref<2x8x8x32xf32, #tpu.memory_space<vmem>>, vector<2x8x8x32xf32>
    %c0_8 = arith.constant 0 : index
    %c0_9 = arith.constant 0 : index
    %c0_10 = arith.constant 0 : index
    %c0_11 = arith.constant 0 : index
    %5 = vector.load %arg4[%c0_8, %c0_9, %c0_10, %c0_11] : memref<2x8x8x32xf32, #tpu.memory_space<vmem>>, vector<2x8x8x32xf32>
    %c0_12 = arith.constant 0 : index
    %c0_13 = arith.constant 0 : index
    %c0_14 = arith.constant 0 : index
    %6 = vector.load %arg6[%c0_12, %c0_13, %c0_14] : memref<1x448x32xbf16, #tpu.memory_space<vmem>>, vector<1x448x32xbf16>
    %7 = vector.shape_cast %6 : vector<1x448x32xbf16> to vector<448x32xbf16>
    %c0_15 = arith.constant 0 : index
    %c0_16 = arith.constant 0 : index
    %c0_17 = arith.constant 0 : index
    %8 = vector.load %arg7[%c0_15, %c0_16, %c0_17] : memref<1x1x32xf32, #tpu.memory_space<vmem>>, vector<1x1x32xf32>
    %9 = vector.shape_cast %8 : vector<1x1x32xf32> to vector<1x32xf32>
    %c0_18 = arith.constant 0 : index
    %c0_19 = arith.constant 0 : index
    %c0_20 = arith.constant 0 : index
    %10 = vector.load %arg8[%c0_18, %c0_19, %c0_20] : memref<1x384x64xbf16, #tpu.memory_space<vmem>>, vector<1x384x64xbf16>
    %11 = vector.shape_cast %10 : vector<1x384x64xbf16> to vector<384x64xbf16>
    %c0_21 = arith.constant 0 : index
    %c0_22 = arith.constant 0 : index
    %c0_23 = arith.constant 0 : index
    %12 = vector.load %arg9[%c0_21, %c0_22, %c0_23] : memref<1x1x64xf32, #tpu.memory_space<vmem>>, vector<1x1x64xf32>
    %13 = vector.shape_cast %12 : vector<1x1x64xf32> to vector<1x64xf32>
    %cst = arith.constant 0.000000e+00 : f32
    %14 = vector.broadcast %cst : f32 to vector<2x8x8x32xf32>
    %15 = arith.cmpf ogt, %3, %14 : vector<2x8x8x32xf32>
    %cst_24 = arith.constant 0.000000e+00 : f32
    %16 = vector.broadcast %cst_24 : f32 to vector<2x8x8x32xf32>
    %17 = arith.minimumf %3, %16 : vector<2x8x8x32xf32>
    %18 = math.exp %17 : vector<2x8x8x32xf32>
    %cst_25 = arith.constant 1.000000e+00 : f32
    %19 = vector.broadcast %cst_25 : f32 to vector<2x8x8x32xf32>
    %20 = arith.subf %18, %19 : vector<2x8x8x32xf32>
    %21 = arith.select %15, %3, %20 : vector<2x8x8x32xi1>, vector<2x8x8x32xf32>
    %cst_26 = arith.constant 0.000000e+00 : f32
    %22 = vector.broadcast %cst_26 : f32 to vector<2x8x8x32xf32>
    %23 = arith.subf %22, %3 : vector<2x8x8x32xf32>
    %cst_27 = arith.constant 0.000000e+00 : f32
    %24 = vector.broadcast %cst_27 : f32 to vector<2x8x8x32xf32>
    %25 = arith.cmpf ogt, %23, %24 : vector<2x8x8x32xf32>
    %cst_28 = arith.constant 0.000000e+00 : f32
    %26 = vector.broadcast %cst_28 : f32 to vector<2x8x8x32xf32>
    %27 = arith.minimumf %23, %26 : vector<2x8x8x32xf32>
    %28 = math.exp %27 : vector<2x8x8x32xf32>
    %cst_29 = arith.constant 1.000000e+00 : f32
    %29 = vector.broadcast %cst_29 : f32 to vector<2x8x8x32xf32>
    %30 = arith.subf %28, %29 : vector<2x8x8x32xf32>
    %31 = arith.select %25, %23, %30 : vector<2x8x8x32xi1>, vector<2x8x8x32xf32>
    %32 = tpu.concatenate %21, %31 in 3 : vector<2x8x8x32xf32>, vector<2x8x8x32xf32> -> vector<2x8x8x64xf32>
    %c0_30 = arith.constant 0 : index
    %c1 = arith.constant 1 : index
    %c1_31 = arith.constant 1 : index
    %c0_32 = arith.constant 0 : index
    %33 = vector.load %arg16[%c0_30, %c1, %c1_31, %c0_32] : memref<2x9x10x64xf32, #tpu.memory_space<vmem>>, vector<2x8x8x64xf32>
    tpu.vector_store %arg16[%c0_30, %c1, %c1_31, %c0_32], %32 {strides = array<i32>} : memref<2x9x10x64xf32, #tpu.memory_space<vmem>>, vector<2x8x8x64xf32>,
    %c0_33 = arith.constant 0 : index
    %c0_34 = arith.constant 0 : index
    %c0_35 = arith.constant 0 : index
    %c0_36 = arith.constant 0 : index
    %34 = vector.load %arg16[%c0_33, %c0_34, %c0_35, %c0_36] : memref<2x9x10x64xf32, #tpu.memory_space<vmem>>, vector<2x8x8x64xf32>
    %c0_37 = arith.constant 0 : index
    %c0_38 = arith.constant 0 : index
    %c1_39 = arith.constant 1 : index
    %c0_40 = arith.constant 0 : index
    %35 = vector.load %arg16[%c0_37, %c0_38, %c1_39, %c0_40] : memref<2x9x10x64xf32, #tpu.memory_space<vmem>>, vector<2x8x8x64xf32>
    %c0_41 = arith.constant 0 : index
    %c0_42 = arith.constant 0 : index
    %c2 = arith.constant 2 : index
    %c0_43 = arith.constant 0 : index
    %36 = vector.load %arg16[%c0_41, %c0_42, %c2, %c0_43] : memref<2x9x10x64xf32, #tpu.memory_space<vmem>>, vector<2x8x8x64xf32>
    %c0_44 = arith.constant 0 : index
    %c1_45 = arith.constant 1 : index
    %c0_46 = arith.constant 0 : index
    %c0_47 = arith.constant 0 : index
    %37 = vector.load %arg16[%c0_44, %c1_45, %c0_46, %c0_47] : memref<2x9x10x64xf32, #tpu.memory_space<vmem>>, vector<2x8x8x64xf32>
    %c0_48 = arith.constant 0 : index
    %c1_49 = arith.constant 1 : index
    %c1_50 = arith.constant 1 : index
    %c0_51 = arith.constant 0 : index
    %38 = vector.load %arg16[%c0_48, %c1_49, %c1_50, %c0_51] : memref<2x9x10x64xf32, #tpu.memory_space<vmem>>, vector<2x8x8x64xf32>
    %c0_52 = arith.constant 0 : index
    %c1_53 = arith.constant 1 : index
    %c2_54 = arith.constant 2 : index
    %c0_55 = arith.constant 0 : index
    %39 = vector.load %arg16[%c0_52, %c1_53, %c2_54, %c0_55] : memref<2x9x10x64xf32, #tpu.memory_space<vmem>>, vector<2x8x8x64xf32>
    %cst_56 = arith.constant 0.000000e+00 : f32
    %40 = vector.broadcast %cst_56 : f32 to vector<2x8x8x32xf32>
    %41 = arith.cmpf ogt, %5, %40 : vector<2x8x8x32xf32>
    %cst_57 = arith.constant 0.000000e+00 : f32
    %42 = vector.broadcast %cst_57 : f32 to vector<2x8x8x32xf32>
    %43 = arith.minimumf %5, %42 : vector<2x8x8x32xf32>
    %44 = math.exp %43 : vector<2x8x8x32xf32>
    %cst_58 = arith.constant 1.000000e+00 : f32
    %45 = vector.broadcast %cst_58 : f32 to vector<2x8x8x32xf32>
    %46 = arith.subf %44, %45 : vector<2x8x8x32xf32>
    %47 = arith.select %41, %5, %46 : vector<2x8x8x32xi1>, vector<2x8x8x32xf32>
    %cst_59 = arith.constant 0.000000e+00 : f32
    %48 = vector.broadcast %cst_59 : f32 to vector<2x8x8x32xf32>
    %49 = arith.subf %48, %5 : vector<2x8x8x32xf32>
    %cst_60 = arith.constant 0.000000e+00 : f32
    %50 = vector.broadcast %cst_60 : f32 to vector<2x8x8x32xf32>
    %51 = arith.cmpf ogt, %49, %50 : vector<2x8x8x32xf32>
    %cst_61 = arith.constant 0.000000e+00 : f32
    %52 = vector.broadcast %cst_61 : f32 to vector<2x8x8x32xf32>
    %53 = arith.minimumf %49, %52 : vector<2x8x8x32xf32>
    %54 = math.exp %53 : vector<2x8x8x32xf32>
    %cst_62 = arith.constant 1.000000e+00 : f32
    %55 = vector.broadcast %cst_62 : f32 to vector<2x8x8x32xf32>
    %56 = arith.subf %54, %55 : vector<2x8x8x32xf32>
    %57 = arith.select %51, %49, %56 : vector<2x8x8x32xi1>, vector<2x8x8x32xf32>
    %58 = tpu.concatenate %47, %57 in 3 : vector<2x8x8x32xf32>, vector<2x8x8x32xf32> -> vector<2x8x8x64xf32>
    %59 = tpu.concatenate %34, %35, %36, %37, %38, %39, %58 in 3 : vector<2x8x8x64xf32>, vector<2x8x8x64xf32>, vector<2x8x8x64xf32>, vector<2x8x8x64xf32>, vector<2x8x8x64xf32>, vector<2x8x8x64xf32>, vector<2x8x8x64xf32> -> vector<2x8x8x448xf32>
    %60 = vector.shape_cast %59 : vector<2x8x8x448xf32> to vector<128x448xf32>
    %61 = arith.truncf %60 : vector<128x448xf32> to vector<128x448xbf16>
    %cst_63 = arith.constant dense<0.000000e+00> : vector<128x32xf32>
    %62 = tpu.matmul %61, %7, %cst_63 {dimension_numbers = #tpu.dot_dimension_numbers<[1], [0], [0], [1], [0, 0, 1, 1], [], []>} : vector<128x448xbf16>, vector<448x32xbf16>, vector<128x32xf32> -> vector<128x32xf32>
    %63 = vector.broadcast %9 : vector<1x32xf32> to vector<128x32xf32>
    %64 = arith.addf %62, %63 : vector<128x32xf32>
    %65 = vector.shape_cast %64 : vector<128x32xf32> to vector<2x8x8x32xf32>
    %cst_64 = arith.constant 0.000000e+00 : f32
    %66 = vector.broadcast %cst_64 : f32 to vector<2x8x8x32xf32>
    %67 = arith.cmpf ogt, %65, %66 : vector<2x8x8x32xf32>
    %cst_65 = arith.constant 0.000000e+00 : f32
    %68 = vector.broadcast %cst_65 : f32 to vector<2x8x8x32xf32>
    %69 = arith.minimumf %65, %68 : vector<2x8x8x32xf32>
    %70 = math.exp %69 : vector<2x8x8x32xf32>
    %cst_66 = arith.constant 1.000000e+00 : f32
    %71 = vector.broadcast %cst_66 : f32 to vector<2x8x8x32xf32>
    %72 = arith.subf %70, %71 : vector<2x8x8x32xf32>
    %73 = arith.select %67, %65, %72 : vector<2x8x8x32xi1>, vector<2x8x8x32xf32>
    %cst_67 = arith.constant 0.000000e+00 : f32
    %74 = vector.broadcast %cst_67 : f32 to vector<2x8x8x32xf32>
    %75 = arith.subf %74, %65 : vector<2x8x8x32xf32>
    %cst_68 = arith.constant 0.000000e+00 : f32
    %76 = vector.broadcast %cst_68 : f32 to vector<2x8x8x32xf32>
    %77 = arith.cmpf ogt, %75, %76 : vector<2x8x8x32xf32>
    %cst_69 = arith.constant 0.000000e+00 : f32
    %78 = vector.broadcast %cst_69 : f32 to vector<2x8x8x32xf32>
    %79 = arith.minimumf %75, %78 : vector<2x8x8x32xf32>
    %80 = math.exp %79 : vector<2x8x8x32xf32>
    %cst_70 = arith.constant 1.000000e+00 : f32
    %81 = vector.broadcast %cst_70 : f32 to vector<2x8x8x32xf32>
    %82 = arith.subf %80, %81 : vector<2x8x8x32xf32>
    %83 = arith.select %77, %75, %82 : vector<2x8x8x32xi1>, vector<2x8x8x32xf32>
    %84 = tpu.concatenate %73, %83 in 3 : vector<2x8x8x32xf32>, vector<2x8x8x32xf32> -> vector<2x8x8x64xf32>
    %c0_71 = arith.constant 0 : index
    %c1_72 = arith.constant 1 : index
    %c1_73 = arith.constant 1 : index
    %c0_74 = arith.constant 0 : index
    %85 = vector.load %arg16[%c0_71, %c1_72, %c1_73, %c0_74] : memref<2x9x10x64xf32, #tpu.memory_space<vmem>>, vector<2x8x8x64xf32>
    tpu.vector_store %arg16[%c0_71, %c1_72, %c1_73, %c0_74], %84 {strides = array<i32>} : memref<2x9x10x64xf32, #tpu.memory_space<vmem>>, vector<2x8x8x64xf32>,
    %c0_75 = arith.constant 0 : index
    %c0_76 = arith.constant 0 : index
    %c0_77 = arith.constant 0 : index
    %c0_78 = arith.constant 0 : index
    %86 = vector.load %arg16[%c0_75, %c0_76, %c0_77, %c0_78] : memref<2x9x10x64xf32, #tpu.memory_space<vmem>>, vector<2x8x8x64xf32>
    %c0_79 = arith.constant 0 : index
    %c0_80 = arith.constant 0 : index
    %c1_81 = arith.constant 1 : index
    %c0_82 = arith.constant 0 : index
    %87 = vector.load %arg16[%c0_79, %c0_80, %c1_81, %c0_82] : memref<2x9x10x64xf32, #tpu.memory_space<vmem>>, vector<2x8x8x64xf32>
    %c0_83 = arith.constant 0 : index
    %c0_84 = arith.constant 0 : index
    %c2_85 = arith.constant 2 : index
    %c0_86 = arith.constant 0 : index
    %88 = vector.load %arg16[%c0_83, %c0_84, %c2_85, %c0_86] : memref<2x9x10x64xf32, #tpu.memory_space<vmem>>, vector<2x8x8x64xf32>
    %c0_87 = arith.constant 0 : index
    %c1_88 = arith.constant 1 : index
    %c0_89 = arith.constant 0 : index
    %c0_90 = arith.constant 0 : index
    %89 = vector.load %arg16[%c0_87, %c1_88, %c0_89, %c0_90] : memref<2x9x10x64xf32, #tpu.memory_space<vmem>>, vector<2x8x8x64xf32>
    %c0_91 = arith.constant 0 : index
    %c1_92 = arith.constant 1 : index
    %c1_93 = arith.constant 1 : index
    %c0_94 = arith.constant 0 : index
    %90 = vector.load %arg16[%c0_91, %c1_92, %c1_93, %c0_94] : memref<2x9x10x64xf32, #tpu.memory_space<vmem>>, vector<2x8x8x64xf32>
    %c0_95 = arith.constant 0 : index
    %c1_96 = arith.constant 1 : index
    %c2_97 = arith.constant 2 : index
    %c0_98 = arith.constant 0 : index
    %91 = vector.load %arg16[%c0_95, %c1_96, %c2_97, %c0_98] : memref<2x9x10x64xf32, #tpu.memory_space<vmem>>, vector<2x8x8x64xf32>
    %92 = tpu.concatenate %86, %87, %88, %89, %90, %91 in 3 : vector<2x8x8x64xf32>, vector<2x8x8x64xf32>, vector<2x8x8x64xf32>, vector<2x8x8x64xf32>, vector<2x8x8x64xf32>, vector<2x8x8x64xf32> -> vector<2x8x8x384xf32>
    %93 = vector.shape_cast %92 : vector<2x8x8x384xf32> to vector<128x384xf32>
    %94 = arith.truncf %93 : vector<128x384xf32> to vector<128x384xbf16>
    %cst_99 = arith.constant dense<0.000000e+00> : vector<128x64xf32>
    %95 = tpu.matmul %94, %11, %cst_99 {dimension_numbers = #tpu.dot_dimension_numbers<[1], [0], [0], [1], [0, 0, 1, 1], [], []>} : vector<128x384xbf16>, vector<384x64xbf16>, vector<128x64xf32> -> vector<128x64xf32>
    %96 = vector.broadcast %13 : vector<1x64xf32> to vector<128x64xf32>
    %97 = arith.addf %95, %96 : vector<128x64xf32>
    %98 = vector.shape_cast %97 : vector<128x64xf32> to vector<2x8x8x64xf32>
    %99 = vector.extract_strided_slice %98 {offsets = [0, 0, 0, 0], sizes = [2, 8, 8, 32], strides = [1, 1, 1, 1]} : vector<2x8x8x64xf32> to vector<2x8x8x32xf32>
    %100 = vector.extract_strided_slice %98 {offsets = [0, 0, 0, 32], sizes = [2, 8, 8, 32], strides = [1, 1, 1, 1]} : vector<2x8x8x64xf32> to vector<2x8x8x32xf32>
    %101 = arith.negf %100 : vector<2x8x8x32xf32>
    %102 = math.exp %101 : vector<2x8x8x32xf32>
    %cst_100 = arith.constant 1.000000e+00 : f32
    %103 = vector.broadcast %cst_100 : f32 to vector<2x8x8x32xf32>
    %104 = arith.addf %103, %102 : vector<2x8x8x32xf32>
    %105 = arith.divf %103, %104 : vector<2x8x8x32xf32>
    %106 = arith.mulf %99, %105 : vector<2x8x8x32xf32>
    %107 = arith.addf %3, %106 : vector<2x8x8x32xf32>
    %c0_101 = arith.constant 0 : index
    %c0_102 = arith.constant 0 : index
    %c0_103 = arith.constant 0 : index
    %c0_104 = arith.constant 0 : index
    %108 = vector.load %arg5[%c0_101, %c0_102, %c0_103, %c0_104] : memref<2x8x8x32xf32, #tpu.memory_space<vmem>>, vector<2x8x8x32xf32>
    %109 = tpu.concatenate %107, %108 in 3 : vector<2x8x8x32xf32>, vector<2x8x8x32xf32> -> vector<2x8x8x64xf32>
    %c0_105 = arith.constant 0 : index
    %c0_106 = arith.constant 0 : index
    %c0_107 = arith.constant 0 : index
    %110 = vector.load %arg10[%c0_105, %c0_106, %c0_107] : memref<1x384x32xbf16, #tpu.memory_space<vmem>>, vector<1x384x32xbf16>
    %111 = vector.shape_cast %110 : vector<1x384x32xbf16> to vector<384x32xbf16>
    %c0_108 = arith.constant 0 : index
    %c0_109 = arith.constant 0 : index
    %c0_110 = arith.constant 0 : index
    %112 = vector.load %arg11[%c0_108, %c0_109, %c0_110] : memref<1x1x32xf32, #tpu.memory_space<vmem>>, vector<1x1x32xf32>
    %113 = vector.shape_cast %112 : vector<1x1x32xf32> to vector<1x32xf32>
    %c0_111 = arith.constant 0 : index
    %c0_112 = arith.constant 0 : index
    %c0_113 = arith.constant 0 : index
    %114 = vector.load %arg12[%c0_111, %c0_112, %c0_113] : memref<1x256x64xbf16, #tpu.memory_space<vmem>>, vector<1x256x64xbf16>
    %115 = vector.shape_cast %114 : vector<1x256x64xbf16> to vector<256x64xbf16>
    %c0_114 = arith.constant 0 : index
    %c0_115 = arith.constant 0 : index
    %c0_116 = arith.constant 0 : index
    %116 = vector.load %arg13[%c0_114, %c0_115, %c0_116] : memref<1x1x64xf32, #tpu.memory_space<vmem>>, vector<1x1x64xf32>
    %117 = vector.shape_cast %116 : vector<1x1x64xf32> to vector<1x64xf32>
    %cst_117 = arith.constant 0.000000e+00 : f32
    %118 = vector.broadcast %cst_117 : f32 to vector<2x8x8x32xf32>
    %119 = arith.cmpf ogt, %4, %118 : vector<2x8x8x32xf32>
    %cst_118 = arith.constant 0.000000e+00 : f32
    %120 = vector.broadcast %cst_118 : f32 to vector<2x8x8x32xf32>
    %121 = arith.minimumf %4, %120 : vector<2x8x8x32xf32>
    %122 = math.exp %121 : vector<2x8x8x32xf32>
    %cst_119 = arith.constant 1.000000e+00 : f32
    %123 = vector.broadcast %cst_119 : f32 to vector<2x8x8x32xf32>
    %124 = arith.subf %122, %123 : vector<2x8x8x32xf32>
    %125 = arith.select %119, %4, %124 : vector<2x8x8x32xi1>, vector<2x8x8x32xf32>
    %cst_120 = arith.constant 0.000000e+00 : f32
    %126 = vector.broadcast %cst_120 : f32 to vector<2x8x8x32xf32>
    %127 = arith.subf %126, %4 : vector<2x8x8x32xf32>
    %cst_121 = arith.constant 0.000000e+00 : f32
    %128 = vector.broadcast %cst_121 : f32 to vector<2x8x8x32xf32>
    %129 = arith.cmpf ogt, %127, %128 : vector<2x8x8x32xf32>
    %cst_122 = arith.constant 0.000000e+00 : f32
    %130 = vector.broadcast %cst_122 : f32 to vector<2x8x8x32xf32>
    %131 = arith.minimumf %127, %130 : vector<2x8x8x32xf32>
    %132 = math.exp %131 : vector<2x8x8x32xf32>
    %cst_123 = arith.constant 1.000000e+00 : f32
    %133 = vector.broadcast %cst_123 : f32 to vector<2x8x8x32xf32>
    %134 = arith.subf %132, %133 : vector<2x8x8x32xf32>
    %135 = arith.select %129, %127, %134 : vector<2x8x8x32xi1>, vector<2x8x8x32xf32>
    %136 = tpu.concatenate %125, %135 in 3 : vector<2x8x8x32xf32>, vector<2x8x8x32xf32> -> vector<2x8x8x64xf32>
    %c0_124 = arith.constant 0 : index
    %c1_125 = arith.constant 1 : index
    %c1_126 = arith.constant 1 : index
    %c0_127 = arith.constant 0 : index
    %137 = vector.load %arg17[%c0_124, %c1_125, %c1_126, %c0_127] : memref<2x9x9x64xf32, #tpu.memory_space<vmem>>, vector<2x8x8x64xf32>
    tpu.vector_store %arg17[%c0_124, %c1_125, %c1_126, %c0_127], %136 {strides = array<i32>} : memref<2x9x9x64xf32, #tpu.memory_space<vmem>>, vector<2x8x8x64xf32>,
    %c0_128 = arith.constant 0 : index
    %c0_129 = arith.constant 0 : index
    %c0_130 = arith.constant 0 : index
    %c0_131 = arith.constant 0 : index
    %138 = vector.load %arg17[%c0_128, %c0_129, %c0_130, %c0_131] : memref<2x9x9x64xf32, #tpu.memory_space<vmem>>, vector<2x8x8x64xf32>
    %c0_132 = arith.constant 0 : index
    %c0_133 = arith.constant 0 : index
    %c1_134 = arith.constant 1 : index
    %c0_135 = arith.constant 0 : index
    %139 = vector.load %arg17[%c0_132, %c0_133, %c1_134, %c0_135] : memref<2x9x9x64xf32, #tpu.memory_space<vmem>>, vector<2x8x8x64xf32>
    %c0_136 = arith.constant 0 : index
    %c1_137 = arith.constant 1 : index
    %c0_138 = arith.constant 0 : index
    %c0_139 = arith.constant 0 : index
    %140 = vector.load %arg17[%c0_136, %c1_137, %c0_138, %c0_139] : memref<2x9x9x64xf32, #tpu.memory_space<vmem>>, vector<2x8x8x64xf32>
    %c0_140 = arith.constant 0 : index
    %c1_141 = arith.constant 1 : index
    %c1_142 = arith.constant 1 : index
    %c0_143 = arith.constant 0 : index
    %141 = vector.load %arg17[%c0_140, %c1_141, %c1_142, %c0_143] : memref<2x9x9x64xf32, #tpu.memory_space<vmem>>, vector<2x8x8x64xf32>
    %cst_144 = arith.constant 0.000000e+00 : f32
    %142 = vector.broadcast %cst_144 : f32 to vector<2x8x8x64xf32>
    %143 = arith.cmpf ogt, %109, %142 : vector<2x8x8x64xf32>
    %cst_145 = arith.constant 0.000000e+00 : f32
    %144 = vector.broadcast %cst_145 : f32 to vector<2x8x8x64xf32>
    %145 = arith.minimumf %109, %144 : vector<2x8x8x64xf32>
    %146 = math.exp %145 : vector<2x8x8x64xf32>
    %cst_146 = arith.constant 1.000000e+00 : f32
    %147 = vector.broadcast %cst_146 : f32 to vector<2x8x8x64xf32>
    %148 = arith.subf %146, %147 : vector<2x8x8x64xf32>
    %149 = arith.select %143, %109, %148 : vector<2x8x8x64xi1>, vector<2x8x8x64xf32>
    %cst_147 = arith.constant 0.000000e+00 : f32
    %150 = vector.broadcast %cst_147 : f32 to vector<2x8x8x64xf32>
    %151 = arith.subf %150, %109 : vector<2x8x8x64xf32>
    %cst_148 = arith.constant 0.000000e+00 : f32
    %152 = vector.broadcast %cst_148 : f32 to vector<2x8x8x64xf32>
    %153 = arith.cmpf ogt, %151, %152 : vector<2x8x8x64xf32>
    %cst_149 = arith.constant 0.000000e+00 : f32
    %154 = vector.broadcast %cst_149 : f32 to vector<2x8x8x64xf32>
    %155 = arith.minimumf %151, %154 : vector<2x8x8x64xf32>
    %156 = math.exp %155 : vector<2x8x8x64xf32>
    %cst_150 = arith.constant 1.000000e+00 : f32
    %157 = vector.broadcast %cst_150 : f32 to vector<2x8x8x64xf32>
    %158 = arith.subf %156, %157 : vector<2x8x8x64xf32>
    %159 = arith.select %153, %151, %158 : vector<2x8x8x64xi1>, vector<2x8x8x64xf32>
    %160 = tpu.concatenate %149, %159 in 3 : vector<2x8x8x64xf32>, vector<2x8x8x64xf32> -> vector<2x8x8x128xf32>
    %161 = tpu.concatenate %138, %139, %140, %141, %160 in 3 : vector<2x8x8x64xf32>, vector<2x8x8x64xf32>, vector<2x8x8x64xf32>, vector<2x8x8x64xf32>, vector<2x8x8x128xf32> -> vector<2x8x8x384xf32>
    %162 = vector.shape_cast %161 : vector<2x8x8x384xf32> to vector<128x384xf32>
    %163 = arith.truncf %162 : vector<128x384xf32> to vector<128x384xbf16>
    %cst_151 = arith.constant dense<0.000000e+00> : vector<128x32xf32>
    %164 = tpu.matmul %163, %111, %cst_151 {dimension_numbers = #tpu.dot_dimension_numbers<[1], [0], [0], [1], [0, 0, 1, 1], [], []>} : vector<128x384xbf16>, vector<384x32xbf16>, vector<128x32xf32> -> vector<128x32xf32>
    %165 = vector.broadcast %113 : vector<1x32xf32> to vector<128x32xf32>
    %166 = arith.addf %164, %165 : vector<128x32xf32>
    %167 = vector.shape_cast %166 : vector<128x32xf32> to vector<2x8x8x32xf32>
    %cst_152 = arith.constant 0.000000e+00 : f32
    %168 = vector.broadcast %cst_152 : f32 to vector<2x8x8x32xf32>
    %169 = arith.cmpf ogt, %167, %168 : vector<2x8x8x32xf32>
    %cst_153 = arith.constant 0.000000e+00 : f32
    %170 = vector.broadcast %cst_153 : f32 to vector<2x8x8x32xf32>
    %171 = arith.minimumf %167, %170 : vector<2x8x8x32xf32>
    %172 = math.exp %171 : vector<2x8x8x32xf32>
    %cst_154 = arith.constant 1.000000e+00 : f32
    %173 = vector.broadcast %cst_154 : f32 to vector<2x8x8x32xf32>
    %174 = arith.subf %172, %173 : vector<2x8x8x32xf32>
    %175 = arith.select %169, %167, %174 : vector<2x8x8x32xi1>, vector<2x8x8x32xf32>
    %cst_155 = arith.constant 0.000000e+00 : f32
    %176 = vector.broadcast %cst_155 : f32 to vector<2x8x8x32xf32>
    %177 = arith.subf %176, %167 : vector<2x8x8x32xf32>
    %cst_156 = arith.constant 0.000000e+00 : f32
    %178 = vector.broadcast %cst_156 : f32 to vector<2x8x8x32xf32>
    %179 = arith.cmpf ogt, %177, %178 : vector<2x8x8x32xf32>
    %cst_157 = arith.constant 0.000000e+00 : f32
    %180 = vector.broadcast %cst_157 : f32 to vector<2x8x8x32xf32>
    %181 = arith.minimumf %177, %180 : vector<2x8x8x32xf32>
    %182 = math.exp %181 : vector<2x8x8x32xf32>
    %cst_158 = arith.constant 1.000000e+00 : f32
    %183 = vector.broadcast %cst_158 : f32 to vector<2x8x8x32xf32>
    %184 = arith.subf %182, %183 : vector<2x8x8x32xf32>
    %185 = arith.select %179, %177, %184 : vector<2x8x8x32xi1>, vector<2x8x8x32xf32>
    %186 = tpu.concatenate %175, %185 in 3 : vector<2x8x8x32xf32>, vector<2x8x8x32xf32> -> vector<2x8x8x64xf32>
    %c0_159 = arith.constant 0 : index
    %c1_160 = arith.constant 1 : index
    %c1_161 = arith.constant 1 : index
    %c0_162 = arith.constant 0 : index
    %187 = vector.load %arg17[%c0_159, %c1_160, %c1_161, %c0_162] : memref<2x9x9x64xf32, #tpu.memory_space<vmem>>, vector<2x8x8x64xf32>
    tpu.vector_store %arg17[%c0_159, %c1_160, %c1_161, %c0_162], %186 {strides = array<i32>} : memref<2x9x9x64xf32, #tpu.memory_space<vmem>>, vector<2x8x8x64xf32>,
    %c0_163 = arith.constant 0 : index
    %c0_164 = arith.constant 0 : index
    %c0_165 = arith.constant 0 : index
    %c0_166 = arith.constant 0 : index
    %188 = vector.load %arg17[%c0_163, %c0_164, %c0_165, %c0_166] : memref<2x9x9x64xf32, #tpu.memory_space<vmem>>, vector<2x8x8x64xf32>
    %c0_167 = arith.constant 0 : index
    %c0_168 = arith.constant 0 : index
    %c1_169 = arith.constant 1 : index
    %c0_170 = arith.constant 0 : index
    %189 = vector.load %arg17[%c0_167, %c0_168, %c1_169, %c0_170] : memref<2x9x9x64xf32, #tpu.memory_space<vmem>>, vector<2x8x8x64xf32>
    %c0_171 = arith.constant 0 : index
    %c1_172 = arith.constant 1 : index
    %c0_173 = arith.constant 0 : index
    %c0_174 = arith.constant 0 : index
    %190 = vector.load %arg17[%c0_171, %c1_172, %c0_173, %c0_174] : memref<2x9x9x64xf32, #tpu.memory_space<vmem>>, vector<2x8x8x64xf32>
    %c0_175 = arith.constant 0 : index
    %c1_176 = arith.constant 1 : index
    %c1_177 = arith.constant 1 : index
    %c0_178 = arith.constant 0 : index
    %191 = vector.load %arg17[%c0_175, %c1_176, %c1_177, %c0_178] : memref<2x9x9x64xf32, #tpu.memory_space<vmem>>, vector<2x8x8x64xf32>
    %192 = tpu.concatenate %188, %189, %190, %191 in 3 : vector<2x8x8x64xf32>, vector<2x8x8x64xf32>, vector<2x8x8x64xf32>, vector<2x8x8x64xf32> -> vector<2x8x8x256xf32>
    %193 = vector.shape_cast %192 : vector<2x8x8x256xf32> to vector<128x256xf32>
    %194 = arith.truncf %193 : vector<128x256xf32> to vector<128x256xbf16>
    %cst_179 = arith.constant dense<0.000000e+00> : vector<128x64xf32>
    %195 = tpu.matmul %194, %115, %cst_179 {dimension_numbers = #tpu.dot_dimension_numbers<[1], [0], [0], [1], [0, 0, 1, 1], [], []>} : vector<128x256xbf16>, vector<256x64xbf16>, vector<128x64xf32> -> vector<128x64xf32>
    %196 = vector.broadcast %117 : vector<1x64xf32> to vector<128x64xf32>
    %197 = arith.addf %195, %196 : vector<128x64xf32>
    %198 = vector.shape_cast %197 : vector<128x64xf32> to vector<2x8x8x64xf32>
    %199 = vector.extract_strided_slice %198 {offsets = [0, 0, 0, 0], sizes = [2, 8, 8, 32], strides = [1, 1, 1, 1]} : vector<2x8x8x64xf32> to vector<2x8x8x32xf32>
    %200 = vector.extract_strided_slice %198 {offsets = [0, 0, 0, 32], sizes = [2, 8, 8, 32], strides = [1, 1, 1, 1]} : vector<2x8x8x64xf32> to vector<2x8x8x32xf32>
    %201 = arith.negf %200 : vector<2x8x8x32xf32>
    %202 = math.exp %201 : vector<2x8x8x32xf32>
    %cst_180 = arith.constant 1.000000e+00 : f32
    %203 = vector.broadcast %cst_180 : f32 to vector<2x8x8x32xf32>
    %204 = arith.addf %203, %202 : vector<2x8x8x32xf32>
    %205 = arith.divf %203, %204 : vector<2x8x8x32xf32>
    %206 = arith.mulf %199, %205 : vector<2x8x8x32xf32>
    %207 = arith.addf %4, %206 : vector<2x8x8x32xf32>
    %c0_181 = arith.constant 0 : index
    %c0_182 = arith.constant 0 : index
    %c0_183 = arith.constant 0 : index
    %c0_184 = arith.constant 0 : index
    %208 = vector.load %arg14[%c0_181, %c0_182, %c0_183, %c0_184] : memref<2x8x8x32xf32, #tpu.memory_space<vmem>>, vector<2x8x8x32xf32>
    tpu.vector_store %arg14[%c0_181, %c0_182, %c0_183, %c0_184], %107 {strides = array<i32>} : memref<2x8x8x32xf32, #tpu.memory_space<vmem>>, vector<2x8x8x32xf32>,
    %c0_185 = arith.constant 0 : index
    %c0_186 = arith.constant 0 : index
    %c0_187 = arith.constant 0 : index
    %c0_188 = arith.constant 0 : index
    %209 = vector.load %arg15[%c0_185, %c0_186, %c0_187, %c0_188] : memref<2x8x8x32xf32, #tpu.memory_space<vmem>>, vector<2x8x8x32xf32>
    tpu.vector_store %arg15[%c0_185, %c0_186, %c0_187, %c0_188], %207 {strides = array<i32>} : memref<2x8x8x32xf32, #tpu.memory_space<vmem>>, vector<2x8x8x32xf32>,
    return
  }
  func.func @transform_0(%arg0: i32, %arg1: i32) -> (i32, i32, i32, i32) {
    %c0_i32 = arith.constant 0 : i32
    %c0_i32_0 = arith.constant 0 : i32
    %c0_i32_1 = arith.constant 0 : i32
    %c0_i32_2 = arith.constant 0 : i32
    return %arg0, %c0_i32, %c0_i32_0, %c0_i32_1 : i32, i32, i32, i32
  }
  func.func @transform_1(%arg0: i32, %arg1: i32) -> (i32, i32, i32, i32) {
    %c0_i32 = arith.constant 0 : i32
    %c0_i32_0 = arith.constant 0 : i32
    %c0_i32_1 = arith.constant 0 : i32
    %c0_i32_2 = arith.constant 0 : i32
    return %arg0, %c0_i32, %c0_i32_0, %c0_i32_1 : i32, i32, i32, i32
  }
  func.func @transform_2(%arg0: i32, %arg1: i32) -> (i32, i32, i32, i32) {
    %c2_i32 = arith.constant 2 : i32
    %0 = arith.muli %arg1, %c2_i32 : i32
    %1 = arith.addi %0, %arg0 : i32
    %c0_i32 = arith.constant 0 : i32
    %c0_i32_0 = arith.constant 0 : i32
    %c0_i32_1 = arith.constant 0 : i32
    %c0_i32_2 = arith.constant 0 : i32
    return %1, %c0_i32, %c0_i32_0, %c0_i32_1 : i32, i32, i32, i32
  }
  func.func @transform_3(%arg0: i32, %arg1: i32) -> (i32, i32, i32, i32) {
    %c2_i32 = arith.constant 2 : i32
    %0 = arith.muli %arg1, %c2_i32 : i32
    %1 = arith.addi %0, %arg0 : i32
    %c0_i32 = arith.constant 0 : i32
    %c0_i32_0 = arith.constant 0 : i32
    %c0_i32_1 = arith.constant 0 : i32
    %c0_i32_2 = arith.constant 0 : i32
    return %1, %c0_i32, %c0_i32_0, %c0_i32_1 : i32, i32, i32, i32
  }
  func.func @transform_4(%arg0: i32, %arg1: i32) -> (i32, i32, i32) {
    %c0_i32 = arith.constant 0 : i32
    %c0_i32_0 = arith.constant 0 : i32
    %c0_i32_1 = arith.constant 0 : i32
    return %arg1, %c0_i32, %c0_i32_0 : i32, i32, i32
  }
  func.func @transform_5(%arg0: i32, %arg1: i32) -> (i32, i32, i32) {
    %c0_i32 = arith.constant 0 : i32
    %c0_i32_0 = arith.constant 0 : i32
    %c0_i32_1 = arith.constant 0 : i32
    return %arg1, %c0_i32, %c0_i32_0 : i32, i32, i32
  }
  func.func @transform_6(%arg0: i32, %arg1: i32) -> (i32, i32, i32) {
    %c0_i32 = arith.constant 0 : i32
    %c0_i32_0 = arith.constant 0 : i32
    %c0_i32_1 = arith.constant 0 : i32
    return %arg1, %c0_i32, %c0_i32_0 : i32, i32, i32
  }
  func.func @transform_7(%arg0: i32, %arg1: i32) -> (i32, i32, i32) {
    %c0_i32 = arith.constant 0 : i32
    %c0_i32_0 = arith.constant 0 : i32
    %c0_i32_1 = arith.constant 0 : i32
    return %arg1, %c0_i32, %c0_i32_0 : i32, i32, i32
  }
  func.func @transform_8(%arg0: i32, %arg1: i32) -> (i32, i32, i32) {
    %c0_i32 = arith.constant 0 : i32
    %c0_i32_0 = arith.constant 0 : i32
    %c0_i32_1 = arith.constant 0 : i32
    return %arg1, %c0_i32, %c0_i32_0 : i32, i32, i32
  }
  func.func @transform_9(%arg0: i32, %arg1: i32) -> (i32, i32, i32) {
    %c0_i32 = arith.constant 0 : i32
    %c0_i32_0 = arith.constant 0 : i32
    %c0_i32_1 = arith.constant 0 : i32
    return %arg1, %c0_i32, %c0_i32_0 : i32, i32, i32
  }
  func.func @transform_10(%arg0: i32, %arg1: i32) -> (i32, i32, i32) {
    %c0_i32 = arith.constant 0 : i32
    %c0_i32_0 = arith.constant 0 : i32
    %c0_i32_1 = arith.constant 0 : i32
    return %arg1, %c0_i32, %c0_i32_0 : i32, i32, i32
  }
  func.func @transform_11(%arg0: i32, %arg1: i32) -> (i32, i32, i32) {
    %c0_i32 = arith.constant 0 : i32
    %c0_i32_0 = arith.constant 0 : i32
    %c0_i32_1 = arith.constant 0 : i32
    return %arg1, %c0_i32, %c0_i32_0 : i32, i32, i32
  }
  func.func @transform_12(%arg0: i32, %arg1: i32) -> (i32, i32, i32, i32) {
    %c0_i32 = arith.constant 0 : i32
    %c0_i32_0 = arith.constant 0 : i32
    %c0_i32_1 = arith.constant 0 : i32
    %c0_i32_2 = arith.constant 0 : i32
    return %arg0, %c0_i32, %c0_i32_0, %c0_i32_1 : i32, i32, i32, i32
  }
  func.func @transform_13(%arg0: i32, %arg1: i32) -> (i32, i32, i32, i32) {
    %c0_i32 = arith.constant 0 : i32
    %c0_i32_0 = arith.constant 0 : i32
    %c0_i32_1 = arith.constant 0 : i32
    %c0_i32_2 = arith.constant 0 : i32
    return %arg0, %c0_i32, %c0_i32_0, %c0_i32_1 : i32, i32, i32, i32
  }
}

</mosaic_0001>

<bundles_post_ra>
// kernel: apply.1
= control target key start
LH: loop header
LB: loop body
LE: loop exit
PB: predicated region body
PF: predicated region fallthrough
CT: control target
= control target key end

     0   :  { %s11342_s0 = inlined_call_operand.vmem [shape: f32[4,8,8,32], index: 0, kind: input, shape index: {}]   ;;  %s11343_s1 = inlined_call_operand.vmem [shape: f32[4,8,8,32], index: 1, kind: input, shape index: {}]   ;;  %s11344_s2 = inlined_call_operand.vmem [shape: f32[8,8,8,32], index: 2, kind: input, shape index: {}]   ;;  %s11345_s3 = inlined_call_operand.vmem [shape: f32[8,8,8,32], index: 3, kind: input, shape index: {}]   ;;  %s11346_s4 = inlined_call_operand.vmem [shape: bf16[2,448,32], index: 4, kind: input, shape index: {}]   ;;  %s11347_s5 = inlined_call_operand.vmem [shape: f32[2,1,32], index: 5, kind: input, shape index: {}]   ;;  %s11348_s6 = inlined_call_operand.vmem [shape: bf16[2,384,64], index: 6, kind: input, shape index: {}]   ;;  %s11349_s7 = inlined_call_operand.vmem [shape: f32[2,1,64], index: 7, kind: input, shape index: {}]   ;;  %s11350_s8 = inlined_call_operand.vmem [shape: bf16[2,384,32], index: 8, kind: input, shape index: {}]   ;;  %s11351_s9 = inlined_call_operand.vmem [shape: f32[2,1,32], index: 9, kind: input, shape index: {}]   ;;  %s11352_s10 = inlined_call_operand.vmem [shape: bf16[2,256,64], index: 10, kind: input, shape index: {}]   ;;  %s11353_s11 = inlined_call_operand.vmem [shape: f32[2,1,64], index: 11, kind: input, shape index: {}]   ;;  %s11354_s12 = inlined_call_operand.hbm [shape: f32[4,8,8,32], index: 12, kind: output, shape index: {0}]   ;;  %s11355_s13 = inlined_call_operand.hbm [shape: f32[4,8,8,32], index: 13, kind: output, shape index: {1}]  }
   0x1   :  { %11386 = sst [smem:[#allocation28_spill]] %s11342_s0 }
   0x2   :  { %11387 = sst [smem:[#allocation29_spill]] %s11343_s1 }
   0x3   :  { %11388 = sst [smem:[#allocation30_spill]] %s11344_s2 }
   0x4   :  { %11389 = sst [smem:[#allocation31_spill]] %s11345_s3 }
   0x5   :  { %11390 = sst [smem:[#allocation32_spill]] %s11346_s4 }
   0x6   :  { %11391 = sst [smem:[#allocation33_spill]] %s11354_s12 }
   0x7   :  { %11392 = sst [smem:[#allocation34_spill]] %s11355_s13 }
   0x8   :  { %19 = vsyncpa [#allocation5], 0 }
   0x9   :  { %21 = vsyncpa [#allocation5 + $0x1], 0 }
   0xa   :  { %22 = vsyncpa [#allocation7], 0 }
   0xb   :  { %24 = vsyncpa [#allocation7 + $0x1], 0  ;;  %s8324_s25 = smov 0   ;;  %s8326_s26 = smov 0  }
   0xc   :  { %s8328_s27 = smov 0   ;;  %s8330_s28 = smov 0  }
   0xd   :  { %s8332_s29 = smov 0   ;;  %s8334_s30 = smov 0  }
   0xe   :  { %s8336_s14 = smov 0   ;;  %s8338_s15 = smov 0  }
   0xf LB: > { %11393 = sst [smem:[#allocation10_spill]] %s8215_s25  ;;  %s6154_s16 = sadd.s32 4294967295, %s8243_s15   ;;  %s8243_s15 = sphi %s8338_s15, %s30_s15   ;;  %s8239_s14 = sphi %s8336_s14, %s11448_s14   ;;  %s8235_s30 = sphi %s8334_s30, %s11447_s30   ;;  %s8231_s29 = sphi %s8332_s29, %s11446_s29   ;;  %s8227_s28 = sphi %s8330_s28, %s11445_s28   ;;  %s8223_s27 = sphi %s8328_s27, %s11444_s27   ;;  %s8219_s26 = sphi %s8326_s26, %s11443_s26   ;;  %s8215_s25 = sphi %s8324_s25, %s11442_s25  }
  0x10   : > { %11394 = sst [smem:[#allocation11_spill]] %s8219_s26  ;;  %s6155_s17 = sadd.s32 4294967294, %s8243_s15  }
  0x11   : > { %11395 = sst [smem:[#allocation12_spill]] %s8223_s27  ;;  %s39_s18 = sadd.s32 1, %s8235_s30 }
  0x12   : > { %11396 = sst [smem:[#allocation13_spill]] %s8231_s29  ;;  %p40_p0 = scmp.ge.s32.totalorder %s39_s18, 2 }
  0x13   : > { %11397 = sst [smem:[#allocation14_spill]] %s8235_s30  ;;  %s42_s19 = sadd.s32 1, %s8239_s14 }
  0x14   : > { %11398 = sst [smem:[#allocation15_spill]] %s8239_s14  ;;  %p379_p1 = scmp.ne.s32.totalorder %s8223_s27, %s8219_s26 }
  0x15   : > { %11399 = sst [smem:[#allocation16_spill]] %s8243_s15  ;;  %p380_p2 = scmp.eq.s32.totalorder %s6154_s16, 3 }
  0x16   : > { %s11450_s18 = smov (%p40_p0, %s39_s18), 0  ;;  %s11452_s19 = smov (!%p40_p0, %s42_s19), %s8239_s14 }
  0x17   : > { %11400 = sst [smem:[#allocation17_spill]] %s11450_s18  ;;  %p8373_p3 = por %p380_p2, %p379_p1 }
  0x18   : > { %p385_p4 = scmp.ne.s32.totalorder %s8219_s26, %s8215_s25  ;;  %p44_p5 = scmp.ge.s32.totalorder %s11452_s19, 2 }
  0x19   : > { %s11401_s20 = scalar_select %p8373_p3, 1, 0 }
  0x1a   : > { %p386_p6 = scmp.eq.s32.totalorder %s6155_s17, 3  ;;  %p6162_p7 = scmp.ge.s32.totalorder %s8243_s15, 1 }
  0x1b   : > { %11402 = sst [smem:[#allocation18_spill]] %s11401_s20  ;;  %p534_p8 = scmp.lt.s32.totalorder %s8243_s15, 5 }
  0x1c   : > { %s11454_s19 = smov (%p44_p5, %s11452_s19), 0  ;;  %p8383_p9 = por %p386_p6, %p385_p4 }
  0x1d   : > { %11403 = sst [smem:[#allocation19_spill]] %s11454_s19  ;;  %p535_p10 = pnand %p6162_p7, %p534_p8 }
  0x1e   : > { %s11404_s21 = scalar_select %p8383_p9, 1, 0 }
  0x1f   : > { %s366_s22 = ssub.s32 %s8239_s14, %s11454_s19  ;;  %s369_s23 = sadd.s32 1, %s8223_s27 }
  0x20   : > { %11405 = sst [smem:[#allocation20_spill]] %s11404_s21  ;;  %p367_p11 = scmp.eq.s32.totalorder %s366_s22, 0 }
  0x21   : > { %538 = sbr.rel (%p535_p10) target bundleno = 2322 (0x912), region = 68 }
  0x22   : > { %s8391_s24 = scalar_select %p367_p11, %s8223_s27, %s369_s23  }
  0x24   : > { %11406 = sst [smem:[#allocation21_spill]] %s8391_s24 }
  0x26   : > { %s8394_s16 = sand.u32 1, %s8219_s26   ;;  %s6165_s17 = sshll.u32 %s8231_s29, 1 }
  0x27   : > { %11407 = sst [smem:[#allocation22_spill]] %s8394_s16  ;;  %s6163_s18 = sshll.u32 %s8394_s16, 7 }
  0x28   : > { %p639_p12 = scmp.lt.s32.totalorder %s6165_s17, 3  ;;  %s6171_s30 = sshll.u32 %s8227_s28, 1 }
  0x29   : > { %p674_p13 = scmp.lt.s32.totalorder %s8227_s28, 1  ;;  %s653_s22 = sadd.s32 %s8231_s29, %s6171_s30 }
  0x2a   : > { %s11456_s17 = smov (!%p639_p12, %s6165_s17), 3  ;;  %s11408_s0 = sld [smem:[#allocation28_spill]] }
  0x2b   : > { %s6523_s19 = sshll.u32 %s11456_s17, 6  ;;  %s11409_s1 = sld [smem:[#allocation29_spill]] }
  0x2c   : > { %s6172_s26 = sshll.u32 %s653_s22, 1  ;;  %s11411_s2 = sld [smem:[#allocation30_spill]] }
  0x2d   : > { %p655_p0 = scmp.lt.s32.totalorder %s6172_s26, 7  ;;  %s11412_s3 = sld [smem:[#allocation31_spill]] }
  0x2e   : > { %s8412_s15 = scalar_select %p674_p13, %s8227_s28, 1 }
  0x2f   : > { %s11458_s26 = smov (!%p655_p0, %s6172_s26), 7  ;;  %s11413_s4 = sld [smem:[#allocation32_spill]] }
  0x30   : > { %s8404_s24 = scalar_lea.vmem %s11408_s0, %s6523_s19  ;;  %s6900_s30 = smul.u32 224, %s8412_s15 }
  0x31   : > { %s8409_s25 = scalar_lea.vmem %s11409_s1, %s6523_s19  ;;  %s6525_s27 = sshll.u32 %s11458_s26, 6 }
  0x32   : > { %11410 = sst [smem:[#allocation23_spill]] %s8409_s25  ;;  %s6901_s19 = smul.u32 192, %s8412_s15 }
  0x33   : > { %s8423_s0 = scalar_lea.vmem %s11411_s2, %s6525_s27  ;;  %s8428_s12 = scalar_lea.vmem %s11412_s3, %s6525_s27 }
  0x34   : > { %s8438_s26 = scalar_lea.vmem %s11348_s6, %s6901_s19  ;;  %s8447_s1 = scalar_lea.vmem %s11350_s8, %s6901_s19 }
  0x35   : > { %s8433_s29 = scalar_lea.vmem %s11413_s4, %s6900_s30  ;;  %s697_s20 = scalar_lea.vmem %s11351_s9, %s8412_s15 }
  0x36   : > { %s6527_s16 = sshll.u32 %s8412_s15, 7  ;;  %s705_s23 = scalar_lea.vmem %s11353_s11, %s8412_s15 }
  0x37   : > { %s8457_s25 = scalar_lea.vmem %s11352_s10, %s6527_s16  ;;  %s8463_s17 = scalar_lea.vmem [#allocation4], %s6163_s18 }
  0x38   : > { %s8465_s21 = scalar_lea.vmem [#allocation6], %s6163_s18  ;;  %p6184_p1 = scmp.ne.s32.totalorder %s8227_s28, 0 }
  0x39   : > { %s11414_s2 = sld [smem:[#allocation23_spill]] (!%p6184_p1) }
  0x3a   : > { %712 = sbr.rel (%p6184_p1) target bundleno = 116 (0x74), region = 72 }
  0x3f   : > { %v713_v0 = vld [vmem:[%s8404_s24] sm:$0xff]  ;;  %vm729_vm0 = vcmask 261120   ;;  %v714_v1 = vld [vmem:[%s8404_s24 + $0x8] sm:$0xff]  ;;  %v715_v2 = vld [vmem:[%s8404_s24 + $0x10] sm:$0xff]  ;;  %vm778_vm1 = vcmask 523264   ;;  %v8245_v6 = vmov 0.0  }
  0x40   : > { %730 = vst.msk [vmem:[%s8463_s17] sm:$0xff] %vm729_vm0, %v713_v0  ;;  %731 = vst.msk [vmem:[%s8463_s17 + $0x8] sm:$0xff] %vm729_vm0, %v714_v1  ;;  %v716_v3 = vld [vmem:[%s8404_s24 + $0x18] sm:$0xff]  ;;  %v717_v4 = vld [vmem:[%s8404_s24 + $0x20] sm:$0xff]  ;;  %vm780_vm2 = vcmask 517120   ;;  %vm817_vm3 = vcmask 516096  }
  0x41   : > { %732 = vst.msk [vmem:[%s8463_s17 + $0x10] sm:$0xff] %vm729_vm0, %v715_v2  ;;  %v718_v5 = vld [vmem:[%s8404_s24 + $0x28] sm:$0xff]  ;;  %733 = vst.msk [vmem:[%s8463_s17 + $0x18] sm:$0xff] %vm729_vm0, %v716_v3  ;;  %v719_v7 = vld [vmem:[%s8404_s24 + $0x30] sm:$0xff] }
  0x42   : > { %779 = vst.msk [vmem:[#allocation2] sm:$0xff] %vm778_vm1, %v8245_v6  ;;  %782 = vst.msk [vmem:[#allocation2 + $0x10] sm:$0xff] %vm778_vm1, %v8245_v6  ;;  %v720_v8 = vld [vmem:[%s8404_s24 + $0x38] sm:$0xff]  ;;  %v721_v9 = vld [vmem:[%s8404_s24 + $0x40] sm:$0xff] }
  0x43   : > { %784 = vst.msk [vmem:[#allocation2 + $0x20] sm:$0xff] %vm778_vm1, %v8245_v6  ;;  %786 = vst.msk [vmem:[#allocation2 + $0x30] sm:$0xff] %vm778_vm1, %v8245_v6  ;;  %v722_v10 = vld [vmem:[%s8404_s24 + $0x48] sm:$0xff]  ;;  %v723_v11 = vld [vmem:[%s8404_s24 + $0x50] sm:$0xff] }
  0x44   : > { %788 = vst.msk [vmem:[#allocation2 + $0x40] sm:$0xff] %vm778_vm1, %v8245_v6  ;;  %790 = vst.msk [vmem:[#allocation2 + $0x50] sm:$0xff] %vm778_vm1, %v8245_v6  ;;  %v724_v12 = vld [vmem:[%s8404_s24 + $0x58] sm:$0xff]  ;;  %v725_v13 = vld [vmem:[%s8404_s24 + $0x60] sm:$0xff] }
  0x45   : > { %792 = vst.msk [vmem:[#allocation2 + $0x60] sm:$0xff] %vm778_vm1, %v8245_v6  ;;  %794 = vst.msk [vmem:[#allocation2 + $0x70] sm:$0xff] %vm778_vm1, %v8245_v6  ;;  %v726_v14 = vld [vmem:[%s8404_s24 + $0x68] sm:$0xff]  ;;  %v727_v15 = vld [vmem:[%s8404_s24 + $0x70] sm:$0xff] }
  0x46   : > { %796 = vst.msk [vmem:[#allocation2 + $0x80] sm:$0xff] %vm778_vm1, %v8245_v6  ;;  %798 = vst.msk [vmem:[#allocation2 + $0x90] sm:$0xff] %vm778_vm1, %v8245_v6  ;;  %v728_v16 = vld [vmem:[%s8404_s24 + $0x78] sm:$0xff]  ;;  %v746_v17 = vld [vmem:[%s11414_s2] sm:$0xff] }
  0x47   : > { %800 = vst.msk [vmem:[#allocation2 + $0xa0] sm:$0xff] %vm778_vm1, %v8245_v6  ;;  %802 = vst.msk [vmem:[#allocation2 + $0xb0] sm:$0xff] %vm778_vm1, %v8245_v6  ;;  %v747_v18 = vld [vmem:[%s11414_s2 + $0x8] sm:$0xff]  ;;  %v748_v19 = vld [vmem:[%s11414_s2 + $0x10] sm:$0xff] }
  0x48   : > { %804 = vst.msk [vmem:[#allocation2 + $0xc0] sm:$0xff] %vm778_vm1, %v8245_v6  ;;  %806 = vst.msk [vmem:[#allocation2 + $0xd0] sm:$0xff] %vm778_vm1, %v8245_v6  ;;  %v749_v20 = vld [vmem:[%s11414_s2 + $0x18] sm:$0xff]  ;;  %v750_v21 = vld [vmem:[%s11414_s2 + $0x20] sm:$0xff] }
  0x49   : > { %808 = vst.msk [vmem:[#allocation2 + $0xe0] sm:$0xff] %vm778_vm1, %v8245_v6  ;;  %810 = vst.msk [vmem:[#allocation2 + $0xf0] sm:$0xff] %vm778_vm1, %v8245_v6  ;;  %v751_v22 = vld [vmem:[%s11414_s2 + $0x28] sm:$0xff]  ;;  %v752_v23 = vld [vmem:[%s11414_s2 + $0x30] sm:$0xff] }
  0x4a   : > { %812 = vst.msk [vmem:[#allocation2 + $0x100] sm:$0xff] %vm778_vm1, %v8245_v6  ;;  %814 = vst.msk [vmem:[#allocation2 + $0x110] sm:$0xff] %vm778_vm1, %v8245_v6  ;;  %v753_v24 = vld [vmem:[%s11414_s2 + $0x38] sm:$0xff]  ;;  %v754_v25 = vld [vmem:[%s11414_s2 + $0x40] sm:$0xff] }
  0x4b   : > { %816 = vst.msk [vmem:[#allocation3] sm:$0xff] %vm778_vm1, %v8245_v6  ;;  %819 = vst.msk [vmem:[#allocation3 + $0x10] sm:$0xff] %vm778_vm1, %v8245_v6  ;;  %v755_v26 = vld [vmem:[%s11414_s2 + $0x48] sm:$0xff]  ;;  %v756_v27 = vld [vmem:[%s11414_s2 + $0x50] sm:$0xff] }
  0x4c   : > { %821 = vst.msk [vmem:[#allocation3 + $0x20] sm:$0xff] %vm778_vm1, %v8245_v6  ;;  %823 = vst.msk [vmem:[#allocation3 + $0x30] sm:$0xff] %vm778_vm1, %v8245_v6  ;;  %v757_v28 = vld [vmem:[%s11414_s2 + $0x58] sm:$0xff]  ;;  %v758_v29 = vld [vmem:[%s11414_s2 + $0x60] sm:$0xff] }
  0x4d   : > { %825 = vst.msk [vmem:[#allocation3 + $0x40] sm:$0xff] %vm778_vm1, %v8245_v6  ;;  %827 = vst.msk [vmem:[#allocation3 + $0x50] sm:$0xff] %vm778_vm1, %v8245_v6  ;;  %v759_v30 = vld [vmem:[%s11414_s2 + $0x68] sm:$0xff]  ;;  %v760_v31 = vld [vmem:[%s11414_s2 + $0x70] sm:$0xff] }
  0x4e   : > { %829 = vst.msk [vmem:[#allocation3 + $0x60] sm:$0xff] %vm778_vm1, %v8245_v6  ;;  %831 = vst.msk [vmem:[#allocation3 + $0x70] sm:$0xff] %vm778_vm1, %v8245_v6  ;;  %v761_v32 = vld [vmem:[%s11414_s2 + $0x78] sm:$0xff] }
  0x4f   : > { %833 = vst.msk [vmem:[#allocation3 + $0x80] sm:$0xff] %vm778_vm1, %v8245_v6  ;;  %835 = vst.msk [vmem:[#allocation3 + $0x90] sm:$0xff] %vm778_vm1, %v8245_v6 }
  0x50   : > { %837 = vst.msk [vmem:[#allocation3 + $0xa0] sm:$0xff] %vm778_vm1, %v8245_v6  ;;  %839 = vst.msk [vmem:[#allocation3 + $0xb0] sm:$0xff] %vm778_vm1, %v8245_v6 }
  0x51   : > { %841 = vst.msk [vmem:[#allocation3 + $0xc0] sm:$0xff] %vm778_vm1, %v8245_v6  ;;  %843 = vst.msk [vmem:[#allocation3 + $0xd0] sm:$0xff] %vm778_vm1, %v8245_v6 }
  0x52   : > { %845 = vst.msk [vmem:[#allocation3 + $0xe0] sm:$0xff] %vm778_vm1, %v8245_v6  ;;  %847 = vst.msk [vmem:[#allocation3 + $0xf0] sm:$0xff] %vm778_vm1, %v8245_v6 }
  0x53   : > { %849 = vst.msk [vmem:[#allocation3 + $0x100] sm:$0xff] %vm778_vm1, %v8245_v6  ;;  %851 = vst.msk [vmem:[#allocation3 + $0x110] sm:$0xff] %vm778_vm1, %v8245_v6 }
  0x54   : > { %734 = vst.msk [vmem:[%s8463_s17 + $0x20] sm:$0xff] %vm729_vm0, %v717_v4  ;;  %735 = vst.msk [vmem:[%s8463_s17 + $0x28] sm:$0xff] %vm729_vm0, %v718_v5 }
  0x55   : > { %781 = vst.msk [vmem:[#allocation2 + $0x8] sm:$0x3] %vm780_vm2, %v8245_v6  ;;  %783 = vst.msk [vmem:[#allocation2 + $0x18] sm:$0x3] %vm780_vm2, %v8245_v6 }
  0x56   : > { %785 = vst.msk [vmem:[#allocation2 + $0x28] sm:$0x3] %vm780_vm2, %v8245_v6  ;;  %787 = vst.msk [vmem:[#allocation2 + $0x38] sm:$0x3] %vm780_vm2, %v8245_v6 }
  0x57   : > { %789 = vst.msk [vmem:[#allocation2 + $0x48] sm:$0x3] %vm780_vm2, %v8245_v6  ;;  %791 = vst.msk [vmem:[#allocation2 + $0x58] sm:$0x3] %vm780_vm2, %v8245_v6 }
  0x58   : > { %793 = vst.msk [vmem:[#allocation2 + $0x68] sm:$0x3] %vm780_vm2, %v8245_v6  ;;  %795 = vst.msk [vmem:[#allocation2 + $0x78] sm:$0x3] %vm780_vm2, %v8245_v6 }
  0x59   : > { %797 = vst.msk [vmem:[#allocation2 + $0x88] sm:$0x3] %vm780_vm2, %v8245_v6  ;;  %799 = vst.msk [vmem:[#allocation2 + $0x98] sm:$0x3] %vm780_vm2, %v8245_v6 }
  0x5a   : > { %801 = vst.msk [vmem:[#allocation2 + $0xa8] sm:$0x3] %vm780_vm2, %v8245_v6  ;;  %803 = vst.msk [vmem:[#allocation2 + $0xb8] sm:$0x3] %vm780_vm2, %v8245_v6 }
  0x5b   : > { %805 = vst.msk [vmem:[#allocation2 + $0xc8] sm:$0x3] %vm780_vm2, %v8245_v6  ;;  %807 = vst.msk [vmem:[#allocation2 + $0xd8] sm:$0x3] %vm780_vm2, %v8245_v6 }
  0x5c   : > { %809 = vst.msk [vmem:[#allocation2 + $0xe8] sm:$0x3] %vm780_vm2, %v8245_v6  ;;  %811 = vst.msk [vmem:[#allocation2 + $0xf8] sm:$0x3] %vm780_vm2, %v8245_v6 }
  0x5d   : > { %813 = vst.msk [vmem:[#allocation2 + $0x108] sm:$0x3] %vm780_vm2, %v8245_v6  ;;  %815 = vst.msk [vmem:[#allocation2 + $0x118] sm:$0x3] %vm780_vm2, %v8245_v6 }
  0x5e   : > { %818 = vst.msk [vmem:[#allocation3 + $0x8] sm:$0x1] %vm817_vm3, %v8245_v6  ;;  %820 = vst.msk [vmem:[#allocation3 + $0x18] sm:$0x1] %vm817_vm3, %v8245_v6 }
  0x5f   : > { %822 = vst.msk [vmem:[#allocation3 + $0x28] sm:$0x1] %vm817_vm3, %v8245_v6  ;;  %824 = vst.msk [vmem:[#allocation3 + $0x38] sm:$0x1] %vm817_vm3, %v8245_v6 }
  0x60   : > { %826 = vst.msk [vmem:[#allocation3 + $0x48] sm:$0x1] %vm817_vm3, %v8245_v6  ;;  %828 = vst.msk [vmem:[#allocation3 + $0x58] sm:$0x1] %vm817_vm3, %v8245_v6 }
  0x61   : > { %830 = vst.msk [vmem:[#allocation3 + $0x68] sm:$0x1] %vm817_vm3, %v8245_v6  ;;  %832 = vst.msk [vmem:[#allocation3 + $0x78] sm:$0x1] %vm817_vm3, %v8245_v6 }
  0x62   : > { %834 = vst.msk [vmem:[#allocation3 + $0x88] sm:$0x1] %vm817_vm3, %v8245_v6  ;;  %836 = vst.msk [vmem:[#allocation3 + $0x98] sm:$0x1] %vm817_vm3, %v8245_v6 }
  0x63   : > { %838 = vst.msk [vmem:[#allocation3 + $0xa8] sm:$0x1] %vm817_vm3, %v8245_v6  ;;  %840 = vst.msk [vmem:[#allocation3 + $0xb8] sm:$0x1] %vm817_vm3, %v8245_v6 }
  0x64   : > { %842 = vst.msk [vmem:[#allocation3 + $0xc8] sm:$0x1] %vm817_vm3, %v8245_v6  ;;  %844 = vst.msk [vmem:[#allocation3 + $0xd8] sm:$0x1] %vm817_vm3, %v8245_v6 }
  0x65   : > { %846 = vst.msk [vmem:[#allocation3 + $0xe8] sm:$0x1] %vm817_vm3, %v8245_v6  ;;  %848 = vst.msk [vmem:[#allocation3 + $0xf8] sm:$0x1] %vm817_vm3, %v8245_v6 }
  0x66   : > { %850 = vst.msk [vmem:[#allocation3 + $0x108] sm:$0x1] %vm817_vm3, %v8245_v6  ;;  %852 = vst.msk [vmem:[#allocation3 + $0x118] sm:$0x1] %vm817_vm3, %v8245_v6 }
  0x67   : > { %736 = vst.msk [vmem:[%s8463_s17 + $0x30] sm:$0xff] %vm729_vm0, %v719_v7  ;;  %737 = vst.msk [vmem:[%s8463_s17 + $0x38] sm:$0xff] %vm729_vm0, %v720_v8 }
  0x68   : > { %738 = vst.msk [vmem:[%s8463_s17 + $0x40] sm:$0xff] %vm729_vm0, %v721_v9  ;;  %739 = vst.msk [vmem:[%s8463_s17 + $0x48] sm:$0xff] %vm729_vm0, %v722_v10 }
  0x69   : > { %740 = vst.msk [vmem:[%s8463_s17 + $0x50] sm:$0xff] %vm729_vm0, %v723_v11  ;;  %741 = vst.msk [vmem:[%s8463_s17 + $0x58] sm:$0xff] %vm729_vm0, %v724_v12 }
  0x6a   : > { %742 = vst.msk [vmem:[%s8463_s17 + $0x60] sm:$0xff] %vm729_vm0, %v725_v13  ;;  %743 = vst.msk [vmem:[%s8463_s17 + $0x68] sm:$0xff] %vm729_vm0, %v726_v14 }
  0x6b   : > { %744 = vst.msk [vmem:[%s8463_s17 + $0x70] sm:$0xff] %vm729_vm0, %v727_v15  ;;  %745 = vst.msk [vmem:[%s8463_s17 + $0x78] sm:$0xff] %vm729_vm0, %v728_v16 }
  0x6c   : > { %762 = vst.msk [vmem:[%s8465_s21] sm:$0xff] %vm729_vm0, %v746_v17  ;;  %763 = vst.msk [vmem:[%s8465_s21 + $0x8] sm:$0xff] %vm729_vm0, %v747_v18 }
  0x6d   : > { %764 = vst.msk [vmem:[%s8465_s21 + $0x10] sm:$0xff] %vm729_vm0, %v748_v19  ;;  %765 = vst.msk [vmem:[%s8465_s21 + $0x18] sm:$0xff] %vm729_vm0, %v749_v20 }
  0x6e   : > { %766 = vst.msk [vmem:[%s8465_s21 + $0x20] sm:$0xff] %vm729_vm0, %v750_v21  ;;  %767 = vst.msk [vmem:[%s8465_s21 + $0x28] sm:$0xff] %vm729_vm0, %v751_v22 }
  0x6f   : > { %768 = vst.msk [vmem:[%s8465_s21 + $0x30] sm:$0xff] %vm729_vm0, %v752_v23  ;;  %769 = vst.msk [vmem:[%s8465_s21 + $0x38] sm:$0xff] %vm729_vm0, %v753_v24 }
  0x70   : > { %770 = vst.msk [vmem:[%s8465_s21 + $0x40] sm:$0xff] %vm729_vm0, %v754_v25  ;;  %771 = vst.msk [vmem:[%s8465_s21 + $0x48] sm:$0xff] %vm729_vm0, %v755_v26 }
  0x71   : > { %772 = vst.msk [vmem:[%s8465_s21 + $0x50] sm:$0xff] %vm729_vm0, %v756_v27  ;;  %773 = vst.msk [vmem:[%s8465_s21 + $0x58] sm:$0xff] %vm729_vm0, %v757_v28 }
  0x72   : > { %774 = vst.msk [vmem:[%s8465_s21 + $0x60] sm:$0xff] %vm729_vm0, %v758_v29  ;;  %775 = vst.msk [vmem:[%s8465_s21 + $0x68] sm:$0xff] %vm729_vm0, %v759_v30 }
  0x73   : > { %776 = vst.msk [vmem:[%s8465_s21 + $0x70] sm:$0xff] %vm729_vm0, %v760_v31  ;;  %777 = vst.msk [vmem:[%s8465_s21 + $0x78] sm:$0xff] %vm729_vm0, %v761_v32 }
  0x74 PF: > { %v8709_v33 = vld [vmem:[%s8463_s17] sm:$0xff]  ;;  %v8712_v34 = vld [vmem:[%s8463_s17 + $0x10] sm:$0xff]  ;;  %v8715_v35 = vld [vmem:[%s8463_s17 + $0x8] sm:$0xff]  ;;  %s8246_s3 = smov 32   ;;  %s8248_s4 = smov 64  }
  0x75   : > { %v8718_v36 = vsub.f32 0.0, %v8709_v33  ;;  %v8721_v37 = vsub.f32 0.0, %v8712_v34  ;;  %v8724_v38 = vsub.f32 0.0, %v8715_v35  ;;  %v8727_v39 = vld [vmem:[%s8463_s17 + $0x18] sm:$0xff]  ;;  %v8730_v40 = vld [vmem:[%s8463_s17 + $0x20] sm:$0xff]  ;;  %v8733_v41 = vld [vmem:[%s8463_s17 + $0x28] sm:$0xff]  ;;  %s11432_s19 = scalar_lea.vmem %s11349_s7, %s8412_s15 }
  0x76   : > { %v8736_v42 = vsub.f32 0.0, %v8727_v39  ;;  %v8739_v43 = vsub.f32 0.0, %v8730_v40  ;;  %v8742_v44 = vsub.f32 0.0, %v8733_v41  ;;  %v8749_v49 = vld [vmem:[%s8463_s17 + $0x30] sm:$0xff]  ;;  %v8752_v50 = vld [vmem:[%s8463_s17 + $0x38] sm:$0xff]  ;;  %v8755_v51 = vld [vmem:[%s8463_s17 + $0x40] sm:$0xff] }
  0x77   : > { %v1135_v45 = vmin.f32 %v8718_v36, 0.0  ;;  %v1137_v46 = vmin.f32 %v8721_v37, 0.0  ;;  %v1136_v47 = vmin.f32 %v8724_v38, 0.0  ;;  %v8759_v55 = vld [vmem:[%s8463_s17 + $0x48] sm:$0xff]  ;;  %v8763_v60 = vsub.f32 0.0, %v8749_v49  ;;  %v8776_v2 = vld [vmem:[%s8463_s17 + $0x50] sm:$0xff] }
  0x78   : > { %v1138_v48 = vmin.f32 %v8736_v42, 0.0  ;;  %v1139_v54 = vmin.f32 %v8739_v43, 0.0  ;;  %v1140_v58 = vmin.f32 %v8742_v44, 0.0  ;;  %v8766_v61 = vsub.f32 0.0, %v8752_v50  ;;  %v8781_v5 = vld [vmem:[%s8463_s17 + $0x58] sm:$0xff]  ;;  %v8784_v6 = vld [vmem:[%s8463_s17 + $0x60] sm:$0xff] }
  0x79   : > { %v1151_v52 = vmul.f32 1.442695, %v1135_v45  ;;  %v1155_v53 = vmul.f32 1.442695, %v1137_v46  ;;  %v1153_v56 = vmul.f32 1.442695, %v1136_v47 }
  0x7a   : > { %v1157_v57 = vmul.f32 1.442695, %v1138_v48  ;;  %v1159_v59 = vmul.f32 1.442695, %v1139_v54  ;;  %v1161_v62 = vmul.f32 1.442695, %v1140_v58 }
  0x7b   : > { %7557 = vpow2.f32 %v1151_v52  ;;  %v8769_v63 = vsub.f32 0.0, %v8755_v51  ;;  %v8772_v0 = vsub.f32 0.0, %v8759_v55  ;;  %v1141_v1 = vmin.f32 %v8763_v60, 0.0  ;;  %v8788_v9 = vld [vmem:[%s8463_s17 + $0x68] sm:$0xff]  ;;  %v8800_v15 = vld [vmem:[%s8463_s17 + $0x70] sm:$0xff]  ;;  %v8803_v16 = vld [vmem:[%s8463_s17 + $0x78] sm:$0xff] }
  0x7c   : > { %7559 = vpow2.f32 %v1155_v53  ;;  %v1142_v3 = vmin.f32 %v8766_v61, 0.0  ;;  %v8791_v12 = vsub.f32 0.0, %v8776_v2  ;;  %v8794_v13 = vsub.f32 0.0, %v8781_v5  ;;  %s11434_s27 = sld [smem:[#allocation22_spill]]  ;;  %s8250_s28 = smov [#allocation4]  }
  0x7d   : > { %7561 = vpow2.f32 %v1153_v56  ;;  %v1143_v4 = vmin.f32 %v8769_v63, 0.0  ;;  %v1163_v7 = vmul.f32 1.442695, %v1141_v1  ;;  %v1144_v8 = vmin.f32 %v8772_v0, 0.0  ;;  %s11436_s14 = sld [smem:[#allocation33_spill]] }
  0x7e   : > { %7563 = vpow2.f32 %v1157_v57  ;;  %v1165_v10 = vmul.f32 1.442695, %v1142_v3  ;;  %v8797_v14 = vsub.f32 0.0, %v8784_v6  ;;  %v1145_v18 = vmin.f32 %v8791_v12, 0.0 }
  0x7f   : > { %7565 = vpow2.f32 %v1159_v59  ;;  %v1167_v11 = vmul.f32 1.442695, %v1143_v4  ;;  %v1169_v17 = vmul.f32 1.442695, %v1144_v8  ;;  %v8807_v19 = vsub.f32 0.0, %v8788_v9 }
  0x80   : > { %7567 = vpow2.f32 %v1161_v62  ;;  %v1146_v20 = vmin.f32 %v8794_v13, 0.0  ;;  %v1171_v21 = vmul.f32 1.442695, %v1145_v18  ;;  %v1147_v22 = vmin.f32 %v8797_v14, 0.0 }
  0x81   : > { %7569 = vpow2.f32 %v1163_v7  ;;  %v8812_v23 = vsub.f32 0.0, %v8800_v15  ;;  %v8815_v24 = vsub.f32 0.0, %v8803_v16  ;;  %v1148_v26 = vmin.f32 %v8807_v19, 0.0 }
  0x82   : > { %7571 = vpow2.f32 %v1165_v10  ;;  %v1173_v25 = vmul.f32 1.442695, %v1146_v20  ;;  %vm1119_vm4 = vcmp.gt.f32.partialorder %v8718_v36, 0.0  ;;  %vm1121_vm5 = vcmp.gt.f32.partialorder %v8721_v37, 0.0 }
  0x83   : > { %7573 = vpow2.f32 %v1167_v11  ;;  %v1149_v28 = vmin.f32 %v8812_v23, 0.0  ;;  %v1175_v31 = vmul.f32 1.442695, %v1147_v22  ;;  %v1150_v32 = vmin.f32 %v8815_v24, 0.0 }
  0x84   : > { %7575 = vpow2.f32 %v1169_v17  ;;  %vm1120_vm6 = vcmp.gt.f32.partialorder %v8724_v38, 0.0  ;;  %v1177_v47 = vmul.f32 1.442695, %v1148_v26  ;;  %vm1122_vm7 = vcmp.gt.f32.partialorder %v8736_v42, 0.0 }
  0x85   : > { %7577 = vpow2.f32 %v1171_v21  ;;  %v1179_v58 = vmul.f32 1.442695, %v1149_v28  ;;  %vm1123_vm8 = vcmp.gt.f32.partialorder %v8739_v43, 0.0  ;;  %vm1124_vm9 = vcmp.gt.f32.partialorder %v8742_v44, 0.0 }
  0x86   : > { %7579 = vpow2.f32 %v1173_v25  ;;  %vm1125_vm10 = vcmp.gt.f32.partialorder %v8763_v60, 0.0  ;;  %vm1126_vm11 = vcmp.gt.f32.partialorder %v8766_v61, 0.0  ;;  %vm1127_vm12 = vcmp.gt.f32.partialorder %v8769_v63, 0.0 }
  0x87   : > { %7581 = vpow2.f32 %v1175_v31  ;;  %vm1128_vm13 = vcmp.gt.f32.partialorder %v8772_v0, 0.0  ;;  %vm1129_vm14 = vcmp.gt.f32.partialorder %v8791_v12, 0.0  ;;  %vm1130_vm15 = vcmp.gt.f32.partialorder %v8794_v13, 0.0 }
  0x88   : > { %v7558_v27 = vpop.eup %7557  ;;  %7583 = vpow2.f32 %v1177_v47  ;;  %vm1131_vm0 = vcmp.gt.f32.partialorder %v8797_v14, 0.0  ;;  %vm1132_vm1 = vcmp.gt.f32.partialorder %v8807_v19, 0.0  ;;  %vm1133_vm2 = vcmp.gt.f32.partialorder %v8812_v23, 0.0 }
  0x89   : > { %v7560_v29 = vpop.eup %7559  ;;  %v6201_v30 = vadd.f32 -1.0, %v7558_v27  ;;  %7585 = vpow2.f32 %v1179_v58  ;;  %vm1134_vm3 = vcmp.gt.f32.partialorder %v8815_v24, 0.0 }
  0x8a   : > { %v7562_v45 = vpop.eup %7561  ;;  %v6203_v46 = vadd.f32 -1.0, %v7560_v29 }
  0x8b   : > { %v7564_v48 = vpop.eup %7563  ;;  %v1199_v52 = vsel %vm1119_vm4, %v8718_v36, %v6201_v30  ;;  %v6202_v53 = vadd.f32 -1.0, %v7562_v45  ;;  %v1181_v36 = vmul.f32 1.442695, %v1150_v32  ;;  %vm1007_vm4 = vcmp.gt.f32.partialorder %v8709_v33, 0.0 }
  0x8c   : > { %v7566_v54 = vpop.eup %7565  ;;  %1231 = vrot.lane.b32.xlu0 %v1199_v52, %s8246_s3  ;;  %v1201_v56 = vsel %vm1121_vm5, %v8721_v37, %v6203_v46  ;;  %v6204_v57 = vadd.f32 -1.0, %v7564_v48  ;;  %v885_v52 = vld [vmem:[%s8423_s0] sm:$0xff]  ;;  %vm1279_vm5 = vcmask 261120  }
  0x8d   : > { %v7568_v59 = vpop.eup %7567  ;;  %1235 = vrot.lane.b32.xlu1 %v1201_v56, %s8246_s3  ;;  %v1200_v62 = vsel %vm1120_vm6, %v8724_v38, %v6202_v53  ;;  %v6205_v1 = vadd.f32 -1.0, %v7566_v54  ;;  %7587 = vpow2.f32 %v1181_v36  ;;  %v886_v53 = vld [vmem:[%s8423_s0 + $0x8] sm:$0xff]  ;;  %v887_v54 = vld [vmem:[%s8423_s0 + $0x10] sm:$0xff]  ;;  %v1025_v56 = vmin.f32 %v8712_v34, 0.0 }
  0x8e   : > { %v7570_v3 = vpop.eup %7569  ;;  %v1202_v4 = vsel %vm1122_vm7, %v8736_v42, %v6204_v57  ;;  %v6206_v7 = vadd.f32 -1.0, %v7568_v59  ;;  %v8875_v57 = vsub.f32 0.0, %v885_v52  ;;  %v8877_v58 = vsub.f32 0.0, %v886_v53  ;;  %v7483_v52 = vld [vmem:[%s8433_s29 + $0x50] sm:$0xff]  }
  0x8f   : > { %v7572_v8 = vpop.eup %7571  ;;  %v1203_v38 = vsel %vm1123_vm8, %v8739_v43, %v6205_v1  ;;  %v6207_v10 = vadd.f32 -1.0, %v7570_v3  ;;  %v1026_v59 = vmin.f32 %v8727_v39, 0.0  ;;  %v1028_v1 = vmin.f32 %v8733_v41, 0.0  ;;  %v7476_v53 = vld [vmem:[%s8433_s29 + $0x90] sm:$0xff]  }
  0x90   : > { %1233 = vrot.lane.b32.xlu0 %v1200_v62, %s8246_s3  ;;  %v7574_v37 = vpop.eup %7573  ;;  %v1204_v11 = vsel %vm1124_vm9, %v8742_v44, %v6206_v7  ;;  %v6208_v42 = vadd.f32 -1.0, %v7572_v8  ;;  %v1027_v62 = vmin.f32 %v8730_v40, 0.0  ;;  %v1029_v36 = vmin.f32 %v8749_v49, 0.0  ;;  %v7465_v8 = vld [vmem:[%s8433_s29 + $0xb8] sm:$0xff]  }
  0x91   : > { %1237 = vrot.lane.b32.xlu1 %v1202_v4, %s8246_s3  ;;  %v7576_v17 = vpop.eup %7575  ;;  %v1205_v18 = vsel %vm1125_vm10, %v8763_v60, %v6207_v10  ;;  %v6209_v20 = vadd.f32 -1.0, %v7574_v37  ;;  %v8886_v3 = vmul.f32 1.442695, %v1025_v56  ;;  %v1538_v4 = vmin.f32 %v8875_v57, 0.0  ;;  %v7479_v56 = vld [vmem:[%s8433_s29 + $0x88] sm:$0xff]  }
  0x92   : > { %v7578_v21 = vpop.eup %7577  ;;  %v1206_v43 = vsel %vm1126_vm11, %v8766_v61, %v6208_v42  ;;  %v6210_v44 = vadd.f32 -1.0, %v7576_v17  ;;  %v1539_v7 = vmin.f32 %v8877_v58, 0.0  ;;  %v7468_v42 = vld [vmem:[%s8433_s29 + $0x78] sm:$0xff]   ;;  %vm1297_vm6 = vcmask 523264  }
  0x93   : > { %v7580_v22 = vpop.eup %7579  ;;  %v1207_v25 = vsel %vm1127_vm12, %v8769_v63, %v6209_v20  ;;  %v6211_v26 = vadd.f32 -1.0, %v7578_v21  ;;  %v7469_v17 = vld [vmem:[%s8433_s29 + $0x38] sm:$0xff]   ;;  %v1031_v20 = vmin.f32 %v8755_v51, 0.0  ;;  %v1032_v21 = vmin.f32 %v8759_v55, 0.0  ;;  %6532 = vmatprep.subr.bf16.mxu0 %v7468_v42  ;;  %v7472_v55 = vld [vmem:[%s8433_s29 + $0x30] sm:$0xff]  }
  0x94   : > { %1239 = vrot.lane.b32.xlu0 %v1203_v38, %s8246_s3  ;;  %v7582_v27 = vpop.eup %7581  ;;  %v1208_v60 = vsel %vm1128_vm13, %v8772_v0, %v6210_v44  ;;  %v6212_v28 = vadd.f32 -1.0, %v7580_v22  ;;  %v1030_v38 = vmin.f32 %v8752_v50, 0.0  ;;  %v7471_v44 = vld [vmem:[%s8433_s29 + $0x70] sm:$0xff]   ;;  %v8904_v22 = vmul.f32 1.442695, %v1027_v62  ;;  %6533 = vmatpush3.bf16.msra.mxu0 %v7469_v17 }
  0x95   : > { %1241 = vrot.lane.b32.xlu1 %v1204_v11, %s8246_s3  ;;  %v7584_v61 = vpop.eup %7583  ;;  %v1209_v29 = vsel %vm1129_vm14, %v8791_v12, %v6211_v26  ;;  %v6213_v30 = vadd.f32 -1.0, %v7582_v27  ;;  %v8247_v11 = vmov 0   ;;  %v8906_v50 = vmul.f32 1.442695, %v1028_v1  ;;  %6534 = vmatprep.subr.bf16.mxu0 %v7471_v44 }
  0x96   : > { %v7586_v31 = vpop.eup %7585  ;;  %v1210_v63 = vsel %vm1130_vm15, %v8794_v13, %v6212_v28  ;;  %v6214_v32 = vadd.f32 -1.0, %v7584_v61  ;;  %2265 = vmatprep.subr.bf16.mxu1 %v8247_v11  ;;  %v8911_v26 = vmul.f32 1.442695, %v1538_v4  ;;  %v8913_v51 = vmul.f32 1.442695, %v1539_v7  ;;  %v7474_v28 = vld [vmem:[%s8433_s29 + $0x68] sm:$0xff]  }
  0x97   : > { %v1211_v45 = vsel %vm1131_vm0, %v8797_v14, %v6213_v30  ;;  %v6215_v46 = vadd.f32 -1.0, %v7586_v31  ;;  %v1023_v14 = vmin.f32 %v8709_v33, 0.0  ;;  %2266 = vmatpush1.bf16.msra.mxu1 %v7465_v8  ;;  %v8916_v27 = vmul.f32 1.442695, %v1030_v38  ;;  %v7467_v30 = vld [vmem:[%s8433_s29 + $0xa8] sm:$0xff]  }
  0x98   : > { %1243 = vrot.lane.b32.xlu0 %v1205_v18, %s8246_s3  ;;  %v1212_v12 = vsel %vm1132_vm1, %v8807_v19, %v6214_v32  ;;  %v8898_v18 = vmul.f32 1.442695, %v1026_v59  ;;  %2267 = vmatprep.subr.bf16.mxu1 %v8247_v11  ;;  %v8921_v61 = vmul.f32 1.442695, %v1031_v20  ;;  %v7475_v31 = vld [vmem:[%s8433_s29 + $0x28] sm:$0xff]   ;;  %v7470_v32 = vld [vmem:[%s8433_s29 + $0xa0] sm:$0xff]  }
  0x99   : > { %1245 = vrot.lane.b32.xlu1 %v1206_v43, %s8246_s3  ;;  %v1213_v47 = vsel %vm1133_vm2, %v8812_v23, %v6215_v46  ;;  %v1039_v19 = vmul.f32 1.442695, %v1023_v14  ;;  %v1024_v23 = vmin.f32 %v8715_v35, 0.0  ;;  %v7466_v43 = vld [vmem:[%s8433_s29 + $0xb0] sm:$0xff]   ;;  %6535 = vmatpush3.bf16.msra.mxu0 %v7472_v55  ;;  %v7481_v14 = vld [vmem:[%s8433_s29 + $0x18] sm:$0xff]   ;;  %v8954_v59 = vld [vmem:[%s8423_s0 + $0x20] sm:$0xff] }
  0x9a   : > { %v7588_v0 = vpop.eup %7587  ;;  %6536 = vmatprep.subr.bf16.mxu0 %v7474_v28  ;;  %v8962_v1 = vsub.f32 0.0, %v8954_v59  ;;  %v1035_v4 = vmin.f32 %v8784_v6, 0.0  ;;  %v8971_v8 = vld [vmem:[%s8423_s0 + $0x28] sm:$0xff]  ;;  %vm1009_vm7 = vcmp.gt.f32.partialorder %v8712_v34, 0.0  ;;  %vm1008_vm8 = vcmp.gt.f32.partialorder %v8715_v35, 0.0  ;;  %v7488_v55 = vld [vmem:[%s8433_s29 + $0xd0] sm:$0xff]  }
  0x9b   : > { %v6216_v13 = vadd.f32 -1.0, %v7588_v0  ;;  %7589 = vpow2.f32 %v1039_v19  ;;  %v8891_v37 = vmul.f32 1.442695, %v1024_v23  ;;  %2268 = vmatpush1.bf16.msra.mxu1 %v7466_v43  ;;  %v888_v0 = vld [vmem:[%s8423_s0 + $0x18] sm:$0xff]  ;;  %v1033_v19 = vmin.f32 %v8776_v2, 0.0  ;;  %v7482_v23 = vld [vmem:[%s8433_s29 + $0x80] sm:$0xff]  }
  0x9c   : > { %1247 = vrot.lane.b32.xlu0 %v1207_v25, %s8246_s3  ;;  %v8908_v25 = vmul.f32 1.442695, %v1029_v36  ;;  %2269 = vmatprep.subr.bf16.mxu1 %v8247_v11  ;;  %v7485_v2 = vld [vmem:[%s8433_s29 + $0xd8] sm:$0xff]   ;;  %7591 = vpow2.f32 %v8886_v3  ;;  %v1034_v3 = vmin.f32 %v8781_v5, 0.0  ;;  %v1036_v5 = vmin.f32 %v8788_v9, 0.0 }
  0x9d   : > { %1249 = vrot.lane.b32.xlu1 %v1208_v60, %s8246_s3  ;;  %v1214_v48 = vsel %vm1134_vm3, %v8815_v24, %v6216_v13  ;;  %v8880_v24 = vsub.f32 0.0, %v887_v54  ;;  %v7480_v13 = vld [vmem:[%s8433_s29 + $0x58] sm:$0xff]   ;;  %6537 = vmatpush3.bf16.msra.mxu0 %v7475_v31  ;;  %v7484_v54 = vld [vmem:[%s8433_s29 + $0x10] sm:$0xff]   ;;  %7593 = vpow2.f32 %v8891_v37  ;;  %v1059_v36 = vmul.f32 1.442695, %v1033_v19 }
  0x9e   : > { %7595 = vpow2.f32 %v8898_v18  ;;  %v1061_v42 = vmul.f32 1.442695, %v1034_v3  ;;  %v8983_v18 = vsub.f32 0.0, %v8971_v8  ;;  %v1542_v20 = vmin.f32 %v8962_v1, 0.0  ;;  %v8069_v3 = vld [vmem:[%s8463_s17 + $0x20] sm:$0xff] }
  0x9f   : > { %v1540_v10 = vmin.f32 %v8880_v24, 0.0  ;;  %2270 = vmatpush1.bf16.msra.mxu1 %v7467_v30  ;;  %7597 = vpow2.f32 %v8904_v22  ;;  %v1063_v9 = vmul.f32 1.442695, %v1035_v4  ;;  %vm1010_vm9 = vcmp.gt.f32.partialorder %v8727_v39, 0.0 }
  0xa0   : > { %1251 = vrot.lane.b32.xlu0 %v1209_v29, %s8246_s3  ;;  %v8923_v29 = vmul.f32 1.442695, %v1032_v21  ;;  %2271 = vmatprep.subr.bf16.mxu1 %v8247_v11  ;;  %7599 = vpow2.f32 %v8906_v50  ;;  %v1065_v50 = vmul.f32 1.442695, %v1036_v5  ;;  %vm1011_vm10 = vcmp.gt.f32.partialorder %v8730_v40, 0.0 }
  0xa1   : > { %1253 = vrot.lane.b32.xlu1 %v1210_v63, %s8246_s3  ;;  %v8918_v60 = vmul.f32 1.442695, %v1540_v10  ;;  %7601 = vpow2.f32 %v8908_v25  ;;  %v1038_v25 = vmin.f32 %v8803_v16, 0.0  ;;  %vm1012_vm11 = vcmp.gt.f32.partialorder %v8733_v41, 0.0  ;;  %v8998_v16 = vld [vmem:[%s8423_s0 + $0x30] sm:$0xff] }
  0xa2   : > { %7603 = vpow2.f32 %v8911_v26  ;;  %v7486_v26 = vld [vmem:[%s8433_s29 + $0x48] sm:$0xff]   ;;  %v1543_v28 = vmin.f32 %v8983_v18, 0.0  ;;  %vm1013_vm12 = vcmp.gt.f32.partialorder %v8749_v49, 0.0  ;;  %vm1522_vm13 = vcmp.gt.f32.partialorder %v8875_v57, 0.0 }
  0xa3   : > { %2272 = vmatpush1.bf16.msra.mxu1 %v7470_v32  ;;  %7605 = vpow2.f32 %v8916_v27  ;;  %v9006_v32 = vld [vmem:[%s8423_s0 + $0x38] sm:$0xff]  ;;  %vm1523_vm14 = vcmp.gt.f32.partialorder %v8877_v58, 0.0  ;;  %vm1524_vm1 = vcmp.gt.f32.partialorder %v8880_v24, 0.0 }
  0xa4   : > { %1255 = vrot.lane.b32.xlu0 %v1211_v45, %s8246_s3  ;;  %v7477_v45 = vld [vmem:[%s8433_s29 + $0x60] sm:$0xff]   ;;  %2273 = vmatprep.subr.bf16.mxu1 %v8247_v11  ;;  %7607 = vpow2.f32 %v8913_v51  ;;  %v7487_v51 = vld [vmem:[%s8433_s29 + $0x8] sm:$0xff]  }
  0xa5   : > { %1257 = vrot.lane.b32.xlu1 %v1212_v12, %s8246_s3  ;;  %v7478_v12 = vld [vmem:[%s8433_s29 + $0x20] sm:$0xff]   ;;  %6538 = vmatprep.subr.bf16.mxu0 %v7477_v45  ;;  %7609 = vpow2.f32 %v8921_v61  ;;  %v1562_v61 = vmul.f32 1.442695, %v1542_v20 }
  0xa6   : > { %6539 = vmatpush3.bf16.msra.mxu0 %v7478_v12  ;;  %7611 = vpow2.f32 %v8923_v29 }
  0xa7   : > { %6540 = vmatprep.subr.bf16.mxu0 %v7480_v13  ;;  %7613 = vpow2.f32 %v8918_v60  ;;  %v1069_v13 = vmul.f32 1.442695, %v1038_v25 }
  0xa8   : > { %1259 = vrot.lane.b32.xlu0 %v1213_v47, %s8246_s3  ;;  %v7590_v63 = vpop.eup %7589  ;;  %v7473_v47 = vld [vmem:[%s8433_s29 + $0x98] sm:$0xff]   ;;  %7615 = vpow2.f32 %v1059_v36 }
  0xa9   : > { %1261 = vrot.lane.b32.xlu1 %v1214_v48, %s8246_s3  ;;  %v6185_v46 = vadd.f32 -1.0, %v7590_v63  ;;  %v8935_v48 = vsub.f32 0.0, %v888_v0  ;;  %2274 = vmatpush1.bf16.msra.mxu1 %v7473_v47  ;;  %v7592_v7 = vpop.eup %7591  ;;  %7617 = vpow2.f32 %v1061_v42  ;;  %v7489_v47 = vld [vmem:[%s8433_s29 + $0x40] sm:$0xff]   ;;  %v8071_v42 = vld [vmem:[%s8463_s17 + $0x38] sm:$0xff] }
  0xaa   : > { %2275 = vmatprep.subr.bf16.mxu1 %v8247_v11  ;;  %6541 = vmatpush3.bf16.msra.mxu0 %v7481_v14  ;;  %v7594_v37 = vpop.eup %7593  ;;  %v6187_v10 = vadd.f32 -1.0, %v7592_v7  ;;  %v7490_v14 = vld [vmem:[%s8433_s29] sm:$0xff]   ;;  %vm1014_vm15 = vcmp.gt.f32.partialorder %v8071_v42, 0.0 }
  0xab   : > { %6542 = vmatprep.subr.bf16.mxu0 %v7483_v52  ;;  %v1541_v62 = vmin.f32 %v8935_v48, 0.0  ;;  %v7596_v38 = vpop.eup %7595  ;;  %v1087_v6 = vsel %vm1007_vm4, %v8709_v33, %v6185_v46  ;;  %v6186_v21 = vadd.f32 -1.0, %v7594_v37  ;;  %v1037_v33 = vmin.f32 %v8800_v15, 0.0  ;;  %v1330_v37 = vld [vmem:[#allocation2 + $0x1] sm:$0xff] }
  0xac   : > { %v6188_v43 = vadd.f32 -1.0, %v7596_v38  ;;  %v7598_v44 = vpop.eup %7597  ;;  %v1089_v22 = vsel %vm1009_vm7, %v8712_v34, %v6187_v10  ;;  %v8070_v38 = vld [vmem:[%s8463_s17 + $0x28] sm:$0xff]  ;;  %vm1525_vm2 = vcmp.gt.f32.partialorder %v8935_v48, 0.0 }
  0xad   : > { %2276 = vmatpush1.bf16.msra.mxu1 %v7476_v53  ;;  %v1560_v17 = vmul.f32 1.442695, %v1541_v62  ;;  %v7600_v27 = vpop.eup %7599  ;;  %v1088_v31 = vsel %vm1008_vm8, %v8715_v35, %v6186_v21  ;;  %v6189_v63 = vadd.f32 -1.0, %v7598_v44  ;;  %v1067_v0 = vmul.f32 1.442695, %v1037_v33  ;;  %v7491_v35 = vld [vmem:[%s8433_s29 + $0xc8] sm:$0xff]  }
  0xae   : > { %2277 = vmatprep.subr.bf16.mxu1 %v8247_v11  ;;  %6543 = vmatpush3.bf16.msra.mxu0 %v7484_v54  ;;  %v7602_v29 = vpop.eup %7601  ;;  %v1090_v46 = vsel %vm1010_vm9, %v8727_v39, %v6188_v43  ;;  %v6190_v12 = vadd.f32 -1.0, %v7600_v27  ;;  %v9020_v53 = vsub.f32 0.0, %v8998_v16  ;;  %v7492_v21 = vld [vmem:[%s8433_s29 + $0xc0] sm:$0xff]   ;;  %vm1526_vm9 = vcmp.gt.f32.partialorder %v8962_v1, 0.0  ;;  %s11423_s29 = scalar_lea.vmem %s11347_s5, %s8412_s15  ;;  %s11433_s15 = sld [smem:[#allocation13_spill]] }
  0xaf   : > { %7619 = vpow2.f32 %v1560_v17  ;;  %6544 = vmatprep.subr.bf16.mxu0 %v7486_v26  ;;  %v7604_v45 = vpop.eup %7603  ;;  %v1091_v4 = vsel %vm1011_vm10, %v8069_v3, %v6189_v63  ;;  %v6191_v7 = vadd.f32 -1.0, %v7602_v29  ;;  %v8075_v29 = vld [vmem:[%s8463_s17 + $0x50] sm:$0xff] }
  0xb0   : > { %7621 = vpow2.f32 %v1063_v9  ;;  %v7606_v19 = vpop.eup %7605  ;;  %v1092_v10 = vsel %vm1012_vm11, %v8070_v38, %v6190_v12  ;;  %v6233_v17 = vadd.f32 -1.0, %v7604_v45  ;;  %v8072_v9 = vld [vmem:[%s8463_s17 + $0x40] sm:$0xff]  ;;  %vm1017_vm4 = vcmp.gt.f32.partialorder %v8075_v29, 0.0 }
  0xb1   : > { %2278 = vmatpush1.bf16.msra.mxu1 %v7479_v56  ;;  %7623 = vpow2.f32 %v1065_v50  ;;  %v7608_v54 = vpop.eup %7607  ;;  %v6192_v5 = vadd.f32 -1.0, %v7606_v19  ;;  %vm1015_vm0 = vcmp.gt.f32.partialorder %v8072_v9, 0.0  ;;  %v9044_v50 = vld [vmem:[%s8423_s0 + $0x40] sm:$0xff] }
  0xb2   : > { %2279 = vmatprep.subr.bf16.mxu1 %v8247_v11  ;;  %6545 = vmatpush3.bf16.msra.mxu0 %v7487_v51  ;;  %7625 = vpow2.f32 %v1562_v61  ;;  %v7610_v62 = vpop.eup %7609  ;;  %v6234_v20 = vadd.f32 -1.0, %v7608_v54  ;;  %v1602_v63 = vsel %vm1522_vm13, %v8875_v57, %v6233_v17  ;;  %vm1527_vm13 = vcmp.gt.f32.partialorder %v8983_v18, 0.0 }
  0xb3   : > { %6546 = vmatprep.subr.bf16.mxu0 %v7489_v47  ;;  %7627 = vpow2.f32 %v1067_v0  ;;  %v7612_v40 = vpop.eup %7611  ;;  %v6193_v44 = vadd.f32 -1.0, %v7610_v62 }
  0xb4   : > { %7629 = vpow2.f32 %v1069_v13  ;;  %v7614_v25 = vpop.eup %7613  ;;  %v6194_v61 = vadd.f32 -1.0, %v7612_v40  ;;  %v1603_v0 = vsel %vm1523_vm14, %v8877_v58, %v6234_v20  ;;  %vm1528_vm14 = vcmp.gt.f32.partialorder %v9020_v53, 0.0  ;;  %s6529_s16 = sshll.u32 %s11433_s15, 11 }
  0xb5   : > { %2280 = vmatpush1.bf16.msra.mxu1 %v7482_v23  ;;  %v1564_v23 = vmul.f32 1.442695, %v1543_v28  ;;  %v8074_v28 = vld [vmem:[%s8463_s17 + $0x48] sm:$0xff]  ;;  %s11181_s2 = scalar_lea.hbm %s11436_s14, %s6529_s16 }
  0xb6   : > { %2289 = vmatprep.subr.bf16.mxu1 %v8247_v11  ;;  %6547 = vmatpush3.bf16.msra.mxu0 %v7490_v14  ;;  %vm1016_vm3 = vcmp.gt.f32.partialorder %v8074_v28, 0.0 }
  0xb7   : > { %7631 = vpow2.f32 %v1564_v23 }
  0xb9   : > { %2290 = vmatpush2.bf16.msra.mxu1 %v7485_v2  ;;  %v9024_v2 = vsub.f32 0.0, %v9006_v32 }
  0xba   : > { %2291 = vmatprep.subr.bf16.mxu1 %v8247_v11 }
  0xbd   : > { %2292 = vmatpush2.bf16.msra.mxu1 %v7488_v55  ;;  %v8073_v55 = vld [vmem:[%s8463_s17 + $0x30] sm:$0xff] }
  0xbe   : > { %2293 = vmatprep.subr.bf16.mxu1 %v8247_v11  ;;  %v1093_v27 = vsel %vm1013_vm12, %v8073_v55, %v6191_v7  ;;  %v1096_v7 = vsel %vm1016_vm3, %v8074_v28, %v6194_v61  ;;  %v8078_v28 = vld [vmem:[%s8463_s17 + $0x68] sm:$0xff] }
  0xbf   : > { %vm1020_vm10 = vcmp.gt.f32.partialorder %v8078_v28, 0.0 }
  0xc1   : > { %2294 = vmatpush2.bf16.msra.mxu1 %v7491_v35 }
  0xc2   : > { %2295 = vmatprep.subr.bf16.mxu1 %v8247_v11  ;;  %v1544_v11 = vmin.f32 %v9020_v53, 0.0 }
  0xc4   : > { %v1566_v45 = vmul.f32 1.442695, %v1544_v11 }
  0xc5   : > { %2296 = vmatpush2.bf16.msra.mxu1 %v7492_v21  ;;  %v9093_v21 = vld [vmem:[%s8423_s0 + $0x50] sm:$0xff] }
  0xc6   : > { %7633 = vpow2.f32 %v1566_v45  ;;  %v9118_v45 = vsub.f32 0.0, %v9093_v21 }
  0xfe   : > { %v1232_v60 = vpop.permute.xlu0 %1231 }
  0xff   : > { %v1280_v34 = vsel %vm1279_vm5, %v1087_v6, %v1232_v60  ;;  %v1236_v15 = vpop.permute.xlu1 %1235  ;;  %v9053_v60 = vld [vmem:[%s8423_s0 + $0x48] sm:$0xff] }
 0x100   : > { %1298 = vst.msk [vmem:[#allocation2 + $0x11] sm:$0xff] %vm1297_vm6, %v1280_v34  ;;  %v1282_v30 = vsel %vm1279_vm5, %v1089_v22, %v1236_v15  ;;  %v1545_v22 = vmin.f32 %v9024_v2, 0.0  ;;  %v7616_v34 = vpop.eup %7615  ;;  %v1094_v15 = vsel %vm1014_vm15, %v8071_v42, %v6192_v5  ;;  %v9076_v54 = vsub.f32 0.0, %v9053_v60 }
 0x101   : > { %1300 = vst.msk [vmem:[#allocation2 + $0x31] sm:$0xff] %vm1297_vm6, %v1282_v30  ;;  %v7618_v30 = vpop.eup %7617  ;;  %v6195_v62 = vadd.f32 -1.0, %v7616_v34  ;;  %v6235_v42 = vadd.f32 -1.0, %v7614_v25  ;;  %v8077_v25 = vld [vmem:[%s8463_s17 + $0x60] sm:$0xff]  ;;  %vm1529_vm15 = vcmp.gt.f32.partialorder %v9024_v2, 0.0 }
 0x102   : > { %v1234_v52 = vpop.permute.xlu0 %1233  ;;  %v7620_v12 = vpop.eup %7619  ;;  %v1568_v57 = vmul.f32 1.442695, %v1545_v22  ;;  %v6196_v38 = vadd.f32 -1.0, %v7618_v30  ;;  %v1547_v11 = vmin.f32 %v9076_v54, 0.0  ;;  %vm1019_vm8 = vcmp.gt.f32.partialorder %v8077_v25, 0.0 }
 0x103   : > { %v1281_v39 = vsel %vm1279_vm5, %v1088_v31, %v1234_v52  ;;  %v1238_v56 = vpop.permute.xlu1 %1237  ;;  %v1095_v52 = vsel %vm1015_vm0, %v8072_v9, %v6193_v44  ;;  %v7622_v58 = vpop.eup %7621  ;;  %v6236_v5 = vadd.f32 -1.0, %v7620_v12  ;;  %v1097_v22 = vsel %vm1017_vm4, %v8075_v29, %v6195_v62 }
 0x104   : > { %1299 = vst.msk [vmem:[#allocation2 + $0x21] sm:$0xff] %vm1297_vm6, %v1281_v39  ;;  %v1283_v36 = vsel %vm1279_vm5, %v1090_v46, %v1238_v56  ;;  %v9069_v46 = vsub.f32 0.0, %v9044_v50  ;;  %v6197_v9 = vadd.f32 -1.0, %v7622_v58  ;;  %7635 = vpow2.f32 %v1568_v57 }
 0x105   : > { %1301 = vst.msk [vmem:[#allocation2 + $0x41] sm:$0xff] %vm1297_vm6, %v1283_v36  ;;  %v6990_v36 = vpack.i.bf16 %v1603_v0, %v1602_v63  ;;  %v1604_v29 = vsel %vm1524_vm1, %v8880_v24, %v6235_v42  ;;  %v1548_v42 = vmin.f32 %v9118_v45, 0.0  ;;  %vm1531_vm1 = vcmp.gt.f32.partialorder %v9076_v54, 0.0 }
 0x106   : > { %v1240_v6 = vpop.permute.xlu0 %1239  ;;  %vm1530_vm0 = vcmp.gt.f32.partialorder %v9069_v46, 0.0 }
 0x107   : > { %v1284_v43 = vsel %vm1279_vm5, %v1091_v4, %v1240_v6  ;;  %v1331_v41 = vld [vmem:[#allocation2 + $0x11] sm:$0xff]  ;;  %v1242_v33 = vpop.permute.xlu1 %1241  ;;  %v1546_v6 = vmin.f32 %v9069_v46, 0.0 }
 0x108   : > { %1302 = vst.msk [vmem:[#allocation2 + $0x51] sm:$0xff] %vm1297_vm6, %v1284_v43  ;;  %v6995_v26 = vpack.i.bf16 %v1331_v41, %v1330_v37  ;;  %v1285_v51 = vsel %vm1279_vm5, %v1092_v10, %v1242_v33  ;;  %v9060_v49 = vld [vmem:[#allocation2 + $0x10] sm:$0xff]  ;;  %v8076_v37 = vld [vmem:[%s8463_s17 + $0x58] sm:$0xff]  ;;  %v7624_v10 = vpop.eup %7623 }
 0x109   : > { %1303 = vst.msk [vmem:[#allocation2 + $0x61] sm:$0xff] %vm1297_vm6, %v1285_v51  ;;  %v9071_v47 = vld [vmem:[#allocation2 + $0x12] sm:$0xff]  ;;  %vm1018_vm7 = vcmp.gt.f32.partialorder %v8076_v37, 0.0  ;;  %v7626_v43 = vpop.eup %7625  ;;  %v6198_v61 = vadd.f32 -1.0, %v7624_v10  ;;  %v1570_v0 = vmul.f32 1.442695, %v1546_v6 }
 0x10a   : > { %6996 = vrot.lane.b32.xlu1 %v6995_v26, %s8248_s4  ;;  %v1244_v31 = vpop.permute.xlu0 %1243  ;;  %v1333_v4 = vld [vmem:[#allocation2 + $0x31] sm:$0xff]  ;;  %v7628_v51 = vpop.eup %7627 }
 0x10b   : > { %v1363_v13 = vld [vmem:[#allocation2 + $0x20] sm:$0xff]  ;;  %v1286_v35 = vsel %vm1279_vm5, %v1093_v27, %v1244_v31  ;;  %v1246_v19 = vpop.permute.xlu1 %1245  ;;  %v1364_v33 = vld [vmem:[#allocation2 + $0x30] sm:$0xff]  ;;  %v9101_v26 = vld [vmem:[%s8423_s0 + $0x58] sm:$0xff]  ;;  %v7630_v30 = vpop.eup %7629  ;;  %v1605_v31 = vsel %vm1525_vm2, %v8935_v48, %v6236_v5  ;;  %v6199_v58 = vadd.f32 -1.0, %v7628_v51  ;;  %v1100_v62 = vsel %vm1020_vm10, %v8078_v28, %v6198_v61 }
 0x10c   : > { %v1395_v14 = vld [vmem:[#allocation2 + $0x22] sm:$0xff]  ;;  %v6985_v39 = vpack.i.bf16 %v1363_v13, %v9060_v49  ;;  %1304 = vst.msk [vmem:[#allocation2 + $0x71] sm:$0xff] %vm1297_vm6, %v1286_v35  ;;  %v1287_v23 = vsel %vm1279_vm5, %v1094_v15, %v1246_v19  ;;  %v9103_v27 = vld [vmem:[#allocation2 + $0x32] sm:$0xff]  ;;  %v1098_v15 = vsel %vm1018_vm7, %v8076_v37, %v6196_v38  ;;  %v1572_v35 = vmul.f32 1.442695, %v1547_v11  ;;  %v7632_v24 = vpop.eup %7631 }
 0x10d   : > { %v7000_v56 = vpack.i.bf16 %v1395_v14, %v9071_v47  ;;  %v9082_v3 = vld [vmem:[#allocation2 + $0x21] sm:$0xff]  ;;  %1305 = vst.msk [vmem:[#allocation2 + $0x81] sm:$0xff] %vm1297_vm6, %v1287_v23  ;;  %v1099_v14 = vsel %vm1019_vm8, %v8077_v25, %v6197_v9  ;;  %v9123_v19 = vsub.f32 0.0, %v9101_v26  ;;  %v6237_v23 = vadd.f32 -1.0, %v7626_v43  ;;  %v8080_v10 = vld [vmem:[%s8463_s17 + $0x78] sm:$0xff] }
 0x10e   : > { %6986 = vrot.lane.b32.xlu0 %v6985_v39, %s8248_s4  ;;  %v1248_v40 = vpop.permute.xlu0 %1247  ;;  %v7015_v41 = vpack.i.bf16 %v1333_v4, %v9082_v3  ;;  %v1365_v55 = vld [vmem:[#allocation2 + $0x40] sm:$0xff]  ;;  %v6200_v4 = vadd.f32 -1.0, %v7630_v30  ;;  %7637 = vpow2.f32 %v1570_v0  ;;  %vm1022_vm12 = vcmp.gt.f32.partialorder %v8080_v10, 0.0  ;;  %v7634_v30 = vpop.eup %7633 }
 0x10f   : > { %7001 = vrot.lane.b32.xlu1 %v7000_v56, %s8248_s4  ;;  %v1288_v17 = vsel %vm1279_vm5, %v1095_v52, %v1248_v40  ;;  %v1250_v20 = vpop.permute.xlu1 %1249  ;;  %v1397_v34 = vld [vmem:[#allocation2 + $0x42] sm:$0xff]  ;;  %v7005_v52 = vpack.i.bf16 %v1365_v55, %v1364_v33  ;;  %v1335_v56 = vld [vmem:[#allocation2 + $0x51] sm:$0xff]  ;;  %7639 = vpow2.f32 %v1572_v35  ;;  %v1549_v43 = vmin.f32 %v9123_v19, 0.0 }
 0x110   : > { %1306 = vst.msk [vmem:[#allocation2 + $0xa1] sm:$0xff] %vm1297_vm6, %v1288_v17  ;;  %v1289_v44 = vsel %vm1279_vm5, %v1096_v7, %v1250_v20  ;;  %v7020_v57 = vpack.i.bf16 %v1397_v34, %v9103_v27  ;;  %v9128_v39 = vld [vmem:[#allocation2 + $0x41] sm:$0xff]  ;;  %v7010_v7 = vpack.i.bf16 %v1605_v31, %v1604_v29  ;;  %v9135_v37 = vld [vmem:[#allocation2 + $0x50] sm:$0xff]  ;;  %v6238_v20 = vadd.f32 -1.0, %v7632_v24 }
 0x111   : > { %1307 = vst.msk [vmem:[#allocation2 + $0xb1] sm:$0xff] %vm1297_vm6, %v1289_v44  ;;  %v9140_v5 = vld [vmem:[%s8423_s0 + $0x60] sm:$0xff]  ;;  %v9142_v6 = vld [vmem:[#allocation2 + $0x52] sm:$0xff]  ;;  %v1606_v25 = vsel %vm1526_vm9, %v8962_v1, %v6237_v23  ;;  %v1102_v51 = vsel %vm1022_vm12, %v8080_v10, %v6200_v4  ;;  %v1574_v28 = vmul.f32 1.442695, %v1548_v42  ;;  %v6239_v23 = vadd.f32 -1.0, %v7634_v30 }
 0x112   : > { %6991 = vrot.lane.b32.xlu0 %v6990_v36, %s8246_s3  ;;  %v1252_v63 = vpop.permute.xlu0 %1251  ;;  %v8079_v36 = vld [vmem:[%s8463_s17 + $0x70] sm:$0xff]  ;;  %v1367_v40 = vld [vmem:[#allocation2 + $0x60] sm:$0xff]  ;;  %v9164_v61 = vsub.f32 0.0, %v9140_v5  ;;  %v1607_v1 = vsel %vm1527_vm13, %v8983_v18, %v6238_v20  ;;  %vm1532_vm2 = vcmp.gt.f32.partialorder %v9118_v45, 0.0  ;;  %vm1533_vm3 = vcmp.gt.f32.partialorder %v9123_v19, 0.0 }
 0x113   : > { %7016 = vrot.lane.b32.xlu1 %v7015_v41, %s8248_s4  ;;  %v1290_v12 = vsel %vm1279_vm5, %v1097_v22, %v1252_v63  ;;  %v1254_v13 = vpop.permute.xlu1 %1253  ;;  %vm1021_vm11 = vcmp.gt.f32.partialorder %v8079_v36, 0.0  ;;  %v1399_v17 = vld [vmem:[#allocation2 + $0x62] sm:$0xff]  ;;  %v7035_v41 = vpack.i.bf16 %v1335_v56, %v9128_v39  ;;  %v7025_v55 = vpack.i.bf16 %v1367_v40, %v9135_v37  ;;  %v1337_v35 = vld [vmem:[#allocation2 + $0x71] sm:$0xff] }
 0x114   : > { %1308 = vst.msk [vmem:[#allocation2 + $0xc1] sm:$0xff] %vm1297_vm6, %v1290_v12  ;;  %v1291_v48 = vsel %vm1279_vm5, %v1098_v15, %v1254_v13  ;;  %v1101_v44 = vsel %vm1021_vm11, %v8079_v36, %v6199_v58  ;;  %v9152_v22 = vld [vmem:[%s8423_s0 + $0x68] sm:$0xff]  ;;  %v7040_v34 = vpack.i.bf16 %v1399_v17, %v9142_v6  ;;  %v1576_v63 = vmul.f32 1.442695, %v1549_v43  ;;  %v7636_v12 = vpop.eup %7635  ;;  %v9180_v24 = vld [vmem:[#allocation2 + $0x70] sm:$0xff] }
 0x115   : > { %1309 = vst.msk [vmem:[#allocation2 + $0xd1] sm:$0xff] %vm1297_vm6, %v1291_v48  ;;  %v9171_v0 = vsub.f32 0.0, %v9152_v22  ;;  %v7030_v18 = vpack.i.bf16 %v1607_v1, %v1606_v25  ;;  %7641 = vpow2.f32 %v1574_v28  ;;  %v1369_v48 = vld [vmem:[#allocation2 + $0x80] sm:$0xff]  ;;  %v9186_v58 = vld [vmem:[#allocation2 + $0x72] sm:$0xff]  ;;  %v1608_v20 = vsel %vm1528_vm14, %v9020_v53, %v6239_v23 }
 0x116   : > { %7006 = vrot.lane.b32.xlu0 %v7005_v52, %s8248_s4  ;;  %v1256_v38 = vpop.permute.xlu0 %1255  ;;  %v1550_v52 = vmin.f32 %v9164_v61, 0.0  ;;  %v1401_v56 = vld [vmem:[#allocation2 + $0x82] sm:$0xff]  ;;  %7643 = vpow2.f32 %v1576_v63  ;;  %vm1534_vm4 = vcmp.gt.f32.partialorder %v9164_v61, 0.0 }
 0x117   : > { %7021 = vrot.lane.b32.xlu1 %v7020_v57, %s8248_s4  ;;  %v1292_v9 = vsel %vm1279_vm5, %v1099_v14, %v1256_v38  ;;  %v1258_v11 = vpop.permute.xlu1 %1257  ;;  %v9175_v14 = vld [vmem:[#allocation2 + $0x61] sm:$0xff]  ;;  %v9184_v57 = vld [vmem:[%s8423_s0 + $0x70] sm:$0xff]  ;;  %v1551_v36 = vmin.f32 %v9171_v0, 0.0  ;;  %v7045_v38 = vpack.i.bf16 %v1369_v48, %v9180_v24  ;;  %v7060_v10 = vpack.i.bf16 %v1401_v56, %v9186_v58 }
 0x118   : > { %1310 = vst.msk [vmem:[#allocation2 + $0xe1] sm:$0xff] %vm1297_vm6, %v1292_v9  ;;  %v1293_v33 = vsel %vm1279_vm5, %v1100_v62, %v1258_v11  ;;  %v6240_v62 = vadd.f32 -1.0, %v7636_v12  ;;  %v7055_v4 = vpack.i.bf16 %v1337_v35, %v9175_v14  ;;  %v1578_v42 = vmul.f32 1.442695, %v1550_v52  ;;  %v1338_v11 = vld [vmem:[#allocation2 + $0x91] sm:$0xff]  ;;  %v9204_v43 = vld [vmem:[#allocation2 + $0xa1] sm:$0xff] }
 0x119   : > { %1311 = vst.msk [vmem:[#allocation2 + $0xf1] sm:$0xff] %vm1297_vm6, %v1293_v33  ;;  %v9200_v40 = vsub.f32 0.0, %v9184_v57  ;;  %v9226_v48 = vld [vmem:[#allocation2 + $0xb1] sm:$0xff]  ;;  %vm1535_vm7 = vcmp.gt.f32.partialorder %v9171_v0, 0.0 }
 0x11a   : > { %7011 = vrot.lane.b32.xlu0 %v7010_v7, %s8246_s3  ;;  %v1260_v15 = vpop.permute.xlu0 %1259  ;;  %v9193_v7 = vld [vmem:[%s8423_s0 + $0x78] sm:$0xff]  ;;  %v1609_v9 = vsel %vm1529_vm15, %v9024_v2, %v6240_v62  ;;  %7645 = vpow2.f32 %v1578_v42  ;;  %v1371_v2 = vld [vmem:[#allocation2 + $0xb0] sm:$0xff]  ;;  %vm1415_vm15 = vcmp.gt.f32.partialorder %v8971_v8, 0.0 }
 0x11b   : > { %7036 = vrot.lane.b32.xlu1 %v7035_v41, %s8248_s4  ;;  %v1294_v29 = vsel %vm1279_vm5, %v1101_v44, %v1260_v15  ;;  %v1262_v31 = vpop.permute.xlu1 %1261  ;;  %v7638_v17 = vpop.eup %7637  ;;  %v1580_v41 = vmul.f32 1.442695, %v1551_v36  ;;  %v9207_v33 = vsub.f32 0.0, %v9193_v7  ;;  %v7050_v25 = vpack.i.bf16 %v1609_v9, %v1608_v20  ;;  %v1403_v15 = vld [vmem:[#allocation2 + $0xb2] sm:$0xff]  ;;  %v9228_v56 = vld [vmem:[#allocation2 + $0xc1] sm:$0xff] }
 0x11c   : > { %1312 = vst.msk [vmem:[#allocation2 + $0x101] sm:$0xff] %vm1297_vm6, %v1294_v29  ;;  %v1295_v13 = vsel %vm1279_vm5, %v1102_v51, %v1262_v31  ;;  %v7640_v44 = vpop.eup %7639  ;;  %v7075_v51 = vpack.i.bf16 %v9204_v43, %v1338_v11  ;;  %v1552_v53 = vmin.f32 %v9200_v40, 0.0  ;;  %v6241_v28 = vadd.f32 -1.0, %v7638_v17  ;;  %v9232_v62 = vld [vmem:[#allocation2 + $0xc0] sm:$0xff]  ;;  %v1373_v36 = vld [vmem:[#allocation2 + $0xd0] sm:$0xff] }
 0x11d   : > { %1313 = vst.msk [vmem:[#allocation2 + $0x111] sm:$0xff] %vm1297_vm6, %v1295_v13  ;;  %v6242_v30 = vadd.f32 -1.0, %v7640_v44  ;;  %7647 = vpow2.f32 %v1580_v41  ;;  %v1553_v1 = vmin.f32 %v9207_v33, 0.0  ;;  %v7085_v42 = vpack.i.bf16 %v1373_v36, %v9232_v62  ;;  %v9249_v44 = vld [vmem:[#allocation2 + $0xd1] sm:$0xff] }
 0x11e   : > { %7026 = vrot.lane.b32.xlu0 %v7025_v55, %s8248_s4  ;;  %v9212_v55 = vld [vmem:[#allocation2 + $0xa0] sm:$0xff]  ;;  %v1582_v63 = vmul.f32 1.442695, %v1552_v53  ;;  %v1610_v13 = vsel %vm1530_vm0, %v9069_v46, %v6241_v28  ;;  %v9236_v46 = vld [vmem:[#allocation2 + $0xd2] sm:$0xff]  ;;  %vm1536_vm8 = vcmp.gt.f32.partialorder %v9200_v40, 0.0  ;;  %vm1537_vm9 = vcmp.gt.f32.partialorder %v9207_v33, 0.0 }
 0x11f   : > { %7041 = vrot.lane.b32.xlu1 %v7040_v34, %s8248_s4  ;;  %v9215_v34 = vld [vmem:[#allocation2 + $0xa2] sm:$0xff]  ;;  %v7065_v29 = vpack.i.bf16 %v1371_v2, %v9212_v55  ;;  %v1611_v35 = vsel %vm1531_vm1, %v9076_v54, %v6242_v30  ;;  %vm1416_vm0 = vcmp.gt.f32.partialorder %v8998_v16, 0.0  ;;  %vm1417_vm1 = vcmp.gt.f32.partialorder %v9006_v32, 0.0 }
 0x120   : > { %v7080_v31 = vpack.i.bf16 %v1403_v15, %v9215_v34  ;;  %v7070_v23 = vpack.i.bf16 %v1611_v35, %v1610_v13  ;;  %7649 = vpow2.f32 %v1582_v63  ;;  %v9255_v53 = vld [vmem:[#allocation2 + $0xe0] sm:$0xff]  ;;  %v1375_v2 = vld [vmem:[#allocation2 + $0xf0] sm:$0xff] }
 0x121   : > { %v9257_v15 = vld [vmem:[#allocation2 + $0xe2] sm:$0xff]  ;;  %v9259_v28 = vld [vmem:[#allocation2 + $0xf2] sm:$0xff] }
 0x122   : > { %7031 = vrot.lane.b32.xlu0 %v7030_v18, %s8246_s3  ;;  %v7642_v12 = vpop.eup %7641  ;;  %v1584_v18 = vmul.f32 1.442695, %v1553_v1  ;;  %11415 = vst [vmem:[#allocation24_spill] sm:$0xff] %v9259_v28  ;;  %v7105_v1 = vpack.i.bf16 %v1375_v2, %v9255_v53  ;;  %v9272_v35 = vld [vmem:[#allocation2 + $0xf1] sm:$0xff]  ;;  %v8082_v2 = vld [vmem:[%s8423_s0 + $0x8] sm:$0xff] }
 0x123   : > { %7056 = vrot.lane.b32.xlu1 %v7055_v4, %s8248_s4  ;;  %v7644_v52 = vpop.eup %7643  ;;  %v9234_v4 = vld [vmem:[#allocation2 + $0xc2] sm:$0xff]  ;;  %v6243_v54 = vadd.f32 -1.0, %v7642_v12  ;;  %vm1411_vm11 = vcmp.gt.f32.partialorder %v8082_v2, 0.0 }
 0x124   : > { %7651 = vpow2.f32 %v1584_v18  ;;  %v7100_v17 = vpack.i.bf16 %v9236_v46, %v9234_v4  ;;  %v9274_v18 = vld [vmem:[#allocation2 + $0x101] sm:$0xff]  ;;  %v1377_v36 = vld [vmem:[#allocation2 + $0x110] sm:$0xff] }
 0x125   : > { %v1612_v9 = vsel %vm1532_vm2, %v9118_v45, %v6243_v54  ;;  %11416 = vst [vmem:[#allocation25_spill] sm:$0xff] %v9274_v18  ;;  %v9280_v54 = vld [vmem:[#allocation2 + $0x102] sm:$0xff]  ;;  %vm1418_vm2 = vcmp.gt.f32.partialorder %v9044_v50, 0.0 }
 0x126   : > { %7046 = vrot.lane.b32.xlu0 %v7045_v38, %s8248_s4  ;;  %v6244_v38 = vadd.f32 -1.0, %v7644_v52  ;;  %11418 = vst [vmem:[#allocation27_spill] sm:$0xff] %v9280_v54 }
 0x127   : > { %7061 = vrot.lane.b32.xlu1 %v7060_v10, %s8248_s4  ;;  %v7095_v10 = vpack.i.bf16 %v9228_v56, %v9226_v48  ;;  %v7646_v20 = vpop.eup %7645 }
 0x128   : > { %v1613_v11 = vsel %vm1533_vm3, %v9123_v19, %v6244_v38  ;;  %v6245_v45 = vadd.f32 -1.0, %v7646_v20  ;;  %v1409_v38 = vld [vmem:[#allocation2 + $0x112] sm:$0xff]  ;;  %vm1419_vm3 = vcmp.gt.f32.partialorder %v9053_v60, 0.0 }
 0x12a   : > { %7051 = vrot.lane.b32.xlu0 %v7050_v25, %s8246_s3  ;;  %v7648_v41 = vpop.eup %7647  ;;  %v9251_v25 = vld [vmem:[#allocation2 + $0xe1] sm:$0xff]  ;;  %v1614_v63 = vsel %vm1534_vm4, %v9164_v61, %v6245_v45  ;;  %v1427_v45 = vmin.f32 %v8082_v2, 0.0  ;;  %vm1420_vm4 = vcmp.gt.f32.partialorder %v9093_v21, 0.0 }
 0x12b   : > { %7076 = vrot.lane.b32.xlu1 %v7075_v51, %s8248_s4  ;;  %v7090_v51 = vpack.i.bf16 %v1613_v11, %v1612_v9  ;;  %v6246_v30 = vadd.f32 -1.0, %v7648_v41  ;;  %v7115_v19 = vpack.i.bf16 %v9251_v25, %v9249_v44  ;;  %v8081_v41 = vld [vmem:[%s8423_s0] sm:$0xff] }
 0x12c   : > { %vm1410_vm10 = vcmp.gt.f32.partialorder %v8081_v41, 0.0 }
 0x12d   : > { %v1615_v12 = vsel %vm1535_vm7, %v9171_v0, %v6246_v30  ;;  %v7130_v0 = vpack.i.bf16 %v9274_v18, %v9272_v35  ;;  %vm1421_vm7 = vcmp.gt.f32.partialorder %v9101_v26, 0.0 }
 0x12e   : > { %7066 = vrot.lane.b32.xlu0 %v7065_v29, %s8248_s4  ;;  %v7120_v29 = vpack.i.bf16 %v9259_v28, %v9257_v15  ;;  %v7110_v52 = vpack.i.bf16 %v1615_v12, %v1614_v63  ;;  %v1430_v12 = vmin.f32 %v8954_v59, 0.0  ;;  %v1346_v59 = vld [vmem:[#allocation2 + $0x2] sm:$0xff] }
 0x12f   : > { %7081 = vrot.lane.b32.xlu1 %v7080_v31, %s8248_s4  ;;  %v7650_v31 = vpop.eup %7649 }
 0x130   : > { %v6247_v61 = vadd.f32 -1.0, %v7650_v31 }
 0x131   : > { %v7652_v13 = vpop.eup %7651 }
 0x132   : > { %7071 = vrot.lane.b32.xlu0 %v7070_v23, %s8246_s3  ;;  %v9278_v23 = vld [vmem:[#allocation2 + $0x100] sm:$0xff]  ;;  %v1616_v20 = vsel %vm1536_vm8, %v9200_v40, %v6247_v61  ;;  %v9302_v40 = vld [vmem:[%s8423_s0 + $0x18] sm:$0xff]  ;;  %vm1422_vm8 = vcmp.gt.f32.partialorder %v9140_v5, 0.0 }
 0x133   : > { %7096 = vrot.lane.b32.xlu1 %v7095_v10, %s8248_s4  ;;  %11417 = vst [vmem:[#allocation26_spill] sm:$0xff] %v9278_v23  ;;  %v6248_v10 = vadd.f32 -1.0, %v7652_v13  ;;  %v1431_v13 = vmin.f32 %v8971_v8, 0.0  ;;  %vm1413_vm13 = vcmp.gt.f32.partialorder %v9302_v40, 0.0 }
 0x135   : > { %v1617_v9 = vsel %vm1537_vm9, %v9207_v33, %v6248_v10  ;;  %v1429_v33 = vmin.f32 %v9302_v40, 0.0  ;;  %vm1423_vm9 = vcmp.gt.f32.partialorder %v9152_v22, 0.0 }
 0x136   : > { %7086 = vrot.lane.b32.xlu0 %v7085_v42, %s8248_s4  ;;  %v7125_v42 = vpack.i.bf16 %v1377_v36, %v9278_v23  ;;  %v7135_v11 = vpack.i.bf16 %v1617_v9, %v1616_v20  ;;  %v1432_v20 = vmin.f32 %v8998_v16, 0.0  ;;  %v1314_v9 = vld [vmem:[#allocation2] sm:$0xff] }
 0x137   : > { %7101 = vrot.lane.b32.xlu1 %v7100_v17, %s8248_s4  ;;  %v7140_v17 = vpack.i.bf16 %v1409_v38, %v9280_v54  ;;  %v1448_v63 = vmul.f32 1.442695, %v1429_v33  ;;  %v1452_v38 = vmul.f32 1.442695, %v1431_v13 }
 0x13a   : > { %7091 = vrot.lane.b32.xlu0 %v7090_v51, %s8246_s3  ;;  %v1426_v51 = vmin.f32 %v8081_v41, 0.0 }
 0x13b   : > { %7116 = vrot.lane.b32.xlu1 %v7115_v19, %s8248_s4  ;;  %v1444_v19 = vmul.f32 1.442695, %v1427_v45 }
 0x13c   : > { %v1442_v30 = vmul.f32 1.442695, %v1426_v51 }
 0x13e   : > { %7106 = vrot.lane.b32.xlu0 %v7105_v1, %s8248_s4  ;;  %v9298_v1 = vld [vmem:[%s8423_s0 + $0x10] sm:$0xff]  ;;  %7653 = vpow2.f32 %v1442_v30 }
 0x13f   : > { %7121 = vrot.lane.b32.xlu1 %v7120_v29, %s8248_s4  ;;  %v1428_v29 = vmin.f32 %v9298_v1, 0.0  ;;  %7655 = vpow2.f32 %v1444_v19  ;;  %vm1412_vm12 = vcmp.gt.f32.partialorder %v9298_v1, 0.0 }
 0x141   : > { %v1446_v31 = vmul.f32 1.442695, %v1428_v29 }
 0x142   : > { %7111 = vrot.lane.b32.xlu0 %v7110_v52, %s8246_s3  ;;  %v1450_v52 = vmul.f32 1.442695, %v1430_v12 }
 0x143   : > { %7131 = vrot.lane.b32.xlu1 %v7130_v0, %s8248_s4  ;;  %7657 = vpow2.f32 %v1446_v31 }
 0x144   : > { %7659 = vpow2.f32 %v1448_v63 }
 0x145   : > { %7661 = vpow2.f32 %v1450_v52 }
 0x146   : > { %7126 = vrot.lane.b32.xlu0 %v7125_v42, %s8248_s4  ;;  %7663 = vpow2.f32 %v1452_v38  ;;  %v1435_v38 = vmin.f32 %v9053_v60, 0.0 }
 0x147   : > { %7141 = vrot.lane.b32.xlu1 %v7140_v17, %s8248_s4  ;;  %v1433_v17 = vmin.f32 %v9006_v32, 0.0 }
 0x149   : > { %v1456_v13 = vmul.f32 1.442695, %v1433_v17  ;;  %v1378_v17 = vld [vmem:[#allocation2 + $0x11] sm:$0xff] }
 0x14a   : > { %7136 = vrot.lane.b32.xlu0 %v7135_v11, %s8246_s3 }
 0x14b   : > { %v7654_v36 = vpop.eup %7653 }
 0x14c   : > { %v7656_v10 = vpop.eup %7655  ;;  %v6217_v45 = vadd.f32 -1.0, %v7654_v36 }
 0x14d   : > { %v6218_v30 = vadd.f32 -1.0, %v7656_v10 }
 0x14e   : > { %v1490_v28 = vsel %vm1410_vm10, %v8081_v41, %v6217_v45  ;;  %vm1424_vm10 = vcmp.gt.f32.partialorder %v9184_v57, 0.0 }
 0x150   : > { %v7658_v10 = vpop.eup %7657 }
 0x151   : > { %v7660_v23 = vpop.eup %7659 }
 0x17c   : > { %v6997_v61 = vpop.permute.xlu1 %6996 }
 0x17d   : > { %v6999_v0 = vunpack.i.h.bf16 %v6997_v61  ;;  %v6998_v42 = vunpack.i.l.bf16 %v6997_v61  ;;  %v1454_v61 = vmul.f32 1.442695, %v1432_v20 }
 0x17f   : > { %v1890_v63 = vsel %vm1297_vm6, %v1314_v9, %v6998_v42  ;;  %v1891_v12 = vsel %vm1297_vm6, %v9060_v49, %v6999_v0  ;;  %v1434_v42 = vmin.f32 %v9044_v50, 0.0  ;;  %7665 = vpow2.f32 %v1454_v61 }
 0x180   : > { %v6987_v11 = vpop.permute.xlu0 %6986  ;;  %v1938_v0 = vpack.c.bf16 %v1891_v12, %v1890_v63  ;;  %v6219_v63 = vadd.f32 -1.0, %v7658_v10  ;;  %v6220_v12 = vadd.f32 -1.0, %v7660_v23  ;;  %7667 = vpow2.f32 %v1456_v13 }
 0x181   : > { %v7002_v51 = vpop.permute.xlu1 %7001  ;;  %v6989_v19 = vunpack.i.h.bf16 %v6987_v11  ;;  %v6988_v29 = vunpack.i.l.bf16 %v6987_v11  ;;  %v1458_v10 = vmul.f32 1.442695, %v1434_v42 }
 0x182   : > { %v7004_v33 = vunpack.i.h.bf16 %v7002_v51  ;;  %v7003_v31 = vunpack.i.l.bf16 %v7002_v51  ;;  %v1491_v51 = vsel %vm1411_vm11, %v8082_v2, %v6218_v30  ;;  %vm1425_vm11 = vcmp.gt.f32.partialorder %v9193_v7, 0.0 }
 0x183   : > { %v1906_v52 = vsel %vm1297_vm6, %v1346_v59, %v6988_v29  ;;  %v1907_v36 = vsel %vm1297_vm6, %v9071_v47, %v6989_v19  ;;  %7669 = vpow2.f32 %v1458_v10 }
 0x184   : > { %v6992_v11 = vpop.permute.xlu0 %6991  ;;  %v1939_v54 = vpack.c.bf16 %v1907_v36, %v1906_v52  ;;  %v1922_v47 = vsel %vm1297_vm6, %v1378_v17, %v7003_v31  ;;  %v1923_v19 = vsel %vm1297_vm6, %v9082_v3, %v7004_v33  ;;  %v1316_v3 = vld [vmem:[#allocation2 + $0x20] sm:$0xff]  ;;  %v1317_v33 = vld [vmem:[#allocation2 + $0x30] sm:$0xff]  ;;  %v1493_v17 = vsel %vm1413_vm13, %v9302_v40, %v6220_v12 }
 0x185   : > { %v7017_v18 = vpop.permute.xlu1 %7016  ;;  %v6994_v9 = vunpack.i.h.bf16 %v6992_v11  ;;  %v6993_v49 = vunpack.i.l.bf16 %v6992_v11  ;;  %v1940_v31 = vpack.c.bf16 %v1923_v19, %v1922_v47  ;;  %v1348_v36 = vld [vmem:[#allocation2 + $0x22] sm:$0xff]  ;;  %v1436_v47 = vmin.f32 %v9093_v21, 0.0 }
 0x186   : > { %v7019_v20 = vunpack.i.h.bf16 %v7017_v18  ;;  %v7018_v59 = vunpack.i.l.bf16 %v7017_v18  ;;  %2200 = vmatprep.mubr.bf16.mxu0 %v1939_v54  ;;  %v8085_v12 = vld [vmem:[%s8423_s0 + $0x20] sm:$0xff] }
 0x187   : > { %2201 = vmatmul.mubr.bf16.vlgmr.msra.gmra.mxu0 %v1938_v0  ;;  %v1682_v29 = vsel %vm1279_vm5, %v1490_v28, %v6993_v49  ;;  %v1683_v41 = vsel %vm1279_vm5, %v1491_v51, %v6994_v9  ;;  %v1460_v51 = vmul.f32 1.442695, %v1435_v38  ;;  %v7662_v9 = vpop.eup %7661  ;;  %v1437_v49 = vmin.f32 %v9101_v26, 0.0 }
 0x188   : > { %v7007_v2 = vpop.permute.xlu0 %7006  ;;  %v1941_v30 = vpack.c.bf16 %v1683_v41, %v1682_v29  ;;  %v1892_v61 = vsel %vm1297_vm6, %v1316_v3, %v7018_v59  ;;  %v1893_v11 = vsel %vm1297_vm6, %v1317_v33, %v7019_v20  ;;  %v1492_v0 = vsel %vm1412_vm12, %v9298_v1, %v6219_v63  ;;  %v7664_v59 = vpop.eup %7663  ;;  %v1380_v41 = vld [vmem:[#allocation2 + $0x31] sm:$0xff] }
 0x189   : > { %v7022_v45 = vpop.permute.xlu1 %7021  ;;  %v7009_v18 = vunpack.i.h.bf16 %v7007_v2  ;;  %v7008_v54 = vunpack.i.l.bf16 %v7007_v2  ;;  %v1942_v29 = vpack.c.bf16 %v1893_v11, %v1892_v61  ;;  %vm1414_vm14 = vcmp.gt.f32.partialorder %v8085_v12, 0.0 }
 0x18a   : > { %v7024_v52 = vunpack.i.h.bf16 %v7022_v45  ;;  %v7023_v28 = vunpack.i.l.bf16 %v7022_v45  ;;  %6278 = vmatprep.mubr.msk.bf16.mxu1 %vm1297_vm6, %v1941_v30  ;;  %v6221_v3 = vadd.f32 -1.0, %v7662_v9  ;;  %v6222_v33 = vadd.f32 -1.0, %v7664_v59  ;;  %v8086_v59 = vld [vmem:[%s8423_s0 + $0x28] sm:$0xff] }
 0x18b   : > { %2298 = vmatmul.mubr.bf16.vlgmr.msra.gmra.mxu1 %v1940_v31  ;;  %v1908_v23 = vsel %vm1297_vm6, %v1348_v36, %v7008_v54  ;;  %v1909_v13 = vsel %vm1297_vm6, %v9103_v27, %v7009_v18  ;;  %7671 = vpow2.f32 %v1460_v51  ;;  %v1464_v9 = vmul.f32 1.442695, %v1437_v49 }
 0x18c   : > { %v7012_v20 = vpop.permute.xlu0 %7011  ;;  %v1943_v42 = vpack.c.bf16 %v1909_v13, %v1908_v23  ;;  %v1924_v1 = vsel %vm1297_vm6, %v1380_v41, %v7023_v28  ;;  %v1925_v30 = vsel %vm1297_vm6, %v9128_v39, %v7024_v52  ;;  %v1318_v39 = vld [vmem:[#allocation2 + $0x40] sm:$0xff] }
 0x18d   : > { %v7037_v38 = vpop.permute.xlu1 %7036  ;;  %v7014_v19 = vunpack.i.h.bf16 %v7012_v20  ;;  %v7013_v27 = vunpack.i.l.bf16 %v7012_v20  ;;  %v1944_v28 = vpack.c.bf16 %v1925_v30, %v1924_v1  ;;  %v1350_v23 = vld [vmem:[#allocation2 + $0x42] sm:$0xff]  ;;  %v7666_v20 = vpop.eup %7665  ;;  %v1382_v1 = vld [vmem:[#allocation2 + $0x51] sm:$0xff] }
 0x18e   : > { %v7039_v2 = vunpack.i.h.bf16 %v7037_v38  ;;  %v7038_v45 = vunpack.i.l.bf16 %v7037_v38  ;;  %2208 = vmatprep.mubr.bf16.mxu0 %v1943_v42  ;;  %v1439_v38 = vmin.f32 %v9152_v22, 0.0  ;;  %v1494_v42 = vsel %vm1414_vm14, %v8085_v12, %v6221_v3  ;;  %v7668_v49 = vpop.eup %7667 }
 0x18f   : > { %v1685_v40 = vsel %vm1279_vm5, %v1493_v17, %v7014_v19  ;;  %v1684_v63 = vsel %vm1279_vm5, %v1492_v0, %v7013_v27  ;;  %2209 = vmatmul.mubr.bf16.gmra.mxu0 %v1942_v29  ;;  %v1462_v0 = vmul.f32 1.442695, %v1436_v47  ;;  %v1495_v19 = vsel %vm1415_vm15, %v8086_v59, %v6222_v33 }
 0x190   : > { %v7027_v18 = vpop.permute.xlu0 %7026  ;;  %v1945_v31 = vpack.c.bf16 %v1685_v40, %v1684_v63  ;;  %v1894_v10 = vsel %vm1297_vm6, %v1318_v39, %v7038_v45  ;;  %v1895_v13 = vsel %vm1297_vm6, %v9135_v37, %v7039_v2  ;;  %v1438_v47 = vmin.f32 %v9140_v5, 0.0 }
 0x191   : > { %v7042_v54 = vpop.permute.xlu1 %7041  ;;  %v7029_v36 = vunpack.i.h.bf16 %v7027_v18  ;;  %v7028_v61 = vunpack.i.l.bf16 %v7027_v18  ;;  %v1946_v45 = vpack.c.bf16 %v1895_v13, %v1894_v10  ;;  %7673 = vpow2.f32 %v1462_v0 }
 0x192   : > { %v7044_v52 = vunpack.i.h.bf16 %v7042_v54  ;;  %v7043_v11 = vunpack.i.l.bf16 %v7042_v54  ;;  %6279 = vmatprep.mubr.msk.bf16.mxu1 %vm1297_vm6, %v1945_v31  ;;  %v6223_v3 = vadd.f32 -1.0, %v7666_v20  ;;  %v6224_v33 = vadd.f32 -1.0, %v7668_v49 }
 0x193   : > { %2306 = vmatmul.mubr.bf16.gmra.mxu1 %v1944_v28  ;;  %v1910_v51 = vsel %vm1297_vm6, %v1350_v23, %v7028_v61  ;;  %v1911_v17 = vsel %vm1297_vm6, %v9142_v6, %v7029_v36  ;;  %7675 = vpow2.f32 %v1464_v9  ;;  %v1468_v13 = vmul.f32 1.442695, %v1439_v38 }
 0x194   : > { %v7032_v27 = vpop.permute.xlu0 %7031  ;;  %v1947_v37 = vpack.c.bf16 %v1911_v17, %v1910_v51  ;;  %v1926_v40 = vsel %vm1297_vm6, %v1382_v1, %v7043_v11  ;;  %v1927_v63 = vsel %vm1297_vm6, %v9175_v14, %v7044_v52  ;;  %v1320_v14 = vld [vmem:[#allocation2 + $0x60] sm:$0xff]  ;;  %v1466_v9 = vmul.f32 1.442695, %v1438_v47  ;;  %v7670_v17 = vpop.eup %7669 }
 0x195   : > { %v7057_v29 = vpop.permute.xlu1 %7056  ;;  %v7034_v41 = vunpack.i.h.bf16 %v7032_v27  ;;  %v7033_v2 = vunpack.i.l.bf16 %v7032_v27  ;;  %v1948_v28 = vpack.c.bf16 %v1927_v63, %v1926_v40  ;;  %v1352_v11 = vld [vmem:[#allocation2 + $0x62] sm:$0xff]  ;;  %v1441_v20 = vmin.f32 %v9193_v7, 0.0  ;;  %v1322_v63 = vld [vmem:[#allocation2 + $0x90] sm:$0xff] }
 0x196   : > { %v7059_v6 = vunpack.i.h.bf16 %v7057_v29  ;;  %v7058_v30 = vunpack.i.l.bf16 %v7057_v29  ;;  %2216 = vmatprep.mubr.bf16.mxu0 %v1947_v37  ;;  %v1440_v49 = vmin.f32 %v9184_v57, 0.0  ;;  %7677 = vpow2.f32 %v1466_v9 }
 0x197   : > { %v1687_v8 = vsel %vm1279_vm5, %v1495_v19, %v7034_v41  ;;  %v1686_v12 = vsel %vm1279_vm5, %v1494_v42, %v7033_v2  ;;  %2217 = vmatmul.mubr.bf16.gmra.mxu0 %v1946_v45  ;;  %v8087_v42 = vld [vmem:[%s8423_s0 + $0x30] sm:$0xff]  ;;  %v8088_v19 = vld [vmem:[%s8423_s0 + $0x38] sm:$0xff]  ;;  %v1385_v45 = vld [vmem:[#allocation2 + $0x81] sm:$0xff]  ;;  %7679 = vpow2.f32 %v1468_v13  ;;  %v1472_v9 = vmul.f32 1.442695, %v1441_v20 }
 0x198   : > { %v7047_v18 = vpop.permute.xlu0 %7046  ;;  %v1949_v31 = vpack.c.bf16 %v1687_v8, %v1686_v12  ;;  %v1896_v23 = vsel %vm1297_vm6, %v1320_v14, %v7058_v30  ;;  %v1897_v10 = vsel %vm1297_vm6, %v9180_v24, %v7059_v6  ;;  %v1496_v59 = vsel %vm1416_vm0, %v8087_v42, %v6223_v3  ;;  %v7672_v37 = vpop.eup %7671  ;;  %v1384_v2 = vld [vmem:[#allocation2 + $0x71] sm:$0xff] }
 0x199   : > { %v7062_v54 = vpop.permute.xlu1 %7061  ;;  %v7049_v36 = vunpack.i.h.bf16 %v7047_v18  ;;  %v7048_v61 = vunpack.i.l.bf16 %v7047_v18  ;;  %v1497_v27 = vsel %vm1417_vm1, %v8088_v19, %v6224_v33  ;;  %v1354_v3 = vld [vmem:[#allocation2 + $0x92] sm:$0xff] }
 0x19a   : > { %v7064_v39 = vunpack.i.h.bf16 %v7062_v54  ;;  %v7063_v52 = vunpack.i.l.bf16 %v7062_v54  ;;  %6280 = vmatprep.mubr.msk.bf16.mxu1 %vm1297_vm6, %v1949_v31  ;;  %v6225_v54 = vadd.f32 -1.0, %v7670_v17  ;;  %v6226_v31 = vadd.f32 -1.0, %v7672_v37 }
 0x19b   : > { %2314 = vmatmul.mubr.bf16.gmra.mxu1 %v1948_v28  ;;  %v1912_v0 = vsel %vm1297_vm6, %v1352_v11, %v7048_v61  ;;  %v1913_v51 = vsel %vm1297_vm6, %v9186_v58, %v7049_v36  ;;  %v1950_v58 = vpack.c.bf16 %v1897_v10, %v1896_v23  ;;  %v1470_v11 = vmul.f32 1.442695, %v1440_v49 }
 0x19c   : > { %v7052_v24 = vpop.permute.xlu0 %7051  ;;  %v1951_v29 = vpack.c.bf16 %v1913_v51, %v1912_v0  ;;  %v1928_v16 = vsel %vm1297_vm6, %v1384_v2, %v7063_v52  ;;  %v1929_v30 = vsel %vm1297_vm6, %v1385_v45, %v7064_v39  ;;  %v1498_v0 = vsel %vm1418_vm2, %v9044_v50, %v6225_v54 }
 0x19d   : > { %v7077_v38 = vpop.permute.xlu1 %7076  ;;  %v7054_v47 = vunpack.i.h.bf16 %v7052_v24  ;;  %v7053_v41 = vunpack.i.l.bf16 %v7052_v24  ;;  %v1952_v61 = vpack.c.bf16 %v1929_v30, %v1928_v16  ;;  %v1499_v51 = vsel %vm1419_vm3, %v9053_v60, %v6226_v31  ;;  %v1356_v16 = vld [vmem:[#allocation2 + $0xb2] sm:$0xff] }
 0x19e   : > { %v7079_v1 = vunpack.i.h.bf16 %v7077_v38  ;;  %v7078_v6 = vunpack.i.l.bf16 %v7077_v38  ;;  %2224 = vmatprep.mubr.bf16.mxu0 %v1951_v29  ;;  %v7674_v13 = vpop.eup %7673  ;;  %7681 = vpow2.f32 %v1470_v11 }
 0x19f   : > { %v1689_v32 = vsel %vm1279_vm5, %v1497_v27, %v7054_v47  ;;  %v1688_v40 = vsel %vm1279_vm5, %v1496_v59, %v7053_v41  ;;  %2225 = vmatmul.mubr.bf16.gmra.mxu0 %v1950_v58  ;;  %v6227_v41 = vadd.f32 -1.0, %v7674_v13  ;;  %7683 = vpow2.f32 %v1472_v9 }
 0x1a0   : > { %v7067_v8 = vpop.permute.xlu0 %7066  ;;  %v1953_v18 = vpack.c.bf16 %v1689_v32, %v1688_v40  ;;  %v1898_v39 = vsel %vm1297_vm6, %v1322_v63, %v7078_v6  ;;  %v1899_v52 = vsel %vm1297_vm6, %v9212_v55, %v7079_v1  ;;  %v7676_v19 = vpop.eup %7675 }
 0x1a1   : > { %v7082_v12 = vpop.permute.xlu1 %7081  ;;  %v7069_v33 = vunpack.i.h.bf16 %v7067_v8  ;;  %v7068_v36 = vunpack.i.l.bf16 %v7067_v8  ;;  %v1954_v24 = vpack.c.bf16 %v1899_v52, %v1898_v39  ;;  %v6228_v58 = vadd.f32 -1.0, %v7676_v19 }
 0x1a2   : > { %v7084_v28 = vunpack.i.h.bf16 %v7082_v12  ;;  %v7083_v14 = vunpack.i.l.bf16 %v7082_v12  ;;  %6281 = vmatprep.mubr.msk.bf16.mxu1 %vm1297_vm6, %v1953_v18  ;;  %v1500_v12 = vsel %vm1420_vm4, %v9093_v21, %v6227_v41 }
 0x1a3   : > { %2322 = vmatmul.mubr.bf16.gmra.mxu1 %v1952_v61  ;;  %v1914_v23 = vsel %vm1297_vm6, %v1354_v3, %v7068_v36  ;;  %v1915_v10 = vsel %vm1297_vm6, %v9215_v34, %v7069_v33  ;;  %v7678_v8 = vpop.eup %7677  ;;  %v1501_v18 = vsel %vm1421_vm7, %v9101_v26, %v6228_v58 }
 0x1a4   : > { %v7072_v17 = vpop.permute.xlu0 %7071  ;;  %v1955_v59 = vpack.c.bf16 %v1915_v10, %v1914_v23  ;;  %v1930_v34 = vsel %vm1297_vm6, %v9204_v43, %v7083_v14  ;;  %v1931_v20 = vsel %vm1297_vm6, %v9226_v48, %v7084_v28  ;;  %v1324_v48 = vld [vmem:[#allocation2 + $0xb0] sm:$0xff]  ;;  %v7680_v33 = vpop.eup %7679  ;;  %v6229_v10 = vadd.f32 -1.0, %v7678_v8 }
 0x1a5   : > { %v7097_v42 = vpop.permute.xlu1 %7096  ;;  %v7074_v55 = vunpack.i.h.bf16 %v7072_v17  ;;  %v7073_v27 = vunpack.i.l.bf16 %v7072_v17  ;;  %v1956_v43 = vpack.c.bf16 %v1931_v20, %v1930_v34  ;;  %v6230_v13 = vadd.f32 -1.0, %v7680_v33 }
 0x1a6   : > { %v7099_v38 = vunpack.i.h.bf16 %v7097_v42  ;;  %v7098_v29 = vunpack.i.l.bf16 %v7097_v42  ;;  %2232 = vmatprep.mubr.bf16.mxu0 %v1955_v59 }
 0x1a7   : > { %v1691_v50 = vsel %vm1279_vm5, %v1499_v51, %v7074_v55  ;;  %v1690_v60 = vsel %vm1279_vm5, %v1498_v0, %v7073_v27  ;;  %2233 = vmatmul.mubr.bf16.gmra.mxu0 %v1954_v24  ;;  %v1502_v24 = vsel %vm1422_vm8, %v9140_v5, %v6229_v10 }
 0x1a8   : > { %v7087_v37 = vpop.permute.xlu0 %7086  ;;  %v1957_v47 = vpack.c.bf16 %v1691_v50, %v1690_v60  ;;  %v1900_v30 = vsel %vm1297_vm6, %v1324_v48, %v7098_v29  ;;  %v1901_v32 = vsel %vm1297_vm6, %v9232_v62, %v7099_v38  ;;  %v1503_v38 = vsel %vm1423_vm9, %v9152_v22, %v6230_v13 }
 0x1a9   : > { %v7102_v49 = vpop.permute.xlu1 %7101  ;;  %v7089_v2 = vunpack.i.h.bf16 %v7087_v37  ;;  %v7088_v45 = vunpack.i.l.bf16 %v7087_v37  ;;  %v1958_v62 = vpack.c.bf16 %v1901_v32, %v1900_v30  ;;  %v11419_v32 = vld [vmem:[#allocation26_spill] sm:$0xff] }
 0x1aa   : > { %v7104_v1 = vunpack.i.h.bf16 %v7102_v49  ;;  %v7103_v6 = vunpack.i.l.bf16 %v7102_v49  ;;  %6282 = vmatprep.mubr.msk.bf16.mxu1 %vm1297_vm6, %v1957_v47 }
 0x1ab   : > { %2330 = vmatmul.mubr.bf16.gmra.mxu1 %v1956_v43  ;;  %v1916_v40 = vsel %vm1297_vm6, %v1356_v16, %v7088_v45  ;;  %v1917_v63 = vsel %vm1297_vm6, %v9234_v4, %v7089_v2  ;;  %v7682_v27 = vpop.eup %7681 }
 0x1ac   : > { %v7092_v54 = vpop.permute.xlu0 %7091  ;;  %v1959_v3 = vpack.c.bf16 %v1917_v63, %v1916_v40  ;;  %v1932_v4 = vsel %vm1297_vm6, %v9228_v56, %v7103_v6  ;;  %v1933_v39 = vsel %vm1297_vm6, %v9249_v44, %v7104_v1  ;;  %v1326_v56 = vld [vmem:[#allocation2 + $0xd0] sm:$0xff]  ;;  %v7684_v50 = vpop.eup %7683  ;;  %v6231_v45 = vadd.f32 -1.0, %v7682_v27  ;;  %v11420_v63 = vld [vmem:[#allocation24_spill] sm:$0xff] }
 0x1ad   : > { %v7117_v31 = vpop.permute.xlu1 %7116  ;;  %v7094_v36 = vunpack.i.h.bf16 %v7092_v54  ;;  %v7093_v61 = vunpack.i.l.bf16 %v7092_v54  ;;  %v1960_v51 = vpack.c.bf16 %v1933_v39, %v1932_v4  ;;  %v6232_v43 = vadd.f32 -1.0, %v7684_v50 }
 0x1ae   : > { %v7119_v28 = vunpack.i.h.bf16 %v7117_v31  ;;  %v7118_v14 = vunpack.i.l.bf16 %v7117_v31  ;;  %2240 = vmatprep.mubr.bf16.mxu0 %v1959_v3  ;;  %v1504_v54 = vsel %vm1424_vm10, %v9184_v57, %v6231_v45 }
 0x1af   : > { %v1693_v21 = vsel %vm1279_vm5, %v1501_v18, %v7094_v36  ;;  %v1692_v26 = vsel %vm1279_vm5, %v1500_v12, %v7093_v61  ;;  %2241 = vmatmul.mubr.bf16.gmra.mxu0 %v1958_v62  ;;  %v11421_v12 = vld [vmem:[#allocation27_spill] sm:$0xff]  ;;  %v1505_v31 = vsel %vm1425_vm11, %v9193_v7, %v6232_v43 }
 0x1b0   : > { %v7107_v52 = vpop.permute.xlu0 %7106  ;;  %v1961_v23 = vpack.c.bf16 %v1693_v21, %v1692_v26  ;;  %v1902_v42 = vsel %vm1297_vm6, %v1326_v56, %v7118_v14  ;;  %v1903_v59 = vsel %vm1297_vm6, %v9255_v53, %v7119_v28  ;;  %v1393_v28 = vld [vmem:[#allocation2 + $0x111] sm:$0xff]  ;;  %v11422_v14 = vld [vmem:[#allocation25_spill] sm:$0xff] }
 0x1b1   : > { %v7122_v11 = vpop.permute.xlu1 %7121  ;;  %v7109_v9 = vunpack.i.h.bf16 %v7107_v52  ;;  %v7108_v0 = vunpack.i.l.bf16 %v7107_v52  ;;  %v1962_v37 = vpack.c.bf16 %v1903_v59, %v1902_v42 }
 0x1b2   : > { %v7124_v17 = vunpack.i.h.bf16 %v7122_v11  ;;  %v7123_v44 = vunpack.i.l.bf16 %v7122_v11  ;;  %6283 = vmatprep.mubr.msk.bf16.mxu1 %vm1297_vm6, %v1961_v23  ;;  %v9467_v23 = vld [vmem:[%s11423_s29] ss:$0 sm:$0xff]  ;;  %s8125_s29 = sshll.u32 %s8250_s28, 4  ;;  %s8126_s29 = int_to_ptr.vmem [resolvable:$false] %s8125_s29 }
 0x1b3   : > { %2338 = vmatmul.mubr.bf16.gmra.mxu1 %v1960_v51  ;;  %v1918_v19 = vsel %vm1297_vm6, %v9236_v46, %v7108_v0  ;;  %v1919_v55 = vsel %vm1297_vm6, %v9257_v15, %v7109_v9  ;;  %s8127_s18 = scalar_lea.vmem %s8126_s29, 4096 }
 0x1b4   : > { %v7112_v29 = vpop.permute.xlu0 %7111  ;;  %v1963_v20 = vpack.c.bf16 %v1919_v55, %v1918_v19  ;;  %v1934_v46 = vsel %vm1297_vm6, %v9251_v25, %v7123_v44  ;;  %v1935_v15 = vsel %vm1297_vm6, %v9272_v35, %v7124_v17  ;;  %v1328_v25 = vld [vmem:[#allocation2 + $0xf0] sm:$0xff] }
 0x1b5   : > { %v7132_v34 = vpop.permute.xlu1 %7131  ;;  %v7114_v60 = vunpack.i.h.bf16 %v7112_v29  ;;  %v7113_v53 = vunpack.i.l.bf16 %v7112_v29  ;;  %v1964_v6 = vpack.c.bf16 %v1935_v15, %v1934_v46 }
 0x1b6   : > { %v7134_v49 = vunpack.i.h.bf16 %v7132_v34  ;;  %v7133_v47 = vunpack.i.l.bf16 %v7132_v34  ;;  %2248 = vmatprep.mubr.bf16.mxu0 %v1963_v20 }
 0x1b7   : > { %v1695_v5 = vsel %vm1279_vm5, %v1503_v38, %v7114_v60  ;;  %v1694_v22 = vsel %vm1279_vm5, %v1502_v24, %v7113_v53  ;;  %2249 = vmatmul.mubr.bf16.gmra.mxu0 %v1962_v37 }
 0x1b8   : > { %v7127_v41 = vpop.permute.xlu0 %7126  ;;  %v1965_v2 = vpack.c.bf16 %v1695_v5, %v1694_v22  ;;  %v1904_v30 = vsel %vm1297_vm6, %v1328_v25, %v7133_v47  ;;  %v1905_v40 = vsel %vm1297_vm6, %v11419_v32, %v7134_v49 }
 0x1b9   : > { %v7142_v58 = vpop.permute.xlu1 %7141  ;;  %v7129_v48 = vunpack.i.h.bf16 %v7127_v41  ;;  %v7128_v1 = vunpack.i.l.bf16 %v7127_v41  ;;  %v1966_v62 = vpack.c.bf16 %v1905_v40, %v1904_v30 }
 0x1ba   : > { %v7144_v16 = vunpack.i.h.bf16 %v7142_v58  ;;  %v7143_v35 = vunpack.i.l.bf16 %v7142_v58  ;;  %6284 = vmatprep.mubr.msk.bf16.mxu1 %vm1297_vm6, %v1965_v2 }
 0x1bb   : > { %2346 = vmatmul.mubr.bf16.gmra.mxu1 %v1964_v6  ;;  %v1920_v8 = vsel %vm1297_vm6, %v11420_v63, %v7128_v1  ;;  %v1921_v18 = vsel %vm1297_vm6, %v11421_v12, %v7129_v48 }
 0x1bc   : > { %v7137_v3 = vpop.permute.xlu0 %7136  ;;  %v1967_v33 = vpack.c.bf16 %v1921_v18, %v1920_v8  ;;  %v1936_v4 = vsel %vm1297_vm6, %v11422_v14, %v7143_v35  ;;  %v1937_v39 = vsel %vm1297_vm6, %v1393_v28, %v7144_v16 }
 0x1bd   : > { %v7139_v36 = vunpack.i.h.bf16 %v7137_v3  ;;  %v7138_v61 = vunpack.i.l.bf16 %v7137_v3  ;;  %v1968_v7 = vpack.c.bf16 %v1937_v39, %v1936_v4 }
 0x1be   : > { %2256 = vmatprep.mubr.bf16.mxu0 %v1967_v33 }
 0x1bf   : > { %v1697_v21 = vsel %vm1279_vm5, %v1505_v31, %v7139_v36  ;;  %v1696_v26 = vsel %vm1279_vm5, %v1504_v54, %v7138_v61  ;;  %2257 = vmatmul.mubr.bf16.gmra.mxu0 %v1966_v62 }
 0x1c0   : > { %v1969_v57 = vpack.c.bf16 %v1697_v21, %v1696_v26 }
 0x1c2   : > { %6285 = vmatprep.mubr.msk.bf16.mxu1 %vm1297_vm6, %v1969_v57 }
 0x1c3   : > { %2354 = vmatmul.mubr.bf16.gmra.mxu1 %v1968_v7 }
 0x247   : > { %v6548_v52 = vpop.f32.mrf.mxu0 }
 0x249   : > { %v6549_v11 = vpop.f32.mrf.mxu0 }
 0x24a   : > { %v6550_v10 = vadd.f32 %v6549_v11, %v6548_v52 }
 0x24b   : > { %v6551_v13 = vpop.f32.mrf.mxu0  ;;  %v2299_v9 = vpop.f32.mrf.mxu1 }
 0x24c   : > { %v2203_v0 = vadd.f32 %v6550_v10, %v9467_v23 }
 0x24d   : > { %v6552_v51 = vpop.f32.mrf.mxu0  ;;  %v2301_v56 = vpop.f32.mrf.mxu1 }
 0x24e   : > { %v9470_v17 = vadd.f32 %v2299_v9, %v2203_v0  ;;  %v6553_v44 = vadd.f32 %v6552_v51, %v6551_v13 }
 0x24f   : > { %v6554_v42 = vpop.f32.mrf.mxu0  ;;  %v2302_v59 = vpop.f32.mrf.mxu1 }
 0x250   : > { %v2206_v19 = vadd.f32 %v6553_v44, %v9467_v23  ;;  %v9474_v55 = vsub.f32 0.0, %v9470_v17 }
 0x251   : > { %v6555_v27 = vpop.f32.mrf.mxu0  ;;  %v2304_v24 = vpop.f32.mrf.mxu1 }
 0x252   : > { %v9476_v38 = vadd.f32 %v2302_v59, %v2206_v19  ;;  %v6556_v29 = vadd.f32 %v6555_v27, %v6554_v42  ;;  %v2490_v50 = vmin.f32 %v9474_v55, 0.0  ;;  %vm2474_vm12 = vcmp.gt.f32.partialorder %v9474_v55, 0.0 }
 0x253   : > { %v6557_v34 = vpop.f32.mrf.mxu0  ;;  %v2307_v20 = vpop.f32.mrf.mxu1 }
 0x254   : > { %v2211_v60 = vadd.f32 %v6556_v29, %v9467_v23  ;;  %v9481_v53 = vsub.f32 0.0, %v9476_v38  ;;  %v2506_v47 = vmul.f32 1.442695, %v2490_v50 }
 0x255   : > { %v6558_v37 = vpop.f32.mrf.mxu0  ;;  %v2309_v49 = vpop.f32.mrf.mxu1 }
 0x256   : > { %v9483_v46 = vadd.f32 %v2307_v20, %v2211_v60  ;;  %v6559_v15 = vadd.f32 %v6558_v37, %v6557_v34  ;;  %7685 = vpow2.f32 %v2506_v47  ;;  %v2491_v41 = vmin.f32 %v9481_v53, 0.0 }
 0x257   : > { %v6560_v5 = vpop.f32.mrf.mxu0  ;;  %v2310_v22 = vpop.f32.mrf.mxu1  ;;  %vm2475_vm13 = vcmp.gt.f32.partialorder %v9481_v53, 0.0 }
 0x258   : > { %v2214_v58 = vadd.f32 %v6559_v15, %v9467_v23  ;;  %v9488_v2 = vsub.f32 0.0, %v9483_v46  ;;  %v2508_v48 = vmul.f32 1.442695, %v2491_v41 }
 0x259   : > { %v6561_v45 = vpop.f32.mrf.mxu0  ;;  %v2312_v43 = vpop.f32.mrf.mxu1 }
 0x25a   : > { %v9490_v1 = vadd.f32 %v2310_v22, %v2214_v58  ;;  %v6562_v6 = vadd.f32 %v6561_v45, %v6560_v5  ;;  %7687 = vpow2.f32 %v2508_v48  ;;  %v2492_v35 = vmin.f32 %v9488_v2, 0.0 }
 0x25b   : > { %v6563_v25 = vpop.f32.mrf.mxu0  ;;  %v2315_v16 = vpop.f32.mrf.mxu1  ;;  %vm2476_vm14 = vcmp.gt.f32.partialorder %v9488_v2, 0.0 }
 0x25c   : > { %v2219_v30 = vadd.f32 %v6562_v6, %v9467_v23  ;;  %v9495_v32 = vsub.f32 0.0, %v9490_v1  ;;  %v2510_v8 = vmul.f32 1.442695, %v2492_v35 }
 0x25d   : > { %v6564_v40 = vpop.f32.mrf.mxu0  ;;  %v2317_v63 = vpop.f32.mrf.mxu1 }
 0x25e   : > { %v9497_v12 = vadd.f32 %v2315_v16, %v2219_v30  ;;  %v6565_v18 = vadd.f32 %v6564_v40, %v6563_v25  ;;  %7689 = vpow2.f32 %v2510_v8  ;;  %v2493_v3 = vmin.f32 %v9495_v32, 0.0 }
 0x25f   : > { %v6566_v54 = vpop.f32.mrf.mxu0  ;;  %v2318_v31 = vpop.f32.mrf.mxu1  ;;  %vm2477_vm15 = vcmp.gt.f32.partialorder %v9495_v32, 0.0 }
 0x260   : > { %v2222_v33 = vadd.f32 %v6565_v18, %v9467_v23  ;;  %v9502_v36 = vsub.f32 0.0, %v9497_v12  ;;  %v2512_v28 = vmul.f32 1.442695, %v2493_v3 }
 0x261   : > { %v6567_v61 = vpop.f32.mrf.mxu0  ;;  %v2320_v62 = vpop.f32.mrf.mxu1 }
 0x262   : > { %v9504_v14 = vadd.f32 %v2318_v31, %v2222_v33  ;;  %v6568_v4 = vadd.f32 %v6567_v61, %v6566_v54  ;;  %7691 = vpow2.f32 %v2512_v28  ;;  %v2494_v26 = vmin.f32 %v9502_v36, 0.0 }
 0x263   : > { %v6569_v39 = vpop.f32.mrf.mxu0  ;;  %v2323_v21 = vpop.f32.mrf.mxu1  ;;  %vm2478_vm0 = vcmp.gt.f32.partialorder %v9502_v36, 0.0 }
 0x264   : > { %v7686_v57 = vpop.eup %7685  ;;  %v2227_v7 = vadd.f32 %v6568_v4, %v9467_v23  ;;  %v9509_v52 = vsub.f32 0.0, %v9504_v14  ;;  %v2514_v9 = vmul.f32 1.442695, %v2494_v26 }
 0x265   : > { %v6570_v11 = vpop.f32.mrf.mxu0  ;;  %v2325_v10 = vpop.f32.mrf.mxu1  ;;  %v6302_v13 = vadd.f32 -1.0, %v7686_v57 }
 0x266   : > { %v9511_v0 = vadd.f32 %v2323_v21, %v2227_v7  ;;  %v6571_v51 = vadd.f32 %v6570_v11, %v6569_v39  ;;  %7693 = vpow2.f32 %v2514_v9  ;;  %v2495_v59 = vmin.f32 %v9509_v52, 0.0 }
 0x267   : > { %v6572_v56 = vpop.f32.mrf.mxu0  ;;  %v2326_v44 = vpop.f32.mrf.mxu1  ;;  %v2554_v42 = vsel %vm2474_vm12, %v9474_v55, %v6302_v13  ;;  %vm2479_vm1 = vcmp.gt.f32.partialorder %v9509_v52, 0.0 }
 0x268   : > { %v7688_v19 = vpop.eup %7687  ;;  %v2230_v27 = vadd.f32 %v6571_v51, %v9467_v23  ;;  %2586 = vrot.lane.b32.xlu0 %v2554_v42, %s8246_s3  ;;  %v9519_v24 = vsub.f32 0.0, %v9511_v0  ;;  %v2516_v50 = vmul.f32 1.442695, %v2495_v59 }
 0x269   : > { %v6573_v29 = vpop.f32.mrf.mxu0  ;;  %v2328_v34 = vpop.f32.mrf.mxu1  ;;  %v6303_v20 = vadd.f32 -1.0, %v7688_v19 }
 0x26a   : > { %v9521_v60 = vadd.f32 %v2326_v44, %v2230_v27  ;;  %v6574_v37 = vadd.f32 %v6573_v29, %v6572_v56  ;;  %7695 = vpow2.f32 %v2516_v50  ;;  %v2496_v15 = vmin.f32 %v9519_v24, 0.0 }
 0x26b   : > { %v6575_v55 = vpop.f32.mrf.mxu0  ;;  %v2331_v49 = vpop.f32.mrf.mxu1  ;;  %v2555_v47 = vsel %vm2475_vm13, %v9481_v53, %v6303_v20  ;;  %vm2480_vm2 = vcmp.gt.f32.partialorder %v9519_v24, 0.0 }
 0x26c   : > { %v7690_v5 = vpop.eup %7689  ;;  %v2235_v22 = vadd.f32 %v6574_v37, %v9467_v23  ;;  %2588 = vrot.lane.b32.xlu1 %v2555_v47, %s8246_s3  ;;  %v9529_v41 = vsub.f32 0.0, %v9521_v60  ;;  %v2518_v48 = vmul.f32 1.442695, %v2496_v15 }
 0x26d   : > { %v6576_v58 = vpop.f32.mrf.mxu0  ;;  %v2333_v45 = vpop.f32.mrf.mxu1  ;;  %v6304_v43 = vadd.f32 -1.0, %v7690_v5 }
 0x26e   : > { %v9531_v6 = vadd.f32 %v2331_v49, %v2235_v22  ;;  %v6577_v25 = vadd.f32 %v6576_v58, %v6575_v55  ;;  %7697 = vpow2.f32 %v2518_v48  ;;  %v2497_v30 = vmin.f32 %v9529_v41, 0.0 }
 0x26f   : > { %v6578_v53 = vpop.f32.mrf.mxu0  ;;  %v2334_v16 = vpop.f32.mrf.mxu1  ;;  %v2556_v35 = vsel %vm2476_vm14, %v9488_v2, %v6304_v43  ;;  %vm2481_vm3 = vcmp.gt.f32.partialorder %v9529_v41, 0.0  ;;  %vm2362_vm14 = vcmp.gt.f32.partialorder %v9470_v17, 0.0 }
 0x270   : > { %v7692_v40 = vpop.eup %7691  ;;  %v2238_v63 = vadd.f32 %v6577_v25, %v9467_v23  ;;  %2590 = vrot.lane.b32.xlu0 %v2556_v35, %s8246_s3  ;;  %v9539_v8 = vsub.f32 0.0, %v9531_v6  ;;  %v2520_v3 = vmul.f32 1.442695, %v2497_v30 }
 0x271   : > { %v6579_v18 = vpop.f32.mrf.mxu0  ;;  %v2336_v54 = vpop.f32.mrf.mxu1  ;;  %v6305_v31 = vadd.f32 -1.0, %v7692_v40 }
 0x272   : > { %v9541_v33 = vadd.f32 %v2334_v16, %v2238_v63  ;;  %v6580_v61 = vadd.f32 %v6579_v18, %v6578_v53  ;;  %7699 = vpow2.f32 %v2520_v3  ;;  %v2498_v4 = vmin.f32 %v9539_v8, 0.0 }
 0x273   : > { %v6581_v2 = vpop.f32.mrf.mxu0  ;;  %v2339_v62 = vpop.f32.mrf.mxu1  ;;  %v2557_v28 = vsel %vm2477_vm15, %v9495_v32, %v6305_v31  ;;  %vm2482_vm4 = vcmp.gt.f32.partialorder %v9539_v8, 0.0  ;;  %vm2363_vm15 = vcmp.gt.f32.partialorder %v9476_v38, 0.0 }
 0x274   : > { %v7694_v39 = vpop.eup %7693  ;;  %v2243_v21 = vadd.f32 %v6580_v61, %v9467_v23  ;;  %2592 = vrot.lane.b32.xlu1 %v2557_v28, %s8246_s3  ;;  %v9549_v26 = vsub.f32 0.0, %v9541_v33  ;;  %v2522_v10 = vmul.f32 1.442695, %v2498_v4 }
 0x275   : > { %v6582_v57 = vpop.f32.mrf.mxu0  ;;  %v2341_v7 = vpop.f32.mrf.mxu1  ;;  %v6306_v11 = vadd.f32 -1.0, %v7694_v39 }
 0x276   : > { %v9551_v13 = vadd.f32 %v2339_v62, %v2243_v21  ;;  %v6583_v9 = vadd.f32 %v6582_v57, %v6581_v2  ;;  %7701 = vpow2.f32 %v2522_v10  ;;  %v2499_v44 = vmin.f32 %v9549_v26, 0.0 }
 0x277   : > { %v6584_v32 = vpop.f32.mrf.mxu0  ;;  %v2342_v51 = vpop.f32.mrf.mxu1  ;;  %v2558_v56 = vsel %vm2478_vm0, %v9502_v36, %v6306_v11  ;;  %vm2483_vm7 = vcmp.gt.f32.partialorder %v9549_v26, 0.0  ;;  %vm2364_vm0 = vcmp.gt.f32.partialorder %v9483_v46, 0.0 }
 0x278   : > { %v7696_v42 = vpop.eup %7695  ;;  %v2246_v59 = vadd.f32 %v6583_v9, %v9467_v23  ;;  %2594 = vrot.lane.b32.xlu0 %v2558_v56, %s8246_s3  ;;  %v9559_v19 = vsub.f32 0.0, %v9551_v13  ;;  %v2524_v20 = vmul.f32 1.442695, %v2499_v44 }
 0x279   : > { %v6585_v27 = vpop.f32.mrf.mxu0  ;;  %v2344_v29 = vpop.f32.mrf.mxu1  ;;  %v6307_v34 = vadd.f32 -1.0, %v7696_v42 }
 0x27a   : > { %v9561_v50 = vadd.f32 %v2342_v51, %v2246_v59  ;;  %v6586_v37 = vadd.f32 %v6585_v27, %v6584_v32  ;;  %7703 = vpow2.f32 %v2524_v20  ;;  %v2500_v47 = vmin.f32 %v9559_v19, 0.0 }
 0x27b   : > { %v6587_v36 = vpop.f32.mrf.mxu0  ;;  %v2347_v55 = vpop.f32.mrf.mxu1  ;;  %v2559_v49 = vsel %vm2479_vm1, %v9509_v52, %v6307_v34  ;;  %vm2484_vm8 = vcmp.gt.f32.partialorder %v9559_v19, 0.0  ;;  %vm2365_vm1 = vcmp.gt.f32.partialorder %v9490_v1, 0.0 }
 0x27c   : > { %v7698_v15 = vpop.eup %7697  ;;  %v2251_v5 = vadd.f32 %v6586_v37, %v9467_v23  ;;  %2596 = vrot.lane.b32.xlu1 %v2559_v49, %s8246_s3  ;;  %v9569_v22 = vsub.f32 0.0, %v9561_v50  ;;  %v2526_v48 = vmul.f32 1.442695, %v2500_v47 }
 0x27d   : > { %v6588_v58 = vpop.f32.mrf.mxu0  ;;  %v2349_v45 = vpop.f32.mrf.mxu1  ;;  %v6308_v43 = vadd.f32 -1.0, %v7698_v15 }
 0x27e   : > { %v9571_v25 = vadd.f32 %v2347_v55, %v2251_v5  ;;  %v6589_v53 = vadd.f32 %v6588_v58, %v6587_v36  ;;  %7705 = vpow2.f32 %v2526_v48  ;;  %v2501_v30 = vmin.f32 %v9569_v22, 0.0 }
 0x27f   : > { %v6590_v52 = vpop.f32.mrf.mxu0  ;;  %v2350_v16 = vpop.f32.mrf.mxu1  ;;  %v2560_v35 = vsel %vm2480_vm2, %v9519_v24, %v6308_v43  ;;  %vm2485_vm9 = vcmp.gt.f32.partialorder %v9569_v22, 0.0  ;;  %vm2366_vm2 = vcmp.gt.f32.partialorder %v9497_v12, 0.0 }
 0x280   : > { %v7700_v40 = vpop.eup %7699  ;;  %v2254_v63 = vadd.f32 %v6589_v53, %v9467_v23  ;;  %2598 = vrot.lane.b32.xlu0 %v2560_v35, %s8246_s3  ;;  %v2470_v18 = vsub.f32 0.0, %v9571_v25  ;;  %v2528_v61 = vmul.f32 1.442695, %v2501_v30 }
 0x281   : > { %v6591_v54 = vpop.f32.mrf.mxu0  ;;  %v2352_v31 = vpop.f32.mrf.mxu1  ;;  %v6309_v3 = vadd.f32 -1.0, %v7700_v40 }
 0x282   : > { %v9579_v2 = vadd.f32 %v2350_v16, %v2254_v63  ;;  %v6592_v62 = vadd.f32 %v6591_v54, %v6590_v52  ;;  %7707 = vpow2.f32 %v2528_v61  ;;  %v2502_v39 = vmin.f32 %v2470_v18, 0.0  ;;  %v7494_v61 = vld [vmem:[%s8438_s26 + $0x38] sm:$0xff]  }
 0x283   : > { %v6593_v24 = vpop.f32.mrf.mxu0  ;;  %v2355_v28 = vpop.f32.mrf.mxu1  ;;  %v2561_v4 = vsel %vm2481_vm3, %v9529_v41, %v6309_v3  ;;  %vm2486_vm10 = vcmp.gt.f32.partialorder %v2470_v18, 0.0  ;;  %v7493_v3 = vld [vmem:[%s8438_s26 + $0x78] sm:$0xff]   ;;  %vm2367_vm3 = vcmp.gt.f32.partialorder %v9504_v14, 0.0 }
 0x284   : > { %v7702_v21 = vpop.eup %7701  ;;  %v2259_v57 = vadd.f32 %v6592_v62, %v9467_v23  ;;  %2600 = vrot.lane.b32.xlu1 %v2561_v4, %s8246_s3  ;;  %v2471_v7 = vsub.f32 0.0, %v9579_v2  ;;  %v2530_v32 = vmul.f32 1.442695, %v2502_v39  ;;  %6596 = vmatprep.subr.bf16.mxu0 %v7493_v3  ;;  %v7495_v62 = vld [vmem:[%s8438_s26 + $0x70] sm:$0xff]   ;;  %v7497_v4 = vld [vmem:[%s8438_s26 + $0x68] sm:$0xff]  }
 0x285   : > { %v6594_v11 = vpop.f32.mrf.mxu0  ;;  %v2357_v10 = vpop.f32.mrf.mxu1  ;;  %v6310_v9 = vadd.f32 -1.0, %v7702_v21  ;;  %6597 = vmatpush3.bf16.msra.mxu0 %v7494_v61  ;;  %v7505_v39 = vld [vmem:[%s8438_s26 + $0xb0] sm:$0xff]   ;;  %v7498_v21 = vld [vmem:[%s8438_s26 + $0x28] sm:$0xff]  }
 0x286   : > { %v9586_v51 = vadd.f32 %v2355_v28, %v2259_v57  ;;  %v6595_v56 = vadd.f32 %v6594_v11, %v6593_v24  ;;  %7709 = vpow2.f32 %v2530_v32  ;;  %v2503_v42 = vmin.f32 %v2471_v7, 0.0  ;;  %v7496_v24 = vld [vmem:[%s8438_s26 + $0x30] sm:$0xff]   ;;  %v7502_v28 = vld [vmem:[%s8438_s26 + $0xb8] sm:$0xff]   ;;  %6598 = vmatprep.subr.bf16.mxu0 %v7495_v62  ;;  %v7508_v57 = vld [vmem:[%s8438_s26 + $0xa8] sm:$0xff]  }
 0x287   : > { %v2358_v44 = vpop.f32.mrf.mxu1  ;;  %v2562_v41 = vsel %vm2482_vm4, %v9539_v8, %v6310_v9  ;;  %v7704_v59 = vpop.eup %7703  ;;  %vm2487_vm11 = vcmp.gt.f32.partialorder %v2471_v7, 0.0  ;;  %6820 = vmatprep.subr.bf16.mxu1 %v7502_v28  ;;  %v7500_v11 = vld [vmem:[%s8438_s26 + $0x20] sm:$0xff]   ;;  %v7501_v10 = vld [vmem:[%s8438_s26 + $0x58] sm:$0xff]   ;;  %v7504_v32 = vld [vmem:[%s8438_s26 + $0x50] sm:$0xff]   ;;  %vm2368_vm4 = vcmp.gt.f32.partialorder %v9511_v0, 0.0 }
 0x288   : > { %v2262_v27 = vadd.f32 %v6595_v56, %v9467_v23  ;;  %2602 = vrot.lane.b32.xlu0 %v2562_v41, %s8246_s3  ;;  %v2472_v29 = vsub.f32 0.0, %v9586_v51  ;;  %v6311_v20 = vadd.f32 -1.0, %v7704_v59  ;;  %v2532_v37 = vmul.f32 1.442695, %v2503_v42  ;;  %6821 = vmatpush3.bf16.msra.mxu1 %v7502_v28  ;;  %v7503_v9 = vld [vmem:[%s8438_s26 + $0x18] sm:$0xff]   ;;  %v7506_v56 = vld [vmem:[%s8438_s26 + $0x10] sm:$0xff]  }
 0x289   : > { %v2360_v34 = vpop.f32.mrf.mxu1  ;;  %6599 = vmatpush3.bf16.msra.mxu0 %v7496_v24  ;;  %6822 = vmatprep.subr.bf16.mxu1 %v7505_v39  ;;  %v7509_v41 = vld [vmem:[%s8438_s26 + $0x8] sm:$0xff]   ;;  %v2378_v42 = vmin.f32 %v9470_v17, 0.0 }
 0x28a   : > { %v9593_v36 = vadd.f32 %v2358_v44, %v2262_v27  ;;  %v2504_v55 = vmin.f32 %v2472_v29, 0.0  ;;  %v2563_v49 = vsel %vm2483_vm7, %v9549_v26, %v6311_v20  ;;  %7711 = vpow2.f32 %v2532_v37  ;;  %6600 = vmatprep.subr.bf16.mxu0 %v7497_v4  ;;  %v7507_v44 = vld [vmem:[%s8438_s26 + $0x48] sm:$0xff]  }
 0x28b   : > { %v7706_v8 = vpop.eup %7705  ;;  %2604 = vrot.lane.b32.xlu1 %v2563_v49, %s8246_s3  ;;  %vm2488_vm12 = vcmp.gt.f32.partialorder %v2472_v29, 0.0  ;;  %v2394_v59 = vmul.f32 1.442695, %v2378_v42  ;;  %v2379_v27 = vmin.f32 %v9476_v38, 0.0  ;;  %v2381_v37 = vmin.f32 %v9490_v1, 0.0  ;;  %v2682_v62 = vld [vmem:[#allocation2 + $0x1] sm:$0xff] }
 0x28c   : > { %v2534_v47 = vmul.f32 1.442695, %v2504_v55  ;;  %v2473_v23 = vsub.f32 0.0, %v9593_v36  ;;  %v6312_v15 = vadd.f32 -1.0, %v7706_v8  ;;  %6823 = vmatpush3.bf16.msra.mxu1 %v7505_v39  ;;  %v2382_v55 = vmin.f32 %v9497_v12, 0.0 }
 0x28d   : > { %6601 = vmatpush3.bf16.msra.mxu0 %v7498_v21  ;;  %6824 = vmatprep.subr.bf16.mxu1 %v7508_v57  ;;  %v2396_v34 = vmul.f32 1.442695, %v2379_v27  ;;  %v2400_v49 = vmul.f32 1.442695, %v2381_v37  ;;  %vm2369_vm7 = vcmp.gt.f32.partialorder %v9521_v60, 0.0 }
 0x28e   : > { %7713 = vpow2.f32 %v2534_v47  ;;  %v2505_v5 = vmin.f32 %v2473_v23, 0.0  ;;  %v2564_v58 = vsel %vm2484_vm8, %v9559_v19, %v6312_v15  ;;  %vm2489_vm13 = vcmp.gt.f32.partialorder %v2473_v23, 0.0 }
 0x28f   : > { %v7708_v45 = vpop.eup %7707  ;;  %2606 = vrot.lane.b32.xlu0 %v2564_v58, %s8246_s3  ;;  %v2402_v8 = vmul.f32 1.442695, %v2382_v55  ;;  %v2383_v47 = vmin.f32 %v9504_v14, 0.0  ;;  %v2384_v15 = vmin.f32 %v9511_v0, 0.0  ;;  %vm2370_vm8 = vcmp.gt.f32.partialorder %v9531_v6, 0.0 }
 0x290   : > { %v2536_v43 = vmul.f32 1.442695, %v2505_v5  ;;  %v6313_v48 = vadd.f32 -1.0, %v7708_v45  ;;  %6825 = vmatpush3.bf16.msra.mxu1 %v7508_v57 }
 0x291   : > { %v2404_v5 = vmul.f32 1.442695, %v2383_v47 }
 0x292   : > { %7715 = vpow2.f32 %v2536_v43  ;;  %v2565_v26 = vsel %vm2485_vm9, %v9569_v22, %v6313_v48  ;;  %v2406_v43 = vmul.f32 1.442695, %v2384_v15  ;;  %v7514_v15 = vld [vmem:[%s8438_s26 + $0x90] sm:$0xff]   ;;  %vm2371_vm9 = vcmp.gt.f32.partialorder %v9541_v33, 0.0 }
 0x293   : > { %v7710_v53 = vpop.eup %7709  ;;  %2608 = vrot.lane.b32.xlu1 %v2565_v26, %s8246_s3  ;;  %7717 = vpow2.f32 %v2394_v59  ;;  %v2385_v26 = vmin.f32 %v9521_v60, 0.0 }
 0x294   : > { %v6314_v52 = vadd.f32 -1.0, %v7710_v53  ;;  %7719 = vpow2.f32 %v2396_v34 }
 0x296   : > { %v2566_v16 = vsel %vm2486_vm10, %v2470_v18, %v6314_v52  ;;  %vm2372_vm10 = vcmp.gt.f32.partialorder %v9551_v13, 0.0 }
 0x297   : > { %v7712_v35 = vpop.eup %7711  ;;  %2610 = vrot.lane.b32.xlu0 %v2566_v16, %s8246_s3 }
 0x298   : > { %v6315_v19 = vadd.f32 -1.0, %v7712_v35 }
 0x29a   : > { %v2567_v40 = vsel %vm2487_vm11, %v2471_v7, %v6315_v19  ;;  %v7499_v7 = vld [vmem:[%s8438_s26 + $0x60] sm:$0xff]   ;;  %vm2373_vm11 = vcmp.gt.f32.partialorder %v9561_v50, 0.0 }
 0x29b   : > { %v7714_v30 = vpop.eup %7713  ;;  %2612 = vrot.lane.b32.xlu1 %v2567_v40, %s8246_s3  ;;  %6602 = vmatprep.subr.bf16.mxu0 %v7499_v7  ;;  %v7511_v40 = vld [vmem:[%s8438_s26 + $0xa0] sm:$0xff]  }
 0x29c   : > { %v6316_v22 = vadd.f32 -1.0, %v7714_v30  ;;  %6603 = vmatpush3.bf16.msra.mxu0 %v7500_v11  ;;  %v7510_v30 = vld [vmem:[%s8438_s26 + $0x40] sm:$0xff]   ;;  %6826 = vmatprep.subr.bf16.mxu1 %v7511_v40 }
 0x29d   : > { %6604 = vmatprep.subr.bf16.mxu0 %v7501_v10  ;;  %6827 = vmatpush3.bf16.msra.mxu1 %v7511_v40 }
 0x29e   : > { %v2568_v63 = vsel %vm2488_vm12, %v2472_v29, %v6316_v22  ;;  %v2380_v29 = vmin.f32 %v9483_v46, 0.0  ;;  %v7512_v22 = vld [vmem:[%s8438_s26] sm:$0xff]   ;;  %vm2374_vm12 = vcmp.gt.f32.partialorder %v9571_v25, 0.0 }
 0x29f   : > { %v7716_v18 = vpop.eup %7715  ;;  %2614 = vrot.lane.b32.xlu0 %v2568_v63, %s8246_s3  ;;  %v2408_v63 = vmul.f32 1.442695, %v2385_v26 }
 0x2a0   : > { %v6317_v54 = vadd.f32 -1.0, %v7716_v18  ;;  %6605 = vmatpush3.bf16.msra.mxu0 %v7503_v9  ;;  %v2398_v20 = vmul.f32 1.442695, %v2380_v29  ;;  %v2386_v18 = vmin.f32 %v9531_v6, 0.0  ;;  %v2388_v9 = vmin.f32 %v9551_v13, 0.0 }
 0x2a1   : > { %6606 = vmatprep.subr.bf16.mxu0 %v7504_v32 }
 0x2a2   : > { %v2569_v31 = vsel %vm2489_vm13, %v2473_v23, %v6317_v54  ;;  %7721 = vpow2.f32 %v2398_v20  ;;  %v7718_v23 = vpop.eup %7717  ;;  %v2410_v28 = vmul.f32 1.442695, %v2386_v18  ;;  %v2414_v34 = vmul.f32 1.442695, %v2388_v9 }
 0x2a3   : > { %2616 = vrot.lane.b32.xlu1 %v2569_v31, %s8246_s3  ;;  %7723 = vpow2.f32 %v2400_v49  ;;  %v6286_v58 = vadd.f32 -1.0, %v7718_v23  ;;  %v7720_v45 = vpop.eup %7719  ;;  %v2389_v20 = vmin.f32 %v9561_v50, 0.0  ;;  %vm2375_vm13 = vcmp.gt.f32.partialorder %v9579_v2, 0.0 }
 0x2a4   : > { %6607 = vmatpush3.bf16.msra.mxu0 %v7506_v56  ;;  %7725 = vpow2.f32 %v2402_v8  ;;  %v6287_v16 = vadd.f32 -1.0, %v7720_v45 }
 0x2a5   : > { %6608 = vmatprep.subr.bf16.mxu0 %v7507_v44  ;;  %7727 = vpow2.f32 %v2404_v5  ;;  %v2442_v52 = vsel %vm2362_vm14, %v9470_v17, %v6286_v58  ;;  %v2416_v5 = vmul.f32 1.442695, %v2389_v20  ;;  %v2390_v58 = vmin.f32 %v9571_v25, 0.0 }
 0x2a6   : > { %7729 = vpow2.f32 %v2406_v43  ;;  %v2443_v31 = vsel %vm2363_vm15, %v9476_v38, %v6287_v16  ;;  %v2387_v38 = vmin.f32 %v9541_v33, 0.0  ;;  %vm2376_vm14 = vcmp.gt.f32.partialorder %v9586_v51, 0.0 }
 0x2a7   : > { %7731 = vpow2.f32 %v2408_v63  ;;  %vm2377_vm15 = vcmp.gt.f32.partialorder %v9593_v36, 0.0 }
 0x2a8   : > { %6609 = vmatpush3.bf16.msra.mxu0 %v7509_v41  ;;  %7733 = vpow2.f32 %v2410_v28  ;;  %v2412_v10 = vmul.f32 1.442695, %v2387_v38 }
 0x2a9   : > { %6610 = vmatprep.subr.bf16.mxu0 %v7510_v30 }
 0x2aa   : > { %7735 = vpow2.f32 %v2412_v10 }
 0x2ab   : > { %7737 = vpow2.f32 %v2414_v34 }
 0x2ac   : > { %6611 = vmatpush3.bf16.msra.mxu0 %v7512_v22  ;;  %7739 = vpow2.f32 %v2416_v5 }
 0x2af   : > { %v7722_v48 = vpop.eup %7721 }
 0x2b0   : > { %v6288_v19 = vadd.f32 -1.0, %v7722_v48  ;;  %v7724_v3 = vpop.eup %7723 }
 0x2b1   : > { %v7726_v24 = vpop.eup %7725  ;;  %v6289_v39 = vadd.f32 -1.0, %v7724_v3  ;;  %v7515_v3 = vld [vmem:[%s8438_s26 + $0x88] sm:$0xff]  }
 0x2b2   : > { %v2444_v61 = vsel %vm2364_vm0, %v9483_v46, %v6288_v19  ;;  %v6290_v11 = vadd.f32 -1.0, %v7726_v24  ;;  %v7513_v46 = vld [vmem:[%s8438_s26 + $0x98] sm:$0xff]   ;;  %v7728_v44 = vpop.eup %7727  ;;  %v2391_v19 = vmin.f32 %v9579_v2, 0.0 }
 0x2b3   : > { %v2445_v32 = vsel %vm2365_vm1, %v9490_v1, %v6289_v39  ;;  %6828 = vmatprep.subr.bf16.mxu1 %v7513_v46  ;;  %v7730_v29 = vpop.eup %7729  ;;  %v6291_v55 = vadd.f32 -1.0, %v7728_v44 }
 0x2b4   : > { %6829 = vmatpush3.bf16.msra.mxu1 %v7513_v46  ;;  %v2446_v1 = vsel %vm2366_vm2, %v9497_v12, %v6290_v11  ;;  %v6292_v23 = vadd.f32 -1.0, %v7730_v29  ;;  %v7732_v48 = vpop.eup %7731 }
 0x2b5   : > { %v2447_v45 = vsel %vm2367_vm3, %v9504_v14, %v6291_v55  ;;  %6830 = vmatprep.subr.bf16.mxu1 %v7514_v15  ;;  %v6293_v40 = vadd.f32 -1.0, %v7732_v48  ;;  %v7734_v22 = vpop.eup %7733 }
 0x2b6   : > { %v2448_v14 = vsel %vm2368_vm4, %v9511_v0, %v6292_v23  ;;  %v6294_v24 = vadd.f32 -1.0, %v7734_v22  ;;  %v2690_v23 = vld [vmem:[#allocation2 + $0x91] sm:$0xff] }
 0x2b7   : > { %v7736_v28 = vpop.eup %7735 }
 0x2b8   : > { %6831 = vmatpush3.bf16.msra.mxu1 %v7514_v15  ;;  %v2450_v11 = vsel %vm2370_vm8, %v9531_v6, %v6294_v24  ;;  %v6295_v10 = vadd.f32 -1.0, %v7736_v28  ;;  %v7738_v9 = vpop.eup %7737 }
 0x2b9   : > { %6832 = vmatprep.subr.bf16.mxu1 %v7515_v3  ;;  %v6296_v29 = vadd.f32 -1.0, %v7738_v9  ;;  %v7740_v34 = vpop.eup %7739 }
 0x2ba   : > { %v2451_v6 = vsel %vm2371_vm9, %v9541_v33, %v6295_v10  ;;  %v6297_v5 = vadd.f32 -1.0, %v7740_v34 }
 0x2bb   : > { %v2452_v33 = vsel %vm2372_vm10, %v9551_v13, %v6296_v29 }
 0x2bc   : > { %6833 = vmatpush3.bf16.msra.mxu1 %v7515_v3  ;;  %v2453_v13 = vsel %vm2373_vm11, %v9561_v50, %v6297_v5 }
 0x2da   : > { %v2587_v53 = vpop.permute.xlu0 %2586 }
 0x2db   : > { %v2634_v35 = vsel %vm1279_vm5, %v2442_v52, %v2587_v53 }
 0x2dc   : > { %2650 = vst.msk [vmem:[#allocation2 + $0x11] sm:$0xff] %vm1297_vm6, %v2634_v35  ;;  %v2418_v35 = vmul.f32 1.442695, %v2390_v58 }
 0x2de   : > { %v2589_v54 = vpop.permute.xlu1 %2588  ;;  %7741 = vpow2.f32 %v2418_v35 }
 0x2df   : > { %v2635_v17 = vsel %vm1279_vm5, %v2443_v31, %v2589_v54  ;;  %v2392_v31 = vmin.f32 %v9586_v51, 0.0 }
 0x2e0   : > { %2651 = vst.msk [vmem:[#allocation2 + $0x21] sm:$0xff] %vm1297_vm6, %v2635_v17  ;;  %v2420_v17 = vmul.f32 1.442695, %v2391_v19 }
 0x2e2   : > { %v2591_v4 = vpop.permute.xlu0 %2590  ;;  %7743 = vpow2.f32 %v2420_v17 }
 0x2e3   : > { %v2636_v21 = vsel %vm1279_vm5, %v2444_v61, %v2591_v4  ;;  %v9650_v57 = vld [vmem:[#allocation2 + $0x11] sm:$0xff]  ;;  %v2449_v61 = vsel %vm2369_vm7, %v9521_v60, %v6293_v40  ;;  %v2393_v60 = vmin.f32 %v9593_v36, 0.0 }
 0x2e4   : > { %2652 = vst.msk [vmem:[#allocation2 + $0x31] sm:$0xff] %vm1297_vm6, %v2636_v21  ;;  %v7150_v7 = vpack.i.bf16 %v9650_v57, %v2682_v62  ;;  %v9660_v42 = vld [vmem:[#allocation2 + $0x10] sm:$0xff] }
 0x2e5   : > { %v9770_v24 = vld [vmem:[#allocation2 + $0x12] sm:$0xff] }
 0x2e6   : > { %v2593_v56 = vpop.permute.xlu1 %2592  ;;  %7151 = vrot.lane.b32.xlu1 %v7150_v7, %s8248_s4  ;;  %v2422_v7 = vmul.f32 1.442695, %v2392_v31 }
 0x2e7   : > { %v2637_v41 = vsel %vm1279_vm5, %v2445_v32, %v2593_v56  ;;  %v9662_v59 = vld [vmem:[#allocation2 + $0x20] sm:$0xff] }
 0x2e8   : > { %2653 = vst.msk [vmem:[#allocation2 + $0x41] sm:$0xff] %vm1297_vm6, %v2637_v41  ;;  %v7145_v27 = vpack.i.bf16 %v9662_v59, %v9660_v42  ;;  %v9672_v8 = vld [vmem:[#allocation2 + $0x21] sm:$0xff]  ;;  %7745 = vpow2.f32 %v2422_v7 }
 0x2ea   : > { %v2595_v37 = vpop.permute.xlu0 %2594  ;;  %7146 = vrot.lane.b32.xlu0 %v7145_v27, %s8248_s4  ;;  %v2424_v27 = vmul.f32 1.442695, %v2393_v60 }
 0x2eb   : > { %v2638_v49 = vsel %vm1279_vm5, %v2446_v1, %v2595_v37  ;;  %v9674_v47 = vld [vmem:[#allocation2 + $0x31] sm:$0xff]  ;;  %v7742_v58 = vpop.eup %7741 }
 0x2ec   : > { %2654 = vst.msk [vmem:[#allocation2 + $0x51] sm:$0xff] %vm1297_vm6, %v2638_v49  ;;  %v7160_v12 = vpack.i.bf16 %v9674_v47, %v9672_v8  ;;  %v9685_v53 = vld [vmem:[#allocation2 + $0x30] sm:$0xff]  ;;  %7747 = vpow2.f32 %v2424_v27 }
 0x2ed   : > { %v9756_v22 = vld [vmem:[#allocation2 + $0x32] sm:$0xff] }
 0x2ee   : > { %v2597_v43 = vpop.permute.xlu1 %2596  ;;  %7161 = vrot.lane.b32.xlu1 %v7160_v12, %s8248_s4  ;;  %v7516_v12 = vld [vmem:[%s8438_s26 + $0x80] sm:$0xff]   ;;  %s8249_s26 = smov 96  }
 0x2ef   : > { %v2639_v26 = vsel %vm1279_vm5, %v2447_v45, %v2597_v43  ;;  %v9687_v52 = vld [vmem:[#allocation2 + $0x40] sm:$0xff]  ;;  %6834 = vmatprep.subr.bf16.mxu1 %v7516_v12  ;;  %v7744_v35 = vpop.eup %7743 }
 0x2f0   : > { %2655 = vst.msk [vmem:[#allocation2 + $0x61] sm:$0xff] %vm1297_vm6, %v2639_v26  ;;  %v7155_v16 = vpack.i.bf16 %v9687_v52, %v9685_v53  ;;  %v9697_v18 = vld [vmem:[#allocation2 + $0x41] sm:$0xff]  ;;  %6835 = vmatpush3.bf16.msra.mxu1 %v7516_v12 }
 0x2f1   : > { %v9747_v26 = vld [vmem:[#allocation2 + $0x42] sm:$0xff] }
 0x2f2   : > { %v2599_v30 = vpop.permute.xlu0 %2598  ;;  %7156 = vrot.lane.b32.xlu0 %v7155_v16, %s8248_s4  ;;  %v7200_v50 = vpack.i.bf16 %v9747_v26, %v9756_v22 }
 0x2f3   : > { %v2640_v63 = vsel %vm1279_vm5, %v2448_v14, %v2599_v30  ;;  %v9699_v54 = vld [vmem:[#allocation2 + $0x51] sm:$0xff]  ;;  %v6298_v14 = vadd.f32 -1.0, %v7742_v58 }
 0x2f4   : > { %2656 = vst.msk [vmem:[#allocation2 + $0x71] sm:$0xff] %vm1297_vm6, %v2640_v63  ;;  %v7170_v0 = vpack.i.bf16 %v9699_v54, %v9697_v18  ;;  %v9710_v4 = vld [vmem:[#allocation2 + $0x50] sm:$0xff] }
 0x2f5   : > { %v7746_v31 = vpop.eup %7745  ;;  %v2454_v3 = vsel %vm2374_vm12, %v9571_v25, %v6298_v14 }
 0x2f6   : > { %v2601_v62 = vpop.permute.xlu1 %2600  ;;  %7171 = vrot.lane.b32.xlu1 %v7170_v0, %s8248_s4  ;;  %v9764_v0 = vld [vmem:[#allocation2 + $0x22] sm:$0xff]  ;;  %v6300_v7 = vadd.f32 -1.0, %v7746_v31 }
 0x2f7   : > { %v2641_v38 = vsel %vm1279_vm5, %v2449_v61, %v2601_v62  ;;  %v9712_v39 = vld [vmem:[#allocation2 + $0x60] sm:$0xff]  ;;  %v6299_v61 = vadd.f32 -1.0, %v7744_v35 }
 0x2f8   : > { %2657 = vst.msk [vmem:[#allocation2 + $0x81] sm:$0xff] %vm1297_vm6, %v2641_v38  ;;  %v7165_v21 = vpack.i.bf16 %v9712_v39, %v9710_v4  ;;  %v9722_v56 = vld [vmem:[#allocation2 + $0x61] sm:$0xff] }
 0x2fa   : > { %v2603_v46 = vpop.permute.xlu0 %2602  ;;  %7166 = vrot.lane.b32.xlu0 %v7165_v21, %s8248_s4  ;;  %v7195_v21 = vpack.i.bf16 %v9764_v0, %v9770_v24 }
 0x2fb   : > { %v2642_v32 = vsel %vm1279_vm5, %v2450_v11, %v2603_v46  ;;  %v9724_v44 = vld [vmem:[#allocation2 + $0x71] sm:$0xff]  ;;  %v7748_v11 = vpop.eup %7747  ;;  %v2455_v46 = vsel %vm2375_vm13, %v9579_v2, %v6299_v61 }
 0x2fc   : > { %2658 = vst.msk [vmem:[#allocation2 + $0xa1] sm:$0xff] %vm1297_vm6, %v2642_v32  ;;  %v7180_v41 = vpack.i.bf16 %v9724_v44, %v9722_v56  ;;  %v9733_v37 = vld [vmem:[#allocation2 + $0x70] sm:$0xff]  ;;  %v6301_v34 = vadd.f32 -1.0, %v7748_v11  ;;  %v9858_v11 = vld [vmem:[%s8465_s21 + $0x8] sm:$0xff] }
 0x2fd   : > { %v2605_v1 = vpop.permute.xlu1 %2604  ;;  %v9790_v27 = vld [vmem:[#allocation2 + $0x72] sm:$0xff]  ;;  %11424 = vst [vmem:[#allocation26_spill] sm:$0xff] %v9858_v11 }
 0x2fe   : > { %7181 = vrot.lane.b32.xlu1 %v7180_v41, %s8248_s4  ;;  %v2643_v20 = vsel %vm1279_vm5, %v2451_v6, %v2605_v1  ;;  %v2456_v1 = vsel %vm2376_vm14, %v9586_v51, %v6300_v7 }
 0x2ff   : > { %v2721_v55 = vld [vmem:[#allocation2 + $0x80] sm:$0xff]  ;;  %2659 = vst.msk [vmem:[#allocation2 + $0xb1] sm:$0xff] %vm1297_vm6, %v2643_v20 }
 0x300   : > { %v7175_v49 = vpack.i.bf16 %v2721_v55, %v9733_v37  ;;  %v2753_v60 = vld [vmem:[#allocation2 + $0x82] sm:$0xff] }
 0x301   : > { %v2607_v15 = vpop.permute.xlu0 %2606  ;;  %v7220_v6 = vpack.i.bf16 %v2753_v60, %v9790_v27  ;;  %v9798_v20 = vld [vmem:[#allocation2 + $0x62] sm:$0xff] }
 0x302   : > { %7176 = vrot.lane.b32.xlu0 %v7175_v49, %s8248_s4  ;;  %v2644_v45 = vsel %vm1279_vm5, %v2452_v33, %v2607_v15  ;;  %v9804_v49 = vld [vmem:[#allocation2 + $0x52] sm:$0xff]  ;;  %v2457_v15 = vsel %vm2377_vm15, %v9593_v36, %v6301_v34  ;;  %v9855_v60 = vld [vmem:[%s8465_s21] sm:$0xff] }
 0x303   : > { %v9742_v43 = vld [vmem:[#allocation2 + $0xa1] sm:$0xff]  ;;  %2660 = vst.msk [vmem:[#allocation2 + $0xc1] sm:$0xff] %vm1297_vm6, %v2644_v45  ;;  %v7215_v51 = vpack.i.bf16 %v9798_v20, %v9804_v49  ;;  %vm3740_vm12 = vcmp.gt.f32.partialorder %v9855_v60, 0.0 }
 0x304   : > { %v7185_v48 = vpack.i.bf16 %v9742_v43, %v2690_v23  ;;  %v9752_v30 = vld [vmem:[#allocation2 + $0xa0] sm:$0xff] }
 0x305   : > { %v2609_v16 = vpop.permute.xlu1 %2608  ;;  %v9873_v34 = vld [vmem:[%s8465_s21 + $0x20] sm:$0xff] }
 0x306   : > { %7186 = vrot.lane.b32.xlu1 %v7185_v48, %s8248_s4  ;;  %v2645_v19 = vsel %vm1279_vm5, %v2453_v13, %v2609_v16  ;;  %v9754_v40 = vld [vmem:[#allocation2 + $0xb0] sm:$0xff]  ;;  %11427 = vst [vmem:[#allocation25_spill] sm:$0xff] %v9873_v34 }
 0x307   : > { %2661 = vst.msk [vmem:[#allocation2 + $0xd1] sm:$0xff] %vm1297_vm6, %v2645_v19  ;;  %v7190_v63 = vpack.i.bf16 %v9754_v40, %v9752_v30  ;;  %v9772_v28 = vld [vmem:[#allocation2 + $0xb1] sm:$0xff] }
 0x308   : > { %v9832_v35 = vld [vmem:[#allocation2 + $0xb2] sm:$0xff] }
 0x309   : > { %v2611_v17 = vpop.permute.xlu0 %2610  ;;  %7191 = vrot.lane.b32.xlu0 %v7190_v63, %s8248_s4 }
 0x30a   : > { %7201 = vrot.lane.b32.xlu1 %v7200_v50, %s8248_s4  ;;  %v2646_v62 = vsel %vm1279_vm5, %v2454_v3, %v2611_v17  ;;  %v9774_v38 = vld [vmem:[#allocation2 + $0xc1] sm:$0xff] }
 0x30b   : > { %2662 = vst.msk [vmem:[#allocation2 + $0xe1] sm:$0xff] %vm1297_vm6, %v2646_v62  ;;  %v7205_v25 = vpack.i.bf16 %v9774_v38, %v9772_v28  ;;  %v9786_v32 = vld [vmem:[#allocation2 + $0xc0] sm:$0xff] }
 0x30c   : > { %v9826_v16 = vld [vmem:[#allocation2 + $0xc2] sm:$0xff] }
 0x30d   : > { %v2613_v10 = vpop.permute.xlu1 %2612  ;;  %7196 = vrot.lane.b32.xlu0 %v7195_v21, %s8248_s4  ;;  %v9840_v50 = vld [vmem:[#allocation2 + $0xa2] sm:$0xff] }
 0x30e   : > { %7206 = vrot.lane.b32.xlu1 %v7205_v25, %s8248_s4  ;;  %v2647_v9 = vsel %vm1279_vm5, %v2455_v46, %v2613_v10  ;;  %v9788_v41 = vld [vmem:[#allocation2 + $0xd0] sm:$0xff]  ;;  %v7235_v3 = vpack.i.bf16 %v9832_v35, %v9840_v50  ;;  %v3836_v10 = vsub.f32 0.0, %v9855_v60 }
 0x30f   : > { %2663 = vst.msk [vmem:[#allocation2 + $0xf1] sm:$0xff] %vm1297_vm6, %v2647_v9  ;;  %v7210_v2 = vpack.i.bf16 %v9788_v41, %v9786_v32  ;;  %v9806_v12 = vld [vmem:[#allocation2 + $0xd1] sm:$0xff]  ;;  %v3837_v9 = vsub.f32 0.0, %v9858_v11 }
 0x310   : > { %v9816_v58 = vld [vmem:[#allocation2 + $0xd2] sm:$0xff]  ;;  %vm3852_vm0 = vcmp.gt.f32.partialorder %v3836_v10, 0.0 }
 0x311   : > { %v2615_v29 = vpop.permute.xlu0 %2614  ;;  %7211 = vrot.lane.b32.xlu0 %v7210_v2, %s8248_s4  ;;  %v7240_v14 = vpack.i.bf16 %v9816_v58, %v9826_v16  ;;  %v9861_v46 = vld [vmem:[%s8465_s21 + $0x10] sm:$0xff]  ;;  %vm3853_vm1 = vcmp.gt.f32.partialorder %v3837_v9, 0.0 }
 0x312   : > { %v2648_v55 = vsel %vm1279_vm5, %v2456_v1, %v2615_v29  ;;  %7221 = vrot.lane.b32.xlu1 %v7220_v6, %s8248_s4  ;;  %v9808_v23 = vld [vmem:[#allocation2 + $0xe1] sm:$0xff]  ;;  %11425 = vst [vmem:[#allocation24_spill] sm:$0xff] %v9861_v46  ;;  %v3838_v2 = vsub.f32 0.0, %v9861_v46  ;;  %v9867_v6 = vld [vmem:[%s8465_s21 + $0x18] sm:$0xff] }
 0x313   : > { %2664 = vst.msk [vmem:[#allocation2 + $0x101] sm:$0xff] %vm1297_vm6, %v2648_v55  ;;  %v7225_v33 = vpack.i.bf16 %v9808_v23, %v9806_v12  ;;  %v9822_v48 = vld [vmem:[#allocation2 + $0xe0] sm:$0xff]  ;;  %11426 = vst [vmem:[#allocation27_spill] sm:$0xff] %v9867_v6  ;;  %v3839_v29 = vsub.f32 0.0, %v9867_v6  ;;  %v3868_v55 = vmin.f32 %v3836_v10, 0.0 }
 0x314   : > { %vm3854_vm2 = vcmp.gt.f32.partialorder %v3838_v2, 0.0 }
 0x315   : > { %v2617_v5 = vpop.permute.xlu1 %2616  ;;  %7216 = vrot.lane.b32.xlu0 %v7215_v51, %s8248_s4  ;;  %v3869_v51 = vmin.f32 %v3837_v9, 0.0  ;;  %vm3855_vm3 = vcmp.gt.f32.partialorder %v3839_v29, 0.0 }
 0x316   : > { %v2649_v45 = vsel %vm1279_vm5, %v2457_v15, %v2617_v5  ;;  %7226 = vrot.lane.b32.xlu1 %v7225_v33, %s8248_s4  ;;  %v9824_v13 = vld [vmem:[#allocation2 + $0xf0] sm:$0xff]  ;;  %v9878_v33 = vld [vmem:[%s8465_s21 + $0x28] sm:$0xff]  ;;  %v3870_v5 = vmin.f32 %v3838_v2, 0.0 }
 0x317   : > { %2665 = vst.msk [vmem:[#allocation2 + $0x111] sm:$0xff] %vm1297_vm6, %v2649_v45  ;;  %v7230_v36 = vpack.i.bf16 %v9824_v13, %v9822_v48  ;;  %v9836_v19 = vld [vmem:[#allocation2 + $0xf1] sm:$0xff]  ;;  %v9880_v15 = vld [vmem:[#allocation2 + $0xe2] sm:$0xff]  ;;  %v3871_v45 = vmin.f32 %v3839_v29, 0.0 }
 0x318   : > { %v9869_v1 = vld [vmem:[#allocation2 + $0xf2] sm:$0xff] }
 0x319   : > { %7231 = vrot.lane.b32.xlu0 %v7230_v36, %s8248_s4  ;;  %v7255_v36 = vpack.i.bf16 %v9869_v1, %v9880_v15 }
 0x31a   : > { %7241 = vrot.lane.b32.xlu1 %v7240_v14, %s8248_s4  ;;  %v9838_v63 = vld [vmem:[#allocation2 + $0x101] sm:$0xff]  ;;  %v3884_v14 = vmul.f32 1.442695, %v3868_v55 }
 0x31b   : > { %v7245_v31 = vpack.i.bf16 %v9838_v63, %v9836_v19  ;;  %v9846_v17 = vld [vmem:[#allocation2 + $0x100] sm:$0xff] }
 0x31c   : > { %v9850_v62 = vld [vmem:[#allocation2 + $0x102] sm:$0xff]  ;;  %7749 = vpow2.f32 %v3884_v14 }
 0x31d   : > { %7236 = vrot.lane.b32.xlu0 %v7235_v3, %s8248_s4  ;;  %v3840_v3 = vsub.f32 0.0, %v9873_v34 }
 0x31e   : > { %7246 = vrot.lane.b32.xlu1 %v7245_v31, %s8248_s4  ;;  %v2729_v61 = vld [vmem:[#allocation2 + $0x110] sm:$0xff]  ;;  %v3886_v31 = vmul.f32 1.442695, %v3869_v51 }
 0x31f   : > { %v2761_v21 = vld [vmem:[#allocation2 + $0x112] sm:$0xff]  ;;  %v7250_v25 = vpack.i.bf16 %v2729_v61, %v9846_v17  ;;  %v3888_v61 = vmul.f32 1.442695, %v3870_v5  ;;  %vm3856_vm4 = vcmp.gt.f32.partialorder %v3840_v3, 0.0 }
 0x320   : > { %v7260_v7 = vpack.i.bf16 %v2761_v21, %v9850_v62  ;;  %v3890_v21 = vmul.f32 1.442695, %v3871_v45  ;;  %7751 = vpow2.f32 %v3886_v31 }
 0x321   : > { %7251 = vrot.lane.b32.xlu0 %v7250_v25, %s8248_s4  ;;  %v3841_v25 = vsub.f32 0.0, %v9878_v33  ;;  %7753 = vpow2.f32 %v3888_v61 }
 0x322   : > { %7261 = vrot.lane.b32.xlu1 %v7260_v7, %s8248_s4  ;;  %v3872_v7 = vmin.f32 %v3840_v3, 0.0  ;;  %7755 = vpow2.f32 %v3890_v21  ;;  %v3562_v21 = vld [vmem:[%s8428_s12] sm:$0xff] }
 0x323   : > { %v3873_v6 = vmin.f32 %v3841_v25, 0.0  ;;  %vm3857_vm7 = vcmp.gt.f32.partialorder %v3841_v25, 0.0 }
 0x324   : > { %v3892_v46 = vmul.f32 1.442695, %v3872_v7 }
 0x325   : > { %7256 = vrot.lane.b32.xlu0 %v7255_v36, %s8248_s4  ;;  %v3894_v11 = vmul.f32 1.442695, %v3873_v6 }
 0x326   : > { %7757 = vpow2.f32 %v3892_v46 }
 0x327   : > { %7759 = vpow2.f32 %v3894_v11 }
 0x329   : > { %v7750_v55 = vpop.eup %7749 }
 0x32a   : > { %v6375_v34 = vadd.f32 -1.0, %v7750_v55  ;;  %v3563_v55 = vld [vmem:[%s8428_s12 + $0x8] sm:$0xff] }
 0x32c   : > { %v3932_v14 = vsel %vm3852_vm0, %v3836_v10, %v6375_v34 }
 0x32d   : > { %v7752_v51 = vpop.eup %7751  ;;  %3964 = vrot.lane.b32.xlu0 %v3932_v14, %s8246_s3 }
 0x32e   : > { %v7754_v5 = vpop.eup %7753  ;;  %v6376_v45 = vadd.f32 -1.0, %v7752_v51  ;;  %v3565_v51 = vld [vmem:[%s8428_s12 + $0x18] sm:$0xff] }
 0x32f   : > { %v7756_v36 = vpop.eup %7755  ;;  %v6377_v31 = vadd.f32 -1.0, %v7754_v5 }
 0x330   : > { %v3933_v46 = vsel %vm3853_vm1, %v3837_v9, %v6376_v45  ;;  %v6378_v11 = vadd.f32 -1.0, %v7756_v36  ;;  %v3564_v9 = vld [vmem:[%s8428_s12 + $0x10] sm:$0xff]  ;;  %v3566_v45 = vld [vmem:[%s8428_s12 + $0x20] sm:$0xff]  ;;  %v3567_v36 = vld [vmem:[%s8428_s12 + $0x28] sm:$0xff]  ;;  %vm3745_vm1 = vcmp.gt.f32.partialorder %v9878_v33, 0.0 }
 0x331   : > { %3966 = vrot.lane.b32.xlu1 %v3933_v46, %s8246_s3  ;;  %v3934_v6 = vsel %vm3854_vm2, %v3838_v2, %v6377_v31 }
 0x332   : > { %v3935_v61 = vsel %vm3855_vm3, %v3839_v29, %v6378_v11  ;;  %3968 = vrot.lane.b32.xlu0 %v3934_v6, %s8246_s3  ;;  %v2666_v11 = vld [vmem:[#allocation2] sm:$0xff] }
 0x333   : > { %v7758_v7 = vpop.eup %7757 }
 0x334   : > { %v7760_v10 = vpop.eup %7759  ;;  %v6379_v34 = vadd.f32 -1.0, %v7758_v7 }
 0x335   : > { %3970 = vrot.lane.b32.xlu1 %v3935_v61, %s8246_s3  ;;  %v6380_v2 = vadd.f32 -1.0, %v7760_v10  ;;  %v2698_v61 = vld [vmem:[#allocation2 + $0x2] sm:$0xff] }
 0x336   : > { %3594 = vrot.lane.b32.xlu0 %v3562_v21, %s8246_s3  ;;  %v3936_v29 = vsel %vm3856_vm4, %v3840_v3, %v6379_v34 }
 0x337   : > { %v3937_v5 = vsel %vm3857_vm7, %v3841_v25, %v6380_v2 }
 0x339   : > { %3596 = vrot.lane.b32.xlu1 %v3563_v55, %s8246_s3 }
 0x33a   : > { %3598 = vrot.lane.b32.xlu0 %v3564_v9, %s8246_s3 }
 0x33d   : > { %3600 = vrot.lane.b32.xlu1 %v3565_v51, %s8246_s3 }
 0x33e   : > { %3972 = vrot.lane.b32.xlu0 %v3936_v29, %s8246_s3 }
 0x341   : > { %3974 = vrot.lane.b32.xlu1 %v3937_v5, %s8246_s3 }
 0x342   : > { %3602 = vrot.lane.b32.xlu0 %v3566_v45, %s8246_s3 }
 0x345   : > { %3604 = vrot.lane.b32.xlu1 %v3567_v36, %s8246_s3 }
 0x358   : > { %v7152_v14 = vpop.permute.xlu1 %7151 }
 0x359   : > { %v7154_v31 = vunpack.i.h.bf16 %v7152_v14  ;;  %v7153_v46 = vunpack.i.l.bf16 %v7152_v14 }
 0x35b   : > { %v2954_v3 = vsel %vm1297_vm6, %v2666_v11, %v7153_v46  ;;  %v2955_v25 = vsel %vm1297_vm6, %v9660_v42, %v7154_v31 }
 0x35c   : > { %v7147_v6 = vpop.permute.xlu0 %7146  ;;  %v3002_v51 = vpack.c.bf16 %v2955_v25, %v2954_v3 }
 0x35d   : > { %v7149_v21 = vunpack.i.h.bf16 %v7147_v6  ;;  %v7148_v7 = vunpack.i.l.bf16 %v7147_v6 }
 0x35f   : > { %v2970_v55 = vsel %vm1297_vm6, %v2698_v61, %v7148_v7  ;;  %v2971_v10 = vsel %vm1297_vm6, %v9770_v24, %v7149_v21 }
 0x360   : > { %v7162_v9 = vpop.permute.xlu1 %7161  ;;  %v3003_v34 = vpack.c.bf16 %v2971_v10, %v2970_v55 }
 0x361   : > { %v7164_v2 = vunpack.i.h.bf16 %v7162_v9  ;;  %v7163_v29 = vunpack.i.l.bf16 %v7162_v9 }
 0x362   : > { %3208 = vmatprep.mubr.bf16.mxu0 %v3003_v34 }
 0x363   : > { %3209 = vmatmul.mubr.bf16.vlgmr.msra.gmra.mxu0 %v3002_v51  ;;  %v2956_v14 = vsel %vm1297_vm6, %v9662_v59, %v7163_v29  ;;  %v2957_v42 = vsel %vm1297_vm6, %v9685_v53, %v7164_v2 }
 0x364   : > { %v7157_v5 = vpop.permute.xlu0 %7156  ;;  %v3005_v6 = vpack.c.bf16 %v2957_v42, %v2956_v14 }
 0x365   : > { %v7159_v45 = vunpack.i.h.bf16 %v7157_v5  ;;  %v7158_v36 = vunpack.i.l.bf16 %v7157_v5 }
 0x367   : > { %v2972_v31 = vsel %vm1297_vm6, %v9764_v0, %v7158_v36  ;;  %v2973_v24 = vsel %vm1297_vm6, %v9756_v22, %v7159_v45 }
 0x368   : > { %v7172_v46 = vpop.permute.xlu1 %7171  ;;  %v3006_v11 = vpack.c.bf16 %v2973_v24, %v2972_v31  ;;  %v2674_v24 = vld [vmem:[#allocation2 + $0x90] sm:$0xff] }
 0x369   : > { %v7174_v61 = vunpack.i.h.bf16 %v7172_v46  ;;  %v7173_v21 = vunpack.i.l.bf16 %v7172_v46 }
 0x36a   : > { %3216 = vmatprep.mubr.bf16.mxu0 %v3006_v11 }
 0x36b   : > { %3217 = vmatmul.mubr.bf16.gmra.mxu0 %v3005_v6  ;;  %v2958_v59 = vsel %vm1297_vm6, %v9687_v52, %v7173_v21  ;;  %v2959_v53 = vsel %vm1297_vm6, %v9710_v4, %v7174_v61 }
 0x36c   : > { %v7167_v7 = vpop.permute.xlu0 %7166  ;;  %v3008_v9 = vpack.c.bf16 %v2959_v53, %v2958_v59 }
 0x36d   : > { %v7169_v3 = vunpack.i.h.bf16 %v7167_v7  ;;  %v7168_v25 = vunpack.i.l.bf16 %v7167_v7 }
 0x36f   : > { %v2974_v0 = vsel %vm1297_vm6, %v9747_v26, %v7168_v25  ;;  %v2975_v22 = vsel %vm1297_vm6, %v9804_v49, %v7169_v3 }
 0x370   : > { %v7182_v55 = vpop.permute.xlu1 %7181  ;;  %v3009_v10 = vpack.c.bf16 %v2975_v22, %v2974_v0 }
 0x371   : > { %v7184_v34 = vunpack.i.h.bf16 %v7182_v55  ;;  %v7183_v51 = vunpack.i.l.bf16 %v7182_v55 }
 0x372   : > { %3224 = vmatprep.mubr.bf16.mxu0 %v3009_v10 }
 0x373   : > { %3225 = vmatmul.mubr.bf16.gmra.mxu0 %v3008_v9  ;;  %v2960_v52 = vsel %vm1297_vm6, %v9712_v39, %v7183_v51  ;;  %v2961_v4 = vsel %vm1297_vm6, %v9733_v37, %v7184_v34  ;;  %v2706_v39 = vld [vmem:[#allocation2 + $0x92] sm:$0xff] }
 0x374   : > { %v7177_v2 = vpop.permute.xlu0 %7176  ;;  %v3011_v31 = vpack.c.bf16 %v2961_v4, %v2960_v52 }
 0x375   : > { %v7179_v29 = vunpack.i.h.bf16 %v7177_v2  ;;  %v7178_v5 = vunpack.i.l.bf16 %v7177_v2 }
 0x377   : > { %v2976_v26 = vsel %vm1297_vm6, %v9798_v20, %v7178_v5  ;;  %v2977_v49 = vsel %vm1297_vm6, %v9790_v27, %v7179_v29 }
 0x378   : > { %v7187_v45 = vpop.permute.xlu1 %7186  ;;  %v3012_v36 = vpack.c.bf16 %v2977_v49, %v2976_v26 }
 0x379   : > { %v7189_v14 = vunpack.i.h.bf16 %v7187_v45  ;;  %v7188_v42 = vunpack.i.l.bf16 %v7187_v45 }
 0x37a   : > { %3232 = vmatprep.mubr.bf16.mxu0 %v3012_v36  ;;  %v2737_v36 = vld [vmem:[#allocation2 + $0x81] sm:$0xff] }
 0x37b   : > { %3233 = vmatmul.mubr.bf16.gmra.mxu0 %v3011_v31  ;;  %v7192_v46 = vpop.permute.xlu0 %7191  ;;  %v2962_v6 = vsel %vm1297_vm6, %v2674_v24, %v7188_v42  ;;  %v2963_v37 = vsel %vm1297_vm6, %v9752_v30, %v7189_v14 }
 0x37c   : > { %v7202_v11 = vpop.permute.xlu1 %7201  ;;  %v7194_v20 = vunpack.i.h.bf16 %v7192_v46  ;;  %v7193_v61 = vunpack.i.l.bf16 %v7192_v46  ;;  %v3014_v55 = vpack.c.bf16 %v2963_v37, %v2962_v6 }
 0x37d   : > { %v7204_v21 = vunpack.i.h.bf16 %v7202_v11  ;;  %v7203_v27 = vunpack.i.l.bf16 %v7202_v11 }
 0x37e   : > { %v2978_v7 = vsel %vm1297_vm6, %v2706_v39, %v7193_v61  ;;  %v2979_v3 = vsel %vm1297_vm6, %v9840_v50, %v7194_v20 }
 0x37f   : > { %v2989_v25 = vsel %vm1297_vm6, %v9697_v18, %v7204_v21  ;;  %v2988_v59 = vsel %vm1297_vm6, %v9674_v47, %v7203_v27  ;;  %v7197_v53 = vpop.permute.xlu0 %7196  ;;  %v3015_v22 = vpack.c.bf16 %v2979_v3, %v2978_v7 }
 0x380   : > { %v7207_v0 = vpop.permute.xlu1 %7206  ;;  %v7199_v30 = vunpack.i.h.bf16 %v7197_v53  ;;  %v7198_v10 = vunpack.i.l.bf16 %v7197_v53  ;;  %v3007_v18 = vpack.c.bf16 %v2989_v25, %v2988_v59 }
 0x381   : > { %v7209_v9 = vunpack.i.h.bf16 %v7207_v0  ;;  %v7208_v34 = vunpack.i.l.bf16 %v7207_v0  ;;  %3240 = vmatprep.mubr.bf16.mxu0 %v3015_v22 }
 0x382   : > { %v2986_v51 = vsel %vm1297_vm6, %v9650_v57, %v7198_v10  ;;  %v2987_v50 = vsel %vm1297_vm6, %v9672_v8, %v7199_v30 }
 0x383   : > { %3241 = vmatmul.mubr.bf16.gmra.mxu0 %v3014_v55  ;;  %v7212_v2 = vpop.permute.xlu0 %7211  ;;  %v3004_v47 = vpack.c.bf16 %v2987_v50, %v2986_v51  ;;  %v2964_v5 = vsel %vm1297_vm6, %v9754_v40, %v7208_v34  ;;  %v2965_v52 = vsel %vm1297_vm6, %v9786_v32, %v7209_v9  ;;  %v9981_v51 = vld [vmem:[%s8465_s21 + $0x30] sm:$0xff]  ;;  %v9984_v50 = vld [vmem:[%s8465_s21 + $0x38] sm:$0xff] }
 0x384   : > { %v7222_v29 = vpop.permute.xlu1 %7221  ;;  %v7214_v4 = vunpack.i.h.bf16 %v7212_v2  ;;  %v7213_v26 = vunpack.i.l.bf16 %v7212_v2  ;;  %v3017_v40 = vpack.c.bf16 %v2965_v52, %v2964_v5  ;;  %vm3746_vm2 = vcmp.gt.f32.partialorder %v9981_v51, 0.0 }
 0x385   : > { %v7224_v49 = vunpack.i.h.bf16 %v7222_v29  ;;  %v7223_v45 = vunpack.i.l.bf16 %v7222_v29  ;;  %6836 = vmatprep.mubr.bf16.mxu1 %v3004_v47  ;;  %v3842_v29 = vsub.f32 0.0, %v9981_v51  ;;  %v3843_v47 = vsub.f32 0.0, %v9984_v50 }
 0x386   : > { %6837 = vmatmul.mubr.bf16.vlgmr.msra.gmra.mxu1 %v3007_v18  ;;  %v2980_v57 = vsel %vm1297_vm6, %v9832_v35, %v7213_v26  ;;  %v2981_v8 = vsel %vm1297_vm6, %v9826_v16, %v7214_v4  ;;  %vm3747_vm3 = vcmp.gt.f32.partialorder %v9984_v50, 0.0 }
 0x387   : > { %v7217_v14 = vpop.permute.xlu0 %7216  ;;  %v3018_v31 = vpack.c.bf16 %v2981_v8, %v2980_v57  ;;  %v2992_v32 = vsel %vm1297_vm6, %v9724_v44, %v7223_v45  ;;  %v2993_v24 = vsel %vm1297_vm6, %v2737_v36, %v7224_v49  ;;  %v3874_v49 = vmin.f32 %v3842_v29, 0.0 }
 0x388   : > { %v7227_v42 = vpop.permute.xlu1 %7226  ;;  %v7219_v46 = vunpack.i.h.bf16 %v7217_v14  ;;  %v7218_v11 = vunpack.i.l.bf16 %v7217_v14  ;;  %v3013_v21 = vpack.c.bf16 %v2993_v24, %v2992_v32  ;;  %v3875_v45 = vmin.f32 %v3843_v47, 0.0  ;;  %v2745_v32 = vld [vmem:[#allocation2 + $0x111] sm:$0xff] }
 0x389   : > { %v7229_v39 = vunpack.i.h.bf16 %v7227_v42  ;;  %v7228_v6 = vunpack.i.l.bf16 %v7227_v42  ;;  %3248 = vmatprep.mubr.bf16.mxu0 %v3018_v31  ;;  %v3896_v42 = vmul.f32 1.442695, %v3874_v49  ;;  %vm3858_vm8 = vcmp.gt.f32.partialorder %v3842_v29, 0.0 }
 0x38a   : > { %v2990_v35 = vsel %vm1297_vm6, %v9699_v54, %v7218_v11  ;;  %v2991_v16 = vsel %vm1297_vm6, %v9722_v56, %v7219_v46  ;;  %v3898_v31 = vmul.f32 1.442695, %v3875_v45  ;;  %vm3859_vm9 = vcmp.gt.f32.partialorder %v3843_v47, 0.0 }
 0x38b   : > { %3249 = vmatmul.mubr.bf16.gmra.mxu0 %v3017_v40  ;;  %v7232_v37 = vpop.permute.xlu0 %7231  ;;  %v3010_v61 = vpack.c.bf16 %v2991_v16, %v2990_v35  ;;  %v2966_v44 = vsel %vm1297_vm6, %v9788_v41, %v7228_v6  ;;  %v2967_v27 = vsel %vm1297_vm6, %v9822_v48, %v7229_v39  ;;  %7761 = vpow2.f32 %v3896_v42  ;;  %v3568_v6 = vld [vmem:[%s8428_s12 + $0x30] sm:$0xff]  ;;  %v3569_v35 = vld [vmem:[%s8428_s12 + $0x38] sm:$0xff] }
 0x38c   : > { %v7242_v20 = vpop.permute.xlu1 %7241  ;;  %v7234_v7 = vunpack.i.h.bf16 %v7232_v37  ;;  %v7233_v3 = vunpack.i.l.bf16 %v7232_v37  ;;  %v3020_v22 = vpack.c.bf16 %v2967_v27, %v2966_v44  ;;  %7763 = vpow2.f32 %v3898_v31  ;;  %3606 = vrot.lane.b32.xlu0 %v3568_v6, %s8246_s3  ;;  %3608 = vrot.lane.b32.xlu1 %v3569_v35, %s8246_s3  ;;  %v10014_v27 = vld [vmem:[%s8465_s21 + $0x48] sm:$0xff] }
 0x38d   : > { %v7244_v25 = vunpack.i.h.bf16 %v7242_v20  ;;  %v7243_v59 = vunpack.i.l.bf16 %v7242_v20  ;;  %6840 = vmatprep.mubr.bf16.mxu1 %v3010_v61  ;;  %v10010_v61 = vld [vmem:[%s8465_s21 + $0x40] sm:$0xff]  ;;  %vm3749_vm7 = vcmp.gt.f32.partialorder %v10014_v27, 0.0 }
 0x38e   : > { %6841 = vmatmul.mubr.bf16.gmra.mxu1 %v3013_v21  ;;  %v2982_v54 = vsel %vm1297_vm6, %v9816_v58, %v7233_v3  ;;  %v2983_v56 = vsel %vm1297_vm6, %v9880_v15, %v7234_v7  ;;  %v3844_v21 = vsub.f32 0.0, %v10010_v61  ;;  %v3845_v3 = vsub.f32 0.0, %v10014_v27 }
 0x38f   : > { %v7237_v53 = vpop.permute.xlu0 %7236  ;;  %v3021_v41 = vpack.c.bf16 %v2983_v56, %v2982_v54  ;;  %v2996_v48 = vsel %vm1297_vm6, %v9774_v38, %v7243_v59  ;;  %v2997_v55 = vsel %vm1297_vm6, %v9806_v12, %v7244_v25  ;;  %v3570_v54 = vld [vmem:[%s8428_s12 + $0x40] sm:$0xff]  ;;  %v3572_v56 = vld [vmem:[%s8428_s12 + $0x50] sm:$0xff]  ;;  %vm3748_vm4 = vcmp.gt.f32.partialorder %v10010_v61, 0.0 }
 0x390   : > { %v7247_v0 = vpop.permute.xlu1 %7246  ;;  %v7239_v30 = vunpack.i.h.bf16 %v7237_v53  ;;  %v7238_v10 = vunpack.i.l.bf16 %v7237_v53  ;;  %v3019_v12 = vpack.c.bf16 %v2997_v55, %v2996_v48  ;;  %v3876_v44 = vmin.f32 %v3844_v21, 0.0  ;;  %v3571_v53 = vld [vmem:[%s8428_s12 + $0x48] sm:$0xff]  ;;  %v3573_v48 = vld [vmem:[%s8428_s12 + $0x58] sm:$0xff] }
 0x391   : > { %v7249_v9 = vunpack.i.h.bf16 %v7247_v0  ;;  %v7248_v34 = vunpack.i.l.bf16 %v7247_v0  ;;  %3256 = vmatprep.mubr.bf16.mxu0 %v3021_v41  ;;  %v3877_v25 = vmin.f32 %v3845_v3, 0.0  ;;  %vm3860_vm10 = vcmp.gt.f32.partialorder %v3844_v21, 0.0 }
 0x392   : > { %v2994_v58 = vsel %vm1297_vm6, %v9742_v43, %v7238_v10  ;;  %v2995_v15 = vsel %vm1297_vm6, %v9772_v28, %v7239_v30  ;;  %v3900_v7 = vmul.f32 1.442695, %v3876_v44  ;;  %vm3861_vm11 = vcmp.gt.f32.partialorder %v3845_v3, 0.0  ;;  %v3574_v10 = vld [vmem:[%s8428_s12 + $0x60] sm:$0xff] }
 0x393   : > { %3257 = vmatmul.mubr.bf16.gmra.mxu0 %v3020_v22  ;;  %v7252_v38 = vpop.permute.xlu0 %7251  ;;  %v3016_v2 = vpack.c.bf16 %v2995_v15, %v2994_v58  ;;  %v2968_v43 = vsel %vm1297_vm6, %v9824_v13, %v7248_v34  ;;  %v2969_v28 = vsel %vm1297_vm6, %v9846_v17, %v7249_v9  ;;  %v3902_v59 = vmul.f32 1.442695, %v3877_v25  ;;  %v3575_v34 = vld [vmem:[%s8428_s12 + $0x68] sm:$0xff] }
 0x394   : > { %v7262_v18 = vpop.permute.xlu1 %7261  ;;  %v7254_v5 = vunpack.i.h.bf16 %v7252_v38  ;;  %v7253_v52 = vunpack.i.l.bf16 %v7252_v38  ;;  %v3023_v17 = vpack.c.bf16 %v2969_v28, %v2968_v43  ;;  %7765 = vpow2.f32 %v3900_v7  ;;  %v11428_v38 = vld [vmem:[#allocation26_spill] sm:$0xff]  ;;  %v11430_v28 = vld [vmem:[#allocation27_spill] sm:$0xff] }
 0x395   : > { %v7264_v4 = vunpack.i.h.bf16 %v7262_v18  ;;  %v7263_v26 = vunpack.i.l.bf16 %v7262_v18  ;;  %6844 = vmatprep.mubr.bf16.mxu1 %v3016_v2  ;;  %7767 = vpow2.f32 %v3902_v59  ;;  %v3756_v58 = vmin.f32 %v9855_v60, 0.0 }
 0x396   : > { %6845 = vmatmul.mubr.bf16.gmra.mxu1 %v3019_v12  ;;  %v2984_v57 = vsel %vm1297_vm6, %v9869_v1, %v7253_v52  ;;  %v2985_v8 = vsel %vm1297_vm6, %v9850_v62, %v7254_v5  ;;  %v3757_v18 = vmin.f32 %v11428_v38, 0.0  ;;  %vm3741_vm13 = vcmp.gt.f32.partialorder %v11428_v38, 0.0 }
 0x397   : > { %v7257_v36 = vpop.permute.xlu0 %7256  ;;  %v3024_v14 = vpack.c.bf16 %v2985_v8, %v2984_v57  ;;  %v3000_v24 = vsel %vm1297_vm6, %v9838_v63, %v7263_v26  ;;  %v3001_v46 = vsel %vm1297_vm6, %v2745_v32, %v7264_v4  ;;  %v3772_v12 = vmul.f32 1.442695, %v3756_v58  ;;  %v11431_v8 = vld [vmem:[#allocation25_spill] sm:$0xff] }
 0x398   : > { %v7259_v13 = vunpack.i.h.bf16 %v7257_v36  ;;  %v7258_v40 = vunpack.i.l.bf16 %v7257_v36  ;;  %v3025_v39 = vpack.c.bf16 %v3001_v46, %v3000_v24  ;;  %v7762_v63 = vpop.eup %7761  ;;  %v3759_v4 = vmin.f32 %v11430_v28, 0.0 }
 0x399   : > { %3264 = vmatprep.mubr.bf16.mxu0 %v3024_v14  ;;  %v7764_v16 = vpop.eup %7763  ;;  %v6381_v37 = vadd.f32 -1.0, %v7762_v63  ;;  %7769 = vpow2.f32 %v3772_v12  ;;  %v3760_v36 = vmin.f32 %v11431_v8, 0.0  ;;  %v3761_v14 = vmin.f32 %v9878_v33, 0.0 }
 0x39a   : > { %v2998_v62 = vsel %vm1297_vm6, %v9808_v23, %v7258_v40  ;;  %v2999_v1 = vsel %vm1297_vm6, %v9836_v19, %v7259_v13  ;;  %v6382_v23 = vadd.f32 -1.0, %v7764_v16  ;;  %v3778_v49 = vmul.f32 1.442695, %v3759_v4 }
 0x39b   : > { %3265 = vmatmul.mubr.bf16.gmra.mxu0 %v3023_v17  ;;  %v3022_v11 = vpack.c.bf16 %v2999_v1, %v2998_v62  ;;  %v3938_v19 = vsel %vm3858_vm8, %v3842_v29, %v6381_v37  ;;  %v3774_v29 = vmul.f32 1.442695, %v3757_v18  ;;  %v3780_v42 = vmul.f32 1.442695, %v3760_v36 }
 0x39c   : > { %3976 = vrot.lane.b32.xlu0 %v3938_v19, %s8246_s3  ;;  %v3939_v20 = vsel %vm3859_vm9, %v3843_v47, %v6382_v23  ;;  %v11429_v47 = vld [vmem:[#allocation24_spill] sm:$0xff]  ;;  %v3782_v31 = vmul.f32 1.442695, %v3761_v14  ;;  %v3762_v17 = vmin.f32 %v9981_v51, 0.0  ;;  %v3763_v32 = vmin.f32 %v9984_v50, 0.0 }
 0x39d   : > { %6848 = vmatprep.mubr.bf16.mxu1 %v3022_v11  ;;  %3978 = vrot.lane.b32.xlu1 %v3939_v20, %s8246_s3  ;;  %v3758_v5 = vmin.f32 %v11429_v47, 0.0  ;;  %7771 = vpow2.f32 %v3774_v29  ;;  %vm3742_vm14 = vcmp.gt.f32.partialorder %v11429_v47, 0.0  ;;  %vm3743_vm15 = vcmp.gt.f32.partialorder %v11430_v28, 0.0 }
 0x39e   : > { %6849 = vmatmul.mubr.bf16.gmra.mxu1 %v3025_v39  ;;  %v3784_v24 = vmul.f32 1.442695, %v3762_v17  ;;  %v3786_v46 = vmul.f32 1.442695, %v3763_v32  ;;  %vm3744_vm0 = vcmp.gt.f32.partialorder %v11431_v8, 0.0 }
 0x39f   : > { %v3965_v15 = vpop.permute.xlu0 %3964  ;;  %v3776_v26 = vmul.f32 1.442695, %v3758_v5 }
 0x3a0   : > { %3610 = vrot.lane.b32.xlu0 %v3570_v54, %s8246_s3 }
 0x3a1   : > { %3612 = vrot.lane.b32.xlu1 %v3571_v53, %s8246_s3  ;;  %v7766_v0 = vpop.eup %7765  ;;  %7773 = vpow2.f32 %v3776_v26 }
 0x3a2   : > { %v6383_v41 = vadd.f32 -1.0, %v7766_v0  ;;  %v7768_v55 = vpop.eup %7767  ;;  %7775 = vpow2.f32 %v3778_v49 }
 0x3a3   : > { %v6384_v30 = vadd.f32 -1.0, %v7768_v55  ;;  %v3967_v2 = vpop.permute.xlu1 %3966  ;;  %7777 = vpow2.f32 %v3780_v42 }
 0x3a4   : > { %3614 = vrot.lane.b32.xlu0 %v3572_v56, %s8246_s3  ;;  %v3940_v22 = vsel %vm3860_vm10, %v3844_v21, %v6383_v41  ;;  %v3969_v52 = vpop.permute.xlu0 %3968  ;;  %7779 = vpow2.f32 %v3782_v31  ;;  %v3764_v31 = vmin.f32 %v10010_v61, 0.0 }
 0x3a5   : > { %3616 = vrot.lane.b32.xlu1 %v3573_v48, %s8246_s3  ;;  %v3941_v9 = vsel %vm3861_vm11, %v3845_v3, %v6384_v30  ;;  %7781 = vpow2.f32 %v3784_v24 }
 0x3a6   : > { %v7770_v62 = vpop.eup %7769  ;;  %7783 = vpow2.f32 %v3786_v46  ;;  %v3788_v24 = vmul.f32 1.442695, %v3764_v31  ;;  %v3765_v46 = vmin.f32 %v10014_v27, 0.0 }
 0x3a7   : > { %v3971_v43 = vpop.permute.xlu1 %3970  ;;  %v6359_v11 = vadd.f32 -1.0, %v7770_v62 }
 0x3a8   : > { %3980 = vrot.lane.b32.xlu0 %v3940_v22, %s8246_s3  ;;  %v10035_v45 = vpop.permute.xlu0 %3594  ;;  %7785 = vpow2.f32 %v3788_v24 }
 0x3a9   : > { %3982 = vrot.lane.b32.xlu1 %v3941_v9, %s8246_s3  ;;  %v3820_v63 = vsel %vm3740_vm12, %v9855_v60, %v6359_v11 }
 0x3aa   : > { %v7772_v1 = vpop.eup %7771  ;;  %v4012_v37 = vsel %vm1279_vm5, %v3820_v63, %v3965_v15  ;;  %v10094_v63 = vld [vmem:[%s11432_s19] ss:$0 sm:$0xff] }
 0x3ab   : > { %v10037_v57 = vpop.permute.xlu1 %3596  ;;  %v6360_v35 = vadd.f32 -1.0, %v7772_v1  ;;  %4029 = vst.msk [vmem:[#allocation3 + $0x11] sm:$0xff] %vm1297_vm6, %v4012_v37 }
 0x3ac   : > { %3618 = vrot.lane.b32.xlu0 %v3574_v10, %s8246_s3  ;;  %v10041_v13 = vpop.permute.xlu0 %3598 }
 0x3ad   : > { %3620 = vrot.lane.b32.xlu1 %v3575_v34, %s8246_s3  ;;  %v3821_v23 = vsel %vm3741_vm13, %v11428_v38, %v6360_v35 }
 0x3ae   : > { %v7774_v16 = vpop.eup %7773  ;;  %v4013_v20 = vsel %vm1279_vm5, %v3821_v23, %v3967_v2 }
 0x3af   : > { %v10043_v40 = vpop.permute.xlu1 %3600  ;;  %v7776_v19 = vpop.eup %7775  ;;  %v6361_v21 = vadd.f32 -1.0, %v7774_v16  ;;  %4030 = vst.msk [vmem:[#allocation3 + $0x21] sm:$0xff] %vm1297_vm6, %v4013_v20 }
 0x3b0   : > { %v3973_v39 = vpop.permute.xlu0 %3972  ;;  %v6362_v60 = vadd.f32 -1.0, %v7776_v19  ;;  %v7778_v56 = vpop.eup %7777 }
 0x3b1   : > { %v3822_v3 = vsel %vm3742_vm14, %v11429_v47, %v6361_v21  ;;  %v7780_v53 = vpop.eup %7779  ;;  %v6363_v0 = vadd.f32 -1.0, %v7778_v56 }
 0x3b2   : > { %v4014_v25 = vsel %vm1279_vm5, %v3822_v3, %v3969_v52  ;;  %v3823_v59 = vsel %vm3743_vm15, %v11430_v28, %v6362_v60  ;;  %v6364_v48 = vadd.f32 -1.0, %v7780_v53  ;;  %v7782_v30 = vpop.eup %7781 }
 0x3b3   : > { %v3975_v6 = vpop.permute.xlu1 %3974  ;;  %4031 = vst.msk [vmem:[#allocation3 + $0x31] sm:$0xff] %vm1297_vm6, %v4014_v25  ;;  %v4015_v54 = vsel %vm1279_vm5, %v3823_v59, %v3971_v43  ;;  %v3824_v55 = vsel %vm3744_vm0, %v11431_v8, %v6363_v0  ;;  %v7784_v34 = vpop.eup %7783  ;;  %v6365_v15 = vadd.f32 -1.0, %v7782_v30 }
 0x3b4   : > { %v10056_v44 = vpop.permute.xlu0 %3602  ;;  %4032 = vst.msk [vmem:[#allocation3 + $0x41] sm:$0xff] %vm1297_vm6, %v4015_v54  ;;  %v4016_v10 = vsel %vm1279_vm5, %v3824_v55, %v3973_v39  ;;  %v3825_v9 = vsel %vm3745_vm1, %v9878_v33, %v6364_v48  ;;  %v6366_v18 = vadd.f32 -1.0, %v7784_v34 }
 0x3b5   : > { %4033 = vst.msk [vmem:[#allocation3 + $0x51] sm:$0xff] %vm1297_vm6, %v4016_v10  ;;  %v4017_v58 = vsel %vm1279_vm5, %v3825_v9, %v3975_v6  ;;  %v3826_v12 = vsel %vm3746_vm2, %v9981_v51, %v6365_v15  ;;  %v3790_v6 = vmul.f32 1.442695, %v3765_v46 }
 0x3b6   : > { %4034 = vst.msk [vmem:[#allocation3 + $0x61] sm:$0xff] %vm1297_vm6, %v4017_v58  ;;  %v3827_v33 = vsel %vm3747_vm3, %v9984_v50, %v6366_v18 }
 0x3b7   : > { %v10058_v7 = vpop.permute.xlu1 %3604  ;;  %7787 = vpow2.f32 %v3790_v6 }
 0x3fe   : > { %v10069_v41 = vpop.permute.xlu0 %3606  ;;  %v10071_v22 = vpop.permute.xlu1 %3608 }
 0x40e   : > { %v3977_v38 = vpop.permute.xlu0 %3976 }
 0x40f   : > { %v3979_v2 = vpop.permute.xlu1 %3978  ;;  %v4018_v29 = vsel %vm1279_vm5, %v3826_v12, %v3977_v38 }
 0x410   : > { %4035 = vst.msk [vmem:[#allocation3 + $0x71] sm:$0xff] %vm1297_vm6, %v4018_v29  ;;  %v4019_v47 = vsel %vm1279_vm5, %v3827_v33, %v3979_v2 }
 0x411   : > { %4036 = vst.msk [vmem:[#allocation3 + $0x81] sm:$0xff] %vm1297_vm6, %v4019_v47 }
 0x413   : > { %v10130_v24 = vpop.permute.xlu1 %3612 }
 0x423   : > { %v6612_v5 = vpop.f32.mrf.mxu0 }
 0x425   : > { %v6613_v52 = vpop.f32.mrf.mxu0 }
 0x426   : > { %v6614_v39 = vadd.f32 %v6613_v52, %v6612_v5 }
 0x427   : > { %v6615_v43 = vpop.f32.mrf.mxu0 }
 0x428   : > { %v3211_v60 = vadd.f32 %v6614_v39, %v10094_v63 }
 0x429   : > { %v6616_v28 = vpop.f32.mrf.mxu0 }
 0x42a   : > { %v6617_v23 = vadd.f32 %v6616_v28, %v6615_v43  ;;  %v10118_v43 = vpop.permute.xlu0 %3610  ;;  %v7786_v28 = vpop.eup %7785 }
 0x42b   : > { %v6618_v4 = vpop.f32.mrf.mxu0  ;;  %v6367_v46 = vadd.f32 -1.0, %v7786_v28 }
 0x42c   : > { %v3214_v55 = vadd.f32 %v6617_v23, %v10094_v63 }
 0x42d   : > { %v6619_v26 = vpop.f32.mrf.mxu0 }
 0x42e   : > { %v6620_v1 = vadd.f32 %v6619_v26, %v6618_v4 }
 0x42f   : > { %v6621_v49 = vpop.f32.mrf.mxu0 }
 0x430   : > { %v3219_v37 = vadd.f32 %v6620_v1, %v10094_v63 }
 0x431   : > { %v6622_v8 = vpop.f32.mrf.mxu0 }
 0x432   : > { %v6623_v16 = vadd.f32 %v6622_v8, %v6621_v49 }
 0x433   : > { %v6624_v36 = vpop.f32.mrf.mxu0 }
 0x434   : > { %v3222_v53 = vadd.f32 %v6623_v16, %v10094_v63 }
 0x435   : > { %v6625_v51 = vpop.f32.mrf.mxu0 }
 0x436   : > { %v6626_v30 = vadd.f32 %v6625_v51, %v6624_v36 }
 0x437   : > { %v6627_v14 = vpop.f32.mrf.mxu0 }
 0x438   : > { %v3227_v52 = vadd.f32 %v6626_v30, %v10094_v63 }
 0x439   : > { %v6628_v42 = vpop.f32.mrf.mxu0 }
 0x43a   : > { %v6629_v12 = vadd.f32 %v6628_v42, %v6627_v14 }
 0x43b   : > { %v6630_v50 = vpop.f32.mrf.mxu0 }
 0x43d   : > { %v6631_v17 = vpop.f32.mrf.mxu0 }
 0x43e   : > { %v6632_v3 = vadd.f32 %v6631_v17, %v6630_v50  ;;  %v3230_v50 = vadd.f32 %v6629_v12, %v10094_v63 }
 0x43f   : > { %v6633_v32 = vpop.f32.mrf.mxu0 }
 0x440   : > { %v3235_v15 = vadd.f32 %v6632_v3, %v10094_v63 }
 0x441   : > { %v6634_v62 = vpop.f32.mrf.mxu0 }
 0x442   : > { %v6635_v38 = vadd.f32 %v6634_v62, %v6633_v32  ;;  %v10128_v32 = vpop.permute.xlu0 %3614  ;;  %v7788_v62 = vpop.eup %7787 }
 0x443   : > { %v6636_v11 = vpop.f32.mrf.mxu0 }
 0x444   : > { %v3238_v51 = vadd.f32 %v6635_v38, %v10094_v63 }
 0x445   : > { %v6637_v35 = vpop.f32.mrf.mxu0 }
 0x446   : > { %v6838_v20 = vpop.f32.mrf.mxu1  ;;  %v6638_v1 = vadd.f32 %v6637_v35, %v6636_v11  ;;  %v3828_v11 = vsel %vm3748_vm4, %v10010_v61, %v6367_v46  ;;  %v6368_v35 = vadd.f32 -1.0, %v7788_v62 }
 0x447   : > { %v10097_v19 = vpop.f32.mrf.mxu0  ;;  %v10099_v21 = vadd.f32 %v6838_v20, %v3219_v37 }
 0x448   : > { %v3307_v59 = vpop.f32.mrf.mxu1 }
 0x449   : > { %v6640_v25 = vpop.f32.mrf.mxu0  ;;  %v6345_v54 = vmul.f32 -1.442695, %v10099_v21  ;;  %v10103_v56 = vadd.f32 %v3307_v59, %v3211_v60 }
 0x44a   : > { %v6839_v48 = vpop.f32.mrf.mxu1 }
 0x44b   : > { %v6642_v0 = vpop.f32.mrf.mxu0  ;;  %7789 = vpow2.f32 %v6345_v54  ;;  %v6343_v10 = vmul.f32 -1.442695, %v10103_v56  ;;  %v10108_v9 = vadd.f32 %v6839_v48, %v3222_v53 }
 0x44c   : > { %v3310_v58 = vpop.f32.mrf.mxu1 }
 0x44d   : > { %v6643_v34 = vpop.f32.mrf.mxu0  ;;  %7791 = vpow2.f32 %v6343_v10  ;;  %v6346_v18 = vmul.f32 -1.442695, %v10108_v9  ;;  %v10112_v2 = vadd.f32 %v3310_v58, %v3214_v55  ;;  %v3243_v55 = vadd.f32 %v6638_v1, %v10094_v63  ;;  %v3981_v58 = vpop.permute.xlu0 %3980 }
 0x44e   : > { %v6842_v33 = vpop.f32.mrf.mxu1  ;;  %v6644_v4 = vadd.f32 %v6643_v34, %v6642_v0  ;;  %v6641_v0 = vadd.f32 %v6640_v25, %v10097_v19  ;;  %v4020_v25 = vsel %vm1279_vm5, %v3828_v11, %v3981_v58 }
 0x44f   : > { %v6645_v29 = vpop.f32.mrf.mxu0  ;;  %v6344_v47 = vmul.f32 -1.442695, %v10112_v2  ;;  %v10115_v5 = vadd.f32 %v6842_v33, %v3235_v15  ;;  %7793 = vpow2.f32 %v6346_v18  ;;  %v10146_v15 = vpop.permute.xlu1 %3616  ;;  %4037 = vst.msk [vmem:[#allocation3 + $0xa1] sm:$0xff] %vm1297_vm6, %v4020_v25 }
 0x450   : > { %v3323_v49 = vpop.f32.mrf.mxu1  ;;  %v3251_v16 = vadd.f32 %v6644_v4, %v10094_v63 }
 0x451   : > { %v6646_v26 = vpop.f32.mrf.mxu0  ;;  %7795 = vpow2.f32 %v6344_v47  ;;  %v6349_v8 = vmul.f32 -1.442695, %v10115_v5  ;;  %v10121_v36 = vadd.f32 %v3323_v49, %v3227_v52  ;;  %v3829_v47 = vsel %vm3749_vm7, %v10014_v27, %v6368_v35 }
 0x452   : > { %v6843_v42 = vpop.f32.mrf.mxu1  ;;  %v6647_v37 = vadd.f32 %v6646_v26, %v6645_v29  ;;  %v3246_v26 = vadd.f32 %v6641_v0, %v10094_v63 }
 0x453   : > { %v6648_v14 = vpop.f32.mrf.mxu0  ;;  %7797 = vpow2.f32 %v6349_v8  ;;  %v6347_v31 = vmul.f32 -1.442695, %v10121_v36  ;;  %v10126_v17 = vadd.f32 %v6843_v42, %v3238_v51 }
 0x454   : > { %v3326_v6 = vpop.f32.mrf.mxu1  ;;  %v3254_v34 = vadd.f32 %v6647_v37, %v10094_v63 }
 0x455   : > { %v6649_v39 = vpop.f32.mrf.mxu0  ;;  %7799 = vpow2.f32 %v6347_v31  ;;  %v6350_v23 = vmul.f32 -1.442695, %v10126_v17  ;;  %v10135_v20 = vadd.f32 %v3326_v6, %v3230_v50  ;;  %v3983_v50 = vpop.permute.xlu1 %3982 }
 0x456   : > { %v6846_v3 = vpop.f32.mrf.mxu1  ;;  %v6650_v52 = vadd.f32 %v6649_v39, %v6648_v14  ;;  %v4021_v14 = vsel %vm1279_vm5, %v3829_v47, %v3983_v50 }
 0x457   : > { %v6651_v60 = vpop.f32.mrf.mxu0  ;;  %v6348_v59 = vmul.f32 -1.442695, %v10135_v20  ;;  %v10138_v54 = vadd.f32 %v6846_v3, %v3251_v16  ;;  %7801 = vpow2.f32 %v6350_v23  ;;  %4038 = vst.msk [vmem:[#allocation3 + $0xb1] sm:$0xff] %vm1297_vm6, %v4021_v14  ;;  %v10187_v14 = vld [vmem:[%s8465_s21 + $0x58] sm:$0xff] }
 0x458   : > { %v7790_v53 = vpop.eup %7789  ;;  %v3339_v30 = vpop.f32.mrf.mxu1  ;;  %vm3751_vm15 = vcmp.gt.f32.partialorder %v10187_v14, 0.0 }
 0x459   : > { %v6652_v48 = vpop.f32.mrf.mxu0  ;;  %7803 = vpow2.f32 %v6348_v59  ;;  %v6353_v10 = vmul.f32 -1.442695, %v10138_v54  ;;  %v10148_v38 = vadd.f32 %v3339_v30, %v3243_v55  ;;  %v3420_v12 = vadd.f32 1.0, %v7790_v53 }
 0x45a   : > { %v7792_v61 = vpop.eup %7791  ;;  %v6847_v19 = vpop.f32.mrf.mxu1  ;;  %v6653_v39 = vadd.f32 %v6652_v48, %v6651_v60  ;;  %v3259_v59 = vadd.f32 %v6650_v52, %v10094_v63 }
 0x45b   : > { %v6654_v18 = vpop.f32.mrf.mxu0  ;;  %v3418_v29 = vadd.f32 1.0, %v7792_v61  ;;  %v10151_v33 = vadd.f32 %v6847_v19, %v3254_v34  ;;  %7805 = vpow2.f32 %v6353_v10  ;;  %v6351_v28 = vmul.f32 -1.442695, %v10148_v38 }
 0x45c   : > { %v3342_v49 = vpop.f32.mrf.mxu1  ;;  %v7794_v8 = vpop.eup %7793  ;;  %v3262_v58 = vadd.f32 %v6653_v39, %v10094_v63  ;;  %v10192_v39 = vld [vmem:[%s8465_s21 + $0x60] sm:$0xff] }
 0x45d   : > { %v6655_v4 = vpop.f32.mrf.mxu0  ;;  %7807 = vrcp.f32 %v3418_v29  ;;  %v6354_v51 = vmul.f32 -1.442695, %v10151_v33  ;;  %v10158_v46 = vadd.f32 %v3342_v49, %v3246_v26  ;;  %v3421_v37 = vadd.f32 1.0, %v7794_v8  ;;  %v10180_v49 = vld [vmem:[%s8465_s21 + $0x50] sm:$0xff] }
 0x45e   : > { %v6656_v42 = vadd.f32 %v6655_v4, %v6654_v18  ;;  %v7796_v31 = vpop.eup %7795  ;;  %7809 = vpow2.f32 %v6351_v28  ;;  %v6850_v27 = vpop.f32.mrf.mxu1  ;;  %vm3750_vm14 = vcmp.gt.f32.partialorder %v10180_v49, 0.0  ;;  %vm3752_vm0 = vcmp.gt.f32.partialorder %v10192_v39, 0.0 }
 0x45f   : > { %v6657_v62 = vpop.f32.mrf.mxu0  ;;  %7811 = vrcp.f32 %v3420_v12  ;;  %v3419_v1 = vadd.f32 1.0, %v7796_v31  ;;  %v6352_v23 = vmul.f32 -1.442695, %v10158_v46 }
 0x460   : > { %v3267_v6 = vadd.f32 %v6656_v42, %v10094_v63  ;;  %v7798_v16 = vpop.eup %7797  ;;  %7813 = vpow2.f32 %v6354_v51  ;;  %v3355_v11 = vpop.f32.mrf.mxu1 }
 0x461   : > { %v6658_v3 = vpop.f32.mrf.mxu0  ;;  %7815 = vrcp.f32 %v3419_v1  ;;  %v3424_v55 = vadd.f32 1.0, %v7798_v16  ;;  %v10167_v60 = vadd.f32 %v3355_v11, %v3259_v59  ;;  %v10199_v11 = vsub.f32 0.0, %v10192_v39 }
 0x462   : > { %v10165_v35 = vadd.f32 %v6850_v27, %v3267_v6  ;;  %v6659_v53 = vadd.f32 %v6658_v3, %v6657_v62  ;;  %v7800_v0 = vpop.eup %7799  ;;  %7817 = vpow2.f32 %v6352_v23  ;;  %v6851_v48 = vpop.f32.mrf.mxu1  ;;  %v10184_v62 = vsub.f32 0.0, %v10180_v49 }
 0x463   : > { %v3422_v30 = vadd.f32 1.0, %v7800_v0  ;;  %7819 = vrcp.f32 %v3421_v37  ;;  %v6355_v61 = vmul.f32 -1.442695, %v10167_v60  ;;  %v10196_v23 = vsub.f32 0.0, %v10187_v14  ;;  %v10204_v0 = vld [vmem:[%s8465_s21 + $0x68] sm:$0xff] }
 0x464   : > { %v6357_v10 = vmul.f32 -1.442695, %v10165_v35  ;;  %v3270_v34 = vadd.f32 %v6659_v53, %v10094_v63  ;;  %v3358_v18 = vpop.f32.mrf.mxu1  ;;  %v7802_v19 = vpop.eup %7801  ;;  %v3878_v37 = vmin.f32 %v10184_v62, 0.0  ;;  %vm3862_vm8 = vcmp.gt.f32.partialorder %v10184_v62, 0.0 }
 0x465   : > { %7821 = vrcp.f32 %v3422_v30  ;;  %v10175_v12 = vadd.f32 %v3358_v18, %v3262_v58  ;;  %v3425_v4 = vadd.f32 1.0, %v7802_v19  ;;  %v3880_v18 = vmin.f32 %v10199_v11, 0.0 }
 0x466   : > { %v10173_v25 = vadd.f32 %v6851_v48, %v3270_v34  ;;  %v7804_v29 = vpop.eup %7803  ;;  %7823 = vrcp.f32 %v3424_v55  ;;  %v10207_v48 = vld [vmem:[%s8465_s21 + $0x70] sm:$0xff]  ;;  %v3879_v34 = vmin.f32 %v10196_v23, 0.0  ;;  %v10212_v19 = vsub.f32 0.0, %v10204_v0 }
 0x467   : > { %v3423_v47 = vadd.f32 1.0, %v7804_v29  ;;  %7825 = vpow2.f32 %v6357_v10  ;;  %v6356_v28 = vmul.f32 -1.442695, %v10175_v12  ;;  %v3904_v10 = vmul.f32 1.442695, %v3878_v37 }
 0x468   : > { %v6358_v52 = vmul.f32 -1.442695, %v10173_v25  ;;  %7827 = vpow2.f32 %v6355_v61  ;;  %v7806_v63 = vpop.eup %7805  ;;  %vm3863_vm9 = vcmp.gt.f32.partialorder %v10196_v23, 0.0  ;;  %vm3864_vm10 = vcmp.gt.f32.partialorder %v10199_v11, 0.0 }
 0x469   : > { %7829 = vrcp.f32 %v3423_v47  ;;  %v3428_v31 = vadd.f32 1.0, %v7806_v63  ;;  %v10217_v47 = vsub.f32 0.0, %v10207_v48  ;;  %vm3865_vm11 = vcmp.gt.f32.partialorder %v10212_v19, 0.0 }
 0x46a   : > { %v7808_v26 = vpop.eup %7807  ;;  %7831 = vpow2.f32 %v6358_v52  ;;  %v10220_v52 = vld [vmem:[%s8465_s21 + $0x78] sm:$0xff]  ;;  %vm3753_vm1 = vcmp.gt.f32.partialorder %v10204_v0, 0.0  ;;  %vm3754_vm2 = vcmp.gt.f32.partialorder %v10207_v48, 0.0 }
 0x46b   : > { %v7810_v8 = vpop.eup %7809  ;;  %7833 = vpow2.f32 %v6356_v28  ;;  %3482 = vrot.lane.b32.xlu0 %v7808_v26, %s8249_s26  ;;  %v3906_v26 = vmul.f32 1.442695, %v3879_v34  ;;  %vm3866_vm12 = vcmp.gt.f32.partialorder %v10217_v47, 0.0  ;;  %vm3755_vm3 = vcmp.gt.f32.partialorder %v10220_v52, 0.0 }
 0x46c   : > { %v7812_v51 = vpop.eup %7811  ;;  %v3426_v42 = vadd.f32 1.0, %v7810_v8  ;;  %7835 = vrcp.f32 %v3425_v4 }
 0x46d   : > { %v7814_v50 = vpop.eup %7813 }
 0x46e   : > { %v7816_v27 = vpop.eup %7815  ;;  %7837 = vrcp.f32 %v3426_v42  ;;  %v3429_v59 = vadd.f32 1.0, %v7814_v50  ;;  %v3881_v42 = vmin.f32 %v10212_v19, 0.0  ;;  %v10224_v50 = vsub.f32 0.0, %v10220_v52 }
 0x46f   : > { %v7818_v1 = vpop.eup %7817  ;;  %3484 = vrot.lane.b32.xlu1 %v7816_v27, %s8249_s26  ;;  %3486 = vrot.lane.b32.xlu0 %v7812_v51, %s8249_s26  ;;  %7839 = vrcp.f32 %v3428_v31  ;;  %v3908_v51 = vmul.f32 1.442695, %v3880_v18 }
 0x470   : > { %v3427_v6 = vadd.f32 1.0, %v7818_v1  ;;  %v7820_v16 = vpop.eup %7819  ;;  %v3882_v1 = vmin.f32 %v10217_v47, 0.0  ;;  %vm3867_vm13 = vcmp.gt.f32.partialorder %v10224_v50, 0.0 }
 0x472   : > { %v7822_v3 = vpop.eup %7821  ;;  %7841 = vrcp.f32 %v3427_v6  ;;  %v7517_v6 = vld [vmem:[%s8447_s1 + $0x78] sm:$0xff]  }
 0x473   : > { %v7824_v53 = vpop.eup %7823  ;;  %3488 = vrot.lane.b32.xlu1 %v7820_v16, %s8249_s26  ;;  %3490 = vrot.lane.b32.xlu0 %v7822_v3, %s8249_s26  ;;  %7843 = vrcp.f32 %v3429_v59  ;;  %v7518_v16 = vld [vmem:[%s8447_s1 + $0x38] sm:$0xff]   ;;  %v3910_v3 = vmul.f32 1.442695, %v3881_v42  ;;  %v3883_v59 = vmin.f32 %v10224_v50, 0.0 }
 0x474   : > { %v7826_v55 = vpop.eup %7825  ;;  %6676 = vmatprep.subr.bf16.mxu1 %v7517_v6  ;;  %v7523_v6 = vld [vmem:[%s8447_s1 + $0x60] sm:$0xff]  }
 0x475   : > { %v7828_v30 = vpop.eup %7827  ;;  %v3432_v63 = vadd.f32 1.0, %v7826_v55  ;;  %6677 = vmatpush3.bf16.msra.mxu1 %v7518_v16  ;;  %v3912_v55 = vmul.f32 1.442695, %v3882_v1  ;;  %v3914_v34 = vmul.f32 1.442695, %v3883_v59  ;;  %v7524_v59 = vld [vmem:[%s8447_s1 + $0x20] sm:$0xff]  }
 0x476   : > { %v7830_v58 = vpop.eup %7829  ;;  %v3430_v61 = vadd.f32 1.0, %v7828_v30  ;;  %v7519_v30 = vld [vmem:[%s8447_s1 + $0x70] sm:$0xff]  }
 0x477   : > { %v7832_v29 = vpop.eup %7831  ;;  %3492 = vrot.lane.b32.xlu1 %v7830_v58, %s8249_s26  ;;  %3494 = vrot.lane.b32.xlu0 %v7824_v53, %s8249_s26 }
 0x478   : > { %v7834_v28 = vpop.eup %7833  ;;  %7845 = vrcp.f32 %v3430_v61  ;;  %v3433_v27 = vadd.f32 1.0, %v7832_v29  ;;  %6678 = vmatprep.subr.bf16.mxu1 %v7519_v30  ;;  %v7521_v61 = vld [vmem:[%s8447_s1 + $0x68] sm:$0xff]  }
 0x479   : > { %v3431_v4 = vadd.f32 1.0, %v7834_v28  ;;  %v7836_v8 = vpop.eup %7835  ;;  %7847 = vpow2.f32 %v3904_v10  ;;  %v7520_v10 = vld [vmem:[%s8447_s1 + $0x30] sm:$0xff]   ;;  %v7522_v29 = vld [vmem:[%s8447_s1 + $0x28] sm:$0xff]  }
 0x47a   : > { %6679 = vmatpush3.bf16.msra.mxu1 %v7520_v10 }
 0x47b   : > { %v7838_v31 = vpop.eup %7837  ;;  %7849 = vrcp.f32 %v3431_v4  ;;  %3496 = vrot.lane.b32.xlu1 %v7836_v8, %s8249_s26  ;;  %6680 = vmatprep.subr.bf16.mxu1 %v7521_v61 }
 0x47c   : > { %7851 = vrcp.f32 %v3432_v63  ;;  %3498 = vrot.lane.b32.xlu0 %v7838_v31, %s8249_s26  ;;  %v7840_v37 = vpop.eup %7839 }
 0x47d   : > { %7853 = vpow2.f32 %v3906_v26 }
 0x47e   : > { %7855 = vpow2.f32 %v3908_v51  ;;  %6681 = vmatpush3.bf16.msra.mxu1 %v7522_v29  ;;  %v3576_v51 = vld [vmem:[%s8428_s12 + $0x70] sm:$0xff] }
 0x47f   : > { %v7842_v53 = vpop.eup %7841  ;;  %7857 = vrcp.f32 %v3433_v27  ;;  %v3577_v27 = vld [vmem:[%s8428_s12 + $0x78] sm:$0xff]  ;;  %6682 = vmatprep.subr.bf16.mxu1 %v7523_v6  ;;  %v4100_v6 = vld [vmem:[#allocation3 + $0x81] sm:$0xff] }
 0x480   : > { %3500 = vrot.lane.b32.xlu1 %v7842_v53, %s8249_s26  ;;  %3502 = vrot.lane.b32.xlu0 %v7840_v37, %s8249_s26  ;;  %7859 = vpow2.f32 %v3910_v3  ;;  %v7844_v58 = vpop.eup %7843 }
 0x481   : > { %7861 = vpow2.f32 %v3912_v55 }
 0x482   : > { %7863 = vpow2.f32 %v3914_v34  ;;  %6683 = vmatpush3.bf16.msra.mxu1 %v7524_v59 }
 0x484   : > { %3504 = vrot.lane.b32.xlu1 %v7844_v58, %s8249_s26 }
 0x485   : > { %v7846_v18 = vpop.eup %7845 }
 0x486   : > { %3506 = vrot.lane.b32.xlu0 %v7846_v18, %s8249_s26  ;;  %v7848_v28 = vpop.eup %7847 }
 0x487   : > { %v6385_v42 = vadd.f32 -1.0, %v7848_v28 }
 0x488   : > { %v7850_v63 = vpop.eup %7849 }
 0x489   : > { %v7852_v4 = vpop.eup %7851  ;;  %3508 = vrot.lane.b32.xlu1 %v7850_v63, %s8249_s26  ;;  %v3942_v37 = vsel %vm3862_vm8, %v10184_v62, %v6385_v42  ;;  %v4061_v63 = vld [vmem:[#allocation3 + $0x1] sm:$0xff]  ;;  %v7525_v42 = vld [vmem:[%s8447_s1 + $0x58] sm:$0xff]  }
 0x48a   : > { %v7854_v26 = vpop.eup %7853  ;;  %3510 = vrot.lane.b32.xlu0 %v7852_v4, %s8249_s26  ;;  %v4095_v4 = vld [vmem:[#allocation3 + $0x31] sm:$0xff]  ;;  %6684 = vmatprep.subr.bf16.mxu1 %v7525_v42 }
 0x48b   : > { %v7856_v8 = vpop.eup %7855  ;;  %v6386_v1 = vadd.f32 -1.0, %v7854_v26  ;;  %v4096_v26 = vld [vmem:[#allocation3 + $0x41] sm:$0xff] }
 0x48c   : > { %v7858_v31 = vpop.eup %7857  ;;  %v6387_v3 = vadd.f32 -1.0, %v7856_v8  ;;  %v4097_v8 = vld [vmem:[#allocation3 + $0x51] sm:$0xff] }
 0x48d   : > { %3512 = vrot.lane.b32.xlu1 %v7858_v31, %s8249_s26  ;;  %v7860_v16 = vpop.eup %7859  ;;  %v3943_v55 = vsel %vm3863_vm9, %v10196_v23, %v6386_v1  ;;  %v4093_v23 = vld [vmem:[#allocation3 + $0x11] sm:$0xff] }
 0x48e   : > { %3622 = vrot.lane.b32.xlu0 %v3576_v51, %s8246_s3  ;;  %v7862_v53 = vpop.eup %7861  ;;  %v6388_v30 = vadd.f32 -1.0, %v7860_v16  ;;  %v3944_v34 = vsel %vm3864_vm10, %v10199_v11, %v6387_v3  ;;  %v4094_v11 = vld [vmem:[#allocation3 + $0x21] sm:$0xff]  ;;  %v7526_v31 = vld [vmem:[%s8447_s1 + $0x18] sm:$0xff]   ;;  %v7527_v16 = vld [vmem:[%s8447_s1 + $0x50] sm:$0xff]   ;;  %v7290_v3 = vpack.i.bf16 %v4097_v8, %v4096_v26 }
 0x48f   : > { %v7864_v10 = vpop.eup %7863  ;;  %v6389_v62 = vadd.f32 -1.0, %v7862_v53  ;;  %v7265_v28 = vpack.i.bf16 %v4094_v11, %v4093_v23  ;;  %v4098_v51 = vld [vmem:[#allocation3 + $0x61] sm:$0xff]  ;;  %v4099_v1 = vld [vmem:[#allocation3 + $0x71] sm:$0xff]  ;;  %6685 = vmatpush3.bf16.msra.mxu1 %v7526_v31  ;;  %v3767_v31 = vmin.f32 %v10187_v14, 0.0 }
 0x490   : > { %v3945_v58 = vsel %vm3865_vm11, %v10212_v19, %v6388_v30  ;;  %v6390_v61 = vadd.f32 -1.0, %v7864_v10  ;;  %v7270_v19 = vpack.i.bf16 %v4093_v23, %v4061_v63  ;;  %v7295_v59 = vpack.i.bf16 %v4100_v6, %v4099_v1  ;;  %6686 = vmatprep.subr.bf16.mxu1 %v7527_v16  ;;  %v7529_v53 = vld [vmem:[%s8447_s1 + $0x48] sm:$0xff]   ;;  %v7531_v10 = vld [vmem:[%s8447_s1 + $0x40] sm:$0xff]   ;;  %v7537_v23 = vld [vmem:[%s8447_s1 + $0x98] sm:$0xff]   ;;  %v10292_v63 = vpop.permute.xlu1 %3620 }
 0x491   : > { %3624 = vrot.lane.b32.xlu1 %v3577_v27, %s8246_s3  ;;  %v3946_v18 = vsel %vm3866_vm12, %v10217_v47, %v6389_v62  ;;  %v7275_v47 = vpack.i.bf16 %v4096_v26, %v4095_v4  ;;  %v7285_v27 = vpack.i.bf16 %v4098_v51, %v4097_v8  ;;  %v7300_v30 = vpack.i.bf16 %v4099_v1, %v4098_v51  ;;  %v7533_v62 = vld [vmem:[%s8447_s1 + $0xb8] sm:$0xff]   ;;  %v8090_v6 = vld [vmem:[%s8463_s17 + $0x8] sm:$0xff] }
 0x492   : > { %3984 = vrot.lane.b32.xlu0 %v3942_v37, %s8246_s3  ;;  %v3947_v29 = vsel %vm3867_vm13, %v10224_v50, %v6390_v61  ;;  %v7280_v50 = vpack.i.bf16 %v4095_v4, %v4094_v11  ;;  %v7528_v37 = vld [vmem:[%s8447_s1 + $0x10] sm:$0xff]   ;;  %6852 = vmatprep.subr.bf16.mxu0 %v7533_v62  ;;  %v7535_v61 = vld [vmem:[%s8447_s1 + $0xa8] sm:$0xff]  }
 0x493   : > { %6687 = vmatpush3.bf16.msra.mxu1 %v7528_v37  ;;  %6853 = vmatpush3.bf16.msra.mxu0 %v7533_v62  ;;  %v7538_v11 = vld [vmem:[%s8447_s1 + $0x90] sm:$0xff]  }
 0x494   : > { %6688 = vmatprep.subr.bf16.mxu1 %v7529_v53  ;;  %v8091_v37 = vld [vmem:[%s8463_s17 + $0x10] sm:$0xff] }
 0x495   : > { %3986 = vrot.lane.b32.xlu1 %v3943_v55, %s8246_s3  ;;  %v7530_v55 = vld [vmem:[%s8447_s1 + $0x8] sm:$0xff]  }
 0x496   : > { %3988 = vrot.lane.b32.xlu0 %v3944_v34, %s8246_s3  ;;  %v7532_v34 = vld [vmem:[%s8447_s1] sm:$0xff]  }
 0x497   : > { %6689 = vmatpush3.bf16.msra.mxu1 %v7530_v55  ;;  %v3794_v55 = vmul.f32 1.442695, %v3767_v31 }
 0x498   : > { %6690 = vmatprep.subr.bf16.mxu1 %v7531_v10  ;;  %v3769_v10 = vmin.f32 %v10204_v0, 0.0 }
 0x499   : > { %3990 = vrot.lane.b32.xlu1 %v3945_v58, %s8246_s3  ;;  %v7534_v58 = vld [vmem:[%s8447_s1 + $0xb0] sm:$0xff]  }
 0x49a   : > { %3992 = vrot.lane.b32.xlu0 %v3946_v18, %s8246_s3  ;;  %6854 = vmatprep.subr.bf16.mxu0 %v7534_v58  ;;  %v7536_v18 = vld [vmem:[%s8447_s1 + $0xa0] sm:$0xff]  }
 0x49b   : > { %6691 = vmatpush3.bf16.msra.mxu1 %v7532_v34  ;;  %6855 = vmatpush3.bf16.msra.mxu0 %v7534_v58  ;;  %v8092_v58 = vld [vmem:[%s8463_s17 + $0x18] sm:$0xff] }
 0x49c   : > { %6856 = vmatprep.subr.bf16.mxu0 %v7535_v61 }
 0x49d   : > { %3994 = vrot.lane.b32.xlu1 %v3947_v29, %s8246_s3  ;;  %v7539_v29 = vld [vmem:[%s8447_s1 + $0x88] sm:$0xff]  }
 0x49e   : > { %7266 = vrot.lane.b32.xlu0 %v7265_v28, %s8248_s4  ;;  %v10290_v28 = vpop.permute.xlu0 %3618 }
 0x49f   : > { %6857 = vmatpush3.bf16.msra.mxu0 %v7535_v61 }
 0x4a0   : > { %6858 = vmatprep.subr.bf16.mxu0 %v7536_v18 }
 0x4a1   : > { %7271 = vrot.lane.b32.xlu1 %v7270_v19, %s8248_s4  ;;  %v3766_v19 = vmin.f32 %v10180_v49, 0.0 }
 0x4a2   : > { %7276 = vrot.lane.b32.xlu0 %v7275_v47, %s8248_s4  ;;  %v8089_v47 = vld [vmem:[%s8463_s17] sm:$0xff] }
 0x4a3   : > { %6859 = vmatpush3.bf16.msra.mxu0 %v7536_v18  ;;  %v3792_v1 = vmul.f32 1.442695, %v3766_v19  ;;  %v8093_v18 = vld [vmem:[%s8463_s17 + $0x20] sm:$0xff] }
 0x4a4   : > { %6860 = vmatprep.subr.bf16.mxu0 %v7537_v23 }
 0x4a5   : > { %7281 = vrot.lane.b32.xlu1 %v7280_v50, %s8248_s4  ;;  %7865 = vpow2.f32 %v3792_v1 }
 0x4a6   : > { %7286 = vrot.lane.b32.xlu0 %v7285_v27, %s8248_s4  ;;  %7867 = vpow2.f32 %v3794_v55 }
 0x4a7   : > { %6861 = vmatpush3.bf16.msra.mxu0 %v7537_v23 }
 0x4a8   : > { %6862 = vmatprep.subr.bf16.mxu0 %v7538_v11 }
 0x4a9   : > { %7291 = vrot.lane.b32.xlu1 %v7290_v3, %s8248_s4 }
 0x4aa   : > { %7296 = vrot.lane.b32.xlu0 %v7295_v59, %s8248_s4 }
 0x4ab   : > { %6863 = vmatpush3.bf16.msra.mxu0 %v7538_v11 }
 0x4ac   : > { %6864 = vmatprep.subr.bf16.mxu0 %v7539_v29 }
 0x4ad   : > { %7301 = vrot.lane.b32.xlu1 %v7300_v30, %s8248_s4  ;;  %v3768_v30 = vmin.f32 %v10192_v39, 0.0 }
 0x4af   : > { %6865 = vmatpush3.bf16.msra.mxu0 %v7539_v29  ;;  %v3796_v29 = vmul.f32 1.442695, %v3768_v30 }
 0x4b1   : > { %7869 = vpow2.f32 %v3796_v29 }
 0x4dd   : > { %v3483_v4 = vpop.permute.xlu0 %3482 }
 0x4de   : > { %v3530_v26 = vmul.f32 %v3483_v4, %v10103_v56  ;;  %v3798_v4 = vmul.f32 1.442695, %v3769_v10 }
 0x4e0   : > { %v3546_v8 = vadd.f32 %v8089_v47, %v3530_v26  ;;  %7871 = vpow2.f32 %v3798_v4 }
 0x4e1   : > { %v3485_v51 = vpop.permute.xlu1 %3484  ;;  %v3487_v42 = vpop.permute.xlu0 %3486 }
 0x4e2   : > { %5860 = vst.msk [vmem:[%s8463_s17] sm:$0xff] %vm1279_vm5, %v3546_v8  ;;  %v3531_v50 = vmul.f32 %v3485_v51, %v10112_v2  ;;  %v3532_v27 = vmul.f32 %v3487_v42, %v10099_v21  ;;  %v10304_v56 = vsel %vm1279_vm5, %v3546_v8, %v10035_v45 }
 0x4e3   : > { %v10324_v34 = vsub.f32 0.0, %v10304_v56 }
 0x4e4   : > { %v3547_v16 = vadd.f32 %v8090_v6, %v3531_v50  ;;  %v10308_v3 = vadd.f32 %v8091_v37, %v3532_v27  ;;  %v8094_v6 = vld [vmem:[%s8463_s17 + $0x28] sm:$0xff]  ;;  %v8095_v37 = vld [vmem:[%s8463_s17 + $0x30] sm:$0xff] }
 0x4e5   : > { %v3489_v59 = vpop.permute.xlu1 %3488  ;;  %v3491_v53 = vpop.permute.xlu0 %3490  ;;  %v4237_v26 = vmin.f32 %v10324_v34, 0.0  ;;  %vm4221_vm4 = vcmp.gt.f32.partialorder %v10324_v34, 0.0 }
 0x4e6   : > { %v10313_v21 = vsel %vm1279_vm5, %v3547_v16, %v10037_v57  ;;  %5861 = vst.msk [vmem:[%s8463_s17 + $0x8] sm:$0xff] %vm1279_vm5, %v3547_v16  ;;  %5862 = vst.msk [vmem:[%s8463_s17 + $0x10] sm:$0xff] %vm1279_vm5, %v10308_v3  ;;  %v3533_v45 = vmul.f32 %v3489_v59, %v10108_v9  ;;  %v3534_v2 = vmul.f32 %v3491_v53, %v10121_v36  ;;  %v3770_v57 = vmin.f32 %v10207_v48, 0.0 }
 0x4e7   : > { %v10328_v62 = vsub.f32 0.0, %v10313_v21  ;;  %v3771_v36 = vmin.f32 %v10220_v52, 0.0  ;;  %v4253_v1 = vmul.f32 1.442695, %v4237_v26  ;;  %v10385_v26 = vld [vmem:[#allocation3 + $0xa1] sm:$0xff] }
 0x4e8   : > { %v10331_v61 = vadd.f32 %v8092_v58, %v3533_v45  ;;  %v10334_v9 = vadd.f32 %v8093_v18, %v3534_v2  ;;  %v3800_v19 = vmul.f32 1.442695, %v3770_v57  ;;  %v8097_v45 = vld [vmem:[%s8463_s17 + $0x40] sm:$0xff]  ;;  %v8098_v58 = vld [vmem:[%s8463_s17 + $0x48] sm:$0xff] }
 0x4e9   : > { %v3493_v23 = vpop.permute.xlu1 %3492  ;;  %v3495_v11 = vpop.permute.xlu0 %3494  ;;  %v4238_v47 = vmin.f32 %v10328_v62, 0.0  ;;  %v3802_v8 = vmul.f32 1.442695, %v3771_v36  ;;  %vm4222_vm7 = vcmp.gt.f32.partialorder %v10328_v62, 0.0 }
 0x4ea   : > { %5863 = vst.msk [vmem:[%s8463_s17 + $0x18] sm:$0xff] %vm1279_vm5, %v10331_v61  ;;  %5864 = vst.msk [vmem:[%s8463_s17 + $0x20] sm:$0xff] %vm1279_vm5, %v10334_v9  ;;  %v3535_v51 = vmul.f32 %v3493_v23, %v10135_v20  ;;  %v3536_v42 = vmul.f32 %v3495_v11, %v10115_v5  ;;  %7873 = vpow2.f32 %v3800_v19  ;;  %v8096_v5 = vld [vmem:[%s8463_s17 + $0x38] sm:$0xff]  ;;  %v8099_v11 = vld [vmem:[%s8463_s17 + $0x50] sm:$0xff] }
 0x4eb   : > { %v4255_v20 = vmul.f32 1.442695, %v4238_v47  ;;  %7875 = vpow2.f32 %v3802_v8  ;;  %v10387_v19 = vld [vmem:[#allocation3 + $0xb1] sm:$0xff] }
 0x4ec   : > { %v10349_v16 = vadd.f32 %v8094_v6, %v3535_v51  ;;  %v10352_v59 = vadd.f32 %v8095_v37, %v3536_v42  ;;  %7877 = vpow2.f32 %v4253_v1  ;;  %v10393_v51 = vsel %vm1279_vm5, %v10308_v3, %v10041_v13  ;;  %v8100_v42 = vld [vmem:[%s8463_s17 + $0x58] sm:$0xff] }
 0x4ed   : > { %v3497_v31 = vpop.permute.xlu1 %3496  ;;  %7879 = vpow2.f32 %v4255_v20  ;;  %v7310_v13 = vpack.i.bf16 %v10387_v19, %v10385_v26  ;;  %v10421_v20 = vsub.f32 0.0, %v10393_v51 }
 0x4ee   : > { %v3537_v50 = vmul.f32 %v3497_v31, %v10126_v17  ;;  %v3499_v27 = vpop.permute.xlu0 %3498  ;;  %5865 = vst.msk [vmem:[%s8463_s17 + $0x28] sm:$0xff] %vm1279_vm5, %v10349_v16  ;;  %5866 = vst.msk [vmem:[%s8463_s17 + $0x30] sm:$0xff] %vm1279_vm5, %v10352_v59 }
 0x4ef   : > { %v3538_v17 = vmul.f32 %v3499_v27, %v10148_v38  ;;  %v7866_v38 = vpop.eup %7865  ;;  %vm4223_vm8 = vcmp.gt.f32.partialorder %v10421_v20, 0.0 }
 0x4f0   : > { %v10355_v53 = vadd.f32 %v8096_v5, %v3537_v50  ;;  %v7868_v36 = vpop.eup %7867  ;;  %v6369_v4 = vadd.f32 -1.0, %v7866_v38 }
 0x4f1   : > { %v10368_v2 = vadd.f32 %v8097_v45, %v3538_v17  ;;  %v6370_v47 = vadd.f32 -1.0, %v7868_v36  ;;  %v7870_v8 = vpop.eup %7869  ;;  %v8102_v45 = vld [vmem:[%s8463_s17 + $0x68] sm:$0xff] }
 0x4f2   : > { %5867 = vst.msk [vmem:[%s8463_s17 + $0x38] sm:$0xff] %vm1279_vm5, %v10355_v53  ;;  %v3501_v55 = vpop.permute.xlu1 %3500  ;;  %v3503_v30 = vpop.permute.xlu0 %3502  ;;  %v10417_v6 = vsel %vm3750_vm14, %v10180_v49, %v6369_v4  ;;  %v10433_v49 = vsel %vm1279_vm5, %v10334_v9, %v10056_v44  ;;  %v10472_v4 = vsel %vm1279_vm5, %v10355_v53, %v10071_v22 }
 0x4f3   : > { %v3539_v10 = vmul.f32 %v3501_v55, %v10158_v46  ;;  %v3540_v57 = vmul.f32 %v3503_v30, %v10138_v54  ;;  %5868 = vst.msk [vmem:[%s8463_s17 + $0x40] sm:$0xff] %vm1279_vm5, %v10368_v2  ;;  %v7872_v50 = vpop.eup %7871  ;;  %v10427_v17 = vsel %vm3751_vm15, %v10187_v14, %v6370_v47  ;;  %v8101_v55 = vld [vmem:[%s8463_s17 + $0x60] sm:$0xff]  ;;  %v10443_v14 = vsel %vm1279_vm5, %v10349_v16, %v10058_v7  ;;  %v8103_v47 = vld [vmem:[%s8463_s17 + $0x70] sm:$0xff] }
 0x4f4   : > { %v4239_v16 = vmin.f32 %v10421_v20, 0.0 }
 0x4f5   : > { %v10376_v18 = vadd.f32 %v8098_v58, %v3539_v10  ;;  %v10382_v46 = vadd.f32 %v8099_v11, %v3540_v57  ;;  %v6372_v58 = vadd.f32 -1.0, %v7872_v50 }
 0x4f6   : > { %v3505_v23 = vpop.permute.xlu1 %3504 }
 0x4f7   : > { %5869 = vst.msk [vmem:[%s8463_s17 + $0x48] sm:$0xff] %vm1279_vm5, %v10376_v18  ;;  %v3541_v29 = vmul.f32 %v3505_v23, %v10151_v33  ;;  %v10398_v33 = vsel %vm1279_vm5, %v10331_v61, %v10043_v40  ;;  %5870 = vst.msk [vmem:[%s8463_s17 + $0x50] sm:$0xff] %vm1279_vm5, %v10382_v46  ;;  %v7874_v3 = vpop.eup %7873 }
 0x4f8   : > { %v3507_v54 = vpop.permute.xlu0 %3506  ;;  %v7876_v37 = vpop.eup %7875  ;;  %v10424_v5 = vsub.f32 0.0, %v10398_v33  ;;  %v6373_v36 = vadd.f32 -1.0, %v7874_v3 }
 0x4f9   : > { %v10404_v31 = vadd.f32 %v8100_v42, %v3541_v29  ;;  %v3542_v40 = vmul.f32 %v3507_v54, %v10167_v60  ;;  %v6371_v60 = vadd.f32 -1.0, %v7870_v8  ;;  %v7878_v44 = vpop.eup %7877  ;;  %v6374_v7 = vadd.f32 -1.0, %v7876_v37  ;;  %v8104_v42 = vld [vmem:[%s8463_s17 + $0x78] sm:$0xff] }
 0x4fa   : > { %v4240_v11 = vmin.f32 %v10424_v5, 0.0  ;;  %v10459_v29 = vsub.f32 0.0, %v10433_v49  ;;  %v10467_v54 = vsub.f32 0.0, %v10443_v14  ;;  %v3834_v22 = vsel %vm3754_vm2, %v10207_v48, %v6373_v36 }
 0x4fb   : > { %v3509_v27 = vpop.permute.xlu1 %3508  ;;  %5871 = vst.msk [vmem:[%s8463_s17 + $0x58] sm:$0xff] %vm1279_vm5, %v10404_v31  ;;  %v10436_v30 = vadd.f32 %v8101_v55, %v3542_v40  ;;  %v10501_v48 = vsub.f32 0.0, %v10472_v4  ;;  %v4257_v37 = vmul.f32 1.442695, %v4239_v16  ;;  %v10518_v55 = vsel %vm1279_vm5, %v10376_v18, %v10130_v24 }
 0x4fc   : > { %v3543_v61 = vmul.f32 %v3509_v27, %v10175_v12  ;;  %v3511_v1 = vpop.permute.xlu0 %3510  ;;  %v7540_v12 = vld [vmem:[%s8447_s1 + $0x80] sm:$0xff]   ;;  %v6407_v27 = vadd.f32 -1.0, %v7878_v44  ;;  %v10544_v36 = vsub.f32 0.0, %v10518_v55  ;;  %vm4224_vm9 = vcmp.gt.f32.partialorder %v10424_v5, 0.0 }
 0x4fd   : > { %v3544_v38 = vmul.f32 %v3511_v1, %v10165_v35  ;;  %6866 = vmatprep.subr.bf16.mxu0 %v7540_v12  ;;  %5872 = vst.msk [vmem:[%s8463_s17 + $0x60] sm:$0xff] %vm1279_vm5, %v10436_v30  ;;  %v7880_v35 = vpop.eup %7879  ;;  %v10511_v1 = vsel %vm1279_vm5, %v10404_v31, %v10146_v15  ;;  %7881 = vpow2.f32 %v4257_v37  ;;  %v10564_v16 = vsel %vm1279_vm5, %v10436_v30, %v10290_v28 }
 0x4fe   : > { %v3559_v10 = vadd.f32 %v8102_v45, %v3543_v61  ;;  %6867 = vmatpush3.bf16.msra.mxu0 %v7540_v12  ;;  %v6408_v53 = vadd.f32 -1.0, %v7880_v35  ;;  %v10506_v61 = vsel %vm1279_vm5, %v10368_v2, %v10118_v43  ;;  %v4242_v12 = vmin.f32 %v10467_v54, 0.0 }
 0x4ff   : > { %v3513_v57 = vpop.permute.xlu1 %3512  ;;  %v10475_v8 = vadd.f32 %v8103_v47, %v3544_v38  ;;  %v10523_v43 = vsel %vm1279_vm5, %v10382_v46, %v10128_v32  ;;  %v4301_v2 = vsel %vm4221_vm4, %v10324_v34, %v6407_v27  ;;  %v10528_v45 = vsub.f32 0.0, %v10506_v61 }
 0x500   : > { %5873 = vst.msk [vmem:[%s8463_s17 + $0x68] sm:$0xff] %vm1279_vm5, %v3559_v10  ;;  %v3545_v9 = vmul.f32 %v3513_v57, %v10173_v25  ;;  %v10452_v23 = vpop.permute.xlu0 %3622  ;;  %v10464_v25 = vsel %vm1279_vm5, %v10352_v59, %v10069_v41  ;;  %v3832_v41 = vsel %vm3752_vm0, %v10192_v39, %v6371_v60  ;;  %v3833_v59 = vsel %vm3753_vm1, %v10204_v0, %v6372_v58 }
 0x501   : > { %5874 = vst.msk [vmem:[%s8463_s17 + $0x70] sm:$0xff] %vm1279_vm5, %v10475_v8  ;;  %v3835_v39 = vsel %vm3755_vm3, %v10220_v52, %v6374_v7  ;;  %v10498_v0 = vsub.f32 0.0, %v10464_v25  ;;  %v4259_v60 = vmul.f32 1.442695, %v4240_v11  ;;  %v4241_v52 = vmin.f32 %v10459_v29, 0.0 }
 0x502   : > { %v3561_v50 = vadd.f32 %v8104_v42, %v3545_v9  ;;  %v4302_v15 = vsel %vm4222_vm7, %v10328_v62, %v6408_v53  ;;  %v10531_v38 = vsub.f32 0.0, %v10511_v1  ;;  %v10535_v24 = vsel %vm1279_vm5, %v3559_v10, %v10292_v63 }
 0x503   : > { %v3625_v3 = vpop.permute.xlu1 %3624  ;;  %v7305_v18 = vpack.i.bf16 %v4302_v15, %v4301_v2  ;;  %v4243_v32 = vmin.f32 %v10498_v0, 0.0  ;;  %v4244_v46 = vmin.f32 %v10501_v48, 0.0  ;;  %v4261_v58 = vmul.f32 1.442695, %v4241_v52 }
 0x504   : > { %5875 = vst.msk [vmem:[%s8463_s17 + $0x78] sm:$0xff] %vm1279_vm5, %v3561_v50  ;;  %v3985_v40 = vpop.permute.xlu0 %3984  ;;  %v10547_v44 = vsub.f32 0.0, %v10523_v43  ;;  %v4263_v63 = vmul.f32 1.442695, %v4242_v12  ;;  %v4245_v7 = vmin.f32 %v10528_v45, 0.0  ;;  %v4248_v35 = vmin.f32 %v10531_v38, 0.0 }
 0x505   : > { %v4022_v34 = vsel %vm1279_vm5, %v10417_v6, %v3985_v40  ;;  %7306 = vrot.lane.b32.xlu0 %v7305_v18, %s8248_s4  ;;  %v10553_v6 = vsub.f32 0.0, %v10535_v24  ;;  %v4265_v42 = vmul.f32 1.442695, %v4243_v32  ;;  %7883 = vpow2.f32 %v4259_v60  ;;  %v4046_v12 = vld [vmem:[#allocation3 + $0x10] sm:$0xff]  ;;  %v4078_v18 = vld [vmem:[#allocation3 + $0x20] sm:$0xff] }
 0x506   : > { %4039 = vst.msk [vmem:[#allocation3 + $0xc1] sm:$0xff] %vm1297_vm6, %v4022_v34  ;;  %v10575_v28 = vsel %vm1279_vm5, %v10475_v8, %v10452_v23  ;;  %7885 = vpow2.f32 %v4261_v58  ;;  %v4269_v40 = vmul.f32 1.442695, %v4245_v7  ;;  %v4275_v23 = vmul.f32 1.442695, %v4248_v35 }
 0x507   : > { %v3987_v31 = vpop.permute.xlu1 %3986  ;;  %7887 = vpow2.f32 %v4263_v63  ;;  %v10591_v60 = vsub.f32 0.0, %v10575_v28  ;;  %vm4225_vm10 = vcmp.gt.f32.partialorder %v10459_v29, 0.0  ;;  %vm4226_vm11 = vcmp.gt.f32.partialorder %v10467_v54, 0.0 }
 0x508   : > { %v3989_v57 = vpop.permute.xlu0 %3988  ;;  %v4023_v62 = vsel %vm1279_vm5, %v10427_v17, %v3987_v31  ;;  %v10556_v17 = vsel %vm1279_vm5, %v3561_v50, %v3625_v3  ;;  %v4267_v50 = vmul.f32 1.442695, %v4244_v46  ;;  %v4246_v3 = vmin.f32 %v10544_v36, 0.0 }
 0x509   : > { %4040 = vst.msk [vmem:[#allocation3 + $0xd1] sm:$0xff] %vm1297_vm6, %v4023_v62  ;;  %v4024_v10 = vsel %vm1279_vm5, %v3832_v41, %v3989_v57  ;;  %v4247_v41 = vmin.f32 %v10547_v44, 0.0  ;;  %v10578_v30 = vsub.f32 0.0, %v10556_v17  ;;  %7311 = vrot.lane.b32.xlu0 %v7310_v13, %s8248_s4  ;;  %7889 = vpow2.f32 %v4265_v42 }
 0x50a   : > { %4041 = vst.msk [vmem:[#allocation3 + $0xe1] sm:$0xff] %vm1297_vm6, %v4024_v10  ;;  %v4271_v2 = vmul.f32 1.442695, %v4246_v3  ;;  %7891 = vpow2.f32 %v4267_v50  ;;  %v4251_v7 = vmin.f32 %v10591_v60, 0.0  ;;  %v10601_v3 = vld [vmem:[#allocation3 + $0x40] sm:$0xff]  ;;  %vm4227_vm12 = vcmp.gt.f32.partialorder %v10498_v0, 0.0 }
 0x50b   : > { %v3991_v9 = vpop.permute.xlu1 %3990  ;;  %v4273_v15 = vmul.f32 1.442695, %v4247_v41  ;;  %v4252_v31 = vmin.f32 %v10578_v30, 0.0  ;;  %7893 = vpow2.f32 %v4275_v23  ;;  %v7882_v41 = vpop.eup %7881  ;;  %vm4228_vm13 = vcmp.gt.f32.partialorder %v10501_v48, 0.0 }
 0x50c   : > { %v4025_v11 = vsel %vm1279_vm5, %v3833_v59, %v3991_v9  ;;  %v3993_v47 = vpop.permute.xlu0 %3992  ;;  %v10586_v59 = vsub.f32 0.0, %v10564_v16  ;;  %7895 = vpow2.f32 %v4269_v40  ;;  %vm4230_vm14 = vcmp.gt.f32.partialorder %v10544_v36, 0.0 }
 0x50d   : > { %4042 = vst.msk [vmem:[#allocation3 + $0xf1] sm:$0xff] %vm1297_vm6, %v4025_v11  ;;  %v4026_v27 = vsel %vm1279_vm5, %v3834_v22, %v3993_v47  ;;  %v4250_v22 = vmin.f32 %v10553_v6, 0.0  ;;  %v4283_v47 = vmul.f32 1.442695, %v4252_v31  ;;  %7897 = vpow2.f32 %v4271_v2 }
 0x50e   : > { %4043 = vst.msk [vmem:[#allocation3 + $0x101] sm:$0xff] %vm1297_vm6, %v4026_v27  ;;  %v4249_v57 = vmin.f32 %v10586_v59, 0.0  ;;  %v4079_v27 = vld [vmem:[#allocation3 + $0x30] sm:$0xff]  ;;  %7899 = vpow2.f32 %v4273_v15  ;;  %v6409_v2 = vadd.f32 -1.0, %v7882_v41  ;;  %vm4232_vm15 = vcmp.gt.f32.partialorder %v10531_v38, 0.0 }
 0x50f   : > { %v3995_v53 = vpop.permute.xlu1 %3994  ;;  %v4279_v32 = vmul.f32 1.442695, %v4250_v22  ;;  %v10603_v22 = vld [vmem:[#allocation3 + $0x91] sm:$0xff]  ;;  %7901 = vpow2.f32 %v4283_v47  ;;  %vm4229_vm0 = vcmp.gt.f32.partialorder %v10528_v45, 0.0  ;;  %vm4231_vm1 = vcmp.gt.f32.partialorder %v10547_v44, 0.0 }
 0x510   : > { %v4027_v8 = vsel %vm1279_vm5, %v3835_v39, %v3995_v53  ;;  %v7267_v37 = vpop.permute.xlu0 %7266  ;;  %v4045_v39 = vld [vmem:[#allocation3] sm:$0xff]  ;;  %v7320_v15 = vpack.i.bf16 %v10385_v26, %v10603_v22  ;;  %vm4234_vm2 = vcmp.gt.f32.partialorder %v10553_v6, 0.0  ;;  %vm4233_vm3 = vcmp.gt.f32.partialorder %v10586_v59, 0.0 }
 0x511   : > { %4044 = vst.msk [vmem:[#allocation3 + $0x111] sm:$0xff] %vm1297_vm6, %v4027_v8  ;;  %v7269_v13 = vunpack.i.h.bf16 %v7267_v37  ;;  %v7268_v52 = vunpack.i.l.bf16 %v7267_v37  ;;  %v4277_v37 = vmul.f32 1.442695, %v4249_v57  ;;  %7903 = vpow2.f32 %v4279_v32 }
 0x512   : > { %vm4236_vm4 = vcmp.gt.f32.partialorder %v10578_v30, 0.0  ;;  %vm4235_vm7 = vcmp.gt.f32.partialorder %v10591_v60, 0.0 }
 0x513   : > { %v7272_v46 = vpop.permute.xlu1 %7271  ;;  %v4541_v34 = vsel %vm1297_vm6, %v4046_v12, %v7268_v52  ;;  %v4542_v62 = vsel %vm1297_vm6, %v4078_v18, %v7269_v13  ;;  %7905 = vpow2.f32 %v4277_v37 }
 0x514   : > { %v7274_v58 = vunpack.i.h.bf16 %v7272_v46  ;;  %v7273_v63 = vunpack.i.l.bf16 %v7272_v46  ;;  %v7277_v10 = vpop.permute.xlu0 %7276  ;;  %v4558_v9 = vpack.c.bf16 %v4542_v62, %v4541_v34  ;;  %v4281_v46 = vmul.f32 1.442695, %v4251_v7 }
 0x515   : > { %v7279_v35 = vunpack.i.h.bf16 %v7277_v10  ;;  %v7278_v11 = vunpack.i.l.bf16 %v7277_v10 }
 0x516   : > { %v4526_v42 = vsel %vm1297_vm6, %v4046_v12, %v7274_v58  ;;  %v4525_v50 = vsel %vm1297_vm6, %v4045_v39, %v7273_v63  ;;  %4763 = vmatprep.mubr.bf16.mxu1 %v4558_v9  ;;  %v7884_v39 = vpop.eup %7883  ;;  %v4303_v9 = vsel %vm4223_vm8, %v10421_v20, %v6409_v2  ;;  %7907 = vpow2.f32 %v4281_v46 }
 0x517   : > { %v4557_v53 = vpack.c.bf16 %v4526_v42, %v4525_v50  ;;  %v7282_v23 = vpop.permute.xlu1 %7281  ;;  %v4543_v8 = vsel %vm1297_vm6, %v4079_v27, %v7278_v11  ;;  %v4544_v40 = vsel %vm1297_vm6, %v10601_v3, %v7279_v35  ;;  %v6410_v34 = vadd.f32 -1.0, %v7884_v39  ;;  %v7886_v57 = vpop.eup %7885  ;;  %v4072_v39 = vld [vmem:[#allocation3 + $0xc1] sm:$0xff] }
 0x518   : > { %v7284_v13 = vunpack.i.h.bf16 %v7282_v23  ;;  %v7283_v52 = vunpack.i.l.bf16 %v7282_v23  ;;  %v7287_v12 = vpop.permute.xlu0 %7286  ;;  %v4561_v31 = vpack.c.bf16 %v4544_v40, %v4543_v8  ;;  %v7888_v10 = vpop.eup %7887  ;;  %v6411_v7 = vadd.f32 -1.0, %v7886_v57  ;;  %v10626_v23 = vld [vmem:[#allocation3 + $0xd1] sm:$0xff] }
 0x519   : > { %4764 = vmatmul.mubr.bf16.vlgmr.msra.gmra.mxu1 %v4557_v53  ;;  %v4304_v26 = vsel %vm4224_vm9, %v10424_v5, %v6410_v34  ;;  %v7288_v35 = vunpack.i.l.bf16 %v7287_v12  ;;  %v7890_v11 = vpop.eup %7889  ;;  %v6412_v32 = vadd.f32 -1.0, %v7888_v10  ;;  %v7289_v42 = vunpack.i.h.bf16 %v7287_v12  ;;  %v4081_v40 = vld [vmem:[#allocation3 + $0x50] sm:$0xff]  ;;  %v4082_v12 = vld [vmem:[#allocation3 + $0x60] sm:$0xff] }
 0x51a   : > { %4771 = vmatprep.mubr.bf16.mxu1 %v4561_v31  ;;  %v4527_v58 = vsel %vm1297_vm6, %v4078_v18, %v7283_v52  ;;  %v4528_v63 = vsel %vm1297_vm6, %v4079_v27, %v7284_v13  ;;  %v7315_v47 = vpack.i.bf16 %v4304_v26, %v4303_v9  ;;  %v7892_v41 = vpop.eup %7891  ;;  %v6413_v22 = vadd.f32 -1.0, %v7890_v11 }
 0x51b   : > { %v7292_v62 = vpop.permute.xlu1 %7291  ;;  %v4560_v53 = vpack.c.bf16 %v4528_v63, %v4527_v58  ;;  %v4305_v20 = vsel %vm4225_vm10, %v10459_v29, %v6411_v7  ;;  %v4306_v5 = vsel %vm4226_vm11, %v10467_v54, %v6412_v32  ;;  %v6414_v27 = vadd.f32 -1.0, %v7892_v41  ;;  %v7894_v37 = vpop.eup %7893  ;;  %v4083_v7 = vld [vmem:[#allocation3 + $0x70] sm:$0xff] }
 0x51c   : > { %v7297_v50 = vpop.permute.xlu0 %7296  ;;  %v7294_v18 = vunpack.i.h.bf16 %v7292_v62  ;;  %7316 = vrot.lane.b32.xlu1 %v7315_v47, %s8248_s4  ;;  %v7293_v8 = vunpack.i.l.bf16 %v7292_v62  ;;  %v7325_v13 = vpack.i.bf16 %v4306_v5, %v4305_v20  ;;  %v4545_v31 = vsel %vm1297_vm6, %v4081_v40, %v7288_v35  ;;  %v7896_v2 = vpop.eup %7895  ;;  %v4084_v47 = vld [vmem:[#allocation3 + $0x80] sm:$0xff] }
 0x51d   : > { %v7298_v52 = vunpack.i.l.bf16 %v7297_v50  ;;  %v4307_v29 = vsel %vm4227_vm12, %v10498_v0, %v6413_v22  ;;  %v4308_v54 = vsel %vm4228_vm13, %v10501_v48, %v6414_v27  ;;  %v7299_v46 = vunpack.i.h.bf16 %v7297_v50  ;;  %v7898_v57 = vpop.eup %7897 }
 0x51e   : > { %v4546_v34 = vsel %vm1297_vm6, %v4082_v12, %v7289_v42  ;;  %7326 = vrot.lane.b32.xlu0 %v7325_v13, %s8248_s4  ;;  %v7335_v62 = vpack.i.bf16 %v4308_v54, %v4307_v29  ;;  %v7330_v58 = vpack.i.bf16 %v10626_v23, %v4072_v39  ;;  %v7900_v10 = vpop.eup %7899  ;;  %v6415_v9 = vadd.f32 -1.0, %v7896_v2  ;;  %v4074_v13 = vld [vmem:[#allocation3 + $0xe1] sm:$0xff] }
 0x51f   : > { %v4564_v63 = vpack.c.bf16 %v4546_v34, %v4545_v31  ;;  %v6416_v26 = vadd.f32 -1.0, %v7898_v57  ;;  %v4529_v0 = vsel %vm1297_vm6, %v10601_v3, %v7293_v8  ;;  %v4530_v48 = vsel %vm1297_vm6, %v4081_v40, %v7294_v18  ;;  %v7302_v11 = vpop.permute.xlu1 %7301  ;;  %v7902_v50 = vpop.eup %7901 }
 0x520   : > { %7321 = vrot.lane.b32.xlu1 %v7320_v15, %s8248_s4  ;;  %v6418_v35 = vadd.f32 -1.0, %v7894_v37  ;;  %v4547_v32 = vsel %vm1297_vm6, %v4083_v7, %v7298_v52  ;;  %v4548_v15 = vsel %vm1297_vm6, %v4084_v47, %v7299_v46  ;;  %v6417_v3 = vadd.f32 -1.0, %v7900_v10  ;;  %v7904_v22 = vpop.eup %7903 }
 0x521   : > { %4772 = vmatmul.mubr.bf16.gmra.mxu1 %v4560_v53  ;;  %v4310_v42 = vsel %vm4230_vm14, %v10544_v36, %v6416_v26  ;;  %v4563_v41 = vpack.c.bf16 %v4530_v48, %v4529_v0  ;;  %v4309_v18 = vsel %vm4229_vm0, %v10528_v45, %v6415_v9  ;;  %v4106_v53 = vld [vmem:[#allocation3 + $0xf1] sm:$0xff]  ;;  %v7304_v20 = vunpack.i.h.bf16 %v7302_v11  ;;  %v7906_v27 = vpop.eup %7905 }
 0x522   : > { %4779 = vmatprep.mubr.bf16.mxu1 %v4564_v63  ;;  %7331 = vrot.lane.b32.xlu0 %v7330_v58, %s8248_s4  ;;  %v7303_v5 = vunpack.i.l.bf16 %v7302_v11  ;;  %v4567_v36 = vpack.c.bf16 %v4548_v15, %v4547_v32  ;;  %v4312_v8 = vsel %vm4232_vm15, %v10531_v38, %v6418_v35  ;;  %v7345_v40 = vpack.i.bf16 %v4310_v42, %v4309_v18  ;;  %v4076_v63 = vld [vmem:[#allocation3 + $0x101] sm:$0xff] }
 0x523   : > { %v7340_v37 = vpack.i.bf16 %v4072_v39, %v10387_v19  ;;  %v6420_v52 = vadd.f32 -1.0, %v7904_v22  ;;  %v7908_v31 = vpop.eup %7907  ;;  %v4311_v2 = vsel %vm4231_vm1, %v10547_v44, %v6417_v3  ;;  %v7350_v45 = vpack.i.bf16 %v4106_v53, %v4074_v13 }
 0x524   : > { %7336 = vrot.lane.b32.xlu1 %v7335_v62, %s8248_s4  ;;  %v7355_v29 = vpack.i.bf16 %v4312_v8, %v4311_v2  ;;  %v6419_v54 = vadd.f32 -1.0, %v7906_v27  ;;  %v4531_v38 = vsel %vm1297_vm6, %v4082_v12, %v7303_v5  ;;  %v4532_v46 = vsel %vm1297_vm6, %v4083_v7, %v7304_v20  ;;  %v4108_v12 = vld [vmem:[#allocation3 + $0x111] sm:$0xff] }
 0x525   : > { %v6422_v19 = vadd.f32 -1.0, %v7902_v50  ;;  %v4314_v39 = vsel %vm4234_vm2, %v10553_v6, %v6420_v52  ;;  %v6421_v34 = vadd.f32 -1.0, %v7908_v31  ;;  %v4566_v44 = vpack.c.bf16 %v4532_v46, %v4531_v38 }
 0x526   : > { %7346 = vrot.lane.b32.xlu0 %v7345_v40, %s8248_s4  ;;  %v4313_v57 = vsel %vm4233_vm3, %v10586_v59, %v6419_v54  ;;  %v7360_v6 = vpack.i.bf16 %v4074_v13, %v10626_v23  ;;  %v7370_v9 = vpack.i.bf16 %v4108_v12, %v4076_v63  ;;  %v4125_v59 = vmin.f32 %v10304_v56, 0.0 }
 0x527   : > { %v4316_v62 = vsel %vm4236_vm4, %v10578_v30, %v6422_v19  ;;  %v7365_v58 = vpack.i.bf16 %v4314_v39, %v4313_v57  ;;  %v4315_v10 = vsel %vm4235_vm7, %v10591_v60, %v6421_v34  ;;  %v7380_v30 = vpack.i.bf16 %v4076_v63, %v4106_v53 }
 0x528   : > { %7341 = vrot.lane.b32.xlu1 %v7340_v37, %s8248_s4  ;;  %v7375_v26 = vpack.i.bf16 %v4316_v62, %v4315_v10  ;;  %v4126_v23 = vmin.f32 %v10313_v21, 0.0  ;;  %v4141_v0 = vmul.f32 1.442695, %v4125_v59  ;;  %v4127_v35 = vmin.f32 %v10393_v51, 0.0 }
 0x529   : > { %4780 = vmatmul.mubr.bf16.gmra.mxu1 %v4563_v41  ;;  %v4128_v11 = vmin.f32 %v10398_v33, 0.0  ;;  %v4129_v47 = vmin.f32 %v10433_v49, 0.0  ;;  %v4130_v50 = vmin.f32 %v10443_v14, 0.0  ;;  %vm4109_vm8 = vcmp.gt.f32.partialorder %v10304_v56, 0.0 }
 0x52a   : > { %4787 = vmatprep.mubr.bf16.mxu1 %v4567_v36  ;;  %7351 = vrot.lane.b32.xlu0 %v7350_v45, %s8248_s4  ;;  %v4143_v48 = vmul.f32 1.442695, %v4126_v23  ;;  %7909 = vpow2.f32 %v4141_v0  ;;  %v4145_v15 = vmul.f32 1.442695, %v4127_v35  ;;  %vm4110_vm9 = vcmp.gt.f32.partialorder %v10313_v21, 0.0 }
 0x52b   : > { %v4147_v3 = vmul.f32 1.442695, %v4128_v11  ;;  %v4149_v53 = vmul.f32 1.442695, %v4129_v47  ;;  %v4131_v20 = vmin.f32 %v10464_v25, 0.0  ;;  %v4132_v37 = vmin.f32 %v10472_v4, 0.0 }
 0x52c   : > { %7356 = vrot.lane.b32.xlu1 %v7355_v29, %s8248_s4  ;;  %7911 = vpow2.f32 %v4143_v48  ;;  %v4151_v27 = vmul.f32 1.442695, %v4130_v50  ;;  %v4133_v29 = vmin.f32 %v10506_v61, 0.0  ;;  %v4134_v54 = vmin.f32 %v10518_v55, 0.0 }
 0x52d   : > { %7913 = vpow2.f32 %v4145_v15  ;;  %v4153_v45 = vmul.f32 1.442695, %v4131_v20  ;;  %v4155_v19 = vmul.f32 1.442695, %v4132_v37  ;;  %v4135_v57 = vmin.f32 %v10523_v43, 0.0  ;;  %v4053_v37 = vld [vmem:[#allocation3 + $0x90] sm:$0xff] }
 0x52e   : > { %7366 = vrot.lane.b32.xlu0 %v7365_v58, %s8248_s4  ;;  %7915 = vpow2.f32 %v4147_v3  ;;  %v4157_v34 = vmul.f32 1.442695, %v4133_v29  ;;  %v4136_v12 = vmin.f32 %v10511_v1, 0.0  ;;  %v4137_v62 = vmin.f32 %v10564_v16, 0.0 }
 0x52f   : > { %7917 = vpow2.f32 %v4149_v53  ;;  %v4138_v58 = vmin.f32 %v10535_v24, 0.0  ;;  %v4140_v59 = vmin.f32 %v10556_v17, 0.0  ;;  %vm4112_vm10 = vcmp.gt.f32.partialorder %v10398_v33, 0.0 }
 0x530   : > { %7361 = vrot.lane.b32.xlu1 %v7360_v6, %s8248_s4  ;;  %7919 = vpow2.f32 %v4151_v27  ;;  %v4161_v6 = vmul.f32 1.442695, %v4135_v57  ;;  %v4163_v10 = vmul.f32 1.442695, %v4136_v12  ;;  %vm4111_vm11 = vcmp.gt.f32.partialorder %v10393_v51, 0.0 }
 0x531   : > { %4788 = vmatmul.mubr.bf16.gmra.mxu1 %v4566_v44  ;;  %7921 = vpow2.f32 %v4153_v45  ;;  %v4159_v44 = vmul.f32 1.442695, %v4134_v54  ;;  %v4167_v23 = vmul.f32 1.442695, %v4138_v58  ;;  %v4171_v11 = vmul.f32 1.442695, %v4140_v59 }
 0x532   : > { %7371 = vrot.lane.b32.xlu0 %v7370_v9, %s8248_s4  ;;  %7923 = vpow2.f32 %v4155_v19  ;;  %v4139_v9 = vmin.f32 %v10575_v28, 0.0  ;;  %vm4113_vm12 = vcmp.gt.f32.partialorder %v10433_v49, 0.0  ;;  %vm4114_vm13 = vcmp.gt.f32.partialorder %v10443_v14, 0.0  ;;  %v4087_v58 = vld [vmem:[#allocation3 + $0xc0] sm:$0xff] }
 0x533   : > { %7925 = vpow2.f32 %v4157_v34  ;;  %vm4115_vm14 = vcmp.gt.f32.partialorder %v10464_v25, 0.0  ;;  %vm4116_vm15 = vcmp.gt.f32.partialorder %v10472_v4, 0.0  ;;  %vm4117_vm0 = vcmp.gt.f32.partialorder %v10506_v61, 0.0 }
 0x534   : > { %7376 = vrot.lane.b32.xlu1 %v7375_v26, %s8248_s4  ;;  %7927 = vpow2.f32 %v4159_v44  ;;  %vm4118_vm1 = vcmp.gt.f32.partialorder %v10518_v55, 0.0  ;;  %vm4119_vm2 = vcmp.gt.f32.partialorder %v10523_v43, 0.0  ;;  %vm4120_vm3 = vcmp.gt.f32.partialorder %v10511_v1, 0.0 }
 0x535   : > { %7929 = vpow2.f32 %v4161_v6  ;;  %v10721_v6 = vld [vmem:[#allocation3 + $0xd0] sm:$0xff]  ;;  %vm4121_vm4 = vcmp.gt.f32.partialorder %v10564_v16, 0.0  ;;  %vm4122_vm7 = vcmp.gt.f32.partialorder %v10535_v24, 0.0 }
 0x536   : > { %7931 = vpow2.f32 %v4163_v10 }
 0x537   : > { %v7910_v60 = vpop.eup %7909 }
 0x538   : > { %7381 = vrot.lane.b32.xlu1 %v7380_v30, %s8248_s4  ;;  %v6391_v32 = vadd.f32 -1.0, %v7910_v60  ;;  %v4165_v30 = vmul.f32 1.442695, %v4137_v62  ;;  %v4169_v60 = vmul.f32 1.442695, %v4139_v9 }
 0x539   : > { %v7912_v7 = vpop.eup %7911 }
 0x53a   : > { %v6392_v42 = vadd.f32 -1.0, %v7912_v7  ;;  %v4189_v5 = vsel %vm4109_vm8, %v10304_v56, %v6391_v32  ;;  %v10689_v56 = vld [vmem:[#allocation3 + $0xa0] sm:$0xff]  ;;  %v7914_v63 = vpop.eup %7913  ;;  %7933 = vpow2.f32 %v4165_v30  ;;  %vm4123_vm8 = vcmp.gt.f32.partialorder %v10575_v28, 0.0 }
 0x53b   : > { %v7916_v26 = vpop.eup %7915  ;;  %v6393_v35 = vadd.f32 -1.0, %v7914_v63  ;;  %7935 = vpow2.f32 %v4167_v23 }
 0x53c   : > { %v4190_v36 = vsel %vm4110_vm9, %v10313_v21, %v6392_v42  ;;  %v10691_v21 = vld [vmem:[#allocation3 + $0xb0] sm:$0xff]  ;;  %v7918_v0 = vpop.eup %7917  ;;  %v6394_v7 = vadd.f32 -1.0, %v7916_v26  ;;  %7937 = vpow2.f32 %v4169_v60  ;;  %vm4124_vm9 = vcmp.gt.f32.partialorder %v10556_v17, 0.0 }
 0x53d   : > { %v7920_v48 = vpop.eup %7919  ;;  %v6395_v15 = vadd.f32 -1.0, %v7918_v0  ;;  %7939 = vpow2.f32 %v4171_v11 }
 0x53e   : > { %v6396_v50 = vadd.f32 -1.0, %v7920_v48  ;;  %v7922_v3 = vpop.eup %7921 }
 0x53f   : > { %v6397_v54 = vadd.f32 -1.0, %v7922_v3 }
 0x577   : > { %v7307_v41 = vpop.permute.xlu0 %7306 }
 0x578   : > { %v7309_v22 = vunpack.i.h.bf16 %v7307_v41  ;;  %v7308_v18 = vunpack.i.l.bf16 %v7307_v41  ;;  %v4192_v41 = vsel %vm4112_vm10, %v10398_v33, %v6394_v7 }
 0x57a   : > { %v4381_v8 = vsel %vm1297_vm6, %v4189_v5, %v7308_v18  ;;  %v4382_v40 = vsel %vm1297_vm6, %v4190_v36, %v7309_v22  ;;  %v4191_v22 = vsel %vm4111_vm11, %v10393_v51, %v6393_v35  ;;  %v7924_v18 = vpop.eup %7923  ;;  %v4193_v51 = vsel %vm4113_vm12, %v10433_v49, %v6395_v15 }
 0x57b   : > { %v7312_v13 = vpop.permute.xlu0 %7311  ;;  %v4559_v52 = vpack.c.bf16 %v4382_v40, %v4381_v8 }
 0x57c   : > { %v7314_v31 = vunpack.i.h.bf16 %v7312_v13  ;;  %v7313_v2 = vunpack.i.l.bf16 %v7312_v13  ;;  %v7926_v13 = vpop.eup %7925 }
 0x57d   : > { %6868 = vmatprep.mubr.bf16.mxu0 %v4559_v52  ;;  %v6399_v63 = vadd.f32 -1.0, %v7926_v13 }
 0x57e   : > { %v4549_v38 = vsel %vm1297_vm6, %v10689_v56, %v7313_v2  ;;  %v4550_v46 = vsel %vm1297_vm6, %v10691_v21, %v7314_v31  ;;  %v4194_v31 = vsel %vm4114_vm13, %v10443_v14, %v6396_v50  ;;  %v7928_v2 = vpop.eup %7927 }
 0x57f   : > { %v4570_v39 = vpack.c.bf16 %v4550_v46, %v4549_v38  ;;  %v6398_v38 = vadd.f32 -1.0, %v7924_v18  ;;  %v6400_v10 = vadd.f32 -1.0, %v7928_v2  ;;  %v7930_v9 = vpop.eup %7929  ;;  %v4197_v50 = vsel %vm4117_vm0, %v10506_v61, %v6399_v63 }
 0x580   : > { %v7932_v23 = vpop.eup %7931  ;;  %v6401_v18 = vadd.f32 -1.0, %v7930_v9 }
 0x581   : > { %4795 = vmatprep.mubr.bf16.mxu1 %v4570_v39  ;;  %v4196_v26 = vsel %vm4116_vm15, %v10472_v4, %v6398_v38  ;;  %v7934_v35 = vpop.eup %7933  ;;  %v4198_v3 = vsel %vm4118_vm1, %v10518_v55, %v6400_v10 }
 0x582   : > { %v7936_v4 = vpop.eup %7935  ;;  %v6403_v2 = vadd.f32 -1.0, %v7934_v35  ;;  %v4092_v35 = vld [vmem:[#allocation3 + $0x110] sm:$0xff] }
 0x58e   : > { %v7317_v47 = vpop.permute.xlu1 %7316 }
 0x58f   : > { %v7319_v32 = vunpack.i.h.bf16 %v7317_v47  ;;  %v7318_v42 = vunpack.i.l.bf16 %v7317_v47 }
 0x590   : > { %v7327_v5 = vpop.permute.xlu0 %7326 }
 0x591   : > { %v4384_v53 = vsel %vm1297_vm6, %v4192_v41, %v7319_v32  ;;  %v4383_v20 = vsel %vm1297_vm6, %v4191_v22, %v7318_v42  ;;  %v7329_v8 = vunpack.i.h.bf16 %v7327_v5  ;;  %v7328_v40 = vunpack.i.l.bf16 %v7327_v5 }
 0x592   : > { %v4562_v36 = vpack.c.bf16 %v4384_v53, %v4383_v20  ;;  %v7322_v27 = vpop.permute.xlu1 %7321  ;;  %v6402_v53 = vadd.f32 -1.0, %v7932_v23  ;;  %v7938_v20 = vpop.eup %7937 }
 0x593   : > { %v7324_v33 = vunpack.i.h.bf16 %v7322_v27  ;;  %v7323_v52 = vunpack.i.l.bf16 %v7322_v27  ;;  %v4385_v45 = vsel %vm1297_vm6, %v4193_v51, %v7328_v40  ;;  %v4386_v29 = vsel %vm1297_vm6, %v4194_v31, %v7329_v8  ;;  %v7940_v61 = vpop.eup %7939  ;;  %v4089_v51 = vld [vmem:[#allocation3 + $0xe0] sm:$0xff]  ;;  %v4090_v31 = vld [vmem:[#allocation3 + $0xf0] sm:$0xff] }
 0x594   : > { %6869 = vmatmul.mubr.bf16.vlgmr.msra.gmra.mxu0 %v4562_v36  ;;  %v4565_v39 = vpack.c.bf16 %v4386_v29, %v4385_v45  ;;  %v7332_v34 = vpop.permute.xlu0 %7331  ;;  %v4199_v45 = vsel %vm4119_vm2, %v10523_v43, %v6401_v18  ;;  %v4200_v29 = vsel %vm4120_vm3, %v10511_v1, %v6402_v53  ;;  %v6406_v63 = vadd.f32 -1.0, %v7940_v61 }
 0x595   : > { %v4533_v46 = vsel %vm1297_vm6, %v4053_v37, %v7323_v52  ;;  %v4534_v19 = vsel %vm1297_vm6, %v10689_v56, %v7324_v33  ;;  %v7334_v14 = vunpack.i.h.bf16 %v7332_v34  ;;  %v7333_v57 = vunpack.i.l.bf16 %v7332_v34 }
 0x596   : > { %v7337_v49 = vpop.permute.xlu1 %7336  ;;  %v4569_v44 = vpack.c.bf16 %v4534_v19, %v4533_v46  ;;  %6872 = vmatprep.mubr.bf16.mxu0 %v4565_v39  ;;  %v4195_v56 = vsel %vm4115_vm14, %v10464_v25, %v6397_v54 }
 0x597   : > { %v7339_v12 = vunpack.i.h.bf16 %v7337_v49  ;;  %v7338_v62 = vunpack.i.l.bf16 %v7337_v49  ;;  %v4551_v30 = vsel %vm1297_vm6, %v4087_v58, %v7333_v57  ;;  %v4552_v59 = vsel %vm1297_vm6, %v10721_v6, %v7334_v14 }
 0x598   : > { %4796 = vmatmul.mubr.bf16.gmra.mxu1 %v4569_v44  ;;  %v7347_v60 = vpop.permute.xlu0 %7346  ;;  %v4573_v7 = vpack.c.bf16 %v4552_v59, %v4551_v30 }
 0x599   : > { %v4387_v0 = vsel %vm1297_vm6, %v4195_v56, %v7338_v62  ;;  %v4388_v48 = vsel %vm1297_vm6, %v4196_v26, %v7339_v12  ;;  %v7349_v25 = vunpack.i.h.bf16 %v7347_v60  ;;  %v7348_v32 = vunpack.i.l.bf16 %v7347_v60 }
 0x59a   : > { %v7342_v11 = vpop.permute.xlu1 %7341  ;;  %v4568_v47 = vpack.c.bf16 %v4388_v48, %v4387_v0  ;;  %4803 = vmatprep.mubr.bf16.mxu1 %v4573_v7  ;;  %v4201_v12 = vsel %vm4121_vm4, %v10564_v16, %v6403_v2  ;;  %v4091_v7 = vld [vmem:[#allocation3 + $0x100] sm:$0xff] }
 0x59b   : > { %v7344_v42 = vunpack.i.h.bf16 %v7342_v11  ;;  %v7343_v15 = vunpack.i.l.bf16 %v7342_v11  ;;  %v4389_v41 = vsel %vm1297_vm6, %v4197_v50, %v7348_v32  ;;  %v4390_v22 = vsel %vm1297_vm6, %v4198_v3, %v7349_v25 }
 0x59c   : > { %6873 = vmatmul.mubr.bf16.gmra.mxu0 %v4568_v47  ;;  %v7352_v27 = vpop.permute.xlu0 %7351  ;;  %v4571_v8 = vpack.c.bf16 %v4390_v22, %v4389_v41 }
 0x59d   : > { %v4535_v5 = vsel %vm1297_vm6, %v10691_v21, %v7343_v15  ;;  %v4536_v36 = vsel %vm1297_vm6, %v4087_v58, %v7344_v42  ;;  %v7354_v37 = vunpack.i.h.bf16 %v7352_v27  ;;  %v7353_v13 = vunpack.i.l.bf16 %v7352_v27 }
 0x59e   : > { %v7357_v40 = vpop.permute.xlu1 %7356  ;;  %v4572_v55 = vpack.c.bf16 %v4536_v36, %v4535_v5  ;;  %6876 = vmatprep.mubr.bf16.mxu0 %v4571_v8  ;;  %v6404_v21 = vadd.f32 -1.0, %v7936_v4  ;;  %v6405_v58 = vadd.f32 -1.0, %v7938_v20 }
 0x59f   : > { %v7359_v33 = vunpack.i.h.bf16 %v7357_v40  ;;  %v7358_v52 = vunpack.i.l.bf16 %v7357_v40  ;;  %v4553_v54 = vsel %vm1297_vm6, %v4089_v51, %v7353_v13  ;;  %v4554_v38 = vsel %vm1297_vm6, %v4090_v31, %v7354_v37 }
 0x5a0   : > { %4804 = vmatmul.mubr.bf16.gmra.mxu1 %v4572_v55  ;;  %v7367_v39 = vpop.permute.xlu0 %7366  ;;  %v4576_v34 = vpack.c.bf16 %v4554_v38, %v4553_v54  ;;  %v4202_v62 = vsel %vm4122_vm7, %v10535_v24, %v6404_v21  ;;  %v4203_v11 = vsel %vm4123_vm8, %v10575_v28, %v6405_v58  ;;  %v10775_v21 = vld [vmem:[%s697_s20] ss:$0 sm:$0xff] }
 0x5a1   : > { %v4391_v46 = vsel %vm1297_vm6, %v4199_v45, %v7358_v52  ;;  %v4392_v19 = vsel %vm1297_vm6, %v4200_v29, %v7359_v33  ;;  %v7369_v14 = vunpack.i.h.bf16 %v7367_v39  ;;  %v7368_v57 = vunpack.i.l.bf16 %v7367_v39 }
 0x5a2   : > { %v7362_v49 = vpop.permute.xlu1 %7361  ;;  %v4574_v44 = vpack.c.bf16 %v4392_v19, %v4391_v46  ;;  %4811 = vmatprep.mubr.bf16.mxu1 %v4576_v34 }
 0x5a3   : > { %v7364_v43 = vunpack.i.h.bf16 %v7362_v49  ;;  %v7363_v1 = vunpack.i.l.bf16 %v7362_v49  ;;  %v4393_v10 = vsel %vm1297_vm6, %v4201_v12, %v7368_v57  ;;  %v4394_v9 = vsel %vm1297_vm6, %v4202_v62, %v7369_v14 }
 0x5a4   : > { %6877 = vmatmul.mubr.bf16.gmra.mxu0 %v4574_v44  ;;  %v7372_v30 = vpop.permute.xlu0 %7371  ;;  %v4577_v59 = vpack.c.bf16 %v4394_v9, %v4393_v10 }
 0x5a5   : > { %v4537_v56 = vsel %vm1297_vm6, %v10721_v6, %v7363_v1  ;;  %v4538_v26 = vsel %vm1297_vm6, %v4089_v51, %v7364_v43  ;;  %v7374_v48 = vunpack.i.h.bf16 %v7372_v30  ;;  %v7373_v16 = vunpack.i.l.bf16 %v7372_v30 }
 0x5a6   : > { %v7377_v23 = vpop.permute.xlu1 %7376  ;;  %v4575_v0 = vpack.c.bf16 %v4538_v26, %v4537_v56  ;;  %6880 = vmatprep.mubr.bf16.mxu0 %v4577_v59  ;;  %v4204_v6 = vsel %vm4124_vm9, %v10556_v17, %v6406_v63 }
 0x5a7   : > { %v7379_v24 = vunpack.i.h.bf16 %v7377_v23  ;;  %v7378_v60 = vunpack.i.l.bf16 %v7377_v23  ;;  %v4555_v47 = vsel %vm1297_vm6, %v4091_v7, %v7373_v16  ;;  %v4556_v25 = vsel %vm1297_vm6, %v4092_v35, %v7374_v48 }
 0x5a8   : > { %4812 = vmatmul.mubr.bf16.gmra.mxu1 %v4575_v0  ;;  %v4579_v42 = vpack.c.bf16 %v4556_v25, %v4555_v47 }
 0x5a9   : > { %v4395_v32 = vsel %vm1297_vm6, %v4203_v11, %v7378_v60  ;;  %v4396_v4 = vsel %vm1297_vm6, %v4204_v6, %v7379_v24 }
 0x5aa   : > { %v7382_v15 = vpop.permute.xlu1 %7381  ;;  %v4580_v50 = vpack.c.bf16 %v4396_v4, %v4395_v32  ;;  %4819 = vmatprep.mubr.bf16.mxu1 %v4579_v42 }
 0x5ab   : > { %v7384_v3 = vunpack.i.h.bf16 %v7382_v15  ;;  %v7383_v41 = vunpack.i.l.bf16 %v7382_v15 }
 0x5ac   : > { %6881 = vmatmul.mubr.bf16.gmra.mxu0 %v4580_v50 }
 0x5ad   : > { %v4539_v28 = vsel %vm1297_vm6, %v4090_v31, %v7383_v41  ;;  %v4540_v17 = vsel %vm1297_vm6, %v4091_v7, %v7384_v3 }
 0x5ae   : > { %v4578_v22 = vpack.c.bf16 %v4540_v17, %v4539_v28 }
 0x5b0   : > { %4820 = vmatmul.mubr.bf16.gmra.mxu1 %v4578_v22 }
 0x5d9   : > { %v6692_v18 = vpop.f32.mrf.mxu1 }
 0x5db   : > { %v6693_v53 = vpop.f32.mrf.mxu1 }
 0x5dc   : > { %v6694_v31 = vadd.f32 %v6693_v53, %v6692_v18 }
 0x5dd   : > { %v6695_v20 = vpop.f32.mrf.mxu1 }
 0x5de   : > { %v4766_v38 = vadd.f32 %v6694_v31, %v10775_v21 }
 0x5df   : > { %v6696_v5 = vpop.f32.mrf.mxu1 }
 0x5e0   : > { %v6697_v46 = vadd.f32 %v6696_v5, %v6695_v20 }
 0x5e1   : > { %v6698_v36 = vpop.f32.mrf.mxu1 }
 0x5e2   : > { %v4769_v62 = vadd.f32 %v6697_v46, %v10775_v21 }
 0x5e3   : > { %v6699_v27 = vpop.f32.mrf.mxu1 }
 0x5e4   : > { %v6700_v51 = vadd.f32 %v6699_v27, %v6698_v36 }
 0x5e5   : > { %v6701_v8 = vpop.f32.mrf.mxu1 }
 0x5e6   : > { %v4774_v45 = vadd.f32 %v6700_v51, %v10775_v21 }
 0x5e7   : > { %v6702_v61 = vpop.f32.mrf.mxu1 }
 0x5e8   : > { %v6703_v44 = vadd.f32 %v6702_v61, %v6701_v8 }
 0x5e9   : > { %v6704_v40 = vpop.f32.mrf.mxu1 }
 0x5ea   : > { %v4777_v10 = vadd.f32 %v6703_v44, %v10775_v21 }
 0x5eb   : > { %v6705_v55 = vpop.f32.mrf.mxu1 }
 0x5ec   : > { %v6706_v43 = vadd.f32 %v6705_v55, %v6704_v40 }
 0x5ed   : > { %v6707_v37 = vpop.f32.mrf.mxu1 }
 0x5ee   : > { %v4782_v0 = vadd.f32 %v6706_v43, %v10775_v21 }
 0x5ef   : > { %v6708_v13 = vpop.f32.mrf.mxu1 }
 0x5f0   : > { %v6709_v23 = vadd.f32 %v6708_v13, %v6707_v37 }
 0x5f1   : > { %v10766_v33 = vpop.f32.mrf.mxu1 }
 0x5f2   : > { %v4785_v25 = vadd.f32 %v6709_v23, %v10775_v21 }
 0x5f3   : > { %v6711_v52 = vpop.f32.mrf.mxu1 }
 0x5f4   : > { %v6712_v40 = vadd.f32 %v6711_v52, %v10766_v33 }
 0x5f5   : > { %v10768_v2 = vpop.f32.mrf.mxu1 }
 0x5f6   : > { %v4790_v44 = vadd.f32 %v6712_v40, %v10775_v21 }
 0x5f7   : > { %v10781_v19 = vpop.f32.mrf.mxu1 }
 0x654   : > { %v6870_v29 = vpop.f32.mrf.mxu0 }
 0x655   : > { %v10778_v54 = vadd.f32 %v6870_v29, %v4774_v45 }
 0x656   : > { %v4862_v39 = vpop.f32.mrf.mxu0 }
 0x657   : > { %v10783_v34 = vadd.f32 %v4862_v39, %v4766_v38  ;;  %v10786_v49 = vsub.f32 0.0, %v10778_v54  ;;  %v6715_v39 = vadd.f32 %v10781_v19, %v10768_v2 }
 0x658   : > { %v10788_v14 = vpop.f32.mrf.mxu1  ;;  %v6871_v57 = vpop.f32.mrf.mxu0 }
 0x659   : > { %v10791_v1 = vsub.f32 0.0, %v10783_v34  ;;  %v5055_v63 = vmin.f32 %v10786_v49, 0.0  ;;  %v10802_v48 = vadd.f32 %v6871_v57, %v4777_v10  ;;  %vm5039_vm11 = vcmp.gt.f32.partialorder %v10786_v49, 0.0 }
 0x65a   : > { %v10793_v12 = vpop.f32.mrf.mxu1  ;;  %v4865_v58 = vpop.f32.mrf.mxu0 }
 0x65b   : > { %v10798_v9 = vadd.f32 %v4865_v58, %v4769_v62  ;;  %v5053_v30 = vmin.f32 %v10791_v1, 0.0  ;;  %v5073_v59 = vmul.f32 1.442695, %v5055_v63  ;;  %v10814_v15 = vsub.f32 0.0, %v10802_v48 }
 0x65c   : > { %v6719_v56 = vpop.f32.mrf.mxu1  ;;  %v6874_v26 = vpop.f32.mrf.mxu0  ;;  %v6718_v10 = vadd.f32 %v10793_v12, %v10788_v14  ;;  %vm5037_vm10 = vcmp.gt.f32.partialorder %v10791_v1, 0.0 }
 0x65d   : > { %v5069_v60 = vmul.f32 1.442695, %v5053_v30  ;;  %v10805_v7 = vsub.f32 0.0, %v10798_v9  ;;  %7941 = vpow2.f32 %v5073_v59  ;;  %v5056_v22 = vmin.f32 %v10814_v15, 0.0 }
 0x65e   : > { %v6720_v16 = vpop.f32.mrf.mxu1  ;;  %v4878_v24 = vpop.f32.mrf.mxu0  ;;  %v10847_v59 = vadd.f32 %v6874_v26, %v4790_v44  ;;  %vm5040_vm13 = vcmp.gt.f32.partialorder %v10814_v15, 0.0 }
 0x65f   : > { %v10807_v35 = vadd.f32 %v4878_v24, %v4782_v0  ;;  %7943 = vpow2.f32 %v5069_v60  ;;  %v5054_v47 = vmin.f32 %v10805_v7, 0.0  ;;  %v5075_v5 = vmul.f32 1.442695, %v5056_v22 }
 0x660   : > { %v10809_v11 = vpop.f32.mrf.mxu0  ;;  %v6722_v6 = vpop.f32.mrf.mxu1  ;;  %v6721_v8 = vadd.f32 %v6720_v16, %v6719_v56  ;;  %v4793_v16 = vadd.f32 %v6715_v39, %v10775_v21  ;;  %vm5038_vm12 = vcmp.gt.f32.partialorder %v10805_v7, 0.0 }
 0x661   : > { %v5071_v42 = vmul.f32 1.442695, %v5054_v47  ;;  %v10817_v50 = vsub.f32 0.0, %v10807_v35 }
 0x662   : > { %v4881_v32 = vpop.f32.mrf.mxu0  ;;  %v6723_v4 = vpop.f32.mrf.mxu1  ;;  %v4801_v33 = vadd.f32 %v6721_v8, %v10775_v21  ;;  %v10869_v22 = vadd.f32 %v10809_v11, %v4793_v16 }
 0x663   : > { %v10819_v3 = vadd.f32 %v4881_v32, %v4785_v25  ;;  %v6724_v41 = vadd.f32 %v6723_v4, %v6722_v6  ;;  %7945 = vpow2.f32 %v5071_v42  ;;  %v5057_v36 = vmin.f32 %v10817_v50, 0.0 }
 0x664   : > { %v6725_v28 = vpop.f32.mrf.mxu1  ;;  %v6878_v17 = vpop.f32.mrf.mxu0  ;;  %7947 = vpow2.f32 %v5075_v5  ;;  %v4798_v32 = vadd.f32 %v6718_v10, %v10775_v21  ;;  %vm5041_vm14 = vcmp.gt.f32.partialorder %v10817_v50, 0.0 }
 0x665   : > { %v4806_v18 = vadd.f32 %v6724_v41, %v10775_v21  ;;  %v10827_v27 = vsub.f32 0.0, %v10819_v3  ;;  %v5077_v51 = vmul.f32 1.442695, %v5057_v36 }
 0x666   : > { %v6726_v53 = vpop.f32.mrf.mxu1  ;;  %v10823_v20 = vpop.f32.mrf.mxu0 }
 0x667   : > { %v6727_v61 = vadd.f32 %v6726_v53, %v6725_v28  ;;  %v10830_v55 = vadd.f32 %v6878_v17, %v4806_v18  ;;  %v5058_v45 = vmin.f32 %v10827_v27, 0.0  ;;  %7949 = vpow2.f32 %v5077_v51 }
 0x668   : > { %v6728_v37 = vpop.f32.mrf.mxu1  ;;  %v6879_v13 = vpop.f32.mrf.mxu0  ;;  %v10866_v17 = vsub.f32 0.0, %v10847_v59  ;;  %v10876_v51 = vadd.f32 %v10823_v20, %v4798_v32  ;;  %vm5042_vm15 = vcmp.gt.f32.partialorder %v10827_v27, 0.0 }
 0x669   : > { %v4809_v31 = vadd.f32 %v6727_v61, %v10775_v21  ;;  %v10835_v46 = vsub.f32 0.0, %v10830_v55  ;;  %v5079_v58 = vmul.f32 1.442695, %v5058_v45 }
 0x66a   : > { %v6729_v29 = vpop.f32.mrf.mxu1  ;;  %v4897_v38 = vpop.f32.mrf.mxu0  ;;  %vm5043_vm3 = vcmp.gt.f32.partialorder %v10866_v17, 0.0 }
 0x66b   : > { %v7942_v52 = vpop.eup %7941  ;;  %v10841_v57 = vadd.f32 %v6879_v13, %v4809_v31  ;;  %v6730_v56 = vadd.f32 %v6729_v29, %v6728_v37  ;;  %v10845_v30 = vadd.f32 %v4897_v38, %v4801_v33  ;;  %v5063_v0 = vmin.f32 %v10835_v46, 0.0 }
 0x66c   : > { %v6731_v43 = vpop.f32.mrf.mxu1  ;;  %v6882_v62 = vpop.f32.mrf.mxu0  ;;  %v6466_v60 = vadd.f32 -1.0, %v7942_v52  ;;  %7951 = vpow2.f32 %v5079_v58  ;;  %v5059_v29 = vmin.f32 %v10866_v17, 0.0  ;;  %v10890_v52 = vsub.f32 0.0, %v10869_v22 }
 0x66d   : > { %v7944_v63 = vpop.eup %7943  ;;  %v5089_v12 = vmul.f32 1.442695, %v5063_v0  ;;  %v10854_v26 = vsub.f32 0.0, %v10841_v57  ;;  %v4814_v4 = vadd.f32 %v6730_v56, %v10775_v21  ;;  %v10861_v42 = vsub.f32 0.0, %v10845_v30 }
 0x66e   : > { %v6732_v2 = vpop.f32.mrf.mxu1  ;;  %v4910_v19 = vpop.f32.mrf.mxu0  ;;  %v6464_v23 = vadd.f32 -1.0, %v7944_v63  ;;  %v5119_v8 = vsel %vm5039_vm11, %v10786_v49, %v6466_v60  ;;  %v5081_v58 = vmul.f32 1.442695, %v5059_v29  ;;  %v5060_v10 = vmin.f32 %v10890_v52, 0.0 }
 0x66f   : > { %v6733_v24 = vadd.f32 %v6732_v2, %v6731_v43  ;;  %v5064_v28 = vmin.f32 %v10854_v26, 0.0  ;;  %7953 = vpow2.f32 %v5089_v12  ;;  %v5062_v37 = vmin.f32 %v10861_v42, 0.0 }
 0x670   : > { %v5117_v6 = vsel %vm5037_vm10, %v10791_v1, %v6464_v23  ;;  %v6734_v47 = vpop.f32.mrf.mxu1  ;;  %v6883_v14 = vpop.f32.mrf.mxu0  ;;  %v10878_v31 = vadd.f32 %v4910_v19, %v4814_v4  ;;  %v5083_v23 = vmul.f32 1.442695, %v5060_v10  ;;  %vm5047_vm0 = vcmp.gt.f32.partialorder %v10835_v46, 0.0 }
 0x671   : > { %v7946_v25 = vpop.eup %7945  ;;  %5149 = vrot.lane.b32.xlu0 %v5117_v6, %s8246_s3  ;;  %v4817_v53 = vadd.f32 %v6733_v24, %v10775_v21  ;;  %v5091_v40 = vmul.f32 1.442695, %v5064_v28  ;;  %v5087_v45 = vmul.f32 1.442695, %v5062_v37  ;;  %vm5048_vm1 = vcmp.gt.f32.partialorder %v10854_v26, 0.0 }
 0x672   : > { %v6735_v1 = vpop.f32.mrf.mxu1  ;;  %v6465_v41 = vadd.f32 -1.0, %v7946_v25  ;;  %v4913_v5 = vpop.f32.mrf.mxu0  ;;  %v5033_v56 = vsub.f32 0.0, %v10878_v31  ;;  %vm5046_vm2 = vcmp.gt.f32.partialorder %v10861_v42, 0.0  ;;  %vm5044_vm4 = vcmp.gt.f32.partialorder %v10890_v52, 0.0 }
 0x673   : > { %v6736_v18 = vadd.f32 %v6735_v1, %v6734_v47  ;;  %v7948_v13 = vpop.eup %7947  ;;  %7955 = vpow2.f32 %v5091_v40  ;;  %v10887_v20 = vadd.f32 %v4913_v5, %v4817_v53 }
 0x674   : > { %v5118_v36 = vsel %vm5038_vm12, %v10805_v7, %v6465_v41  ;;  %v6737_v61 = vpop.f32.mrf.mxu1  ;;  %v6467_v49 = vadd.f32 -1.0, %v7948_v13  ;;  %v7950_v38 = vpop.eup %7949  ;;  %7957 = vpow2.f32 %v5087_v45  ;;  %vm5049_vm7 = vcmp.gt.f32.partialorder %v5033_v56, 0.0 }
 0x675   : > { %v4822_v11 = vadd.f32 %v6736_v18, %v10775_v21  ;;  %5151 = vrot.lane.b32.xlu1 %v5118_v36, %s8246_s3  ;;  %5153 = vrot.lane.b32.xlu0 %v5119_v8, %s8246_s3  ;;  %v6468_v43 = vadd.f32 -1.0, %v7950_v38  ;;  %7959 = vpow2.f32 %v5081_v58  ;;  %vm4925_vm12 = vcmp.gt.f32.partialorder %v10783_v34, 0.0 }
 0x676   : > { %v6738_v7 = vpop.f32.mrf.mxu1  ;;  %v5120_v44 = vsel %vm5040_vm13, %v10814_v15, %v6467_v49  ;;  %v10903_v15 = vsub.f32 0.0, %v10887_v20  ;;  %7961 = vpow2.f32 %v5083_v23  ;;  %v7542_v23 = vld [vmem:[%s8457_s25 + $0x38] sm:$0xff]   ;;  %vm4926_vm13 = vcmp.gt.f32.partialorder %v10798_v9, 0.0 }
 0x677   : > { %v10885_v39 = vadd.f32 %v6882_v62, %v4822_v11  ;;  %v6739_v33 = vadd.f32 %v6738_v7, %v6737_v61  ;;  %v5121_v62 = vsel %vm5041_vm14, %v10817_v50, %v6468_v43  ;;  %v5065_v50 = vmin.f32 %v5033_v56, 0.0 }
 0x678   : > { %v5066_v16 = vmin.f32 %v10903_v15, 0.0  ;;  %vm5050_vm8 = vcmp.gt.f32.partialorder %v10903_v15, 0.0  ;;  %vm4927_vm14 = vcmp.gt.f32.partialorder %v10778_v54, 0.0 }
 0x679   : > { %v4825_v63 = vadd.f32 %v6739_v33, %v10775_v21  ;;  %5155 = vrot.lane.b32.xlu1 %v5120_v44, %s8246_s3  ;;  %5157 = vrot.lane.b32.xlu0 %v5121_v62, %s8246_s3  ;;  %v10906_v21 = vsub.f32 0.0, %v10876_v51  ;;  %v10909_v19 = vsub.f32 0.0, %v10885_v39  ;;  %v7952_v0 = vpop.eup %7951  ;;  %v5093_v60 = vmul.f32 1.442695, %v5065_v50  ;;  %v7543_v50 = vld [vmem:[%s8457_s25 + $0x70] sm:$0xff]  }
 0x67a   : > { %v6469_v24 = vadd.f32 -1.0, %v7952_v0  ;;  %v5095_v47 = vmul.f32 1.442695, %v5066_v16  ;;  %v7546_v0 = vld [vmem:[%s8457_s25 + $0x28] sm:$0xff]   ;;  %v7547_v16 = vld [vmem:[%s8457_s25 + $0x60] sm:$0xff]  }
 0x67b   : > { %v10899_v2 = vadd.f32 %v6883_v14, %v4825_v63  ;;  %v5061_v6 = vmin.f32 %v10906_v21, 0.0  ;;  %v5067_v14 = vmin.f32 %v10909_v19, 0.0  ;;  %7963 = vpow2.f32 %v5093_v60  ;;  %v7549_v60 = vld [vmem:[%s8457_s25 + $0x58] sm:$0xff]  }
 0x67c   : > { %v7954_v25 = vpop.eup %7953  ;;  %v5122_v32 = vsel %vm5042_vm15, %v10827_v27, %v6469_v24  ;;  %7965 = vpow2.f32 %v5095_v47  ;;  %vm5045_vm9 = vcmp.gt.f32.partialorder %v10906_v21, 0.0  ;;  %vm5051_vm10 = vcmp.gt.f32.partialorder %v10909_v19, 0.0  ;;  %v7548_v24 = vld [vmem:[%s8457_s25 + $0x20] sm:$0xff]   ;;  %v7551_v47 = vld [vmem:[%s8457_s25 + $0x50] sm:$0xff]  }
 0x67d   : > { %v5036_v12 = vsub.f32 0.0, %v10899_v2  ;;  %v5085_v4 = vmul.f32 1.442695, %v5061_v6  ;;  %5159 = vrot.lane.b32.xlu1 %v5122_v32, %s8246_s3  ;;  %v6474_v1 = vadd.f32 -1.0, %v7954_v25  ;;  %v5097_v41 = vmul.f32 1.442695, %v5067_v14 }
 0x67e   : > { %v7550_v6 = vld [vmem:[%s8457_s25 + $0x18] sm:$0xff]   ;;  %v7552_v14 = vld [vmem:[%s8457_s25 + $0x10] sm:$0xff]   ;;  %v4943_v25 = vmin.f32 %v10778_v54, 0.0  ;;  %vm4928_vm15 = vcmp.gt.f32.partialorder %v10802_v48, 0.0 }
 0x67f   : > { %7967 = vpow2.f32 %v5085_v4  ;;  %v5068_v28 = vmin.f32 %v5036_v12, 0.0  ;;  %v5127_v53 = vsel %vm5047_vm0, %v10835_v46, %v6474_v1  ;;  %vm5052_vm11 = vcmp.gt.f32.partialorder %v5036_v12, 0.0 }
 0x680   : > { %v7956_v18 = vpop.eup %7955  ;;  %7969 = vpow2.f32 %v5097_v41  ;;  %5169 = vrot.lane.b32.xlu0 %v5127_v53, %s8246_s3  ;;  %v4942_v4 = vmin.f32 %v10798_v9, 0.0  ;;  %v4961_v1 = vmul.f32 1.442695, %v4943_v25  ;;  %v4944_v41 = vmin.f32 %v10802_v48, 0.0 }
 0x681   : > { %v6475_v5 = vadd.f32 -1.0, %v7956_v18  ;;  %v5099_v36 = vmul.f32 1.442695, %v5068_v28  ;;  %v7958_v27 = vpop.eup %7957  ;;  %v4945_v18 = vmin.f32 %v10807_v35, 0.0  ;;  %vm4929_vm0 = vcmp.gt.f32.partialorder %v10807_v35, 0.0 }
 0x682   : > { %v6473_v61 = vadd.f32 -1.0, %v7958_v27  ;;  %v7960_v40 = vpop.eup %7959  ;;  %v4959_v28 = vmul.f32 1.442695, %v4942_v4  ;;  %v4963_v53 = vmul.f32 1.442695, %v4944_v41  ;;  %v4951_v27 = vmin.f32 %v10830_v55, 0.0 }
 0x683   : > { %v5128_v8 = vsel %vm5048_vm1, %v10854_v26, %v6475_v5  ;;  %7971 = vpow2.f32 %v5099_v36  ;;  %v6470_v46 = vadd.f32 -1.0, %v7960_v40  ;;  %v7962_v11 = vpop.eup %7961  ;;  %v4965_v5 = vmul.f32 1.442695, %v4945_v18 }
 0x684   : > { %5171 = vrot.lane.b32.xlu1 %v5128_v8, %s8246_s3  ;;  %v5126_v37 = vsel %vm5046_vm2, %v10861_v42, %v6473_v61  ;;  %v6471_v26 = vadd.f32 -1.0, %v7962_v11  ;;  %v4946_v36 = vmin.f32 %v10819_v3, 0.0  ;;  %v4952_v40 = vmin.f32 %v10841_v57, 0.0 }
 0x685   : > { %5167 = vrot.lane.b32.xlu0 %v5126_v37, %s8246_s3  ;;  %v5123_v13 = vsel %vm5043_vm3, %v10866_v17, %v6470_v46  ;;  %v4977_v37 = vmul.f32 1.442695, %v4951_v27  ;;  %v4956_v27 = vmin.f32 %v10899_v2, 0.0  ;;  %vm4930_vm1 = vcmp.gt.f32.partialorder %v10819_v3, 0.0 }
 0x686   : > { %v5124_v45 = vsel %vm5044_vm4, %v10890_v52, %v6471_v26  ;;  %v4967_v8 = vmul.f32 1.442695, %v4946_v36  ;;  %vm4935_vm2 = vcmp.gt.f32.partialorder %v10830_v55, 0.0  ;;  %vm4936_vm3 = vcmp.gt.f32.partialorder %v10841_v57, 0.0 }
 0x687   : > { %vm4934_vm4 = vcmp.gt.f32.partialorder %v10845_v30, 0.0 }
 0x688   : > { %5161 = vrot.lane.b32.xlu1 %v5123_v13, %s8246_s3  ;;  %v7964_v7 = vpop.eup %7963  ;;  %v4950_v13 = vmin.f32 %v10845_v30, 0.0 }
 0x689   : > { %v7966_v49 = vpop.eup %7965  ;;  %v6476_v29 = vadd.f32 -1.0, %v7964_v7  ;;  %5163 = vrot.lane.b32.xlu0 %v5124_v45, %s8246_s3  ;;  %v4947_v7 = vmin.f32 %v10847_v59, 0.0 }
 0x68a   : > { %v6477_v42 = vadd.f32 -1.0, %v7966_v49  ;;  %v4979_v49 = vmul.f32 1.442695, %v4952_v40  ;;  %v4975_v45 = vmul.f32 1.442695, %v4950_v13 }
 0x68b   : > { %v5129_v44 = vsel %vm5049_vm7, %v5033_v56, %v6476_v29  ;;  %vm4931_vm7 = vcmp.gt.f32.partialorder %v10847_v59, 0.0 }
 0x68c   : > { %v7968_v38 = vpop.eup %7967  ;;  %5173 = vrot.lane.b32.xlu1 %v5129_v44, %s8246_s3  ;;  %v5130_v43 = vsel %vm5050_vm8, %v10903_v15, %v6477_v42  ;;  %v7541_v15 = vld [vmem:[%s8457_s25 + $0x78] sm:$0xff]   ;;  %vm4932_vm8 = vcmp.gt.f32.partialorder %v10869_v22, 0.0 }
 0x68d   : > { %v7970_v33 = vpop.eup %7969  ;;  %v6472_v17 = vadd.f32 -1.0, %v7968_v38  ;;  %5175 = vrot.lane.b32.xlu0 %v5130_v43, %s8246_s3  ;;  %6884 = vmatprep.subr.bf16.mxu1 %v7541_v15 }
 0x68e   : > { %v6478_v58 = vadd.f32 -1.0, %v7970_v33  ;;  %6756 = vmatprep.subr.bf16.mxu0 %v7541_v15  ;;  %6892 = vmatpush3.bf16.msra.mxu1 %v7542_v23 }
 0x68f   : > { %v5125_v63 = vsel %vm5045_vm9, %v10906_v21, %v6472_v17  ;;  %6757 = vmatpush3.bf16.msra.mxu0 %v7542_v23  ;;  %v7544_v21 = vld [vmem:[%s8457_s25 + $0x30] sm:$0xff]   ;;  %6885 = vmatprep.subr.bf16.mxu1 %v7543_v50  ;;  %v4948_v17 = vmin.f32 %v10869_v22, 0.0  ;;  %vm4937_vm9 = vcmp.gt.f32.partialorder %v10878_v31, 0.0 }
 0x690   : > { %v7972_v52 = vpop.eup %7971  ;;  %v5131_v62 = vsel %vm5051_vm10, %v10909_v19, %v6478_v58  ;;  %5165 = vrot.lane.b32.xlu1 %v5125_v63, %s8246_s3  ;;  %6758 = vmatprep.subr.bf16.mxu0 %v7543_v50  ;;  %v7545_v19 = vld [vmem:[%s8457_s25 + $0x68] sm:$0xff]   ;;  %v4969_v58 = vmul.f32 1.442695, %v4947_v7  ;;  %vm4938_vm10 = vcmp.gt.f32.partialorder %v10887_v20, 0.0 }
 0x691   : > { %v6479_v10 = vadd.f32 -1.0, %v7972_v52  ;;  %5177 = vrot.lane.b32.xlu0 %v5131_v62, %s8246_s3  ;;  %v7553_v52 = vld [vmem:[%s8457_s25 + $0x48] sm:$0xff]  }
 0x692   : > { %6893 = vmatpush3.bf16.msra.mxu1 %v7544_v21  ;;  %v7554_v63 = vld [vmem:[%s8457_s25 + $0x8] sm:$0xff]  }
 0x693   : > { %v5132_v56 = vsel %vm5052_vm11, %v5036_v12, %v6479_v10  ;;  %6759 = vmatpush3.bf16.msra.mxu0 %v7544_v21  ;;  %6886 = vmatprep.subr.bf16.mxu1 %v7545_v19  ;;  %v4941_v12 = vmin.f32 %v10783_v34, 0.0  ;;  %v4953_v10 = vmin.f32 %v10878_v31, 0.0  ;;  %vm4933_vm11 = vcmp.gt.f32.partialorder %v10876_v51, 0.0 }
 0x694   : > { %5179 = vrot.lane.b32.xlu1 %v5132_v56, %s8246_s3  ;;  %6760 = vmatprep.subr.bf16.mxu0 %v7545_v19  ;;  %v4971_v19 = vmul.f32 1.442695, %v4948_v17  ;;  %s5912_s3 = sshll.u32 %s8463_s17, 4  ;;  %s11185_s3 = int_to_ptr.vmem [resolvable:$true] %s5912_s3 }
 0x695   : > { %v4957_v32 = vmul.f32 1.442695, %v4941_v12  ;;  %s8121_s0 = scalar_lea.vmem %s11185_s3, 2048  ;;  %p8128_p6 = scmp.lt.s32.totalorder %s11185_s3, %s8126_s29 }
 0x696   : > { %6894 = vmatpush3.bf16.msra.mxu1 %v7546_v0  ;;  %p8122_p2 = scmp.ne.s32.totalorder %s11185_s3, %s8121_s0  ;;  %p8129_p7 = scmp.lt.s32.totalorder %s8127_s18, %s8121_s0 }
 0x697   : > { %6761 = vmatpush3.bf16.msra.mxu0 %v7546_v0  ;;  %6887 = vmatprep.subr.bf16.mxu1 %v7547_v16  ;;  %7973 = vpow2.f32 %v4957_v32 }
 0x698   : > { %6762 = vmatprep.subr.bf16.mxu0 %v7547_v16  ;;  %7975 = vpow2.f32 %v4961_v1  ;;  %v4955_v1 = vmin.f32 %v10885_v39, 0.0  ;;  %p8123_p4 = pnand %p8122_p2, %p8373_p3  ;;  %p8130_p8 = por %p8129_p7, %p8128_p6 }
 0x699   : > { %7977 = vpow2.f32 %v4959_v28 }
 0x69a   : > { %6895 = vmatpush3.bf16.msra.mxu1 %v7548_v24  ;;  %7979 = vpow2.f32 %v4963_v53  ;;  %p8124_p5 = pneg %p8123_p4 }
 0x69b   : > { %6763 = vmatpush3.bf16.msra.mxu0 %v7548_v24  ;;  %6888 = vmatprep.subr.bf16.mxu1 %v7549_v60  ;;  %7981 = vpow2.f32 %v4965_v5  ;;  %v7556_v24 = vld [vmem:[%s8457_s25] sm:$0xff]  }
 0x69c   : > { %6764 = vmatprep.subr.bf16.mxu0 %v7549_v60  ;;  %7983 = vpow2.f32 %v4967_v8  ;;  %v4954_v60 = vmin.f32 %v10887_v20, 0.0  ;;  %p8131_p10 = pnand %p8130_p8, %p8124_p5 }
 0x69d   : > { %7985 = vpow2.f32 %v4977_v37 }
 0x69e   : > { %6896 = vmatpush3.bf16.msra.mxu1 %v7550_v6  ;;  %7987 = vpow2.f32 %v4979_v49  ;;  %v4983_v41 = vmul.f32 1.442695, %v4954_v60  ;;  %v4987_v49 = vmul.f32 1.442695, %v4956_v27 }
 0x69f   : > { %6765 = vmatpush3.bf16.msra.mxu0 %v7550_v6  ;;  %6889 = vmatprep.subr.bf16.mxu1 %v7551_v47  ;;  %7989 = vpow2.f32 %v4975_v45  ;;  %v4949_v6 = vmin.f32 %v10876_v51, 0.0 }
 0x6a0   : > { %6766 = vmatprep.subr.bf16.mxu0 %v7551_v47  ;;  %7991 = vpow2.f32 %v4969_v58  ;;  %v4981_v47 = vmul.f32 1.442695, %v4953_v10 }
 0x6a1   : > { %7993 = vpow2.f32 %v4971_v19  ;;  %v4973_v36 = vmul.f32 1.442695, %v4949_v6 }
 0x6a2   : > { %6897 = vmatpush3.bf16.msra.mxu1 %v7552_v14  ;;  %7995 = vpow2.f32 %v4981_v47 }
 0x6a3   : > { %6767 = vmatpush3.bf16.msra.mxu0 %v7552_v14  ;;  %6890 = vmatprep.subr.bf16.mxu1 %v7553_v52  ;;  %7997 = vpow2.f32 %v4983_v41 }
 0x6a4   : > { %v7974_v61 = vpop.eup %7973  ;;  %6768 = vmatprep.subr.bf16.mxu0 %v7553_v52  ;;  %7999 = vpow2.f32 %v4973_v36 }
 0x6a5   : > { %v7976_v46 = vpop.eup %7975  ;;  %v6448_v11 = vadd.f32 -1.0, %v7974_v61 }
 0x6a6   : > { %v7978_v26 = vpop.eup %7977  ;;  %v6450_v33 = vadd.f32 -1.0, %v7976_v46  ;;  %6898 = vmatpush3.bf16.msra.mxu1 %v7554_v63 }
 0x6a7   : > { %v5005_v38 = vsel %vm4925_vm12, %v10783_v34, %v6448_v11  ;;  %v6449_v42 = vadd.f32 -1.0, %v7978_v26  ;;  %v7980_v44 = vpop.eup %7979  ;;  %v7555_v34 = vld [vmem:[%s8457_s25 + $0x40] sm:$0xff]   ;;  %6769 = vmatpush3.bf16.msra.mxu0 %v7554_v63  ;;  %vm4939_vm12 = vcmp.gt.f32.partialorder %v10885_v39, 0.0 }
 0x6a8   : > { %v7982_v62 = vpop.eup %7981  ;;  %v5007_v23 = vsel %vm4927_vm14, %v10778_v54, %v6450_v33  ;;  %v6451_v21 = vadd.f32 -1.0, %v7980_v44  ;;  %6770 = vmatprep.subr.bf16.mxu0 %v7555_v34  ;;  %6891 = vmatprep.subr.bf16.mxu1 %v7555_v34 }
 0x6a9   : > { %v5006_v15 = vsel %vm4926_vm13, %v10798_v9, %v6449_v42  ;;  %v6452_v54 = vadd.f32 -1.0, %v7982_v62  ;;  %v5245_v9 = vld [vmem:[#allocation3 + $0x1] sm:$0xff]  ;;  %v7984_v25 = vpop.eup %7983  ;;  %vm4940_vm13 = vcmp.gt.f32.partialorder %v10899_v2, 0.0 }
 0x6aa   : > { %v5008_v14 = vsel %vm4928_vm15, %v10802_v48, %v6451_v21  ;;  %6899 = vmatpush3.bf16.msra.mxu1 %v7556_v24  ;;  %v7986_v5 = vpop.eup %7985  ;;  %v6453_v8 = vadd.f32 -1.0, %v7984_v25 }
 0x6ab   : > { %6771 = vmatpush3.bf16.msra.mxu0 %v7556_v24  ;;  %v5009_v28 = vsel %vm4929_vm0, %v10807_v35, %v6452_v54  ;;  %v4985_v35 = vmul.f32 1.442695, %v4955_v1  ;;  %v7988_v13 = vpop.eup %7987  ;;  %v6458_v11 = vadd.f32 -1.0, %v7986_v5 }
 0x6ac   : > { %v5010_v26 = vsel %vm4930_vm1, %v10819_v3, %v6453_v8  ;;  %v7990_v45 = vpop.eup %7989  ;;  %v6459_v33 = vadd.f32 -1.0, %v7988_v13 }
 0x6ad   : > { %8001 = vpow2.f32 %v4985_v35  ;;  %v7992_v44 = vpop.eup %7991  ;;  %v5015_v3 = vsel %vm4935_vm2, %v10830_v55, %v6458_v11  ;;  %v6457_v58 = vadd.f32 -1.0, %v7990_v45 }
 0x6ae   : > { %8003 = vpow2.f32 %v4987_v49  ;;  %v7994_v52 = vpop.eup %7993  ;;  %v5016_v63 = vsel %vm4936_vm3, %v10841_v57, %v6459_v33  ;;  %v6454_v10 = vadd.f32 -1.0, %v7992_v44  ;;  %v5253_v44 = vld [vmem:[#allocation3 + $0x91] sm:$0xff] }
 0x6af   : > { %v5014_v55 = vsel %vm4934_vm4, %v10845_v30, %v6457_v58 }
 0x6b0   : > { %v5011_v19 = vsel %vm4931_vm7, %v10847_v59, %v6454_v10 }
 0x6e3   : > { %v5150_v29 = vpop.permute.xlu0 %5149 }
 0x6e4   : > { %v5197_v43 = vsel %vm1279_vm5, %v5005_v38, %v5150_v29 }
 0x6e5   : > { %5213 = vst.msk [vmem:[#allocation3 + $0x11] sm:$0xff] %vm1297_vm6, %v5197_v43 }
 0x6e7   : > { %v5152_v56 = vpop.permute.xlu1 %5151  ;;  %v5154_v50 = vpop.permute.xlu0 %5153 }
 0x6e8   : > { %v5198_v0 = vsel %vm1279_vm5, %v5006_v15, %v5152_v56  ;;  %v5199_v16 = vsel %vm1279_vm5, %v5007_v23, %v5154_v50  ;;  %v7996_v15 = vpop.eup %7995 }
 0x6e9   : > { %5214 = vst.msk [vmem:[#allocation3 + $0x21] sm:$0xff] %vm1297_vm6, %v5198_v0  ;;  %5215 = vst.msk [vmem:[#allocation3 + $0x31] sm:$0xff] %vm1297_vm6, %v5199_v16  ;;  %v6455_v16 = vadd.f32 -1.0, %v7994_v52  ;;  %v7998_v24 = vpop.eup %7997  ;;  %v6460_v60 = vadd.f32 -1.0, %v7996_v15 }
 0x6ea   : > { %v8000_v54 = vpop.eup %7999 }
 0x6eb   : > { %v5156_v12 = vpop.permute.xlu1 %5155  ;;  %v5158_v18 = vpop.permute.xlu0 %5157  ;;  %v6456_v41 = vadd.f32 -1.0, %v8000_v54 }
 0x6ec   : > { %v5200_v32 = vsel %vm1279_vm5, %v5008_v14, %v5156_v12  ;;  %v5246_v4 = vld [vmem:[#allocation3 + $0x11] sm:$0xff]  ;;  %v5201_v48 = vsel %vm1279_vm5, %v5009_v28, %v5158_v18  ;;  %v6461_v14 = vadd.f32 -1.0, %v7998_v24  ;;  %v8002_v12 = vpop.eup %8001 }
 0x6ed   : > { %5216 = vst.msk [vmem:[#allocation3 + $0x41] sm:$0xff] %vm1297_vm6, %v5200_v32  ;;  %v7390_v53 = vpack.i.bf16 %v5246_v4, %v5245_v9  ;;  %5217 = vst.msk [vmem:[#allocation3 + $0x51] sm:$0xff] %vm1297_vm6, %v5201_v48  ;;  %v5012_v9 = vsel %vm4932_vm8, %v10869_v22, %v6455_v16  ;;  %v8004_v22 = vpop.eup %8003  ;;  %v6462_v36 = vadd.f32 -1.0, %v8002_v12 }
 0x6ee   : > { %v5018_v48 = vsel %vm4938_vm10, %v10887_v20, %v6461_v14 }
 0x6ef   : > { %7391 = vrot.lane.b32.xlu1 %v7390_v53, %s8248_s4  ;;  %v5160_v7 = vpop.permute.xlu1 %5159 }
 0x6f0   : > { %v5278_v61 = vld [vmem:[#allocation3 + $0x21] sm:$0xff]  ;;  %v5248_v40 = vld [vmem:[#allocation3 + $0x31] sm:$0xff]  ;;  %v5202_v29 = vsel %vm1279_vm5, %v5010_v26, %v5160_v7 }
 0x6f1   : > { %v7385_v37 = vpack.i.bf16 %v5278_v61, %v5246_v4  ;;  %v7400_v46 = vpack.i.bf16 %v5248_v40, %v5278_v61  ;;  %5218 = vst.msk [vmem:[#allocation3 + $0x61] sm:$0xff] %vm1297_vm6, %v5202_v29  ;;  %v5017_v4 = vsel %vm4937_vm9, %v10878_v31, %v6460_v60  ;;  %v5013_v31 = vsel %vm4933_vm11, %v10876_v51, %v6456_v41  ;;  %v5263_v14 = vld [vmem:[#allocation3 + $0x30] sm:$0xff] }
 0x6f2   : > { %v5170_v17 = vpop.permute.xlu0 %5169  ;;  %v6463_v61 = vadd.f32 -1.0, %v8004_v22 }
 0x6f3   : > { %7386 = vrot.lane.b32.xlu0 %v7385_v37, %s8248_s4  ;;  %7401 = vrot.lane.b32.xlu1 %v7400_v46, %s8248_s4  ;;  %v5207_v43 = vsel %vm1279_vm5, %v5015_v3, %v5170_v17  ;;  %v5019_v46 = vsel %vm4939_vm12, %v10885_v39, %v6462_v36 }
 0x6f4   : > { %v5280_v38 = vld [vmem:[#allocation3 + $0x41] sm:$0xff]  ;;  %5223 = vst.msk [vmem:[#allocation3 + $0xc1] sm:$0xff] %vm1297_vm6, %v5207_v43  ;;  %v5281_v50 = vld [vmem:[#allocation3 + $0x51] sm:$0xff]  ;;  %v5020_v11 = vsel %vm4940_vm13, %v10899_v2, %v6463_v61 }
 0x6f5   : > { %v7395_v42 = vpack.i.bf16 %v5280_v38, %v5248_v40  ;;  %v7410_v47 = vpack.i.bf16 %v5281_v50, %v5280_v38  ;;  %v5264_v12 = vld [vmem:[#allocation3 + $0x40] sm:$0xff] }
 0x6f6   : > { %v5172_v62 = vpop.permute.xlu1 %5171 }
 0x6f7   : > { %7396 = vrot.lane.b32.xlu0 %v7395_v42, %s8248_s4  ;;  %v5208_v34 = vsel %vm1279_vm5, %v5016_v63, %v5172_v62  ;;  %v5168_v56 = vpop.permute.xlu0 %5167 }
 0x6f8   : > { %5224 = vst.msk [vmem:[#allocation3 + $0xd1] sm:$0xff] %vm1297_vm6, %v5208_v34  ;;  %v5206_v23 = vsel %vm1279_vm5, %v5014_v55, %v5168_v56  ;;  %v11015_v21 = vld [vmem:[#allocation3 + $0x61] sm:$0xff]  ;;  %v5230_v56 = vld [vmem:[#allocation3 + $0x10] sm:$0xff] }
 0x6f9   : > { %5222 = vst.msk [vmem:[#allocation3 + $0xb1] sm:$0xff] %vm1297_vm6, %v5206_v23  ;;  %v7405_v57 = vpack.i.bf16 %v11015_v21, %v5281_v50  ;;  %v5229_v34 = vld [vmem:[#allocation3] sm:$0xff] }
 0x6fa   : > { %v5162_v0 = vpop.permute.xlu1 %5161 }
 0x6fb   : > { %v5203_v30 = vsel %vm1279_vm5, %v5011_v19, %v5162_v0  ;;  %7406 = vrot.lane.b32.xlu0 %v7405_v57, %s8248_s4  ;;  %v5164_v6 = vpop.permute.xlu0 %5163  ;;  %v5287_v25 = vld [vmem:[#allocation3 + $0xc1] sm:$0xff] }
 0x6fc   : > { %5219 = vst.msk [vmem:[#allocation3 + $0x71] sm:$0xff] %vm1297_vm6, %v5203_v30  ;;  %v5204_v59 = vsel %vm1279_vm5, %v5012_v9, %v5164_v6  ;;  %v5262_v57 = vld [vmem:[#allocation3 + $0x20] sm:$0xff] }
 0x6fd   : > { %5220 = vst.msk [vmem:[#allocation3 + $0x81] sm:$0xff] %vm1297_vm6, %v5204_v59 }
 0x6fe   : > { %v5174_v1 = vpop.permute.xlu1 %5173 }
 0x6ff   : > { %v5288_v32 = vld [vmem:[#allocation3 + $0xd1] sm:$0xff]  ;;  %7411 = vrot.lane.b32.xlu0 %v7410_v47, %s8248_s4  ;;  %v5209_v18 = vsel %vm1279_vm5, %v5017_v4, %v5174_v1  ;;  %v5176_v5 = vpop.permute.xlu0 %5175 }
 0x700   : > { %v7425_v28 = vpack.i.bf16 %v5288_v32, %v5287_v25  ;;  %v5255_v53 = vld [vmem:[#allocation3 + $0xb1] sm:$0xff]  ;;  %5225 = vst.msk [vmem:[#allocation3 + $0xe1] sm:$0xff] %vm1297_vm6, %v5209_v18  ;;  %v5210_v27 = vsel %vm1279_vm5, %v5018_v48, %v5176_v5  ;;  %v5266_v48 = vld [vmem:[#allocation3 + $0x60] sm:$0xff] }
 0x701   : > { %5226 = vst.msk [vmem:[#allocation3 + $0xf1] sm:$0xff] %vm1297_vm6, %v5210_v27  ;;  %v7430_v40 = vpack.i.bf16 %v5287_v25, %v5255_v53 }
 0x702   : > { %7426 = vrot.lane.b32.xlu1 %v7425_v28, %s8248_s4  ;;  %v5166_v8 = vpop.permute.xlu1 %5165 }
 0x703   : > { %v5205_v37 = vsel %vm1279_vm5, %v5013_v31, %v5166_v8  ;;  %v5283_v20 = vld [vmem:[#allocation3 + $0x71] sm:$0xff]  ;;  %v5178_v35 = vpop.permute.xlu0 %5177 }
 0x704   : > { %5221 = vst.msk [vmem:[#allocation3 + $0xa1] sm:$0xff] %vm1297_vm6, %v5205_v37  ;;  %v5211_v13 = vsel %vm1279_vm5, %v5019_v46, %v5178_v35  ;;  %v5284_v51 = vld [vmem:[#allocation3 + $0x81] sm:$0xff]  ;;  %v7420_v29 = vpack.i.bf16 %v5283_v20, %v11015_v21 }
 0x705   : > { %5227 = vst.msk [vmem:[#allocation3 + $0x101] sm:$0xff] %vm1297_vm6, %v5211_v13  ;;  %v7415_v7 = vpack.i.bf16 %v5284_v51, %v5283_v20  ;;  %v5240_v13 = vld [vmem:[#allocation3 + $0xc0] sm:$0xff]  ;;  %v5272_v51 = vld [vmem:[#allocation3 + $0xd0] sm:$0xff] }
 0x706   : > { %7431 = vrot.lane.b32.xlu1 %v7430_v40, %s8248_s4  ;;  %v5180_v26 = vpop.permute.xlu1 %5179 }
 0x707   : > { %v5212_v49 = vsel %vm1279_vm5, %v5020_v11, %v5180_v26  ;;  %v5289_v45 = vld [vmem:[#allocation3 + $0xe1] sm:$0xff]  ;;  %7416 = vrot.lane.b32.xlu0 %v7415_v7, %s8248_s4 }
 0x708   : > { %5228 = vst.msk [vmem:[#allocation3 + $0x111] sm:$0xff] %vm1297_vm6, %v5212_v49  ;;  %v5290_v39 = vld [vmem:[#allocation3 + $0xf1] sm:$0xff]  ;;  %v7440_v2 = vpack.i.bf16 %v5289_v45, %v5288_v32 }
 0x709   : > { %v7435_v38 = vpack.i.bf16 %v5290_v39, %v5289_v45 }
 0x70b   : > { %v5285_v42 = vld [vmem:[#allocation3 + $0xa1] sm:$0xff]  ;;  %7421 = vrot.lane.b32.xlu0 %v7420_v29, %s8248_s4  ;;  %7436 = vrot.lane.b32.xlu1 %v7435_v38, %s8248_s4  ;;  %v5239_v38 = vld [vmem:[#allocation3 + $0xb0] sm:$0xff] }
 0x70c   : > { %v7445_v33 = vpack.i.bf16 %v5255_v53, %v5285_v42  ;;  %v5291_v3 = vld [vmem:[#allocation3 + $0x101] sm:$0xff]  ;;  %v7455_v58 = vpack.i.bf16 %v5285_v42, %v5253_v44  ;;  %v5265_v53 = vld [vmem:[#allocation3 + $0x50] sm:$0xff] }
 0x70d   : > { %v7460_v52 = vpack.i.bf16 %v5291_v3, %v5290_v39 }
 0x70f   : > { %v5292_v17 = vld [vmem:[#allocation3 + $0x111] sm:$0xff]  ;;  %7446 = vrot.lane.b32.xlu0 %v7445_v33, %s8248_s4  ;;  %7441 = vrot.lane.b32.xlu1 %v7440_v2, %s8248_s4 }
 0x710   : > { %v7450_v43 = vpack.i.bf16 %v5292_v17, %v5291_v3 }
 0x713   : > { %7456 = vrot.lane.b32.xlu0 %v7455_v58, %s8248_s4  ;;  %7451 = vrot.lane.b32.xlu1 %v7450_v43, %s8248_s4  ;;  %v5267_v43 = vld [vmem:[#allocation3 + $0x70] sm:$0xff]  ;;  %v5268_v58 = vld [vmem:[#allocation3 + $0x80] sm:$0xff] }
 0x717   : > { %7461 = vrot.lane.b32.xlu1 %v7460_v52, %s8248_s4  ;;  %s5893_s4 = scalar_lea.sflag [#allocation5], %s11434_s27 }
 0x761   : > { %v7392_v63 = vpop.permute.xlu1 %7391 }
 0x762   : > { %v7394_v62 = vunpack.i.h.bf16 %v7392_v63  ;;  %v7393_v10 = vunpack.i.l.bf16 %v7392_v63 }
 0x764   : > { %v5421_v50 = vsel %vm1297_vm6, %v5229_v34, %v7393_v10  ;;  %v5422_v21 = vsel %vm1297_vm6, %v5230_v56, %v7394_v62 }
 0x765   : > { %v7387_v55 = vpop.permute.xlu0 %7386  ;;  %v7402_v19 = vpop.permute.xlu1 %7401  ;;  %v5453_v60 = vpack.c.bf16 %v5422_v21, %v5421_v50  ;;  %v5273_v50 = vld [vmem:[#allocation3 + $0xe0] sm:$0xff]  ;;  %v5274_v21 = vld [vmem:[#allocation3 + $0xf0] sm:$0xff] }
 0x766   : > { %v7389_v15 = vunpack.i.h.bf16 %v7387_v55  ;;  %v7388_v23 = vunpack.i.l.bf16 %v7387_v55  ;;  %v7404_v6 = vunpack.i.h.bf16 %v7402_v19  ;;  %v7403_v47 = vunpack.i.l.bf16 %v7402_v19 }
 0x768   : > { %v5437_v0 = vsel %vm1297_vm6, %v5230_v56, %v7388_v23  ;;  %v5438_v16 = vsel %vm1297_vm6, %v5262_v57, %v7389_v15  ;;  %v5423_v4 = vsel %vm1297_vm6, %v5262_v57, %v7403_v47  ;;  %v5424_v1 = vsel %vm1297_vm6, %v5263_v14, %v7404_v6 }
 0x769   : > { %v7397_v24 = vpop.permute.xlu0 %7396  ;;  %v5454_v30 = vpack.c.bf16 %v5438_v16, %v5437_v0  ;;  %v5455_v18 = vpack.c.bf16 %v5424_v1, %v5423_v4 }
 0x76a   : > { %v7399_v54 = vunpack.i.h.bf16 %v7397_v24  ;;  %v7398_v9 = vunpack.i.l.bf16 %v7397_v24 }
 0x76b   : > { %5603 = vmatprep.mubr.bf16.mxu0 %v5454_v30 }
 0x76c   : > { %5604 = vmatmul.mubr.bf16.vlgmr.msra.gmra.mxu0 %v5453_v60  ;;  %v5439_v59 = vsel %vm1297_vm6, %v5263_v14, %v7398_v9  ;;  %v5440_v25 = vsel %vm1297_vm6, %v5264_v12, %v7399_v54 }
 0x76d   : > { %v5456_v32 = vpack.c.bf16 %v5440_v25, %v5439_v59  ;;  %v7407_v41 = vpop.permute.xlu0 %7406 }
 0x76e   : > { %v7409_v28 = vunpack.i.h.bf16 %v7407_v41  ;;  %v7408_v22 = vunpack.i.l.bf16 %v7407_v41 }
 0x76f   : > { %5611 = vmatprep.mubr.bf16.mxu0 %v5456_v32 }
 0x770   : > { %v5441_v5 = vsel %vm1297_vm6, %v5265_v53, %v7408_v22  ;;  %v5442_v36 = vsel %vm1297_vm6, %v5266_v48, %v7409_v28 }
 0x771   : > { %v7412_v27 = vpop.permute.xlu0 %7411  ;;  %v5458_v31 = vpack.c.bf16 %v5442_v36, %v5441_v5 }
 0x772   : > { %v7414_v8 = vunpack.i.h.bf16 %v7412_v27  ;;  %v7413_v61 = vunpack.i.l.bf16 %v7412_v27  ;;  %v5275_v27 = vld [vmem:[#allocation3 + $0x100] sm:$0xff] }
 0x774   : > { %5612 = vmatmul.mubr.bf16.gmra.mxu0 %v5455_v18  ;;  %v7427_v40 = vpop.permute.xlu1 %7426  ;;  %v5425_v46 = vsel %vm1297_vm6, %v5264_v12, %v7413_v61  ;;  %v5426_v35 = vsel %vm1297_vm6, %v5265_v53, %v7414_v8  ;;  %v5269_v12 = vld [vmem:[#allocation3 + $0xa0] sm:$0xff]  ;;  %v5237_v18 = vld [vmem:[#allocation3 + $0x90] sm:$0xff] }
 0x775   : > { %5619 = vmatprep.mubr.bf16.mxu0 %v5458_v31  ;;  %v7429_v37 = vunpack.i.h.bf16 %v7427_v40  ;;  %v7428_v20 = vunpack.i.l.bf16 %v7427_v40  ;;  %v5457_v11 = vpack.c.bf16 %v5426_v35, %v5425_v46  ;;  %v5276_v31 = vld [vmem:[#allocation3 + $0x110] sm:$0xff] }
 0x777   : > { %v5447_v26 = vsel %vm1297_vm6, %v5240_v13, %v7428_v20  ;;  %v5448_v7 = vsel %vm1297_vm6, %v5272_v51, %v7429_v37 }
 0x778   : > { %v7432_v49 = vpop.permute.xlu1 %7431  ;;  %v5464_v45 = vpack.c.bf16 %v5448_v7, %v5447_v26 }
 0x779   : > { %v7434_v39 = vunpack.i.h.bf16 %v7432_v49  ;;  %v7433_v29 = vunpack.i.l.bf16 %v7432_v49  ;;  %v7417_v2 = vpop.permute.xlu0 %7416 }
 0x77a   : > { %5643 = vmatprep.mubr.bf16.mxu1 %v5464_v45  ;;  %v7419_v3 = vunpack.i.h.bf16 %v7417_v2  ;;  %v7418_v17 = vunpack.i.l.bf16 %v7417_v2  ;;  %v11097_v45 = vld [vmem:[%s705_s23] ss:$0 sm:$0xff]  ;;  %s11437_s23 = smov %s11436_s14 }
 0x77b   : > { %v5432_v42 = vsel %vm1297_vm6, %v5240_v13, %v7434_v39  ;;  %v5431_v33 = vsel %vm1297_vm6, %v5239_v38, %v7433_v29 }
 0x77c   : > { %5620 = vmatmul.mubr.bf16.gmra.mxu0 %v5457_v11  ;;  %v5463_v44 = vpack.c.bf16 %v5432_v42, %v5431_v33  ;;  %v5443_v52 = vsel %vm1297_vm6, %v5267_v43, %v7418_v17  ;;  %v5444_v63 = vsel %vm1297_vm6, %v5268_v58, %v7419_v3 }
 0x77d   : > { %v7422_v62 = vpop.permute.xlu0 %7421  ;;  %v7437_v10 = vpop.permute.xlu1 %7436  ;;  %v5460_v34 = vpack.c.bf16 %v5444_v63, %v5443_v52 }
 0x77e   : > { %5644 = vmatmul.mubr.bf16.vlgmr.msra.gmra.mxu1 %v5463_v44  ;;  %v7424_v55 = vunpack.i.h.bf16 %v7422_v62  ;;  %v7423_v56 = vunpack.i.l.bf16 %v7422_v62  ;;  %v7439_v15 = vunpack.i.h.bf16 %v7437_v10  ;;  %v7438_v23 = vunpack.i.l.bf16 %v7437_v10 }
 0x77f   : > { %5627 = vmatprep.mubr.bf16.mxu0 %v5460_v34 }
 0x780   : > { %v5427_v57 = vsel %vm1297_vm6, %v5266_v48, %v7423_v56  ;;  %v5428_v19 = vsel %vm1297_vm6, %v5267_v43, %v7424_v55  ;;  %v5449_v0 = vsel %vm1297_vm6, %v5273_v50, %v7438_v23  ;;  %v5450_v16 = vsel %vm1297_vm6, %v5274_v21, %v7439_v15 }
 0x781   : > { %v7447_v24 = vpop.permute.xlu0 %7446  ;;  %v7442_v30 = vpop.permute.xlu1 %7441  ;;  %v5459_v60 = vpack.c.bf16 %v5428_v19, %v5427_v57  ;;  %v5466_v54 = vpack.c.bf16 %v5450_v16, %v5449_v0 }
 0x782   : > { %v7449_v9 = vunpack.i.h.bf16 %v7447_v24  ;;  %v7448_v6 = vunpack.i.l.bf16 %v7447_v24  ;;  %v7444_v47 = vunpack.i.h.bf16 %v7442_v30  ;;  %v7443_v14 = vunpack.i.l.bf16 %v7442_v30 }
 0x783   : > { %5651 = vmatprep.mubr.bf16.mxu1 %v5466_v54 }
 0x784   : > { %5628 = vmatmul.mubr.bf16.gmra.mxu0 %v5459_v60  ;;  %v5445_v59 = vsel %vm1297_vm6, %v5269_v12, %v7448_v6  ;;  %v5446_v25 = vsel %vm1297_vm6, %v5239_v38, %v7449_v9  ;;  %v5433_v32 = vsel %vm1297_vm6, %v5272_v51, %v7443_v14  ;;  %v5434_v4 = vsel %vm1297_vm6, %v5273_v50, %v7444_v47 }
 0x785   : > { %v7457_v1 = vpop.permute.xlu0 %7456  ;;  %v7452_v41 = vpop.permute.xlu1 %7451  ;;  %v5462_v28 = vpack.c.bf16 %v5446_v25, %v5445_v59  ;;  %v5465_v22 = vpack.c.bf16 %v5434_v4, %v5433_v32 }
 0x786   : > { %v7459_v53 = vunpack.i.h.bf16 %v7457_v1  ;;  %v7458_v48 = vunpack.i.l.bf16 %v7457_v1  ;;  %v7454_v5 = vunpack.i.h.bf16 %v7452_v41  ;;  %v7453_v36 = vunpack.i.l.bf16 %v7452_v41 }
 0x787   : > { %5635 = vmatprep.mubr.bf16.mxu0 %v5462_v28  ;;  %5652 = vmatmul.mubr.bf16.gmra.mxu1 %v5465_v22 }
 0x788   : > { %v5429_v8 = vsel %vm1297_vm6, %v5237_v18, %v7458_v48  ;;  %v5430_v61 = vsel %vm1297_vm6, %v5269_v12, %v7459_v53  ;;  %v5451_v40 = vsel %vm1297_vm6, %v5275_v27, %v7453_v36  ;;  %v5452_v37 = vsel %vm1297_vm6, %v5276_v31, %v7454_v5 }
 0x789   : > { %v7462_v20 = vpop.permute.xlu1 %7461  ;;  %v5461_v46 = vpack.c.bf16 %v5430_v61, %v5429_v8  ;;  %v5468_v35 = vpack.c.bf16 %v5452_v37, %v5451_v40 }
 0x78a   : > { %v7464_v13 = vunpack.i.h.bf16 %v7462_v20  ;;  %v7463_v51 = vunpack.i.l.bf16 %v7462_v20 }
 0x78b   : > { %5659 = vmatprep.mubr.bf16.mxu1 %v5468_v35 }
 0x78c   : > { %5636 = vmatmul.mubr.bf16.gmra.mxu0 %v5461_v46  ;;  %v5435_v11 = vsel %vm1297_vm6, %v5274_v21, %v7463_v51  ;;  %v5436_v26 = vsel %vm1297_vm6, %v5275_v27, %v7464_v13 }
 0x78d   : > { %v5467_v7 = vpack.c.bf16 %v5436_v26, %v5435_v11 }
 0x78f   : > { %5660 = vmatmul.mubr.bf16.gmra.mxu1 %v5467_v7 }
 0x82c   : > { %v6772_v49 = vpop.f32.mrf.mxu0 }
 0x82e   : > { %v6773_v39 = vpop.f32.mrf.mxu0 }
 0x82f   : > { %v6774_v29 = vadd.f32 %v6773_v39, %v6772_v49 }
 0x830   : > { %v6775_v38 = vpop.f32.mrf.mxu0 }
 0x831   : > { %v11100_v42 = vadd.f32 %v6774_v29, %v11097_v45 }
 0x832   : > { %v6776_v33 = vpop.f32.mrf.mxu0 }
 0x833   : > { %v6497_v2 = vmul.f32 -1.442695, %v11100_v42  ;;  %v6777_v44 = vadd.f32 %v6776_v33, %v6775_v38 }
 0x834   : > { %v6778_v3 = vpop.f32.mrf.mxu0 }
 0x835   : > { %8005 = vpow2.f32 %v6497_v2  ;;  %v11104_v17 = vadd.f32 %v6777_v44, %v11097_v45 }
 0x836   : > { %v6779_v43 = vpop.f32.mrf.mxu0 }
 0x837   : > { %v6498_v58 = vmul.f32 -1.442695, %v11104_v17  ;;  %v6780_v52 = vadd.f32 %v6779_v43, %v6778_v3 }
 0x838   : > { %v6781_v63 = vpop.f32.mrf.mxu0 }
 0x839   : > { %8007 = vpow2.f32 %v6498_v58  ;;  %v11108_v62 = vadd.f32 %v6780_v52, %v11097_v45 }
 0x83a   : > { %v6782_v10 = vpop.f32.mrf.mxu0 }
 0x83b   : > { %v6499_v34 = vmul.f32 -1.442695, %v11108_v62  ;;  %v6783_v55 = vadd.f32 %v6782_v10, %v6781_v63 }
 0x83c   : > { %v6784_v56 = vpop.f32.mrf.mxu0 }
 0x83d   : > { %8009 = vpow2.f32 %v6499_v34  ;;  %v11112_v15 = vadd.f32 %v6783_v55, %v11097_v45 }
 0x83e   : > { %v6785_v23 = vpop.f32.mrf.mxu0  ;;  %v6802_v0 = vpop.f32.mrf.mxu1 }
 0x83f   : > { %v6500_v50 = vmul.f32 -1.442695, %v11112_v15  ;;  %v6786_v21 = vadd.f32 %v6785_v23, %v6784_v56 }
 0x840   : > { %v6787_v57 = vpop.f32.mrf.mxu0  ;;  %v6803_v9 = vpop.f32.mrf.mxu1 }
 0x841   : > { %8011 = vpow2.f32 %v6500_v50  ;;  %v11116_v19 = vadd.f32 %v6786_v21, %v11097_v45  ;;  %v6804_v6 = vadd.f32 %v6803_v9, %v6802_v0 }
 0x842   : > { %v8006_v16 = vpop.eup %8005  ;;  %v6788_v24 = vpop.f32.mrf.mxu0 }
 0x843   : > { %v5716_v30 = vadd.f32 1.0, %v8006_v16  ;;  %v6501_v60 = vmul.f32 -1.442695, %v11116_v19  ;;  %v6789_v54 = vadd.f32 %v6788_v24, %v6787_v57  ;;  %v6805_v14 = vpop.f32.mrf.mxu1  ;;  %v11124_v4 = vadd.f32 %v6804_v6, %v11097_v45 }
 0x844   : > { %v6790_v1 = vpop.f32.mrf.mxu0 }
 0x845   : > { %8013 = vrcp.f32 %v5716_v30  ;;  %v11120_v47 = vadd.f32 %v6789_v54, %v11097_v45  ;;  %v6806_v32 = vpop.f32.mrf.mxu1  ;;  %v6507_v53 = vmul.f32 -1.442695, %v11124_v4 }
 0x846   : > { %v8008_v12 = vpop.eup %8007  ;;  %8015 = vpow2.f32 %v6501_v60  ;;  %v6807_v41 = vadd.f32 %v6806_v32, %v6805_v14  ;;  %v6791_v18 = vpop.f32.mrf.mxu0 }
 0x847   : > { %v5717_v59 = vadd.f32 1.0, %v8008_v12  ;;  %v6502_v25 = vmul.f32 -1.442695, %v11120_v47  ;;  %v6792_v48 = vadd.f32 %v6791_v18, %v6790_v1  ;;  %v6808_v27 = vpop.f32.mrf.mxu1 }
 0x848   : > { %v11128_v5 = vadd.f32 %v6807_v41, %v11097_v45  ;;  %v6793_v36 = vpop.f32.mrf.mxu0 }
 0x849   : > { %8017 = vrcp.f32 %v5717_v59  ;;  %v11131_v8 = vadd.f32 %v6792_v48, %v11097_v45  ;;  %v6809_v37 = vpop.f32.mrf.mxu1 }
 0x84a   : > { %v8010_v28 = vpop.eup %8009  ;;  %8019 = vpow2.f32 %v6502_v25  ;;  %v6794_v40 = vpop.f32.mrf.mxu0  ;;  %v6810_v35 = vadd.f32 %v6809_v37, %v6808_v27  ;;  %v6508_v13 = vmul.f32 -1.442695, %v11128_v5 }
 0x84b   : > { %v5718_v22 = vadd.f32 1.0, %v8010_v28  ;;  %v6503_v20 = vmul.f32 -1.442695, %v11131_v8  ;;  %v6795_v46 = vadd.f32 %v6794_v40, %v6793_v36  ;;  %v6811_v11 = vpop.f32.mrf.mxu1 }
 0x84c   : > { %v6796_v51 = vpop.f32.mrf.mxu0  ;;  %v11139_v39 = vadd.f32 %v6810_v35, %v11097_v45 }
 0x84d   : > { %8021 = vrcp.f32 %v5718_v22  ;;  %v11136_v7 = vadd.f32 %v6795_v46, %v11097_v45  ;;  %v6812_v38 = vpop.f32.mrf.mxu1 }
 0x84e   : > { %v8012_v31 = vpop.eup %8011  ;;  %8023 = vpow2.f32 %v6507_v53  ;;  %v6797_v29 = vpop.f32.mrf.mxu0  ;;  %v6813_v3 = vadd.f32 %v6812_v38, %v6811_v11  ;;  %v6509_v34 = vmul.f32 -1.442695, %v11139_v39 }
 0x84f   : > { %v5719_v61 = vadd.f32 1.0, %v8012_v31  ;;  %v6504_v2 = vmul.f32 -1.442695, %v11136_v7  ;;  %v6798_v44 = vadd.f32 %v6797_v29, %v6796_v51  ;;  %v6814_v58 = vpop.f32.mrf.mxu1 }
 0x850   : > { %v6799_v43 = vpop.f32.mrf.mxu0  ;;  %v11148_v55 = vadd.f32 %v6813_v3, %v11097_v45 }
 0x851   : > { %8025 = vrcp.f32 %v5719_v61  ;;  %v11144_v63 = vadd.f32 %v6798_v44, %v11097_v45  ;;  %v6815_v23 = vpop.f32.mrf.mxu1 }
 0x852   : > { %v8014_v26 = vpop.eup %8013  ;;  %8027 = vpow2.f32 %v6503_v20  ;;  %v6800_v56 = vpop.f32.mrf.mxu0  ;;  %v6816_v0 = vadd.f32 %v6815_v23, %v6814_v58  ;;  %v6510_v30 = vmul.f32 -1.442695, %v11148_v55 }
 0x853   : > { %v8016_v49 = vpop.eup %8015  ;;  %5780 = vrot.lane.b32.xlu0 %v8014_v26, %s8249_s26  ;;  %8029 = vpow2.f32 %v6508_v13  ;;  %v6505_v21 = vmul.f32 -1.442695, %v11144_v63  ;;  %v6801_v57 = vadd.f32 %v6800_v56, %v6799_v43  ;;  %v6817_v16 = vpop.f32.mrf.mxu1 }
 0x854   : > { %v5720_v33 = vadd.f32 1.0, %v8016_v49  ;;  %v11157_v54 = vadd.f32 %v6816_v0, %v11097_v45 }
 0x855   : > { %v11154_v60 = vadd.f32 %v6801_v57, %v11097_v45  ;;  %v6818_v9 = vpop.f32.mrf.mxu1 }
 0x856   : > { %v8018_v52 = vpop.eup %8017  ;;  %8031 = vrcp.f32 %v5720_v33  ;;  %v6819_v14 = vadd.f32 %v6818_v9, %v6817_v16  ;;  %v6511_v59 = vmul.f32 -1.442695, %v11157_v54 }
 0x857   : > { %v8020_v10 = vpop.eup %8019  ;;  %8033 = vpow2.f32 %v6504_v2  ;;  %5782 = vrot.lane.b32.xlu1 %v8018_v52, %s8249_s26  ;;  %v6506_v6 = vmul.f32 -1.442695, %v11154_v60 }
 0x858   : > { %v5721_v50 = vadd.f32 1.0, %v8020_v10  ;;  %v11163_v32 = vadd.f32 %v6819_v14, %v11097_v45 }
 0x85a   : > { %v8022_v24 = vpop.eup %8021  ;;  %8035 = vrcp.f32 %v5721_v50  ;;  %v6512_v28 = vmul.f32 -1.442695, %v11163_v32 }
 0x85b   : > { %8037 = vpow2.f32 %v6509_v34  ;;  %5784 = vrot.lane.b32.xlu0 %v8022_v24, %s8249_s26  ;;  %v8024_v12 = vpop.eup %8023 }
 0x85c   : > { %8039 = vpow2.f32 %v6505_v21  ;;  %v5726_v18 = vadd.f32 1.0, %v8024_v12 }
 0x85d   : > { %8041 = vpow2.f32 %v6510_v30 }
 0x85e   : > { %v8026_v25 = vpop.eup %8025  ;;  %8043 = vpow2.f32 %v6506_v6 }
 0x85f   : > { %v8028_v1 = vpop.eup %8027  ;;  %5786 = vrot.lane.b32.xlu1 %v8026_v25, %s8249_s26  ;;  %8045 = vpow2.f32 %v6511_v59 }
 0x860   : > { %v5722_v41 = vadd.f32 1.0, %v8028_v1  ;;  %v8030_v22 = vpop.eup %8029 }
 0x861   : > { %v5727_v27 = vadd.f32 1.0, %v8030_v22 }
 0x862   : > { %8047 = vrcp.f32 %v5722_v41 }
 0x863   : > { %v8032_v53 = vpop.eup %8031  ;;  %8049 = vpow2.f32 %v6512_v28 }
 0x864   : > { %v8034_v48 = vpop.eup %8033  ;;  %5788 = vrot.lane.b32.xlu0 %v8032_v53, %s8249_s26  ;;  %8051 = vrcp.f32 %v5726_v18 }
 0x865   : > { %v5723_v36 = vadd.f32 1.0, %v8034_v48 }
 0x867   : > { %v8036_v45 = vpop.eup %8035  ;;  %8053 = vrcp.f32 %v5723_v36 }
 0x868   : > { %v8038_v31 = vpop.eup %8037  ;;  %5790 = vrot.lane.b32.xlu1 %v8036_v45, %s8249_s26  ;;  %8055 = vrcp.f32 %v5727_v27 }
 0x869   : > { %v8040_v61 = vpop.eup %8039  ;;  %v5728_v46 = vadd.f32 1.0, %v8038_v31 }
 0x86a   : > { %v5724_v40 = vadd.f32 1.0, %v8040_v61  ;;  %v8042_v37 = vpop.eup %8041 }
 0x86b   : > { %v8044_v20 = vpop.eup %8043  ;;  %v5729_v11 = vadd.f32 1.0, %v8042_v37 }
 0x86c   : > { %8057 = vrcp.f32 %v5724_v40  ;;  %v8046_v35 = vpop.eup %8045  ;;  %v5725_v13 = vadd.f32 1.0, %v8044_v20 }
 0x86d   : > { %v5730_v49 = vadd.f32 1.0, %v8046_v35 }
 0x86e   : > { %8059 = vrcp.f32 %v5725_v13 }
 0x86f   : > { %v8048_v51 = vpop.eup %8047  ;;  %8061 = vrcp.f32 %v5728_v46 }
 0x870   : > { %v8050_v26 = vpop.eup %8049  ;;  %5792 = vrot.lane.b32.xlu0 %v8048_v51, %s8249_s26  ;;  %8063 = vrcp.f32 %v5729_v11 }
 0x871   : > { %v8052_v29 = vpop.eup %8051  ;;  %v5731_v38 = vadd.f32 1.0, %v8050_v26  ;;  %8065 = vrcp.f32 %v5730_v49 }
 0x873   : > { %8067 = vrcp.f32 %v5731_v38 }
 0x874   : > { %v8054_v33 = vpop.eup %8053  ;;  %5800 = vrot.lane.b32.xlu0 %v8052_v29, %s8249_s26 }
 0x875   : > { %5794 = vrot.lane.b32.xlu1 %v8054_v33, %s8249_s26  ;;  %v8056_v2 = vpop.eup %8055 }
 0x879   : > { %v8058_v44 = vpop.eup %8057  ;;  %5802 = vrot.lane.b32.xlu1 %v8056_v2, %s8249_s26 }
 0x87a   : > { %5796 = vrot.lane.b32.xlu0 %v8058_v44, %s8249_s26 }
 0x87b   : > { %v8060_v3 = vpop.eup %8059 }
 0x87c   : > { %v8062_v43 = vpop.eup %8061 }
 0x87d   : > { %5798 = vrot.lane.b32.xlu1 %v8060_v3, %s8249_s26  ;;  %v8064_v58 = vpop.eup %8063 }
 0x87e   : > { %5804 = vrot.lane.b32.xlu0 %v8062_v43, %s8249_s26 }
 0x87f   : > { %8134 = shalt.err (!%p8131_p10)
}
 0x880   : > { %s8135_s17 = scalar_lea.hbm %s11181_s2, 2048  ;;  %s8139_s12 = scalar_lea.hbm %s11437_s23, 4096 }
 0x881   : > { %p8136_p11 = scmp.ne.s32.totalorder %s11181_s2, %s8135_s17  ;;  %p8140_p0 = scmp.lt.s32.totalorder %s11181_s2, %s11437_s23 }
 0x882   : > { %p8141_p1 = scmp.lt.s32.totalorder %s8139_s12, %s8135_s17 }
 0x883   : > { %p8137_p12 = pnand %p8136_p11, %p8373_p3 }
 0x884   : > { %p8142_p2 = por %p8141_p1, %p8140_p0 }
 0x885   : > { %p8138_p13 = pneg %p8137_p12 }
 0x887   : > { %p8143_p4 = pnand %p8142_p2, %p8138_p13 }
 0x889   : > { %8146 = shalt.err (!%p8143_p4)
}
 0x88a   : > { %s8251_s13 = smov 128   ;;  %s8252_s30 = smov 8   ;;  %v8066_v52 = vpop.eup %8065  ;;  %5806 = vrot.lane.b32.xlu1 %v8064_v58, %s8249_s26  ;;  %v8105_v23 = vld [vmem:[%s8465_s21] sm:$0xff]  ;;  %v8106_v0 = vld [vmem:[%s8465_s21 + $0x8] sm:$0xff]  ;;  %v8111_v48 = vld [vmem:[%s8465_s21 + $0x30] sm:$0xff] }
 0x88b   : > { %6902 = dma.vmem_to_hbm [thread:$0]  (%p8373_p3), %s11185_s3, 2048, %s11181_s2, %s5893_s4, %s8251_s13, %s8251_s13, %s8252_s30   ;;  %v8068_v10 = vpop.eup %8067 }
 0x88c   : > { %5808 = vrot.lane.b32.xlu0 %v8066_v52, %s8249_s26  ;;  %v8109_v1 = vld [vmem:[%s8465_s21 + $0x20] sm:$0xff]  ;;  %v8110_v22 = vld [vmem:[%s8465_s21 + $0x28] sm:$0xff]  ;;  %v8112_v31 = vld [vmem:[%s8465_s21 + $0x50] sm:$0xff]  ;;  %s11438_s2 = sld [smem:[#allocation34_spill]]  ;;  %s5898_s4 = scalar_lea.sflag [#allocation7], %s11434_s27 }
 0x88d   : > { %v8113_v40 = vld [vmem:[%s8465_s21 + $0x38] sm:$0xff]  ;;  %v8115_v13 = vld [vmem:[%s8465_s21 + $0x40] sm:$0xff]  ;;  %v8118_v3 = vld [vmem:[%s8465_s21 + $0x68] sm:$0xff]  ;;  %s8253_s28 = smov [#allocation6]  }
 0x88e   : > { %5810 = vrot.lane.b32.xlu1 %v8068_v10, %s8249_s26  ;;  %v8117_v38 = vld [vmem:[%s8465_s21 + $0x60] sm:$0xff]  ;;  %v8119_v58 = vld [vmem:[%s8465_s21 + $0x70] sm:$0xff]  ;;  %s5929_s26 = sshll.u32 %s8465_s21, 4  ;;  %s8151_s15 = sshll.u32 %s8253_s28, 4  ;;  %s11286_s26 = int_to_ptr.vmem [resolvable:$true] %s5929_s26  ;;  %s8152_s15 = int_to_ptr.vmem [resolvable:$false] %s8151_s15 }
 0x88f   : > { %s8147_s0 = scalar_lea.vmem %s11286_s26, 2048  ;;  %s8153_s29 = scalar_lea.vmem %s8152_s15, 4096 }
 0x890   : > { %p8148_p5 = scmp.ne.s32.totalorder %s11286_s26, %s8147_s0  ;;  %p8154_p8 = scmp.lt.s32.totalorder %s11286_s26, %s8152_s15 }
 0x891   : > { %p8155_p10 = scmp.lt.s32.totalorder %s8153_s29, %s8147_s0 }
 0x892   : > { %s11284_s3 = scalar_lea.hbm %s11438_s2, %s6529_s16  ;;  %p8149_p6 = pnand %p8148_p5, %p8373_p3 }
 0x893   : > { %p8156_p11 = por %p8155_p10, %p8154_p8 }
 0x894   : > { %p8150_p7 = pneg %p8149_p6 }
 0x896   : > { %p8157_p12 = pnand %p8156_p11, %p8150_p7 }
 0x8c5   : > { %v5781_v34 = vpop.permute.xlu0 %5780 }
 0x8c6   : > { %v5828_v56 = vmul.f32 %v5781_v34, %v11100_v42  ;;  %v8107_v42 = vld [vmem:[%s8465_s21 + $0x10] sm:$0xff] }
 0x8c8   : > { %v5844_v50 = vadd.f32 %v8105_v23, %v5828_v56 }
 0x8c9   : > { %v5783_v21 = vpop.permute.xlu1 %5782 }
 0x8ca   : > { %5876 = vst.msk [vmem:[%s8465_s21] sm:$0xff] %vm1279_vm5, %v5844_v50  ;;  %v5829_v57 = vmul.f32 %v5783_v21, %v11104_v17  ;;  %v8108_v17 = vld [vmem:[%s8465_s21 + $0x18] sm:$0xff] }
 0x8cc   : > { %v5845_v16 = vadd.f32 %v8106_v0, %v5829_v57 }
 0x8cd   : > { %v5785_v24 = vpop.permute.xlu0 %5784 }
 0x8ce   : > { %5877 = vst.msk [vmem:[%s8465_s21 + $0x8] sm:$0xff] %vm1279_vm5, %v5845_v16  ;;  %v5830_v30 = vmul.f32 %v5785_v24, %v11108_v62 }
 0x8d0   : > { %v5846_v9 = vadd.f32 %v8107_v42, %v5830_v30 }
 0x8d1   : > { %v5787_v6 = vpop.permute.xlu1 %5786 }
 0x8d2   : > { %5878 = vst.msk [vmem:[%s8465_s21 + $0x10] sm:$0xff] %vm1279_vm5, %v5846_v9  ;;  %v5831_v14 = vmul.f32 %v5787_v6, %v11112_v15 }
 0x8d4   : > { %v5847_v12 = vadd.f32 %v8108_v17, %v5831_v14 }
 0x8d6   : > { %5879 = vst.msk [vmem:[%s8465_s21 + $0x18] sm:$0xff] %vm1279_vm5, %v5847_v12  ;;  %v5789_v59 = vpop.permute.xlu0 %5788 }
 0x8d7   : > { %v5832_v25 = vmul.f32 %v5789_v59, %v11116_v19 }
 0x8d9   : > { %v5848_v62 = vadd.f32 %v8109_v1, %v5832_v25 }
 0x8da   : > { %v5791_v41 = vpop.permute.xlu1 %5790 }
 0x8db   : > { %5880 = vst.msk [vmem:[%s8465_s21 + $0x20] sm:$0xff] %vm1279_vm5, %v5848_v62  ;;  %v5833_v28 = vmul.f32 %v5791_v41, %v11120_v47 }
 0x8dd   : > { %v5849_v15 = vadd.f32 %v8110_v22, %v5833_v28 }
 0x8df   : > { %5881 = vst.msk [vmem:[%s8465_s21 + $0x28] sm:$0xff] %vm1279_vm5, %v5849_v15 }
 0x8e2   : > { %v5793_v18 = vpop.permute.xlu0 %5792 }
 0x8e3   : > { %v5834_v53 = vmul.f32 %v5793_v18, %v11131_v8 }
 0x8e5   : > { %v5850_v19 = vadd.f32 %v8111_v48, %v5834_v53 }
 0x8e6   : > { %v5801_v36 = vpop.permute.xlu0 %5800 }
 0x8e7   : > { %5882 = vst.msk [vmem:[%s8465_s21 + $0x30] sm:$0xff] %vm1279_vm5, %v5850_v19  ;;  %v5795_v45 = vpop.permute.xlu1 %5794  ;;  %v5838_v27 = vmul.f32 %v5801_v36, %v11124_v4 }
 0x8e8   : > { %v5835_v47 = vmul.f32 %v5795_v45, %v11136_v7  ;;  %v8114_v7 = vld [vmem:[%s8465_s21 + $0x58] sm:$0xff] }
 0x8e9   : > { %v5854_v61 = vadd.f32 %v8112_v31, %v5838_v27 }
 0x8ea   : > { %v5851_v37 = vadd.f32 %v8113_v40, %v5835_v47 }
 0x8eb   : > { %5886 = vst.msk [vmem:[%s8465_s21 + $0x50] sm:$0xff] %vm1279_vm5, %v5854_v61  ;;  %v5803_v8 = vpop.permute.xlu1 %5802 }
 0x8ec   : > { %5883 = vst.msk [vmem:[%s8465_s21 + $0x38] sm:$0xff] %vm1279_vm5, %v5851_v37  ;;  %v5839_v20 = vmul.f32 %v5803_v8, %v11128_v5  ;;  %v5797_v46 = vpop.permute.xlu0 %5796 }
 0x8ed   : > { %v5836_v4 = vmul.f32 %v5797_v46, %v11144_v63  ;;  %v8116_v63 = vld [vmem:[%s8465_s21 + $0x48] sm:$0xff] }
 0x8ee   : > { %v5855_v35 = vadd.f32 %v8114_v7, %v5839_v20 }
 0x8ef   : > { %v5852_v51 = vadd.f32 %v8115_v13, %v5836_v4  ;;  %v5799_v11 = vpop.permute.xlu1 %5798 }
 0x8f0   : > { %5887 = vst.msk [vmem:[%s8465_s21 + $0x58] sm:$0xff] %vm1279_vm5, %v5855_v35  ;;  %v5837_v26 = vmul.f32 %v5799_v11, %v11154_v60  ;;  %v5805_v49 = vpop.permute.xlu0 %5804 }
 0x8f1   : > { %5884 = vst.msk [vmem:[%s8465_s21 + $0x40] sm:$0xff] %vm1279_vm5, %v5852_v51  ;;  %v5840_v5 = vmul.f32 %v5805_v49, %v11139_v39 }
 0x8f2   : > { %v5853_v29 = vadd.f32 %v8116_v63, %v5837_v26 }
 0x8f3   : > { %v5856_v33 = vadd.f32 %v8117_v38, %v5840_v5 }
 0x8f4   : > { %5885 = vst.msk [vmem:[%s8465_s21 + $0x48] sm:$0xff] %vm1279_vm5, %v5853_v29 }
 0x8f5   : > { %5888 = vst.msk [vmem:[%s8465_s21 + $0x60] sm:$0xff] %vm1279_vm5, %v5856_v33 }
 0x8fc   : > { %v5807_v2 = vpop.permute.xlu1 %5806 }
 0x8fd   : > { %v5841_v60 = vmul.f32 %v5807_v2, %v11148_v55  ;;  %v8120_v55 = vld [vmem:[%s8465_s21 + $0x78] sm:$0xff] }
 0x8fe   : > { %v5809_v44 = vpop.permute.xlu0 %5808 }
 0x8ff   : > { %v5842_v39 = vmul.f32 %v5809_v44, %v11157_v54  ;;  %v5857_v43 = vadd.f32 %v8118_v3, %v5841_v60 }
 0x900   : > { %v5811_v10 = vpop.permute.xlu1 %5810 }
 0x901   : > { %v5858_v52 = vadd.f32 %v8119_v58, %v5842_v39  ;;  %5889 = vst.msk [vmem:[%s8465_s21 + $0x68] sm:$0xff] %vm1279_vm5, %v5857_v43  ;;  %v5843_v34 = vmul.f32 %v5811_v10, %v11163_v32 }
 0x903   : > { %5890 = vst.msk [vmem:[%s8465_s21 + $0x70] sm:$0xff] %vm1279_vm5, %v5858_v52  ;;  %v5859_v56 = vadd.f32 %v8120_v55, %v5843_v34 }
 0x905   : > { %5891 = vst.msk [vmem:[%s8465_s21 + $0x78] sm:$0xff] %vm1279_vm5, %v5859_v56 }
 0x906   : > { %8160 = shalt.err (!%p8157_p12)
}
 0x907   : > { %s8161_s21 = scalar_lea.hbm %s11284_s3, 2048  ;;  %s8165_s18 = scalar_lea.hbm %s11438_s2, 4096 }
 0x908   : > { %p8162_p13 = scmp.ne.s32.totalorder %s11284_s3, %s8161_s21  ;;  %p8166_p2 = scmp.lt.s32.totalorder %s11284_s3, %s11438_s2 }
 0x909   : > { %p8167_p4 = scmp.lt.s32.totalorder %s8165_s18, %s8161_s21 }
 0x90a   : > { %p8163_p0 = pnand %p8162_p13, %p8373_p3 }
 0x90b   : > { %p8168_p5 = por %p8167_p4, %p8166_p2 }
 0x90c   : > { %p8164_p1 = pneg %p8163_p0 }
 0x90e   : > { %p8169_p6 = pnand %p8168_p5, %p8164_p1 }
 0x910   : > { %8172 = shalt.err (!%p8169_p6)
}
 0x911   : > { %6903 = dma.vmem_to_hbm [thread:$0]  (%p8373_p3), %s11286_s26, 2048, %s11284_s3, %s5898_s4, %s8251_s13, %s8251_s13, %s8252_s30  }
 0x912 PF: > { %s11439_s19 = sld [smem:[#allocation16_spill]] }
 0x913   : > { %s11440_s12 = sld [smem:[#allocation10_spill]] }
 0x918   : > { %p6913_p7 = scmp.ge.s32.totalorder %s11439_s19, 2 }
 0x919   : > { %s5944_s1 = sand.u32 1, %s11440_s12  }
 0x91a   : > { %p6907_p8 = pnand %p6913_p7, %p8383_p9  ;;  %s5945_s25 = scalar_lea.sflag [#allocation5], %s5944_s1 }
 0x91c   : > { %p6908_p10 = pneg %p6907_p8 }
 0x91e   : > { %8206 = dma.done.wait (%p6908_p10), %s5945_s25, 2048  }
 0x91f   : > { %8208 = vsyncadd (%p6908_p10), %s5945_s25, 4294965248  ;;  %s5954_s14 = scalar_lea.sflag [#allocation7], %s5944_s1 }
 0x920   : > { %8210 = dma.done.wait (%p6908_p10), %s5954_s14, 2048  }
 0x921   : > { %8212 = vsyncadd (%p6908_p10), %s5954_s14, 4294965248  ;;  %s30_s15 = sadd.s32 1, %s11439_s19   ;;  %s11442_s25 = sld [smem:[#allocation11_spill]] }
 0x922   : > { %p27_p11 = scmp.ge.s32.totalorder %s30_s15, 6   ;;  %s11443_s26 = sld [smem:[#allocation12_spill]] }
 0x923   : > { %s11444_s27 = sld [smem:[#allocation21_spill]] }
 0x924   : > { %s11445_s28 = sld [smem:[#allocation14_spill]]  ;;  %29 = sbr.rel (!%p27_p11) target bundleno = 15 (0xf), region = 159 }
 0x925   : > { %s11446_s29 = sld [smem:[#allocation15_spill]] }
 0x926   : > { %s11447_s30 = sld [smem:[#allocation17_spill]] }
 0x927   : > { %s11448_s14 = sld [smem:[#allocation19_spill]] }
 0x929   :  { %5959 = vsyncpa [#allocation5], 1 }
 0x92a   :  { %5961 = vsyncpa [#allocation5 + $0x1], 1 }
 0x92b   :  { %5962 = vsyncpa [#allocation7], 1 }
 0x92c   :  { %5964 = vsyncpa [#allocation7 + $0x1], 1 }

</bundles_post_ra>
